<compile_context>
chip_gen: v6e
topology: v6e:2x2x1
jax: 0.10.0
libtpu: 0.0.40
codegen_flags: <defaults>
</compile_context>

<pallas_src>
import functools

import jax
import jax.numpy as jnp
from jax.experimental import pallas as pl
from jax.experimental.pallas import tpu as pltpu

BN_EPS = 1e-5
SA1_FEAT = 32 + 64  # actual (unpadded) SA1 MSG output channels


def _round_up(x, m):
    return ((x + m - 1) // m) * m


# ----------------------------- Pallas kernels -----------------------------

def _mlp_branch_maxpool(x_ref, w1_ref, b1_ref, w2_ref, b2_ref, w3_ref, b3_ref,
                        tm, s):
    """3-layer shared MLP (1x1 conv + folded eval-BN + ReLU) on a (tm*s, c0)
    bf16 block, then max over the s neighbors. Returns (tm, c3) f32."""
    x = x_ref[...]                                                       # bf16
    h = jnp.dot(x, w1_ref[...], preferred_element_type=jnp.float32) + b1_ref[...]
    h = jnp.maximum(h, 0.0).astype(jnp.bfloat16)                         # cast only dot operands
    h = jnp.dot(h, w2_ref[...], preferred_element_type=jnp.float32) + b2_ref[...]
    h = jnp.maximum(h, 0.0).astype(jnp.bfloat16)
    h = jnp.dot(h, w3_ref[...], preferred_element_type=jnp.float32) + b3_ref[...]
    h = jnp.maximum(h, 0.0)                                              # keep f32 for max/store
    c3 = h.shape[-1]
    return jnp.max(h.reshape(tm, s, c3), axis=1)                         # (tm, c3) f32


def sa_msg_kernel(x1_ref, x2_ref,
                  w11_ref, b11_ref, w12_ref, b12_ref, w13_ref, b13_ref,
                  w21_ref, b21_ref, w22_ref, b22_ref, w23_ref, b23_ref,
                  o_ref, *, tm, s1, s2):
    """Fused 2-scale MSG SA layer: both shared MLPs + max-pool, lane-dense concat."""
    f1 = _mlp_branch_maxpool(x1_ref, w11_ref, b11_ref, w12_ref, b12_ref,
                             w13_ref, b13_ref, tm, s1)
    f2 = _mlp_branch_maxpool(x2_ref, w21_ref, b21_ref, w22_ref, b22_ref,
                             w23_ref, b23_ref, tm, s2)
    o_ref[...] = jnp.concatenate([f1, f2], axis=-1)


def sa_msg_linear_kernel(x1_ref, x2_ref,
                         w11_ref, b11_ref, w12_ref, b12_ref, w13_ref, b13_ref,
                         w21_ref, b21_ref, w22_ref, b22_ref, w23_ref, b23_ref,
                         lw_ref, lb_ref,
                         o_ref, *, tm, s1, s2):
    """Same as sa_msg_kernel, plus the final Linear fused as an epilogue."""
    f1 = _mlp_branch_maxpool(x1_ref, w11_ref, b11_ref, w12_ref, b12_ref,
                             w13_ref, b13_ref, tm, s1)
    f2 = _mlp_branch_maxpool(x2_ref, w21_ref, b21_ref, w22_ref, b22_ref,
                             w23_ref, b23_ref, tm, s2)
    feat = jnp.concatenate([f1, f2], axis=-1).astype(jnp.bfloat16)       # (tm, 256)
    o_ref[...] = (jnp.dot(feat, lw_ref[...], preferred_element_type=jnp.float32)
                  + lb_ref[...])


# ----------------------------- Pallas wrappers -----------------------------

def _pick_tm(M, tm_target):
    """Centers per grid step: big tiles (amortize ~0.35us/step + reach HBM BW),
    but keep grid length >= 2 so both v7x TensorCores get work, and tm a
    multiple of 16 so tm*nsample is 256-aligned for the MXU M dimension."""
    tm = min(tm_target, max(8, M // 2))
    tm = max(8, (tm // 16) * 16) if tm >= 16 else 8
    return tm


def sa_msg_pallas(g1, g2, mlp1, mlp2, lin=None, *, tm_target=128,
                  vmem_limit_bytes=64 * 1024 * 1024):
    """Fused multi-scale-grouping SA layer (one pallas_call for both scales).

    g1: (M, S1, C0) f32 grouped points for scale 1, g2: (M, S2, C0) for scale 2.
    mlp*: [(w, b)] * 3 with w in bf16 (eval-BN folded), b in f32 shape (1, c).
    lin:  optional (w, b) Linear fused as epilogue on concatenated pooled feats.
    Returns (M, C_out) f32 with C_out a multiple of 128 (caller slices).
    """
    M, S1, C01 = g1.shape
    _, S2, C02 = g2.shape
    tm = _pick_tm(M, tm_target)
    M_pad = pl.cdiv(M, tm) * tm

    # Flatten to 2D in the wrapper (free, row-major) and cast to bf16: halves the
    # HBM->VMEM DMA for the dominant input and avoids in-kernel relayout.
    x1 = g1.astype(jnp.bfloat16).reshape(M * S1, C01)
    x2 = g2.astype(jnp.bfloat16).reshape(M * S2, C02)
    if M_pad != M:  # remainder handling: zero-pad centers, slice output below
        x1 = jnp.pad(x1, ((0, (M_pad - M) * S1), (0, 0)))
        x2 = jnp.pad(x2, ((0, (M_pad - M) * S2), (0, 0)))

    (w11, b11), (w12, b12), (w13, b13) = mlp1
    (w21, b21), (w22, b22), (w23, b23) = mlp2
    weight_args = [w11, b11, w12, b12, w13, b13, w21, b21, w22, b22, w23, b23]

    if lin is None:
        c_out = w13.shape[1] + w23.shape[1]          # lane-dense (padded) concat
        kernel = functools.partial(sa_msg_kernel, tm=tm, s1=S1, s2=S2)
    else:
        lw, lb = lin
        c_out = lw.shape[1]                          # padded to 128 multiple
        weight_args = weight_args + [lw, lb]
        kernel = functools.partial(sa_msg_linear_kernel, tm=tm, s1=S1, s2=S2)

    def full_spec(a):
        return pl.BlockSpec(a.shape, lambda i: (0, 0))

    out = pl.pallas_call(
        kernel,
        out_shape=jax.ShapeDtypeStruct((M_pad, c_out), jnp.float32),
        grid=(M_pad // tm,),
        in_specs=[pl.BlockSpec((tm * S1, C01), lambda i: (i, 0)),
                  pl.BlockSpec((tm * S2, C02), lambda i: (i, 0))]
                 + [full_spec(a) for a in weight_args],
        out_specs=pl.BlockSpec((tm, c_out), lambda i: (i, 0)),
        compiler_params=pltpu.CompilerParams(
            dimension_semantics=("parallel",),
            vmem_limit_bytes=vmem_limit_bytes),
    )(x1, x2, *weight_args)
    return out[:M] if M_pad != M else out


# --------------------- glue (plain JAX; data-dependent) ---------------------
# TODO(synk): furthest-point-sampling and ball-query are data-dependent
# gather/argsort ops kept in plain JAX (no clean rectangular-tile Pallas form);
# at realistic N/npoint they dominate and should be kernelized (scalar-prefetch
# gather) or the sort replaced with a masked cumulative-count selection.

def furthest_point_sample(xyz, npoint):
    """xyz: (B, N, 3) -> (B, npoint) int32, first centroid = index 0 (matches CUDA op)."""
    B, N, _ = xyz.shape
    idxs0 = jnp.zeros((B, npoint), dtype=jnp.int32)
    dist0 = jnp.full((B, N), 1e10, dtype=jnp.float32)
    last0 = jnp.zeros((B,), dtype=jnp.int32)

    def body(i, state):
        dist, idxs, last = state
        last_pt = jnp.take_along_axis(xyz, last[:, None, None], axis=1)  # (B,1,3)
        d = jnp.sum((xyz - last_pt) ** 2, axis=-1)                       # (B,N)
        dist = jnp.minimum(dist, d)
        nxt = jnp.argmax(dist, axis=-1).astype(jnp.int32)
        idxs = idxs.at[:, i].set(nxt)
        return dist, idxs, nxt

    _, idxs, _ = jax.lax.fori_loop(1, npoint, body, (dist0, idxs0, last0))
    return idxs


def ball_query(radius, nsample, xyz, new_xyz):
    """xyz: (B,N,3), new_xyz: (B,M,3) -> (B,M,nsample) int32.

    CUDA ball_query semantics: first `nsample` in-radius point indices in
    increasing order; slots beyond the count are filled with the first hit;
    if there is no hit at all, slots stay at index 0.
    """
    B, N, _ = xyz.shape
    d2 = jnp.sum((new_xyz[:, :, None, :] - xyz[:, None, :, :]) ** 2, axis=-1)
    mask = d2 < (radius ** 2)
    ar = jnp.arange(N, dtype=jnp.int32)
    score = jnp.where(mask, ar, ar + N)
    ssort = jnp.sort(score, axis=-1)[:, :, :nsample]
    first = ssort[:, :, :1]
    idx = jnp.where(ssort < N, ssort, first)
    idx = jnp.where(first < N, idx, 0)   # no point in radius -> index 0
    return idx.astype(jnp.int32)


def group_with_xyz(xyz, features, new_xyz, idx):
    """Gather neighbors and build (B, M, S, 3 + C) grouped tensor (relative-xyz first)."""
    B, M, S = idx.shape
    idx_flat = idx.reshape(B, M * S)
    g_xyz = jnp.take_along_axis(xyz, idx_flat[:, :, None], axis=1).reshape(B, M, S, 3)
    g_xyz = g_xyz - new_xyz[:, :, None, :]
    C = features.shape[-1]
    g_feat = jnp.take_along_axis(features, idx_flat[:, :, None], axis=1).reshape(B, M, S, C)
    return jnp.concatenate([g_xyz, g_feat], axis=-1)


# ----------------------------- model + params -----------------------------

def make_shared_mlp(key, dims, pad_last_to=None):
    """dims = [c0, c1, c2, c3]. Returns [(w bf16, b f32)]*3 with eval-mode BN
    folded in; optionally zero-pads the last layer's output columns so the
    fused kernel's concatenated output is lane-dense (multiple of 128)."""
    bn_scale = 1.0 / jnp.sqrt(1.0 + BN_EPS)  # gamma / sqrt(var + eps), defaults
    layers = []
    for i in range(len(dims) - 1):
        key, k = jax.random.split(key)
        c_i, c_o = dims[i], dims[i + 1]
        w = jax.random.normal(k, (c_i, c_o), jnp.float32) * 0.1 * bn_scale
        b = jnp.zeros((1, c_o), jnp.float32)  # beta - mean*scale = 0
        if i == len(dims) - 2 and pad_last_to is not None and pad_last_to > c_o:
            w = jnp.pad(w, ((0, 0), (0, pad_last_to - c_o)))
            b = jnp.pad(b, ((0, 0), (0, pad_last_to - c_o)))
        layers.append((w.astype(jnp.bfloat16), b))
    return key, layers


def init_params(key, c_in, c_out):
    # use_xyz=True => +3 channels on the first layer of every shared MLP.
    sa1_dims = [[c_in + 3, 16, 16, 32], [c_in + 3, 32, 32, 64]]
    c_mid = SA1_FEAT                                   # 96
    sa2_dims = [[c_mid + 3, 64, 64, 128], [c_mid + 3, 64, 96, 128]]
    c_final = 128 + 128
    lin_cout = c_out - 3

    # Pad SA1's 2nd-scale last layer 64 -> 96 so the fused concat output is 128
    # lanes (32 + 96); the wrapper slices back to 96 real channels.
    key, sa1_a = make_shared_mlp(key, sa1_dims[0])
    key, sa1_b = make_shared_mlp(key, sa1_dims[1], pad_last_to=96)
    key, sa2_a = make_shared_mlp(key, sa2_dims[0])
    key, sa2_b = make_shared_mlp(key, sa2_dims[1])

    key, kw, kb = jax.random.split(key, 3)
    lin_w = jax.random.normal(kw, (c_final, lin_cout), jnp.float32) * 0.05
    lin_b = jax.random.normal(kb, (1, lin_cout), jnp.float32) * 0.01
    pad = _round_up(lin_cout, 128) - lin_cout          # 125 -> 128
    lin_w = jnp.pad(lin_w, ((0, 0), (0, pad))).astype(jnp.bfloat16)
    lin_b = jnp.pad(lin_b, ((0, 0), (0, pad)))
    return {"sa1": (sa1_a, sa1_b), "sa2": (sa2_a, sa2_b),
            "linear_w": lin_w, "linear_b": lin_b}


def pointnet2_encoder_forward(pc, params, *, npoint1, num_keypoints, c_out,
                              tm_target=128):
    """pc: (B, N, 3 + c_in) -> (B, num_keypoints, c_out)."""
    B, N, _ = pc.shape
    xyz = pc[..., :3]
    feats = pc[..., 3:]
    lin_cout = c_out - 3

    # ---- SA1: MSG with radii [0.05, 0.1], nsamples [16, 32] ----
    idx1 = furthest_point_sample(xyz, npoint1)
    new_xyz1 = jnp.take_along_axis(xyz, idx1[:, :, None], axis=1)        # (B, np1, 3)
    g1a = group_with_xyz(xyz, feats, new_xyz1, ball_query(0.05, 16, xyz, new_xyz1))
    g1b = group_with_xyz(xyz, feats, new_xyz1, ball_query(0.1, 32, xyz, new_xyz1))
    M1 = B * npoint1
    sa1_out = sa_msg_pallas(g1a.reshape(M1, 16, -1), g1b.reshape(M1, 32, -1),
                            params["sa1"][0], params["sa1"][1],
                            tm_target=tm_target)                          # (M1, 128)
    feats1 = sa1_out[:, :SA1_FEAT].reshape(B, npoint1, SA1_FEAT)          # (B, np1, 96)

    # ---- SA2: MSG with radii [0.1, 0.2], nsamples [16, 32] + fused Linear ----
    idx2 = furthest_point_sample(new_xyz1, num_keypoints)
    new_xyz2 = jnp.take_along_axis(new_xyz1, idx2[:, :, None], axis=1)    # (B, K, 3)
    g2a = group_with_xyz(new_xyz1, feats1, new_xyz2,
                         ball_query(0.1, 16, new_xyz1, new_xyz2))
    g2b = group_with_xyz(new_xyz1, feats1, new_xyz2,
                         ball_query(0.2, 32, new_xyz1, new_xyz2))
    M2 = B * num_keypoints
    lin_out = sa_msg_pallas(g2a.reshape(M2, 16, -1), g2b.reshape(M2, 32, -1),
                            params["sa2"][0], params["sa2"][1],
                            lin=(params["linear_w"], params["linear_b"]),
                            tm_target=tm_target)                          # (M2, 128)
    lin_out = lin_out[:, :lin_cout].reshape(B, num_keypoints, lin_cout)
    return jnp.concatenate([new_xyz2, lin_out], axis=-1)                  # (B, K, c_out)


# ----------------------------------- main -----------------------------------

if __name__ == "__main__":
    # Small, structure-preserving configuration (npoint values scaled down).
    B, N, C_IN, C_OUT = 2, 128, 6, 128
    NPOINT1, NUM_KEYPOINTS = 32, 16

    key = jax.random.PRNGKey(0)
    key, k_pc = jax.random.split(key)
    # points in a small cube so the ball-query radii capture a few neighbors
    xyz = jax.random.uniform(k_pc, (B, N, 3), jnp.float32) * 0.5
    key, k_f = jax.random.split(key)
    feats = jax.random.normal(k_f, (B, N, C_IN), jnp.float32)
    pointcloud = jnp.concatenate([xyz, feats], axis=-1)                   # (B, N, 9)

    params = init_params(jax.random.PRNGKey(0), C_IN, C_OUT)

    fwd = jax.jit(functools.partial(
        pointnet2_encoder_forward,
        npoint1=NPOINT1, num_keypoints=NUM_KEYPOINTS, c_out=C_OUT, tm_target=128))

    out = fwd(pointcloud, params)
    out = jax.block_until_ready(out)

    assert out.shape == (B, NUM_KEYPOINTS, C_OUT), out.shape
    assert out.dtype == jnp.float32
    assert bool(jnp.all(jnp.isfinite(out)))
    print("KERNEL_OK")
</pallas_src>

<mosaic_0001>
module attributes {stable_mosaic.version = 11 : i64} {
  func.func @sa_msg_kernel(%arg0: i32, %arg1: memref<512x9xbf16, #tpu.memory_space<vmem>>, %arg2: memref<1024x9xbf16, #tpu.memory_space<vmem>>, %arg3: memref<9x16xbf16, #tpu.memory_space<vmem>>, %arg4: memref<1x16xf32, #tpu.memory_space<vmem>>, %arg5: memref<16x16xbf16, #tpu.memory_space<vmem>>, %arg6: memref<1x16xf32, #tpu.memory_space<vmem>>, %arg7: memref<16x32xbf16, #tpu.memory_space<vmem>>, %arg8: memref<1x32xf32, #tpu.memory_space<vmem>>, %arg9: memref<9x32xbf16, #tpu.memory_space<vmem>>, %arg10: memref<1x32xf32, #tpu.memory_space<vmem>>, %arg11: memref<32x32xbf16, #tpu.memory_space<vmem>>, %arg12: memref<1x32xf32, #tpu.memory_space<vmem>>, %arg13: memref<32x96xbf16, #tpu.memory_space<vmem>>, %arg14: memref<1x96xf32, #tpu.memory_space<vmem>>, %arg15: memref<32x128xf32, #tpu.memory_space<vmem>>) attributes {dimension_semantics = [#tpu.dimension_semantics<parallel>], iteration_bounds = array<i64: 2>, scalar_prefetch = 0 : i64, scratch_operands = 0 : i64, tpu.core_type = #tpu.core_type<tc>, window_params = [{transform_indices = @transform_0, window_bounds = array<i64: 512, 9>}, {transform_indices = @transform_1, window_bounds = array<i64: 1024, 9>}, {pipeline_mode = #tpu.pipeline_mode<synchronous>, transform_indices = @transform_2, window_bounds = array<i64: 9, 16>}, {pipeline_mode = #tpu.pipeline_mode<synchronous>, transform_indices = @transform_3, window_bounds = array<i64: 1, 16>}, {pipeline_mode = #tpu.pipeline_mode<synchronous>, transform_indices = @transform_4, window_bounds = array<i64: 16, 16>}, {pipeline_mode = #tpu.pipeline_mode<synchronous>, transform_indices = @transform_5, window_bounds = array<i64: 1, 16>}, {pipeline_mode = #tpu.pipeline_mode<synchronous>, transform_indices = @transform_6, window_bounds = array<i64: 16, 32>}, {pipeline_mode = #tpu.pipeline_mode<synchronous>, transform_indices = @transform_7, window_bounds = array<i64: 1, 32>}, {pipeline_mode = #tpu.pipeline_mode<synchronous>, transform_indices = @transform_8, window_bounds = array<i64: 9, 32>}, {pipeline_mode = #tpu.pipeline_mode<synchronous>, transform_indices = @transform_9, window_bounds = array<i64: 1, 32>}, {pipeline_mode = #tpu.pipeline_mode<synchronous>, transform_indices = @transform_10, window_bounds = array<i64: 32, 32>}, {pipeline_mode = #tpu.pipeline_mode<synchronous>, transform_indices = @transform_11, window_bounds = array<i64: 1, 32>}, {pipeline_mode = #tpu.pipeline_mode<synchronous>, transform_indices = @transform_12, window_bounds = array<i64: 32, 96>}, {pipeline_mode = #tpu.pipeline_mode<synchronous>, transform_indices = @transform_13, window_bounds = array<i64: 1, 96>}, {transform_indices = @transform_14, window_bounds = array<i64: 32, 128>}]} {
    %c0 = arith.constant 0 : index
    %c0_0 = arith.constant 0 : index
    %0 = vector.load %arg1[%c0, %c0_0] : memref<512x9xbf16, #tpu.memory_space<vmem>>, vector<512x9xbf16>
    %c0_1 = arith.constant 0 : index
    %c0_2 = arith.constant 0 : index
    %1 = vector.load %arg3[%c0_1, %c0_2] : memref<9x16xbf16, #tpu.memory_space<vmem>>, vector<9x16xbf16>
    %cst = arith.constant dense<0.000000e+00> : vector<512x16xf32>
    %2 = tpu.matmul %0, %1, %cst {dimension_numbers = #tpu.dot_dimension_numbers<[1], [0], [0], [1], [0, 0, 1, 1], [], []>} : vector<512x9xbf16>, vector<9x16xbf16>, vector<512x16xf32> -> vector<512x16xf32>
    %c0_3 = arith.constant 0 : index
    %c0_4 = arith.constant 0 : index
    %3 = vector.load %arg4[%c0_3, %c0_4] : memref<1x16xf32, #tpu.memory_space<vmem>>, vector<1x16xf32>
    %4 = vector.broadcast %3 : vector<1x16xf32> to vector<512x16xf32>
    %5 = arith.addf %2, %4 : vector<512x16xf32>
    %cst_5 = arith.constant 0.000000e+00 : f32
    %6 = vector.broadcast %cst_5 : f32 to vector<512x16xf32>
    %7 = arith.maximumf %5, %6 : vector<512x16xf32>
    %8 = arith.truncf %7 : vector<512x16xf32> to vector<512x16xbf16>
    %c0_6 = arith.constant 0 : index
    %c0_7 = arith.constant 0 : index
    %9 = vector.load %arg5[%c0_6, %c0_7] : memref<16x16xbf16, #tpu.memory_space<vmem>>, vector<16x16xbf16>
    %cst_8 = arith.constant dense<0.000000e+00> : vector<512x16xf32>
    %10 = tpu.matmul %8, %9, %cst_8 {dimension_numbers = #tpu.dot_dimension_numbers<[1], [0], [0], [1], [0, 0, 1, 1], [], []>} : vector<512x16xbf16>, vector<16x16xbf16>, vector<512x16xf32> -> vector<512x16xf32>
    %c0_9 = arith.constant 0 : index
    %c0_10 = arith.constant 0 : index
    %11 = vector.load %arg6[%c0_9, %c0_10] : memref<1x16xf32, #tpu.memory_space<vmem>>, vector<1x16xf32>
    %12 = vector.broadcast %11 : vector<1x16xf32> to vector<512x16xf32>
    %13 = arith.addf %10, %12 : vector<512x16xf32>
    %cst_11 = arith.constant 0.000000e+00 : f32
    %14 = vector.broadcast %cst_11 : f32 to vector<512x16xf32>
    %15 = arith.maximumf %13, %14 : vector<512x16xf32>
    %16 = arith.truncf %15 : vector<512x16xf32> to vector<512x16xbf16>
    %c0_12 = arith.constant 0 : index
    %c0_13 = arith.constant 0 : index
    %17 = vector.load %arg7[%c0_12, %c0_13] : memref<16x32xbf16, #tpu.memory_space<vmem>>, vector<16x32xbf16>
    %cst_14 = arith.constant dense<0.000000e+00> : vector<512x32xf32>
    %18 = tpu.matmul %16, %17, %cst_14 {dimension_numbers = #tpu.dot_dimension_numbers<[1], [0], [0], [1], [0, 0, 1, 1], [], []>} : vector<512x16xbf16>, vector<16x32xbf16>, vector<512x32xf32> -> vector<512x32xf32>
    %c0_15 = arith.constant 0 : index
    %c0_16 = arith.constant 0 : index
    %19 = vector.load %arg8[%c0_15, %c0_16] : memref<1x32xf32, #tpu.memory_space<vmem>>, vector<1x32xf32>
    %20 = vector.broadcast %19 : vector<1x32xf32> to vector<512x32xf32>
    %21 = arith.addf %18, %20 : vector<512x32xf32>
    %cst_17 = arith.constant 0.000000e+00 : f32
    %22 = vector.broadcast %cst_17 : f32 to vector<512x32xf32>
    %23 = arith.maximumf %21, %22 : vector<512x32xf32>
    %24 = vector.shape_cast %23 : vector<512x32xf32> to vector<32x16x32xf32>
    %cst_18 = arith.constant dense<0xFF800000> : vector<32x32xf32>
    %25 = vector.multi_reduction <maximumf>, %24, %cst_18 [1] : vector<32x16x32xf32> to vector<32x32xf32>
    %c0_19 = arith.constant 0 : index
    %c0_20 = arith.constant 0 : index
    %26 = vector.load %arg2[%c0_19, %c0_20] : memref<1024x9xbf16, #tpu.memory_space<vmem>>, vector<1024x9xbf16>
    %c0_21 = arith.constant 0 : index
    %c0_22 = arith.constant 0 : index
    %27 = vector.load %arg9[%c0_21, %c0_22] : memref<9x32xbf16, #tpu.memory_space<vmem>>, vector<9x32xbf16>
    %cst_23 = arith.constant dense<0.000000e+00> : vector<1024x32xf32>
    %28 = tpu.matmul %26, %27, %cst_23 {dimension_numbers = #tpu.dot_dimension_numbers<[1], [0], [0], [1], [0, 0, 1, 1], [], []>} : vector<1024x9xbf16>, vector<9x32xbf16>, vector<1024x32xf32> -> vector<1024x32xf32>
    %c0_24 = arith.constant 0 : index
    %c0_25 = arith.constant 0 : index
    %29 = vector.load %arg10[%c0_24, %c0_25] : memref<1x32xf32, #tpu.memory_space<vmem>>, vector<1x32xf32>
    %30 = vector.broadcast %29 : vector<1x32xf32> to vector<1024x32xf32>
    %31 = arith.addf %28, %30 : vector<1024x32xf32>
    %cst_26 = arith.constant 0.000000e+00 : f32
    %32 = vector.broadcast %cst_26 : f32 to vector<1024x32xf32>
    %33 = arith.maximumf %31, %32 : vector<1024x32xf32>
    %34 = arith.truncf %33 : vector<1024x32xf32> to vector<1024x32xbf16>
    %c0_27 = arith.constant 0 : index
    %c0_28 = arith.constant 0 : index
    %35 = vector.load %arg11[%c0_27, %c0_28] : memref<32x32xbf16, #tpu.memory_space<vmem>>, vector<32x32xbf16>
    %cst_29 = arith.constant dense<0.000000e+00> : vector<1024x32xf32>
    %36 = tpu.matmul %34, %35, %cst_29 {dimension_numbers = #tpu.dot_dimension_numbers<[1], [0], [0], [1], [0, 0, 1, 1], [], []>} : vector<1024x32xbf16>, vector<32x32xbf16>, vector<1024x32xf32> -> vector<1024x32xf32>
    %c0_30 = arith.constant 0 : index
    %c0_31 = arith.constant 0 : index
    %37 = vector.load %arg12[%c0_30, %c0_31] : memref<1x32xf32, #tpu.memory_space<vmem>>, vector<1x32xf32>
    %38 = vector.broadcast %37 : vector<1x32xf32> to vector<1024x32xf32>
    %39 = arith.addf %36, %38 : vector<1024x32xf32>
    %cst_32 = arith.constant 0.000000e+00 : f32
    %40 = vector.broadcast %cst_32 : f32 to vector<1024x32xf32>
    %41 = arith.maximumf %39, %40 : vector<1024x32xf32>
    %42 = arith.truncf %41 : vector<1024x32xf32> to vector<1024x32xbf16>
    %c0_33 = arith.constant 0 : index
    %c0_34 = arith.constant 0 : index
    %43 = vector.load %arg13[%c0_33, %c0_34] : memref<32x96xbf16, #tpu.memory_space<vmem>>, vector<32x96xbf16>
    %cst_35 = arith.constant dense<0.000000e+00> : vector<1024x96xf32>
    %44 = tpu.matmul %42, %43, %cst_35 {dimension_numbers = #tpu.dot_dimension_numbers<[1], [0], [0], [1], [0, 0, 1, 1], [], []>} : vector<1024x32xbf16>, vector<32x96xbf16>, vector<1024x96xf32> -> vector<1024x96xf32>
    %c0_36 = arith.constant 0 : index
    %c0_37 = arith.constant 0 : index
    %45 = vector.load %arg14[%c0_36, %c0_37] : memref<1x96xf32, #tpu.memory_space<vmem>>, vector<1x96xf32>
    %46 = vector.broadcast %45 : vector<1x96xf32> to vector<1024x96xf32>
    %47 = arith.addf %44, %46 : vector<1024x96xf32>
    %cst_38 = arith.constant 0.000000e+00 : f32
    %48 = vector.broadcast %cst_38 : f32 to vector<1024x96xf32>
    %49 = arith.maximumf %47, %48 : vector<1024x96xf32>
    %50 = vector.shape_cast %49 : vector<1024x96xf32> to vector<32x32x96xf32>
    %cst_39 = arith.constant dense<0xFF800000> : vector<32x96xf32>
    %51 = vector.multi_reduction <maximumf>, %50, %cst_39 [1] : vector<32x32x96xf32> to vector<32x96xf32>
    %52 = tpu.concatenate %25, %51 in 1 : vector<32x32xf32>, vector<32x96xf32> -> vector<32x128xf32>
    %c0_40 = arith.constant 0 : index
    %c0_41 = arith.constant 0 : index
    %53 = vector.load %arg15[%c0_40, %c0_41] : memref<32x128xf32, #tpu.memory_space<vmem>>, vector<32x128xf32>
    tpu.vector_store %arg15[%c0_40, %c0_41], %52 {strides = array<i32>} : memref<32x128xf32, #tpu.memory_space<vmem>>, vector<32x128xf32>,
    return
  }
  func.func @transform_0(%arg0: i32) -> (i32, i32) {
    %c0_i32 = arith.constant 0 : i32
    %c0_i32_0 = arith.constant 0 : i32
    return %arg0, %c0_i32 : i32, i32
  }
  func.func @transform_1(%arg0: i32) -> (i32, i32) {
    %c0_i32 = arith.constant 0 : i32
    %c0_i32_0 = arith.constant 0 : i32
    return %arg0, %c0_i32 : i32, i32
  }
  func.func @transform_2(%arg0: i32) -> (i32, i32) {
    %c0_i32 = arith.constant 0 : i32
    %c0_i32_0 = arith.constant 0 : i32
    %c0_i32_1 = arith.constant 0 : i32
    return %c0_i32, %c0_i32_0 : i32, i32
  }
  func.func @transform_3(%arg0: i32) -> (i32, i32) {
    %c0_i32 = arith.constant 0 : i32
    %c0_i32_0 = arith.constant 0 : i32
    %c0_i32_1 = arith.constant 0 : i32
    return %c0_i32, %c0_i32_0 : i32, i32
  }
  func.func @transform_4(%arg0: i32) -> (i32, i32) {
    %c0_i32 = arith.constant 0 : i32
    %c0_i32_0 = arith.constant 0 : i32
    %c0_i32_1 = arith.constant 0 : i32
    return %c0_i32, %c0_i32_0 : i32, i32
  }
  func.func @transform_5(%arg0: i32) -> (i32, i32) {
    %c0_i32 = arith.constant 0 : i32
    %c0_i32_0 = arith.constant 0 : i32
    %c0_i32_1 = arith.constant 0 : i32
    return %c0_i32, %c0_i32_0 : i32, i32
  }
  func.func @transform_6(%arg0: i32) -> (i32, i32) {
    %c0_i32 = arith.constant 0 : i32
    %c0_i32_0 = arith.constant 0 : i32
    %c0_i32_1 = arith.constant 0 : i32
    return %c0_i32, %c0_i32_0 : i32, i32
  }
  func.func @transform_7(%arg0: i32) -> (i32, i32) {
    %c0_i32 = arith.constant 0 : i32
    %c0_i32_0 = arith.constant 0 : i32
    %c0_i32_1 = arith.constant 0 : i32
    return %c0_i32, %c0_i32_0 : i32, i32
  }
  func.func @transform_8(%arg0: i32) -> (i32, i32) {
    %c0_i32 = arith.constant 0 : i32
    %c0_i32_0 = arith.constant 0 : i32
    %c0_i32_1 = arith.constant 0 : i32
    return %c0_i32, %c0_i32_0 : i32, i32
  }
  func.func @transform_9(%arg0: i32) -> (i32, i32) {
    %c0_i32 = arith.constant 0 : i32
    %c0_i32_0 = arith.constant 0 : i32
    %c0_i32_1 = arith.constant 0 : i32
    return %c0_i32, %c0_i32_0 : i32, i32
  }
  func.func @transform_10(%arg0: i32) -> (i32, i32) {
    %c0_i32 = arith.constant 0 : i32
    %c0_i32_0 = arith.constant 0 : i32
    %c0_i32_1 = arith.constant 0 : i32
    return %c0_i32, %c0_i32_0 : i32, i32
  }
  func.func @transform_11(%arg0: i32) -> (i32, i32) {
    %c0_i32 = arith.constant 0 : i32
    %c0_i32_0 = arith.constant 0 : i32
    %c0_i32_1 = arith.constant 0 : i32
    return %c0_i32, %c0_i32_0 : i32, i32
  }
  func.func @transform_12(%arg0: i32) -> (i32, i32) {
    %c0_i32 = arith.constant 0 : i32
    %c0_i32_0 = arith.constant 0 : i32
    %c0_i32_1 = arith.constant 0 : i32
    return %c0_i32, %c0_i32_0 : i32, i32
  }
  func.func @transform_13(%arg0: i32) -> (i32, i32) {
    %c0_i32 = arith.constant 0 : i32
    %c0_i32_0 = arith.constant 0 : i32
    %c0_i32_1 = arith.constant 0 : i32
    return %c0_i32, %c0_i32_0 : i32, i32
  }
  func.func @transform_14(%arg0: i32) -> (i32, i32) {
    %c0_i32 = arith.constant 0 : i32
    %c0_i32_0 = arith.constant 0 : i32
    return %arg0, %c0_i32 : i32, i32
  }
}

module attributes {stable_mosaic.version = 11 : i64} {
  func.func @sa_msg_linear_kernel(%arg0: i32, %arg1: memref<256x99xbf16, #tpu.memory_space<vmem>>, %arg2: memref<512x99xbf16, #tpu.memory_space<vmem>>, %arg3: memref<99x64xbf16, #tpu.memory_space<vmem>>, %arg4: memref<1x64xf32, #tpu.memory_space<vmem>>, %arg5: memref<64x64xbf16, #tpu.memory_space<vmem>>, %arg6: memref<1x64xf32, #tpu.memory_space<vmem>>, %arg7: memref<64x128xbf16, #tpu.memory_space<vmem>>, %arg8: memref<1x128xf32, #tpu.memory_space<vmem>>, %arg9: memref<99x64xbf16, #tpu.memory_space<vmem>>, %arg10: memref<1x64xf32, #tpu.memory_space<vmem>>, %arg11: memref<64x96xbf16, #tpu.memory_space<vmem>>, %arg12: memref<1x96xf32, #tpu.memory_space<vmem>>, %arg13: memref<96x128xbf16, #tpu.memory_space<vmem>>, %arg14: memref<1x128xf32, #tpu.memory_space<vmem>>, %arg15: memref<256x128xbf16, #tpu.memory_space<vmem>>, %arg16: memref<1x128xf32, #tpu.memory_space<vmem>>, %arg17: memref<16x128xf32, #tpu.memory_space<vmem>>) attributes {dimension_semantics = [#tpu.dimension_semantics<parallel>], iteration_bounds = array<i64: 2>, scalar_prefetch = 0 : i64, scratch_operands = 0 : i64, tpu.core_type = #tpu.core_type<tc>, window_params = [{transform_indices = @transform_0, window_bounds = array<i64: 256, 99>}, {transform_indices = @transform_1, window_bounds = array<i64: 512, 99>}, {pipeline_mode = #tpu.pipeline_mode<synchronous>, transform_indices = @transform_2, window_bounds = array<i64: 99, 64>}, {pipeline_mode = #tpu.pipeline_mode<synchronous>, transform_indices = @transform_3, window_bounds = array<i64: 1, 64>}, {pipeline_mode = #tpu.pipeline_mode<synchronous>, transform_indices = @transform_4, window_bounds = array<i64: 64, 64>}, {pipeline_mode = #tpu.pipeline_mode<synchronous>, transform_indices = @transform_5, window_bounds = array<i64: 1, 64>}, {pipeline_mode = #tpu.pipeline_mode<synchronous>, transform_indices = @transform_6, window_bounds = array<i64: 64, 128>}, {pipeline_mode = #tpu.pipeline_mode<synchronous>, transform_indices = @transform_7, window_bounds = array<i64: 1, 128>}, {pipeline_mode = #tpu.pipeline_mode<synchronous>, transform_indices = @transform_8, window_bounds = array<i64: 99, 64>}, {pipeline_mode = #tpu.pipeline_mode<synchronous>, transform_indices = @transform_9, window_bounds = array<i64: 1, 64>}, {pipeline_mode = #tpu.pipeline_mode<synchronous>, transform_indices = @transform_10, window_bounds = array<i64: 64, 96>}, {pipeline_mode = #tpu.pipeline_mode<synchronous>, transform_indices = @transform_11, window_bounds = array<i64: 1, 96>}, {pipeline_mode = #tpu.pipeline_mode<synchronous>, transform_indices = @transform_12, window_bounds = array<i64: 96, 128>}, {pipeline_mode = #tpu.pipeline_mode<synchronous>, transform_indices = @transform_13, window_bounds = array<i64: 1, 128>}, {pipeline_mode = #tpu.pipeline_mode<synchronous>, transform_indices = @transform_14, window_bounds = array<i64: 256, 128>}, {pipeline_mode = #tpu.pipeline_mode<synchronous>, transform_indices = @transform_15, window_bounds = array<i64: 1, 128>}, {transform_indices = @transform_16, window_bounds = array<i64: 16, 128>}]} {
    %c0 = arith.constant 0 : index
    %c0_0 = arith.constant 0 : index
    %0 = vector.load %arg1[%c0, %c0_0] : memref<256x99xbf16, #tpu.memory_space<vmem>>, vector<256x99xbf16>
    %c0_1 = arith.constant 0 : index
    %c0_2 = arith.constant 0 : index
    %1 = vector.load %arg3[%c0_1, %c0_2] : memref<99x64xbf16, #tpu.memory_space<vmem>>, vector<99x64xbf16>
    %cst = arith.constant dense<0.000000e+00> : vector<256x64xf32>
    %2 = tpu.matmul %0, %1, %cst {dimension_numbers = #tpu.dot_dimension_numbers<[1], [0], [0], [1], [0, 0, 1, 1], [], []>} : vector<256x99xbf16>, vector<99x64xbf16>, vector<256x64xf32> -> vector<256x64xf32>
    %c0_3 = arith.constant 0 : index
    %c0_4 = arith.constant 0 : index
    %3 = vector.load %arg4[%c0_3, %c0_4] : memref<1x64xf32, #tpu.memory_space<vmem>>, vector<1x64xf32>
    %4 = vector.broadcast %3 : vector<1x64xf32> to vector<256x64xf32>
    %5 = arith.addf %2, %4 : vector<256x64xf32>
    %cst_5 = arith.constant 0.000000e+00 : f32
    %6 = vector.broadcast %cst_5 : f32 to vector<256x64xf32>
    %7 = arith.maximumf %5, %6 : vector<256x64xf32>
    %8 = arith.truncf %7 : vector<256x64xf32> to vector<256x64xbf16>
    %c0_6 = arith.constant 0 : index
    %c0_7 = arith.constant 0 : index
    %9 = vector.load %arg5[%c0_6, %c0_7] : memref<64x64xbf16, #tpu.memory_space<vmem>>, vector<64x64xbf16>
    %cst_8 = arith.constant dense<0.000000e+00> : vector<256x64xf32>
    %10 = tpu.matmul %8, %9, %cst_8 {dimension_numbers = #tpu.dot_dimension_numbers<[1], [0], [0], [1], [0, 0, 1, 1], [], []>} : vector<256x64xbf16>, vector<64x64xbf16>, vector<256x64xf32> -> vector<256x64xf32>
    %c0_9 = arith.constant 0 : index
    %c0_10 = arith.constant 0 : index
    %11 = vector.load %arg6[%c0_9, %c0_10] : memref<1x64xf32, #tpu.memory_space<vmem>>, vector<1x64xf32>
    %12 = vector.broadcast %11 : vector<1x64xf32> to vector<256x64xf32>
    %13 = arith.addf %10, %12 : vector<256x64xf32>
    %cst_11 = arith.constant 0.000000e+00 : f32
    %14 = vector.broadcast %cst_11 : f32 to vector<256x64xf32>
    %15 = arith.maximumf %13, %14 : vector<256x64xf32>
    %16 = arith.truncf %15 : vector<256x64xf32> to vector<256x64xbf16>
    %c0_12 = arith.constant 0 : index
    %c0_13 = arith.constant 0 : index
    %17 = vector.load %arg7[%c0_12, %c0_13] : memref<64x128xbf16, #tpu.memory_space<vmem>>, vector<64x128xbf16>
    %cst_14 = arith.constant dense<0.000000e+00> : vector<256x128xf32>
    %18 = tpu.matmul %16, %17, %cst_14 {dimension_numbers = #tpu.dot_dimension_numbers<[1], [0], [0], [1], [0, 0, 1, 1], [], []>} : vector<256x64xbf16>, vector<64x128xbf16>, vector<256x128xf32> -> vector<256x128xf32>
    %c0_15 = arith.constant 0 : index
    %c0_16 = arith.constant 0 : index
    %19 = vector.load %arg8[%c0_15, %c0_16] : memref<1x128xf32, #tpu.memory_space<vmem>>, vector<1x128xf32>
    %20 = vector.broadcast %19 : vector<1x128xf32> to vector<256x128xf32>
    %21 = arith.addf %18, %20 : vector<256x128xf32>
    %cst_17 = arith.constant 0.000000e+00 : f32
    %22 = vector.broadcast %cst_17 : f32 to vector<256x128xf32>
    %23 = arith.maximumf %21, %22 : vector<256x128xf32>
    %24 = vector.shape_cast %23 : vector<256x128xf32> to vector<16x16x128xf32>
    %cst_18 = arith.constant dense<0xFF800000> : vector<16x128xf32>
    %25 = vector.multi_reduction <maximumf>, %24, %cst_18 [1] : vector<16x16x128xf32> to vector<16x128xf32>
    %c0_19 = arith.constant 0 : index
    %c0_20 = arith.constant 0 : index
    %26 = vector.load %arg2[%c0_19, %c0_20] : memref<512x99xbf16, #tpu.memory_space<vmem>>, vector<512x99xbf16>
    %c0_21 = arith.constant 0 : index
    %c0_22 = arith.constant 0 : index
    %27 = vector.load %arg9[%c0_21, %c0_22] : memref<99x64xbf16, #tpu.memory_space<vmem>>, vector<99x64xbf16>
    %cst_23 = arith.constant dense<0.000000e+00> : vector<512x64xf32>
    %28 = tpu.matmul %26, %27, %cst_23 {dimension_numbers = #tpu.dot_dimension_numbers<[1], [0], [0], [1], [0, 0, 1, 1], [], []>} : vector<512x99xbf16>, vector<99x64xbf16>, vector<512x64xf32> -> vector<512x64xf32>
    %c0_24 = arith.constant 0 : index
    %c0_25 = arith.constant 0 : index
    %29 = vector.load %arg10[%c0_24, %c0_25] : memref<1x64xf32, #tpu.memory_space<vmem>>, vector<1x64xf32>
    %30 = vector.broadcast %29 : vector<1x64xf32> to vector<512x64xf32>
    %31 = arith.addf %28, %30 : vector<512x64xf32>
    %cst_26 = arith.constant 0.000000e+00 : f32
    %32 = vector.broadcast %cst_26 : f32 to vector<512x64xf32>
    %33 = arith.maximumf %31, %32 : vector<512x64xf32>
    %34 = arith.truncf %33 : vector<512x64xf32> to vector<512x64xbf16>
    %c0_27 = arith.constant 0 : index
    %c0_28 = arith.constant 0 : index
    %35 = vector.load %arg11[%c0_27, %c0_28] : memref<64x96xbf16, #tpu.memory_space<vmem>>, vector<64x96xbf16>
    %cst_29 = arith.constant dense<0.000000e+00> : vector<512x96xf32>
    %36 = tpu.matmul %34, %35, %cst_29 {dimension_numbers = #tpu.dot_dimension_numbers<[1], [0], [0], [1], [0, 0, 1, 1], [], []>} : vector<512x64xbf16>, vector<64x96xbf16>, vector<512x96xf32> -> vector<512x96xf32>
    %c0_30 = arith.constant 0 : index
    %c0_31 = arith.constant 0 : index
    %37 = vector.load %arg12[%c0_30, %c0_31] : memref<1x96xf32, #tpu.memory_space<vmem>>, vector<1x96xf32>
    %38 = vector.broadcast %37 : vector<1x96xf32> to vector<512x96xf32>
    %39 = arith.addf %36, %38 : vector<512x96xf32>
    %cst_32 = arith.constant 0.000000e+00 : f32
    %40 = vector.broadcast %cst_32 : f32 to vector<512x96xf32>
    %41 = arith.maximumf %39, %40 : vector<512x96xf32>
    %42 = arith.truncf %41 : vector<512x96xf32> to vector<512x96xbf16>
    %c0_33 = arith.constant 0 : index
    %c0_34 = arith.constant 0 : index
    %43 = vector.load %arg13[%c0_33, %c0_34] : memref<96x128xbf16, #tpu.memory_space<vmem>>, vector<96x128xbf16>
    %cst_35 = arith.constant dense<0.000000e+00> : vector<512x128xf32>
    %44 = tpu.matmul %42, %43, %cst_35 {dimension_numbers = #tpu.dot_dimension_numbers<[1], [0], [0], [1], [0, 0, 1, 1], [], []>} : vector<512x96xbf16>, vector<96x128xbf16>, vector<512x128xf32> -> vector<512x128xf32>
    %c0_36 = arith.constant 0 : index
    %c0_37 = arith.constant 0 : index
    %45 = vector.load %arg14[%c0_36, %c0_37] : memref<1x128xf32, #tpu.memory_space<vmem>>, vector<1x128xf32>
    %46 = vector.broadcast %45 : vector<1x128xf32> to vector<512x128xf32>
    %47 = arith.addf %44, %46 : vector<512x128xf32>
    %cst_38 = arith.constant 0.000000e+00 : f32
    %48 = vector.broadcast %cst_38 : f32 to vector<512x128xf32>
    %49 = arith.maximumf %47, %48 : vector<512x128xf32>
    %50 = vector.shape_cast %49 : vector<512x128xf32> to vector<16x32x128xf32>
    %cst_39 = arith.constant dense<0xFF800000> : vector<16x128xf32>
    %51 = vector.multi_reduction <maximumf>, %50, %cst_39 [1] : vector<16x32x128xf32> to vector<16x128xf32>
    %52 = tpu.concatenate %25, %51 in 1 : vector<16x128xf32>, vector<16x128xf32> -> vector<16x256xf32>
    %53 = arith.truncf %52 : vector<16x256xf32> to vector<16x256xbf16>
    %c0_40 = arith.constant 0 : index
    %c0_41 = arith.constant 0 : index
    %54 = vector.load %arg15[%c0_40, %c0_41] : memref<256x128xbf16, #tpu.memory_space<vmem>>, vector<256x128xbf16>
    %cst_42 = arith.constant dense<0.000000e+00> : vector<16x128xf32>
    %55 = tpu.matmul %53, %54, %cst_42 {dimension_numbers = #tpu.dot_dimension_numbers<[1], [0], [0], [1], [0, 0, 1, 1], [], []>} : vector<16x256xbf16>, vector<256x128xbf16>, vector<16x128xf32> -> vector<16x128xf32>
    %c0_43 = arith.constant 0 : index
    %c0_44 = arith.constant 0 : index
    %56 = vector.load %arg16[%c0_43, %c0_44] : memref<1x128xf32, #tpu.memory_space<vmem>>, vector<1x128xf32>
    %57 = vector.broadcast %56 : vector<1x128xf32> to vector<16x128xf32>
    %58 = arith.addf %55, %57 : vector<16x128xf32>
    %c0_45 = arith.constant 0 : index
    %c0_46 = arith.constant 0 : index
    %59 = vector.load %arg17[%c0_45, %c0_46] : memref<16x128xf32, #tpu.memory_space<vmem>>, vector<16x128xf32>
    tpu.vector_store %arg17[%c0_45, %c0_46], %58 {strides = array<i32>} : memref<16x128xf32, #tpu.memory_space<vmem>>, vector<16x128xf32>,
    return
  }
  func.func @transform_0(%arg0: i32) -> (i32, i32) {
    %c0_i32 = arith.constant 0 : i32
    %c0_i32_0 = arith.constant 0 : i32
    return %arg0, %c0_i32 : i32, i32
  }
  func.func @transform_1(%arg0: i32) -> (i32, i32) {
    %c0_i32 = arith.constant 0 : i32
    %c0_i32_0 = arith.constant 0 : i32
    return %arg0, %c0_i32 : i32, i32
  }
  func.func @transform_2(%arg0: i32) -> (i32, i32) {
    %c0_i32 = arith.constant 0 : i32
    %c0_i32_0 = arith.constant 0 : i32
    %c0_i32_1 = arith.constant 0 : i32
    return %c0_i32, %c0_i32_0 : i32, i32
  }
  func.func @transform_3(%arg0: i32) -> (i32, i32) {
    %c0_i32 = arith.constant 0 : i32
    %c0_i32_0 = arith.constant 0 : i32
    %c0_i32_1 = arith.constant 0 : i32
    return %c0_i32, %c0_i32_0 : i32, i32
  }
  func.func @transform_4(%arg0: i32) -> (i32, i32) {
    %c0_i32 = arith.constant 0 : i32
    %c0_i32_0 = arith.constant 0 : i32
    %c0_i32_1 = arith.constant 0 : i32
    return %c0_i32, %c0_i32_0 : i32, i32
  }
  func.func @transform_5(%arg0: i32) -> (i32, i32) {
    %c0_i32 = arith.constant 0 : i32
    %c0_i32_0 = arith.constant 0 : i32
    %c0_i32_1 = arith.constant 0 : i32
    return %c0_i32, %c0_i32_0 : i32, i32
  }
  func.func @transform_6(%arg0: i32) -> (i32, i32) {
    %c0_i32 = arith.constant 0 : i32
    %c0_i32_0 = arith.constant 0 : i32
    %c0_i32_1 = arith.constant 0 : i32
    return %c0_i32, %c0_i32_0 : i32, i32
  }
  func.func @transform_7(%arg0: i32) -> (i32, i32) {
    %c0_i32 = arith.constant 0 : i32
    %c0_i32_0 = arith.constant 0 : i32
    %c0_i32_1 = arith.constant 0 : i32
    return %c0_i32, %c0_i32_0 : i32, i32
  }
  func.func @transform_8(%arg0: i32) -> (i32, i32) {
    %c0_i32 = arith.constant 0 : i32
    %c0_i32_0 = arith.constant 0 : i32
    %c0_i32_1 = arith.constant 0 : i32
    return %c0_i32, %c0_i32_0 : i32, i32
  }
  func.func @transform_9(%arg0: i32) -> (i32, i32) {
    %c0_i32 = arith.constant 0 : i32
    %c0_i32_0 = arith.constant 0 : i32
    %c0_i32_1 = arith.constant 0 : i32
    return %c0_i32, %c0_i32_0 : i32, i32
  }
  func.func @transform_10(%arg0: i32) -> (i32, i32) {
    %c0_i32 = arith.constant 0 : i32
    %c0_i32_0 = arith.constant 0 : i32
    %c0_i32_1 = arith.constant 0 : i32
    return %c0_i32, %c0_i32_0 : i32, i32
  }
  func.func @transform_11(%arg0: i32) -> (i32, i32) {
    %c0_i32 = arith.constant 0 : i32
    %c0_i32_0 = arith.constant 0 : i32
    %c0_i32_1 = arith.constant 0 : i32
    return %c0_i32, %c0_i32_0 : i32, i32
  }
  func.func @transform_12(%arg0: i32) -> (i32, i32) {
    %c0_i32 = arith.constant 0 : i32
    %c0_i32_0 = arith.constant 0 : i32
    %c0_i32_1 = arith.constant 0 : i32
    return %c0_i32, %c0_i32_0 : i32, i32
  }
  func.func @transform_13(%arg0: i32) -> (i32, i32) {
    %c0_i32 = arith.constant 0 : i32
    %c0_i32_0 = arith.constant 0 : i32
    %c0_i32_1 = arith.constant 0 : i32
    return %c0_i32, %c0_i32_0 : i32, i32
  }
  func.func @transform_14(%arg0: i32) -> (i32, i32) {
    %c0_i32 = arith.constant 0 : i32
    %c0_i32_0 = arith.constant 0 : i32
    %c0_i32_1 = arith.constant 0 : i32
    return %c0_i32, %c0_i32_0 : i32, i32
  }
  func.func @transform_15(%arg0: i32) -> (i32, i32) {
    %c0_i32 = arith.constant 0 : i32
    %c0_i32_0 = arith.constant 0 : i32
    %c0_i32_1 = arith.constant 0 : i32
    return %c0_i32, %c0_i32_0 : i32, i32
  }
  func.func @transform_16(%arg0: i32) -> (i32, i32) {
    %c0_i32 = arith.constant 0 : i32
    %c0_i32_0 = arith.constant 0 : i32
    return %arg0, %c0_i32 : i32, i32
  }
}

</mosaic_0001>

<bundles_post_ra>
// kernel: custom-call.24
= control target key start
LH: loop header
LB: loop body
LE: loop exit
PB: predicated region body
PF: predicated region fallthrough
CT: control target
= control target key end

     0   :  { %s6_s0 = inlined_call_operand.vmem [shape: f32[2,128], index: 0, kind: output, shape index: {}]  }

// kernel: custom-call.25
= control target key start
LH: loop header
LB: loop body
LE: loop exit
PB: predicated region body
PF: predicated region fallthrough
CT: control target
= control target key end

     0   :  { %s6_s0 = inlined_call_operand.vmem [shape: f32[2,32], index: 0, kind: output, shape index: {}]  }

// kernel: pointnet2_encoder_forward.2
= control target key start
LH: loop header
LB: loop body
LE: loop exit
PB: predicated region body
PF: predicated region fallthrough
CT: control target
= control target key end

     0   :  { %s7846_s29 = smov 0   ;;  %s9744_s0 = inlined_call_operand.vmem [shape: bf16[1024,9], index: 0, kind: input, shape index: {}]   ;;  %s9745_s1 = inlined_call_operand.vmem [shape: bf16[2048,9], index: 1, kind: input, shape index: {}]   ;;  %s9746_s2 = inlined_call_operand.vmem [shape: bf16[9,16], index: 2, kind: input, shape index: {}]   ;;  %s9747_s3 = inlined_call_operand.vmem [shape: f32[1,16], index: 3, kind: input, shape index: {}]   ;;  %s9748_s4 = inlined_call_operand.vmem [shape: bf16[16,16], index: 4, kind: input, shape index: {}]   ;;  %s9749_s5 = inlined_call_operand.vmem [shape: f32[1,16], index: 5, kind: input, shape index: {}]   ;;  %s9750_s6 = inlined_call_operand.vmem [shape: bf16[16,32], index: 6, kind: input, shape index: {}]   ;;  %s9751_s7 = inlined_call_operand.vmem [shape: f32[1,32], index: 7, kind: input, shape index: {}]   ;;  %s9752_s8 = inlined_call_operand.vmem [shape: bf16[9,32], index: 8, kind: input, shape index: {}]   ;;  %s9753_s9 = inlined_call_operand.vmem [shape: f32[1,32], index: 9, kind: input, shape index: {}]   ;;  %s9754_s10 = inlined_call_operand.vmem [shape: bf16[32,32], index: 10, kind: input, shape index: {}]   ;;  %s9755_s11 = inlined_call_operand.vmem [shape: f32[1,32], index: 11, kind: input, shape index: {}]   ;;  %s9756_s12 = inlined_call_operand.vmem [shape: bf16[32,96], index: 12, kind: input, shape index: {}]   ;;  %s9757_s13 = inlined_call_operand.vmem [shape: f32[1,96], index: 13, kind: input, shape index: {}]   ;;  %s9758_s14 = inlined_call_operand.vmem [shape: f32[64,128], index: 14, kind: output, shape index: {}]  }
   0x1 LB: > { %s7852_s30 = sadd.s32 4294967295, %s7767_s29   ;;  %p6345_p0 = scmp.ge.s32.totalorder %s7767_s29, 1  ;;  %s7767_s29 = sphi %s7846_s29, %s24_s29  }
   0x2   : > { %p424_p1 = scmp.lt.s32.totalorder %s7767_s29, 3 }
   0x4   : > { %p425_p2 = pnand %p6345_p0, %p424_p1 }
   0x6   : > { %428 = sbr.rel (%p425_p2) target bundleno = 1362 (0x552), region = 76 }
   0xb   : > { %v7652_v0 = vld [vmem:[%s9746_s2] sm:$0x1f]   ;;  %vm829_vm0 = vcmask 1043456   ;;  %vm830_vm1 = vcmask 1044480   ;;  %s6346_s17 = sshll.u32 %s7852_s30, 6  ;;  %v7769_v1 = vmov 65535  }
   0xc   : > { %v831_v2 = vsel %vm829_vm0, 4294967295, %v7769_v1  ;;  %v7653_v3 = vld [vmem:[%s9752_s8] sm:$0x1f]   ;;  %p476_p3 = scmp.lt.s32.totalorder %s6346_s17, 127  ;;  %vm732_vm2 = vcmask 72704   ;;  %s6348_s28 = sshll.u32 %s7852_s30, 7 }
   0xd   : > { %v832_v4 = vsel %vm830_vm1, %v831_v2, 0  ;;  %v7674_v7 = vld [vmem:[%s9748_s4] sm:$0xff]   ;;  %p482_p4 = scmp.lt.s32.totalorder %s6348_s28, 255  ;;  %vm1236_vm3 = vcmask 130048   ;;  %vm2182_vm4 = vcmask 261120   ;;  %vm6154_vm5 = vcmask 1041409  }
   0xe   : > { %v834_v5 = vand.u32 %v7652_v0, %v832_v4  ;;  %v7863_v6 = vand.u32 %v7653_v3, %v832_v4  ;;  %s9782_s17 = smov (!%p476_p3, %s6346_s17), 127  ;;  %7640 = vmatprep.subr.bf16.mxu1 %v7674_v7  ;;  %v7941_v42 = vld [vmem:[%s9747_s3] ss:$0 sm:$0xff]  ;;  %vm6156_vm6 = vcmask 1042434   ;;  %vm6158_vm7 = vcmask 1043459  }
   0xf   : > { %s6347_s22 = sshll.u32 %s9782_s17, 2  ;;  %7641 = vmatpush3.bf16.msra.mxu1 %v7674_v7  ;;  %s9784_s28 = smov (!%p482_p4, %s6348_s28), 255  ;;  %vm6160_vm8 = vcmask 1044484   ;;  %vm6162_vm9 = vcmask 1045509   ;;  %vm6164_vm10 = vcmask 1046534   ;;  %vm6166_vm11 = vcmask 1047559  }
  0x10   : > { %7048 = vmatprep.subr.bf16.mxu0 %v834_v5  ;;  %s7871_s25 = scalar_lea.vmem %s9744_s0, %s6347_s22  ;;  %7246 = vmatprep.subr.bf16.mxu1 %v7863_v6  ;;  %s6349_s15 = sshll.u32 %s9784_s28, 2  ;;  %vm5705_vm12 = vcmask 785408  }
  0x11   : > { %7049 = vmatpush3.bf16.msra.mxu0 %v834_v5  ;;  %v7654_v8 = vld [vmem:[%s7871_s25] sm:$0xff]   ;;  %v7655_v9 = vld [vmem:[%s7871_s25 + $0x8] sm:$0xff]   ;;  %v7656_v10 = vld [vmem:[%s7871_s25 + $0x10] sm:$0xff]   ;;  %s7951_s18 = scalar_lea.vmem %s9745_s1, %s6349_s15  ;;  %s6350_s22 = sshll.u32 %s7852_s30, 2 }
  0x12   : > { %7114 = vmatprep.subr.bf16.mxu0 %v7674_v7  ;;  %7050 = vmatprep.mubr.msk.bf16.mxu0 %vm732_vm2, %v7654_v8  ;;  %v7657_v11 = vld [vmem:[%s7871_s25 + $0x18] sm:$0xff]   ;;  %v7658_v12 = vld [vmem:[%s7871_s25 + $0x20] sm:$0xff]   ;;  %v7659_v13 = vld [vmem:[%s7871_s25 + $0x28] sm:$0xff]   ;;  %p9614_p5 = scmp.lt.s32.totalorder %s6350_s22, 7 }
  0x13   : > { %v7660_v14 = vld [vmem:[%s7871_s25 + $0x30] sm:$0xff]   ;;  %v7661_v15 = vld [vmem:[%s7871_s25 + $0x38] sm:$0xff]   ;;  %v7662_v16 = vld [vmem:[%s7871_s25 + $0x40] sm:$0xff]  }
  0x14   : > { %7051 = vmatmul.mubr.msk.bf16.vlgmr.msra.gmra.mxu0 %vm732_vm2, %v7655_v9  ;;  %v7663_v17 = vld [vmem:[%s7871_s25 + $0x48] sm:$0xff]   ;;  %v7664_v18 = vld [vmem:[%s7871_s25 + $0x50] sm:$0xff]   ;;  %v7665_v19 = vld [vmem:[%s7871_s25 + $0x58] sm:$0xff]   ;;  %s9786_s22 = smov (!%p9614_p5, %s6350_s22), 7 }
  0x15   : > { %7054 = vmatprep.mubr.msk.bf16.mxu0 %vm732_vm2, %v7656_v10  ;;  %7115 = vmatpush3.bf16.msra.mxu0 %v7674_v7  ;;  %v7666_v20 = vld [vmem:[%s7871_s25 + $0x60] sm:$0xff]   ;;  %v7667_v21 = vld [vmem:[%s7871_s25 + $0x68] sm:$0xff]   ;;  %v7668_v22 = vld [vmem:[%s7871_s25 + $0x70] sm:$0xff]   ;;  %s6351_s30 = sshll.u32 %s9786_s22, 3 }
  0x16   : > { %v7669_v23 = vld [vmem:[%s7871_s25 + $0x78] sm:$0xff]   ;;  %v7670_v24 = vld [vmem:[%s7871_s25 + $0x80] sm:$0xff]   ;;  %v7671_v25 = vld [vmem:[%s7871_s25 + $0x88] sm:$0xff]   ;;  %s9636_s26 = scalar_lea.vmem %s9758_s14, %s6351_s30 }
  0x17   : > { %v7672_v26 = vld [vmem:[%s7871_s25 + $0x90] sm:$0xff]   ;;  %v7673_v27 = vld [vmem:[%s7871_s25 + $0x98] sm:$0xff]   ;;  %v7675_v28 = vld [vmem:[%s7871_s25 + $0xa0] sm:$0xff]  }
  0x18   : > { %v7676_v29 = vld [vmem:[%s7871_s25 + $0xa8] sm:$0xff]   ;;  %v7677_v30 = vld [vmem:[%s7871_s25 + $0xb0] sm:$0xff]   ;;  %v7678_v31 = vld [vmem:[%s7871_s25 + $0xb8] sm:$0xff]  }
  0x19   : > { %v7679_v32 = vld [vmem:[%s7871_s25 + $0xc0] sm:$0xff]   ;;  %v7680_v33 = vld [vmem:[%s7871_s25 + $0xc8] sm:$0xff]   ;;  %v7681_v34 = vld [vmem:[%s7871_s25 + $0xd0] sm:$0xff]  }
  0x1a   : > { %v7682_v35 = vld [vmem:[%s7871_s25 + $0xd8] sm:$0xff]   ;;  %v7683_v36 = vld [vmem:[%s7871_s25 + $0xe0] sm:$0xff]   ;;  %v7684_v37 = vld [vmem:[%s7871_s25 + $0xe8] sm:$0xff]  }
  0x1b   : > { %v7685_v38 = vld [vmem:[%s7871_s25 + $0xf0] sm:$0xff]   ;;  %v7686_v39 = vld [vmem:[%s7871_s25 + $0xf8] sm:$0xff]  }
  0x1c   : > { %7055 = vmatmul.mubr.msk.bf16.gmra.mxu0 %vm732_vm2, %v7657_v11 }
  0x1d   : > { %7058 = vmatprep.mubr.msk.bf16.mxu0 %vm732_vm2, %v7658_v12 }
  0x24   : > { %7059 = vmatmul.mubr.msk.bf16.gmra.mxu0 %vm732_vm2, %v7659_v13  ;;  %v7691_v13 = vld [vmem:[%s9750_s6] sm:$0xff]  }
  0x25   : > { %7062 = vmatprep.mubr.msk.bf16.mxu0 %vm732_vm2, %v7660_v14  ;;  %7180 = vmatprep.subr.bf16.mxu0 %v7691_v13 }
  0x2c   : > { %7063 = vmatmul.mubr.msk.bf16.gmra.mxu0 %vm732_vm2, %v7661_v15 }
  0x2d   : > { %7066 = vmatprep.mubr.msk.bf16.mxu0 %vm732_vm2, %v7662_v16 }
  0x34   : > { %7067 = vmatmul.mubr.msk.bf16.gmra.mxu0 %vm732_vm2, %v7663_v17 }
  0x35   : > { %7070 = vmatprep.mubr.msk.bf16.mxu0 %vm732_vm2, %v7664_v18 }
  0x3c   : > { %7071 = vmatmul.mubr.msk.bf16.gmra.mxu0 %vm732_vm2, %v7665_v19 }
  0x3d   : > { %7074 = vmatprep.mubr.msk.bf16.mxu0 %vm732_vm2, %v7666_v20 }
  0x44   : > { %7075 = vmatmul.mubr.msk.bf16.gmra.mxu0 %vm732_vm2, %v7667_v21 }
  0x45   : > { %7078 = vmatprep.mubr.msk.bf16.mxu0 %vm732_vm2, %v7668_v22 }
  0x4c   : > { %7079 = vmatmul.mubr.msk.bf16.gmra.mxu0 %vm732_vm2, %v7669_v23 }
  0x4d   : > { %7082 = vmatprep.mubr.msk.bf16.mxu0 %vm732_vm2, %v7670_v24 }
  0x54   : > { %7083 = vmatmul.mubr.msk.bf16.gmra.mxu0 %vm732_vm2, %v7671_v25 }
  0x55   : > { %7086 = vmatprep.mubr.msk.bf16.mxu0 %vm732_vm2, %v7672_v26 }
  0x5c   : > { %7087 = vmatmul.mubr.msk.bf16.gmra.mxu0 %vm732_vm2, %v7673_v27 }
  0x5d   : > { %7090 = vmatprep.mubr.msk.bf16.mxu0 %vm732_vm2, %v7675_v28 }
  0x64   : > { %7091 = vmatmul.mubr.msk.bf16.gmra.mxu0 %vm732_vm2, %v7676_v29 }
  0x65   : > { %7094 = vmatprep.mubr.msk.bf16.mxu0 %vm732_vm2, %v7677_v30 }
  0x6c   : > { %7095 = vmatmul.mubr.msk.bf16.gmra.mxu0 %vm732_vm2, %v7678_v31 }
  0x6d   : > { %7098 = vmatprep.mubr.msk.bf16.mxu0 %vm732_vm2, %v7679_v32 }
  0x74   : > { %7099 = vmatmul.mubr.msk.bf16.gmra.mxu0 %vm732_vm2, %v7680_v33 }
  0x75   : > { %7102 = vmatprep.mubr.msk.bf16.mxu0 %vm732_vm2, %v7681_v34 }
  0x7c   : > { %7103 = vmatmul.mubr.msk.bf16.gmra.mxu0 %vm732_vm2, %v7682_v35 }
  0x7d   : > { %7106 = vmatprep.mubr.msk.bf16.mxu0 %vm732_vm2, %v7683_v36 }
  0x84   : > { %7107 = vmatmul.mubr.msk.bf16.gmra.mxu0 %vm732_vm2, %v7684_v37 }
  0x85   : > { %7110 = vmatprep.mubr.msk.bf16.mxu0 %vm732_vm2, %v7685_v38 }
  0x8c   : > { %7111 = vmatmul.mubr.msk.bf16.gmra.mxu0 %vm732_vm2, %v7686_v39 }
  0xd4   : > { %v7052_v40 = vpop.f32.mrf.mxu0 }
  0xd5   : > { %v879_v46 = vadd.f32 %v7052_v40, %v7941_v42 }
  0xd6   : > { %v870_v41 = vpop.f32.mrf.mxu0 }
  0xd7   : > { %v871_v44 = vadd.f32 %v7941_v42, %v870_v41  ;;  %v1127_v53 = vmax.f32 %v879_v46, 0.0 }
  0xd8   : > { %v7053_v43 = vpop.f32.mrf.mxu0 }
  0xd9   : > { %v882_v45 = vadd.f32 %v7053_v43, %v7941_v42  ;;  %v1125_v51 = vmax.f32 %v871_v44, 0.0 }
  0xda   : > { %v873_v47 = vpop.f32.mrf.mxu0 }
  0xdb   : > { %v874_v48 = vadd.f32 %v7941_v42, %v873_v47  ;;  %v1128_v49 = vmax.f32 %v882_v45, 0.0 }
  0xdc   : > { %v7056_v50 = vpop.f32.mrf.mxu0 }
  0xdd   : > { %v1126_v52 = vmax.f32 %v874_v48, 0.0  ;;  %v895_v56 = vadd.f32 %v7056_v50, %v7941_v42  ;;  %v1190_v57 = vpack.c.bf16 %v1128_v49, %v1127_v53 }
  0xde   : > { %v886_v54 = vpop.f32.mrf.mxu0 }
  0xdf   : > { %v1189_v55 = vpack.c.bf16 %v1126_v52, %v1125_v51  ;;  %v887_v59 = vadd.f32 %v7941_v42, %v886_v54  ;;  %v1131_v62 = vmax.f32 %v895_v56, 0.0 }
  0xe0   : > { %v7057_v58 = vpop.f32.mrf.mxu0 }
  0xe1   : > { %v898_v60 = vadd.f32 %v7057_v58, %v7941_v42  ;;  %7116 = vmatprep.mubr.msk.bf16.mxu0 %vm1236_vm3, %v1189_v55  ;;  %v1129_v2 = vmax.f32 %v887_v59, 0.0 }
  0xe2   : > { %v889_v61 = vpop.f32.mrf.mxu0  ;;  %7117 = vmatmul.mubr.msk.bf16.vlgmr.msra.gmra.mxu0 %vm1236_vm3, %v1190_v57 }
  0xe3   : > { %v1132_v63 = vmax.f32 %v898_v60, 0.0  ;;  %v890_v0 = vadd.f32 %v7941_v42, %v889_v61  ;;  %7181 = vmatpush3.bf16.msra.mxu0 %v7691_v13 }
  0xe4   : > { %v7060_v1 = vpop.f32.mrf.mxu0 }
  0xe5   : > { %v1130_v3 = vmax.f32 %v890_v0, 0.0  ;;  %v911_v7 = vadd.f32 %v7060_v1, %v7941_v42  ;;  %v1192_v8 = vpack.c.bf16 %v1132_v63, %v1131_v62 }
  0xe6   : > { %v902_v4 = vpop.f32.mrf.mxu0 }
  0xe7   : > { %v1191_v5 = vpack.c.bf16 %v1130_v3, %v1129_v2  ;;  %v903_v10 = vadd.f32 %v7941_v42, %v902_v4  ;;  %v1135_v14 = vmax.f32 %v911_v7, 0.0 }
  0xe8   : > { %v7061_v9 = vpop.f32.mrf.mxu0 }
  0xe9   : > { %v914_v11 = vadd.f32 %v7061_v9, %v7941_v42  ;;  %7120 = vmatprep.mubr.msk.bf16.mxu0 %vm1236_vm3, %v1191_v5  ;;  %v1133_v18 = vmax.f32 %v903_v10, 0.0 }
  0xea   : > { %v905_v12 = vpop.f32.mrf.mxu0  ;;  %7121 = vmatmul.mubr.msk.bf16.gmra.mxu0 %vm1236_vm3, %v1192_v8 }
  0xeb   : > { %v1136_v15 = vmax.f32 %v914_v11, 0.0  ;;  %v906_v16 = vadd.f32 %v7941_v42, %v905_v12 }
  0xec   : > { %v7064_v17 = vpop.f32.mrf.mxu0 }
  0xed   : > { %v1134_v19 = vmax.f32 %v906_v16, 0.0  ;;  %v927_v22 = vadd.f32 %v7064_v17, %v7941_v42  ;;  %v1194_v23 = vpack.c.bf16 %v1136_v15, %v1135_v14 }
  0xee   : > { %v918_v20 = vpop.f32.mrf.mxu0 }
  0xef   : > { %v1193_v21 = vpack.c.bf16 %v1134_v19, %v1133_v18  ;;  %v919_v25 = vadd.f32 %v7941_v42, %v918_v20  ;;  %v1139_v28 = vmax.f32 %v927_v22, 0.0 }
  0xf0   : > { %v7065_v24 = vpop.f32.mrf.mxu0 }
  0xf1   : > { %v930_v26 = vadd.f32 %v7065_v24, %v7941_v42  ;;  %7124 = vmatprep.mubr.msk.bf16.mxu0 %vm1236_vm3, %v1193_v21  ;;  %v1137_v32 = vmax.f32 %v919_v25, 0.0 }
  0xf2   : > { %v921_v27 = vpop.f32.mrf.mxu0  ;;  %7125 = vmatmul.mubr.msk.bf16.gmra.mxu0 %vm1236_vm3, %v1194_v23 }
  0xf3   : > { %v1140_v29 = vmax.f32 %v930_v26, 0.0  ;;  %v922_v30 = vadd.f32 %v7941_v42, %v921_v27 }
  0xf4   : > { %v7068_v31 = vpop.f32.mrf.mxu0 }
  0xf5   : > { %v1138_v33 = vmax.f32 %v922_v30, 0.0  ;;  %v943_v36 = vadd.f32 %v7068_v31, %v7941_v42  ;;  %v1196_v37 = vpack.c.bf16 %v1140_v29, %v1139_v28 }
  0xf6   : > { %v934_v34 = vpop.f32.mrf.mxu0 }
  0xf7   : > { %v1195_v35 = vpack.c.bf16 %v1138_v33, %v1137_v32  ;;  %v935_v39 = vadd.f32 %v7941_v42, %v934_v34  ;;  %v1143_v43 = vmax.f32 %v943_v36, 0.0 }
  0xf8   : > { %v7069_v38 = vpop.f32.mrf.mxu0 }
  0xf9   : > { %v946_v40 = vadd.f32 %v7069_v38, %v7941_v42  ;;  %7128 = vmatprep.mubr.msk.bf16.mxu0 %vm1236_vm3, %v1195_v35  ;;  %v1141_v47 = vmax.f32 %v935_v39, 0.0 }
  0xfa   : > { %v937_v41 = vpop.f32.mrf.mxu0  ;;  %7129 = vmatmul.mubr.msk.bf16.gmra.mxu0 %vm1236_vm3, %v1196_v37 }
  0xfb   : > { %v1144_v44 = vmax.f32 %v946_v40, 0.0  ;;  %v938_v45 = vadd.f32 %v7941_v42, %v937_v41 }
  0xfc   : > { %v7072_v46 = vpop.f32.mrf.mxu0 }
  0xfd   : > { %v1142_v48 = vmax.f32 %v938_v45, 0.0  ;;  %v959_v51 = vadd.f32 %v7072_v46, %v7941_v42  ;;  %v1198_v52 = vpack.c.bf16 %v1144_v44, %v1143_v43 }
  0xfe   : > { %v950_v49 = vpop.f32.mrf.mxu0 }
  0xff   : > { %v1197_v50 = vpack.c.bf16 %v1142_v48, %v1141_v47  ;;  %v951_v54 = vadd.f32 %v7941_v42, %v950_v49  ;;  %v1147_v57 = vmax.f32 %v959_v51, 0.0 }
 0x100   : > { %v7073_v53 = vpop.f32.mrf.mxu0 }
 0x101   : > { %v962_v55 = vadd.f32 %v7073_v53, %v7941_v42  ;;  %7132 = vmatprep.mubr.msk.bf16.mxu0 %vm1236_vm3, %v1197_v50  ;;  %v1145_v61 = vmax.f32 %v951_v54, 0.0 }
 0x102   : > { %v953_v56 = vpop.f32.mrf.mxu0  ;;  %7133 = vmatmul.mubr.msk.bf16.gmra.mxu0 %vm1236_vm3, %v1198_v52 }
 0x103   : > { %v1148_v58 = vmax.f32 %v962_v55, 0.0  ;;  %v954_v59 = vadd.f32 %v7941_v42, %v953_v56 }
 0x104   : > { %v7076_v60 = vpop.f32.mrf.mxu0 }
 0x105   : > { %v1146_v62 = vmax.f32 %v954_v59, 0.0  ;;  %v975_v1 = vadd.f32 %v7076_v60, %v7941_v42  ;;  %v1200_v2 = vpack.c.bf16 %v1148_v58, %v1147_v57 }
 0x106   : > { %v966_v63 = vpop.f32.mrf.mxu0 }
 0x107   : > { %v1199_v0 = vpack.c.bf16 %v1146_v62, %v1145_v61  ;;  %v967_v4 = vadd.f32 %v7941_v42, %v966_v63  ;;  %v1151_v8 = vmax.f32 %v975_v1, 0.0 }
 0x108   : > { %v7077_v3 = vpop.f32.mrf.mxu0 }
 0x109   : > { %v978_v5 = vadd.f32 %v7077_v3, %v7941_v42  ;;  %7136 = vmatprep.mubr.msk.bf16.mxu0 %vm1236_vm3, %v1199_v0  ;;  %v1149_v12 = vmax.f32 %v967_v4, 0.0 }
 0x10a   : > { %v969_v7 = vpop.f32.mrf.mxu0  ;;  %7137 = vmatmul.mubr.msk.bf16.gmra.mxu0 %vm1236_vm3, %v1200_v2 }
 0x10b   : > { %v1152_v9 = vmax.f32 %v978_v5, 0.0  ;;  %v970_v10 = vadd.f32 %v7941_v42, %v969_v7 }
 0x10c   : > { %v7080_v11 = vpop.f32.mrf.mxu0 }
 0x10d   : > { %v1150_v13 = vmax.f32 %v970_v10, 0.0  ;;  %v1202_v16 = vpack.c.bf16 %v1152_v9, %v1151_v8  ;;  %v991_v20 = vadd.f32 %v7080_v11, %v7941_v42 }
 0x10e   : > { %v982_v14 = vpop.f32.mrf.mxu0 }
 0x10f   : > { %v1201_v15 = vpack.c.bf16 %v1150_v13, %v1149_v12  ;;  %v983_v18 = vadd.f32 %v7941_v42, %v982_v14  ;;  %v1155_v27 = vmax.f32 %v991_v20, 0.0 }
 0x110   : > { %v7081_v17 = vpop.f32.mrf.mxu0 }
 0x111   : > { %v994_v19 = vadd.f32 %v7081_v17, %v7941_v42  ;;  %7140 = vmatprep.mubr.msk.bf16.mxu0 %vm1236_vm3, %v1201_v15  ;;  %v1153_v25 = vmax.f32 %v983_v18, 0.0 }
 0x112   : > { %v985_v21 = vpop.f32.mrf.mxu0  ;;  %7141 = vmatmul.mubr.msk.bf16.gmra.mxu0 %vm1236_vm3, %v1202_v16  ;;  %v8026_v16 = vld [vmem:[%s9754_s10 + $0x8] sm:$0xff]  }
 0x113   : > { %v1156_v22 = vmax.f32 %v994_v19, 0.0  ;;  %v986_v23 = vadd.f32 %v7941_v42, %v985_v21  ;;  %7376 = vmatprep.subr.bf16.mxu0 %v8026_v16 }
 0x114   : > { %v7084_v24 = vpop.f32.mrf.mxu0 }
 0x115   : > { %v1154_v26 = vmax.f32 %v986_v23, 0.0  ;;  %v1204_v30 = vpack.c.bf16 %v1156_v22, %v1155_v27  ;;  %v1007_v34 = vadd.f32 %v7084_v24, %v7941_v42 }
 0x116   : > { %v998_v28 = vpop.f32.mrf.mxu0 }
 0x117   : > { %v1203_v29 = vpack.c.bf16 %v1154_v26, %v1153_v25  ;;  %v999_v32 = vadd.f32 %v7941_v42, %v998_v28  ;;  %v1159_v41 = vmax.f32 %v1007_v34, 0.0 }
 0x118   : > { %v7085_v31 = vpop.f32.mrf.mxu0 }
 0x119   : > { %v1010_v33 = vadd.f32 %v7085_v31, %v7941_v42  ;;  %7144 = vmatprep.mubr.msk.bf16.mxu0 %vm1236_vm3, %v1203_v29  ;;  %v1157_v39 = vmax.f32 %v999_v32, 0.0 }
 0x11a   : > { %v1001_v35 = vpop.f32.mrf.mxu0  ;;  %7145 = vmatmul.mubr.msk.bf16.gmra.mxu0 %vm1236_vm3, %v1204_v30 }
 0x11b   : > { %v1002_v36 = vadd.f32 %v7941_v42, %v1001_v35  ;;  %v1160_v37 = vmax.f32 %v1010_v33, 0.0 }
 0x11c   : > { %v7088_v38 = vpop.f32.mrf.mxu0 }
 0x11d   : > { %v1158_v40 = vmax.f32 %v1002_v36, 0.0  ;;  %v1206_v45 = vpack.c.bf16 %v1160_v37, %v1159_v41  ;;  %v1023_v49 = vadd.f32 %v7088_v38, %v7941_v42 }
 0x11e   : > { %v1014_v43 = vpop.f32.mrf.mxu0 }
 0x11f   : > { %v1205_v44 = vpack.c.bf16 %v1158_v40, %v1157_v39  ;;  %v1015_v47 = vadd.f32 %v7941_v42, %v1014_v43  ;;  %v1163_v56 = vmax.f32 %v1023_v49, 0.0 }
 0x120   : > { %v7089_v46 = vpop.f32.mrf.mxu0 }
 0x121   : > { %v1026_v48 = vadd.f32 %v7089_v46, %v7941_v42  ;;  %7148 = vmatprep.mubr.msk.bf16.mxu1 %vm1236_vm3, %v1205_v44  ;;  %v1161_v54 = vmax.f32 %v1015_v47, 0.0 }
 0x122   : > { %v1017_v50 = vpop.f32.mrf.mxu0  ;;  %7149 = vmatmul.mubr.msk.bf16.vlgmr.msra.gmra.mxu1 %vm1236_vm3, %v1206_v45 }
 0x123   : > { %v1018_v51 = vadd.f32 %v7941_v42, %v1017_v50  ;;  %7247 = vmatpush3.bf16.msra.mxu1 %v7863_v6  ;;  %v1164_v52 = vmax.f32 %v1026_v48, 0.0 }
 0x124   : > { %v7092_v53 = vpop.f32.mrf.mxu0 }
 0x125   : > { %v1162_v55 = vmax.f32 %v1018_v51, 0.0  ;;  %v1208_v59 = vpack.c.bf16 %v1164_v52, %v1163_v56  ;;  %v1039_v63 = vadd.f32 %v7092_v53, %v7941_v42 }
 0x126   : > { %v1030_v57 = vpop.f32.mrf.mxu0 }
 0x127   : > { %v1207_v58 = vpack.c.bf16 %v1162_v55, %v1161_v54  ;;  %v1031_v61 = vadd.f32 %v7941_v42, %v1030_v57  ;;  %v1167_v5 = vmax.f32 %v1039_v63, 0.0 }
 0x128   : > { %v7093_v60 = vpop.f32.mrf.mxu0 }
 0x129   : > { %v1042_v62 = vadd.f32 %v7093_v60, %v7941_v42  ;;  %7152 = vmatprep.mubr.msk.bf16.mxu1 %vm1236_vm3, %v1207_v58  ;;  %v1165_v3 = vmax.f32 %v1031_v61, 0.0 }
 0x12a   : > { %v1033_v0 = vpop.f32.mrf.mxu0  ;;  %7153 = vmatmul.mubr.msk.bf16.gmra.mxu1 %vm1236_vm3, %v1208_v59 }
 0x12b   : > { %v1034_v6 = vadd.f32 %v7941_v42, %v1033_v0  ;;  %v1168_v1 = vmax.f32 %v1042_v62, 0.0 }
 0x12c   : > { %v7096_v2 = vpop.f32.mrf.mxu0 }
 0x12d   : > { %v1166_v4 = vmax.f32 %v1034_v6, 0.0  ;;  %v1210_v9 = vpack.c.bf16 %v1168_v1, %v1167_v5  ;;  %v1055_v13 = vadd.f32 %v7096_v2, %v7941_v42 }
 0x12e   : > { %v1046_v7 = vpop.f32.mrf.mxu0 }
 0x12f   : > { %v1209_v8 = vpack.c.bf16 %v1166_v4, %v1165_v3  ;;  %v1047_v11 = vadd.f32 %v7941_v42, %v1046_v7  ;;  %v1171_v21 = vmax.f32 %v1055_v13, 0.0 }
 0x130   : > { %v7097_v10 = vpop.f32.mrf.mxu0 }
 0x131   : > { %v1058_v12 = vadd.f32 %v7097_v10, %v7941_v42  ;;  %7156 = vmatprep.mubr.msk.bf16.mxu1 %vm1236_vm3, %v1209_v8  ;;  %v1169_v19 = vmax.f32 %v1047_v11, 0.0 }
 0x132   : > { %v1049_v14 = vpop.f32.mrf.mxu0  ;;  %7157 = vmatmul.mubr.msk.bf16.gmra.mxu1 %vm1236_vm3, %v1210_v9 }
 0x133   : > { %v1050_v15 = vadd.f32 %v7941_v42, %v1049_v14  ;;  %v1172_v17 = vmax.f32 %v1058_v12, 0.0 }
 0x134   : > { %v7100_v18 = vpop.f32.mrf.mxu0 }
 0x135   : > { %v1170_v20 = vmax.f32 %v1050_v15, 0.0  ;;  %v1212_v24 = vpack.c.bf16 %v1172_v17, %v1171_v21  ;;  %v1071_v28 = vadd.f32 %v7100_v18, %v7941_v42  ;;  %v7687_v15 = vld [vmem:[%s7951_s18] sm:$0xff]   ;;  %v7688_v18 = vld [vmem:[%s7951_s18 + $0x8] sm:$0xff]  }
 0x136   : > { %v1062_v22 = vpop.f32.mrf.mxu0  ;;  %v7693_v21 = vld [vmem:[%s7951_s18 + $0x28] sm:$0xff]  }
 0x137   : > { %v1211_v23 = vpack.c.bf16 %v1170_v20, %v1169_v19  ;;  %v1063_v26 = vadd.f32 %v7941_v42, %v1062_v22  ;;  %v1175_v35 = vmax.f32 %v1071_v28, 0.0  ;;  %v7690_v19 = vld [vmem:[%s7951_s18 + $0x18] sm:$0xff]   ;;  %v7692_v20 = vld [vmem:[%s7951_s18 + $0x20] sm:$0xff]   ;;  %v7694_v22 = vld [vmem:[%s7951_s18 + $0x30] sm:$0xff]  }
 0x138   : > { %v7101_v25 = vpop.f32.mrf.mxu0  ;;  %v7699_v28 = vld [vmem:[%s7951_s18 + $0x58] sm:$0xff]  }
 0x139   : > { %v1074_v27 = vadd.f32 %v7101_v25, %v7941_v42  ;;  %7160 = vmatprep.mubr.msk.bf16.mxu1 %vm1236_vm3, %v1211_v23  ;;  %v1173_v33 = vmax.f32 %v1063_v26, 0.0  ;;  %v7695_v23 = vld [vmem:[%s7951_s18 + $0x38] sm:$0xff]   ;;  %v7697_v25 = vld [vmem:[%s7951_s18 + $0x48] sm:$0xff]   ;;  %v7698_v26 = vld [vmem:[%s7951_s18 + $0x50] sm:$0xff]  }
 0x13a   : > { %v1065_v29 = vpop.f32.mrf.mxu0  ;;  %7161 = vmatmul.mubr.msk.bf16.gmra.mxu1 %vm1236_vm3, %v1212_v24  ;;  %v7696_v24 = vld [vmem:[%s7951_s18 + $0x40] sm:$0xff]  }
 0x13b   : > { %v1066_v30 = vadd.f32 %v7941_v42, %v1065_v29  ;;  %v1176_v31 = vmax.f32 %v1074_v27, 0.0  ;;  %v7730_v27 = vld [vmem:[%s9756_s12 + $0x8] sm:$0xff]   ;;  %v7700_v29 = vld [vmem:[%s7951_s18 + $0x60] sm:$0xff]  }
 0x13c   : > { %v7104_v32 = vpop.f32.mrf.mxu0  ;;  %7508 = vmatprep.subr.bf16.mxu1 %v7730_v27 }
 0x13d   : > { %v1174_v34 = vmax.f32 %v1066_v30, 0.0  ;;  %v1214_v38 = vpack.c.bf16 %v1176_v31, %v1175_v35  ;;  %v1087_v43 = vadd.f32 %v7104_v32, %v7941_v42  ;;  %v7701_v30 = vld [vmem:[%s7951_s18 + $0x68] sm:$0xff]   ;;  %v7702_v31 = vld [vmem:[%s7951_s18 + $0x70] sm:$0xff]   ;;  %v7703_v32 = vld [vmem:[%s7951_s18 + $0x78] sm:$0xff]  }
 0x13e   : > { %v1078_v36 = vpop.f32.mrf.mxu0  ;;  %v7706_v35 = vld [vmem:[%s7951_s18 + $0x90] sm:$0xff]  }
 0x13f   : > { %v1213_v37 = vpack.c.bf16 %v1174_v34, %v1173_v33  ;;  %v1079_v40 = vadd.f32 %v7941_v42, %v1078_v36  ;;  %v1179_v50 = vmax.f32 %v1087_v43, 0.0  ;;  %v7704_v33 = vld [vmem:[%s7951_s18 + $0x80] sm:$0xff]   ;;  %v7705_v34 = vld [vmem:[%s7951_s18 + $0x88] sm:$0xff]  }
 0x140   : > { %v7105_v39 = vpop.f32.mrf.mxu0 }
 0x141   : > { %v1090_v41 = vadd.f32 %v7105_v39, %v7941_v42  ;;  %7164 = vmatprep.mubr.msk.bf16.mxu1 %vm1236_vm3, %v1213_v37  ;;  %v1177_v48 = vmax.f32 %v1079_v40, 0.0  ;;  %v7707_v40 = vld [vmem:[%s7951_s18 + $0x98] sm:$0xff]  }
 0x142   : > { %v1081_v44 = vpop.f32.mrf.mxu0  ;;  %7165 = vmatmul.mubr.msk.bf16.gmra.mxu1 %vm1236_vm3, %v1214_v38  ;;  %v8099_v38 = vld [vmem:[%s9749_s5] ss:$0 sm:$0xff] }
 0x143   : > { %v1082_v45 = vadd.f32 %v7941_v42, %v1081_v44  ;;  %v1180_v46 = vmax.f32 %v1090_v41, 0.0  ;;  %v7709_v44 = vld [vmem:[%s7951_s18 + $0xa0] sm:$0xff]  }
 0x144   : > { %v7108_v47 = vpop.f32.mrf.mxu0 }
 0x145   : > { %v1178_v49 = vmax.f32 %v1082_v45, 0.0  ;;  %v1216_v53 = vpack.c.bf16 %v1180_v46, %v1179_v50  ;;  %v1103_v57 = vadd.f32 %v7108_v47, %v7941_v42 }
 0x146   : > { %v1094_v51 = vpop.f32.mrf.mxu0 }
 0x147   : > { %v1215_v52 = vpack.c.bf16 %v1178_v49, %v1177_v48  ;;  %v1095_v55 = vadd.f32 %v7941_v42, %v1094_v51  ;;  %v1183_v0 = vmax.f32 %v1103_v57, 0.0  ;;  %v7710_v57 = vld [vmem:[%s7951_s18 + $0xa8] sm:$0xff]  }
 0x148   : > { %v7109_v54 = vpop.f32.mrf.mxu0 }
 0x149   : > { %v1106_v56 = vadd.f32 %v7109_v54, %v7941_v42  ;;  %7168 = vmatprep.mubr.msk.bf16.mxu1 %vm1236_vm3, %v1215_v52  ;;  %v1181_v62 = vmax.f32 %v1095_v55, 0.0 }
 0x14a   : > { %v1097_v58 = vpop.f32.mrf.mxu0  ;;  %7169 = vmatmul.mubr.msk.bf16.gmra.mxu1 %vm1236_vm3, %v1216_v53 }
 0x14b   : > { %v1098_v59 = vadd.f32 %v7941_v42, %v1097_v58  ;;  %v1184_v60 = vmax.f32 %v1106_v56, 0.0  ;;  %v7725_v58 = vld [vmem:[%s9754_s10] sm:$0xff]  }
 0x14c   : > { %v7112_v61 = vpop.f32.mrf.mxu0 }
 0x14d   : > { %v1182_v63 = vmax.f32 %v1098_v59, 0.0  ;;  %v1218_v2 = vpack.c.bf16 %v1184_v60, %v1183_v0  ;;  %v1119_v7 = vadd.f32 %v7112_v61, %v7941_v42  ;;  %v7711_v61 = vld [vmem:[%s7951_s18 + $0xb0] sm:$0xff]  }
 0x14e   : > { %v1110_v6 = vpop.f32.mrf.mxu0 }
 0x14f   : > { %v1217_v1 = vpack.c.bf16 %v1182_v63, %v1181_v62  ;;  %v1111_v4 = vadd.f32 %v7941_v42, %v1110_v6  ;;  %v1187_v13 = vmax.f32 %v1119_v7, 0.0 }
 0x150   : > { %v7113_v3 = vpop.f32.mrf.mxu0 }
 0x151   : > { %v1122_v5 = vadd.f32 %v7113_v3, %v7941_v42  ;;  %7172 = vmatprep.mubr.msk.bf16.mxu1 %vm1236_vm3, %v1217_v1  ;;  %v1185_v11 = vmax.f32 %v1111_v4, 0.0 }
 0x152   : > { %v1113_v8 = vpop.f32.mrf.mxu0  ;;  %7173 = vmatmul.mubr.msk.bf16.gmra.mxu1 %vm1236_vm3, %v1218_v2 }
 0x153   : > { %v1114_v9 = vadd.f32 %v7941_v42, %v1113_v8  ;;  %v1188_v10 = vmax.f32 %v1122_v5, 0.0  ;;  %v7689_v42 = vld [vmem:[%s7951_s18 + $0x10] sm:$0xff]  }
 0x155   : > { %v1186_v12 = vmax.f32 %v1114_v9, 0.0  ;;  %v1220_v17 = vpack.c.bf16 %v1188_v10, %v1187_v13  ;;  %v7712_v10 = vld [vmem:[%s7951_s18 + $0xb8] sm:$0xff]  }
 0x157   : > { %v1219_v14 = vpack.c.bf16 %v1186_v12, %v1185_v11  ;;  %v7713_v12 = vld [vmem:[%s7951_s18 + $0xc0] sm:$0xff]  }
 0x159   : > { %7176 = vmatprep.mubr.msk.bf16.mxu1 %vm1236_vm3, %v1219_v14 }
 0x15a   : > { %7177 = vmatmul.mubr.msk.bf16.gmra.mxu1 %vm1236_vm3, %v1220_v17 }
 0x15b   : > { %7248 = vmatprep.mubr.msk.bf16.mxu1 %vm732_vm2, %v7687_v15 }
 0x162   : > { %7249 = vmatmul.mubr.msk.bf16.vlgmr.msra.gmra.mxu1 %vm732_vm2, %v7688_v18 }
 0x163   : > { %7252 = vmatprep.mubr.msk.bf16.mxu1 %vm732_vm2, %v7689_v42  ;;  %7509 = vmatpush3.bf16.msra.mxu1 %v7730_v27 }
 0x16a   : > { %7253 = vmatmul.mubr.msk.bf16.gmra.mxu1 %vm732_vm2, %v7690_v19 }
 0x16b   : > { %7256 = vmatprep.mubr.msk.bf16.mxu1 %vm732_vm2, %v7692_v20 }
 0x172   : > { %7257 = vmatmul.mubr.msk.bf16.gmra.mxu1 %vm732_vm2, %v7693_v21 }
 0x173   : > { %7260 = vmatprep.mubr.msk.bf16.mxu1 %vm732_vm2, %v7694_v22 }
 0x17a   : > { %7261 = vmatmul.mubr.msk.bf16.gmra.mxu1 %vm732_vm2, %v7695_v23 }
 0x17b   : > { %7264 = vmatprep.mubr.msk.bf16.mxu1 %vm732_vm2, %v7696_v24 }
 0x182   : > { %7265 = vmatmul.mubr.msk.bf16.gmra.mxu1 %vm732_vm2, %v7697_v25  ;;  %v7714_v25 = vld [vmem:[%s7951_s18 + $0xc8] sm:$0xff]  }
 0x183   : > { %7268 = vmatprep.mubr.msk.bf16.mxu1 %vm732_vm2, %v7698_v26 }
 0x18a   : > { %7269 = vmatmul.mubr.msk.bf16.gmra.mxu1 %vm732_vm2, %v7699_v28  ;;  %v7715_v28 = vld [vmem:[%s7951_s18 + $0xd0] sm:$0xff]  }
 0x18b   : > { %7272 = vmatprep.mubr.msk.bf16.mxu1 %vm732_vm2, %v7700_v29 }
 0x192   : > { %7273 = vmatmul.mubr.msk.bf16.gmra.mxu1 %vm732_vm2, %v7701_v30 }
 0x193   : > { %7276 = vmatprep.mubr.msk.bf16.mxu1 %vm732_vm2, %v7702_v31 }
 0x19a   : > { %7277 = vmatmul.mubr.msk.bf16.gmra.mxu1 %vm732_vm2, %v7703_v32 }
 0x19b   : > { %7280 = vmatprep.mubr.msk.bf16.mxu1 %vm732_vm2, %v7704_v33 }
 0x1a2   : > { %v7118_v36 = vpop.f32.mrf.mxu0  ;;  %7281 = vmatmul.mubr.msk.bf16.gmra.mxu1 %vm732_vm2, %v7705_v34 }
 0x1a3   : > { %7284 = vmatprep.mubr.msk.bf16.mxu1 %vm732_vm2, %v7706_v35  ;;  %v1376_v45 = vadd.f32 %v7118_v36, %v8099_v38 }
 0x1a4   : > { %v1367_v37 = vpop.f32.mrf.mxu0 }
 0x1a5   : > { %v1368_v41 = vadd.f32 %v8099_v38, %v1367_v37  ;;  %v1624_v52 = vmax.f32 %v1376_v45, 0.0 }
 0x1a6   : > { %v7119_v39 = vpop.f32.mrf.mxu0 }
 0x1a7   : > { %v1379_v43 = vadd.f32 %v7119_v39, %v8099_v38  ;;  %v1622_v50 = vmax.f32 %v1368_v41, 0.0 }
 0x1a8   : > { %v1370_v46 = vpop.f32.mrf.mxu0 }
 0x1a9   : > { %v1371_v47 = vadd.f32 %v8099_v38, %v1370_v46  ;;  %v1625_v48 = vmax.f32 %v1379_v43, 0.0  ;;  %v7716_v43 = vld [vmem:[%s7951_s18 + $0xd8] sm:$0xff]   ;;  %v7717_v46 = vld [vmem:[%s7951_s18 + $0xe0] sm:$0xff]  }
 0x1aa   : > { %v7122_v49 = vpop.f32.mrf.mxu0  ;;  %7285 = vmatmul.mubr.msk.bf16.gmra.mxu1 %vm732_vm2, %v7707_v40 }
 0x1ab   : > { %v1623_v51 = vmax.f32 %v1371_v47, 0.0  ;;  %7288 = vmatprep.mubr.msk.bf16.mxu1 %vm732_vm2, %v7709_v44  ;;  %v1687_v55 = vpack.c.bf16 %v1625_v48, %v1624_v52  ;;  %v1392_v62 = vadd.f32 %v7122_v49, %v8099_v38 }
 0x1ac   : > { %v1383_v53 = vpop.f32.mrf.mxu0 }
 0x1ad   : > { %v1686_v54 = vpack.c.bf16 %v1623_v51, %v1622_v50  ;;  %v1384_v59 = vadd.f32 %v8099_v38, %v1383_v53  ;;  %v1628_v4 = vmax.f32 %v1392_v62, 0.0  ;;  %v7719_v62 = vld [vmem:[%s7951_s18 + $0xf0] sm:$0xff]  }
 0x1ae   : > { %v7123_v56 = vpop.f32.mrf.mxu0 }
 0x1af   : > { %v1395_v60 = vadd.f32 %v7123_v56, %v8099_v38  ;;  %7182 = vmatprep.mubr.msk.bf16.mxu0 %vm1236_vm3, %v1686_v54  ;;  %v1626_v2 = vmax.f32 %v1384_v59, 0.0  ;;  %v7718_v59 = vld [vmem:[%s7951_s18 + $0xe8] sm:$0xff]  }
 0x1b0   : > { %v1386_v63 = vpop.f32.mrf.mxu0  ;;  %7183 = vmatmul.mubr.msk.bf16.vlgmr.msra.gmra.mxu0 %vm1236_vm3, %v1687_v55 }
 0x1b1   : > { %v1387_v0 = vadd.f32 %v8099_v38, %v1386_v63  ;;  %7377 = vmatpush3.bf16.msra.mxu0 %v8026_v16  ;;  %v1629_v6 = vmax.f32 %v1395_v60, 0.0 }
 0x1b2   : > { %v7126_v1 = vpop.f32.mrf.mxu0  ;;  %7289 = vmatmul.mubr.msk.bf16.gmra.mxu1 %vm732_vm2, %v7710_v57  ;;  %7378 = vmatprep.subr.bf16.mxu0 %v7725_v58 }
 0x1b3   : > { %v1627_v3 = vmax.f32 %v1387_v0, 0.0  ;;  %7292 = vmatprep.mubr.msk.bf16.mxu1 %vm732_vm2, %v7711_v61  ;;  %v1689_v8 = vpack.c.bf16 %v1629_v6, %v1628_v4  ;;  %v1408_v13 = vadd.f32 %v7126_v1, %v8099_v38 }
 0x1b4   : > { %v1399_v5 = vpop.f32.mrf.mxu0 }
 0x1b5   : > { %v1688_v7 = vpack.c.bf16 %v1627_v3, %v1626_v2  ;;  %7379 = vmatpush3.bf16.msra.mxu0 %v7725_v58  ;;  %v1400_v11 = vadd.f32 %v8099_v38, %v1399_v5  ;;  %v1632_v20 = vmax.f32 %v1408_v13, 0.0  ;;  %v7721_v13 = vld [vmem:[%s7951_s18 + $0x100] sm:$0xff]  }
 0x1b6   : > { %v7127_v9 = vpop.f32.mrf.mxu0 }
 0x1b7   : > { %v1411_v16 = vadd.f32 %v7127_v9, %v8099_v38  ;;  %7186 = vmatprep.mubr.msk.bf16.mxu0 %vm1236_vm3, %v1688_v7  ;;  %v1630_v42 = vmax.f32 %v1400_v11, 0.0  ;;  %v7720_v11 = vld [vmem:[%s7951_s18 + $0xf8] sm:$0xff]  }
 0x1b8   : > { %v1402_v14 = vpop.f32.mrf.mxu0  ;;  %7187 = vmatmul.mubr.msk.bf16.gmra.mxu0 %vm1236_vm3, %v1689_v8 }
 0x1b9   : > { %v1403_v15 = vadd.f32 %v8099_v38, %v1402_v14  ;;  %v1633_v17 = vmax.f32 %v1411_v16, 0.0 }
 0x1ba   : > { %v7130_v18 = vpop.f32.mrf.mxu0  ;;  %7293 = vmatmul.mubr.msk.bf16.gmra.mxu1 %vm732_vm2, %v7712_v10 }
 0x1bb   : > { %v1631_v19 = vmax.f32 %v1403_v15, 0.0  ;;  %7296 = vmatprep.mubr.msk.bf16.mxu1 %vm732_vm2, %v7713_v12  ;;  %v1691_v23 = vpack.c.bf16 %v1633_v17, %v1632_v20  ;;  %v1424_v29 = vadd.f32 %v7130_v18, %v8099_v38 }
 0x1bc   : > { %v1415_v21 = vpop.f32.mrf.mxu0 }
 0x1bd   : > { %v1690_v22 = vpack.c.bf16 %v1631_v19, %v1630_v42  ;;  %v1416_v26 = vadd.f32 %v8099_v38, %v1415_v21  ;;  %v1636_v36 = vmax.f32 %v1424_v29, 0.0  ;;  %v7723_v29 = vld [vmem:[%s7951_s18 + $0x110] sm:$0xff]  }
 0x1be   : > { %v7131_v24 = vpop.f32.mrf.mxu0 }
 0x1bf   : > { %v1427_v27 = vadd.f32 %v7131_v24, %v8099_v38  ;;  %7190 = vmatprep.mubr.msk.bf16.mxu0 %vm1236_vm3, %v1690_v22  ;;  %v1634_v34 = vmax.f32 %v1416_v26, 0.0  ;;  %v7722_v26 = vld [vmem:[%s7951_s18 + $0x108] sm:$0xff]  }
 0x1c0   : > { %v1418_v30 = vpop.f32.mrf.mxu0  ;;  %7191 = vmatmul.mubr.msk.bf16.gmra.mxu0 %vm1236_vm3, %v1691_v23 }
 0x1c1   : > { %v1419_v31 = vadd.f32 %v8099_v38, %v1418_v30  ;;  %v1637_v32 = vmax.f32 %v1427_v27, 0.0 }
 0x1c2   : > { %v7134_v33 = vpop.f32.mrf.mxu0  ;;  %7297 = vmatmul.mubr.msk.bf16.gmra.mxu1 %vm732_vm2, %v7714_v25 }
 0x1c3   : > { %v1635_v35 = vmax.f32 %v1419_v31, 0.0  ;;  %7300 = vmatprep.mubr.msk.bf16.mxu1 %vm732_vm2, %v7715_v28  ;;  %v1693_v40 = vpack.c.bf16 %v1637_v32, %v1636_v36  ;;  %v1440_v47 = vadd.f32 %v7134_v33, %v8099_v38 }
 0x1c4   : > { %v1431_v37 = vpop.f32.mrf.mxu0 }
 0x1c5   : > { %v1692_v39 = vpack.c.bf16 %v1635_v35, %v1634_v34  ;;  %v1432_v44 = vadd.f32 %v8099_v38, %v1431_v37  ;;  %v1640_v54 = vmax.f32 %v1440_v47, 0.0  ;;  %v7726_v47 = vld [vmem:[%s7951_s18 + $0x120] sm:$0xff]  }
 0x1c6   : > { %v7135_v41 = vpop.f32.mrf.mxu0 }
 0x1c7   : > { %v1443_v45 = vadd.f32 %v7135_v41, %v8099_v38  ;;  %7194 = vmatprep.mubr.msk.bf16.mxu0 %vm1236_vm3, %v1692_v39  ;;  %v1638_v52 = vmax.f32 %v1432_v44, 0.0  ;;  %v7724_v44 = vld [vmem:[%s7951_s18 + $0x118] sm:$0xff]  }
 0x1c8   : > { %v1434_v48 = vpop.f32.mrf.mxu0  ;;  %7195 = vmatmul.mubr.msk.bf16.gmra.mxu0 %vm1236_vm3, %v1693_v40 }
 0x1c9   : > { %v1435_v49 = vadd.f32 %v8099_v38, %v1434_v48  ;;  %v1641_v50 = vmax.f32 %v1443_v45, 0.0 }
 0x1ca   : > { %v7138_v51 = vpop.f32.mrf.mxu0  ;;  %7301 = vmatmul.mubr.msk.bf16.gmra.mxu1 %vm732_vm2, %v7716_v43 }
 0x1cb   : > { %v1639_v53 = vmax.f32 %v1435_v49, 0.0  ;;  %7304 = vmatprep.mubr.msk.bf16.mxu1 %vm732_vm2, %v7717_v46  ;;  %v1695_v57 = vpack.c.bf16 %v1641_v50, %v1640_v54  ;;  %v1456_v63 = vadd.f32 %v7138_v51, %v8099_v38 }
 0x1cc   : > { %v1447_v55 = vpop.f32.mrf.mxu0 }
 0x1cd   : > { %v1694_v56 = vpack.c.bf16 %v1639_v53, %v1638_v52  ;;  %v1448_v60 = vadd.f32 %v8099_v38, %v1447_v55  ;;  %v1644_v5 = vmax.f32 %v1456_v63, 0.0  ;;  %v7728_v63 = vld [vmem:[%s7951_s18 + $0x130] sm:$0xff]  }
 0x1ce   : > { %v7139_v58 = vpop.f32.mrf.mxu0 }
 0x1cf   : > { %v1459_v61 = vadd.f32 %v7139_v58, %v8099_v38  ;;  %7198 = vmatprep.mubr.msk.bf16.mxu0 %vm1236_vm3, %v1694_v56  ;;  %v1642_v3 = vmax.f32 %v1448_v60, 0.0  ;;  %v7727_v60 = vld [vmem:[%s7951_s18 + $0x128] sm:$0xff]  }
 0x1d0   : > { %v1450_v0 = vpop.f32.mrf.mxu0  ;;  %7199 = vmatmul.mubr.msk.bf16.gmra.mxu0 %vm1236_vm3, %v1695_v57 }
 0x1d1   : > { %v1451_v6 = vadd.f32 %v8099_v38, %v1450_v0  ;;  %v1645_v1 = vmax.f32 %v1459_v61, 0.0 }
 0x1d2   : > { %v7142_v2 = vpop.f32.mrf.mxu0  ;;  %7305 = vmatmul.mubr.msk.bf16.gmra.mxu1 %vm732_vm2, %v7718_v59 }
 0x1d3   : > { %v1643_v4 = vmax.f32 %v1451_v6, 0.0  ;;  %7308 = vmatprep.mubr.msk.bf16.mxu1 %vm732_vm2, %v7719_v62  ;;  %v1697_v9 = vpack.c.bf16 %v1645_v1, %v1644_v5  ;;  %v1472_v14 = vadd.f32 %v7142_v2, %v8099_v38 }
 0x1d4   : > { %v1463_v7 = vpop.f32.mrf.mxu0 }
 0x1d5   : > { %v1696_v8 = vpack.c.bf16 %v1643_v4, %v1642_v3  ;;  %v1464_v16 = vadd.f32 %v8099_v38, %v1463_v7  ;;  %v1648_v21 = vmax.f32 %v1472_v14, 0.0  ;;  %v7731_v14 = vld [vmem:[%s7951_s18 + $0x140] sm:$0xff]  }
 0x1d6   : > { %v7143_v10 = vpop.f32.mrf.mxu0 }
 0x1d7   : > { %v1475_v12 = vadd.f32 %v7143_v10, %v8099_v38  ;;  %7202 = vmatprep.mubr.msk.bf16.mxu0 %vm1236_vm3, %v1696_v8  ;;  %v1646_v19 = vmax.f32 %v1464_v16, 0.0  ;;  %v7729_v16 = vld [vmem:[%s7951_s18 + $0x138] sm:$0xff]  }
 0x1d8   : > { %v1466_v15 = vpop.f32.mrf.mxu0  ;;  %7203 = vmatmul.mubr.msk.bf16.gmra.mxu0 %vm1236_vm3, %v1697_v9 }
 0x1d9   : > { %v1467_v17 = vadd.f32 %v8099_v38, %v1466_v15  ;;  %v1649_v18 = vmax.f32 %v1475_v12, 0.0 }
 0x1da   : > { %v7146_v42 = vpop.f32.mrf.mxu0  ;;  %7309 = vmatmul.mubr.msk.bf16.gmra.mxu1 %vm732_vm2, %v7720_v11 }
 0x1db   : > { %v1647_v20 = vmax.f32 %v1467_v17, 0.0  ;;  %7312 = vmatprep.mubr.msk.bf16.mxu1 %vm732_vm2, %v7721_v13  ;;  %v1699_v24 = vpack.c.bf16 %v1649_v18, %v1648_v21  ;;  %v1488_v30 = vadd.f32 %v7146_v42, %v8099_v38 }
 0x1dc   : > { %v1479_v22 = vpop.f32.mrf.mxu0 }
 0x1dd   : > { %v1698_v23 = vpack.c.bf16 %v1647_v20, %v1646_v19  ;;  %v1480_v27 = vadd.f32 %v8099_v38, %v1479_v22  ;;  %v1652_v37 = vmax.f32 %v1488_v30, 0.0  ;;  %v7733_v30 = vld [vmem:[%s7951_s18 + $0x150] sm:$0xff]  }
 0x1de   : > { %v7147_v25 = vpop.f32.mrf.mxu0 }
 0x1df   : > { %v1491_v28 = vadd.f32 %v7147_v25, %v8099_v38  ;;  %7206 = vmatprep.mubr.msk.bf16.mxu0 %vm1236_vm3, %v1698_v23  ;;  %v1650_v35 = vmax.f32 %v1480_v27, 0.0  ;;  %v7732_v27 = vld [vmem:[%s7951_s18 + $0x148] sm:$0xff]  }
 0x1e0   : > { %v1482_v31 = vpop.f32.mrf.mxu0  ;;  %7207 = vmatmul.mubr.msk.bf16.gmra.mxu0 %vm1236_vm3, %v1699_v24 }
 0x1e1   : > { %v1483_v32 = vadd.f32 %v8099_v38, %v1482_v31  ;;  %v1653_v33 = vmax.f32 %v1491_v28, 0.0 }
 0x1e2   : > { %v7150_v34 = vpop.f32.mrf.mxu1  ;;  %7313 = vmatmul.mubr.msk.bf16.gmra.mxu1 %vm732_vm2, %v7722_v26 }
 0x1e3   : > { %v1651_v36 = vmax.f32 %v1483_v32, 0.0  ;;  %7316 = vmatprep.mubr.msk.bf16.mxu1 %vm732_vm2, %v7723_v29  ;;  %v1701_v41 = vpack.c.bf16 %v1653_v33, %v1652_v37  ;;  %v1504_v48 = vadd.f32 %v7150_v34, %v8099_v38 }
 0x1e4   : > { %v1495_v39 = vpop.f32.mrf.mxu1 }
 0x1e5   : > { %v1700_v40 = vpack.c.bf16 %v1651_v36, %v1650_v35  ;;  %v1496_v45 = vadd.f32 %v8099_v38, %v1495_v39  ;;  %v1656_v55 = vmax.f32 %v1504_v48, 0.0  ;;  %v7735_v48 = vld [vmem:[%s7951_s18 + $0x160] sm:$0xff]  }
 0x1e6   : > { %v7151_v43 = vpop.f32.mrf.mxu1 }
 0x1e7   : > { %v1507_v46 = vadd.f32 %v7151_v43, %v8099_v38  ;;  %7210 = vmatprep.mubr.msk.bf16.mxu0 %vm1236_vm3, %v1700_v40  ;;  %v1654_v53 = vmax.f32 %v1496_v45, 0.0  ;;  %v7734_v45 = vld [vmem:[%s7951_s18 + $0x158] sm:$0xff]  }
 0x1e8   : > { %v1498_v49 = vpop.f32.mrf.mxu1  ;;  %7211 = vmatmul.mubr.msk.bf16.gmra.mxu0 %vm1236_vm3, %v1701_v41 }
 0x1e9   : > { %v1499_v50 = vadd.f32 %v8099_v38, %v1498_v49  ;;  %v1657_v51 = vmax.f32 %v1507_v46, 0.0 }
 0x1ea   : > { %v7154_v52 = vpop.f32.mrf.mxu1  ;;  %7317 = vmatmul.mubr.msk.bf16.gmra.mxu1 %vm732_vm2, %v7724_v44 }
 0x1eb   : > { %v1655_v54 = vmax.f32 %v1499_v50, 0.0  ;;  %7320 = vmatprep.mubr.msk.bf16.mxu1 %vm732_vm2, %v7726_v47  ;;  %v1703_v58 = vpack.c.bf16 %v1657_v51, %v1656_v55  ;;  %v1520_v0 = vadd.f32 %v7154_v52, %v8099_v38 }
 0x1ec   : > { %v1511_v56 = vpop.f32.mrf.mxu1 }
 0x1ed   : > { %v1702_v57 = vpack.c.bf16 %v1655_v54, %v1654_v53  ;;  %v1512_v61 = vadd.f32 %v8099_v38, %v1511_v56  ;;  %v1660_v7 = vmax.f32 %v1520_v0, 0.0 }
 0x1ee   : > { %v7155_v59 = vpop.f32.mrf.mxu1 }
 0x1ef   : > { %v1523_v62 = vadd.f32 %v7155_v59, %v8099_v38  ;;  %7214 = vmatprep.mubr.msk.bf16.mxu0 %vm1236_vm3, %v1702_v57  ;;  %v1658_v4 = vmax.f32 %v1512_v61, 0.0  ;;  %v7736_v61 = vld [vmem:[%s7951_s18 + $0x168] sm:$0xff]  }
 0x1f0   : > { %v1514_v6 = vpop.f32.mrf.mxu1  ;;  %7215 = vmatmul.mubr.msk.bf16.gmra.mxu0 %vm1236_vm3, %v1703_v58 }
 0x1f1   : > { %v1515_v1 = vadd.f32 %v8099_v38, %v1514_v6  ;;  %v1661_v2 = vmax.f32 %v1523_v62, 0.0  ;;  %v7755_v62 = vld [vmem:[%s9756_s12] sm:$0xff]   ;;  %v7737_v6 = vld [vmem:[%s7951_s18 + $0x170] sm:$0xff]  }
 0x1f2   : > { %v7158_v3 = vpop.f32.mrf.mxu1  ;;  %7321 = vmatmul.mubr.msk.bf16.gmra.mxu1 %vm732_vm2, %v7727_v60  ;;  %7510 = vmatprep.subr.bf16.mxu1 %v7755_v62 }
 0x1f3   : > { %v1659_v5 = vmax.f32 %v1515_v1, 0.0  ;;  %7324 = vmatprep.mubr.msk.bf16.mxu1 %vm732_vm2, %v7728_v63  ;;  %v1705_v10 = vpack.c.bf16 %v1661_v2, %v1660_v7  ;;  %v1536_v15 = vadd.f32 %v7158_v3, %v8099_v38  ;;  %7511 = vmatpush3.bf16.msra.mxu1 %v7755_v62 }
 0x1f4   : > { %v1527_v8 = vpop.f32.mrf.mxu1 }
 0x1f5   : > { %v1704_v9 = vpack.c.bf16 %v1659_v5, %v1658_v4  ;;  %v1528_v12 = vadd.f32 %v8099_v38, %v1527_v8  ;;  %v1664_v22 = vmax.f32 %v1536_v15, 0.0 }
 0x1f6   : > { %v7159_v11 = vpop.f32.mrf.mxu1 }
 0x1f7   : > { %v1539_v13 = vadd.f32 %v7159_v11, %v8099_v38  ;;  %7218 = vmatprep.mubr.msk.bf16.mxu0 %vm1236_vm3, %v1704_v9  ;;  %v1662_v20 = vmax.f32 %v1528_v12, 0.0 }
 0x1f8   : > { %v1530_v17 = vpop.f32.mrf.mxu1  ;;  %7219 = vmatmul.mubr.msk.bf16.gmra.mxu0 %vm1236_vm3, %v1705_v10 }
 0x1f9   : > { %v1531_v18 = vadd.f32 %v8099_v38, %v1530_v17  ;;  %v1665_v42 = vmax.f32 %v1539_v13, 0.0  ;;  %v7738_v13 = vld [vmem:[%s7951_s18 + $0x178] sm:$0xff]   ;;  %v7739_v17 = vld [vmem:[%s7951_s18 + $0x180] sm:$0xff]  }
 0x1fa   : > { %v7162_v19 = vpop.f32.mrf.mxu1  ;;  %7325 = vmatmul.mubr.msk.bf16.gmra.mxu1 %vm732_vm2, %v7729_v16 }
 0x1fb   : > { %v1663_v21 = vmax.f32 %v1531_v18, 0.0  ;;  %7328 = vmatprep.mubr.msk.bf16.mxu1 %vm732_vm2, %v7731_v14  ;;  %v1707_v25 = vpack.c.bf16 %v1665_v42, %v1664_v22  ;;  %v1552_v31 = vadd.f32 %v7162_v19, %v8099_v38 }
 0x1fc   : > { %v1543_v23 = vpop.f32.mrf.mxu1 }
 0x1fd   : > { %v1706_v24 = vpack.c.bf16 %v1663_v21, %v1662_v20  ;;  %v1544_v28 = vadd.f32 %v8099_v38, %v1543_v23  ;;  %v1668_v39 = vmax.f32 %v1552_v31, 0.0 }
 0x1fe   : > { %v7163_v26 = vpop.f32.mrf.mxu1 }
 0x1ff   : > { %v1555_v29 = vadd.f32 %v7163_v26, %v8099_v38  ;;  %7222 = vmatprep.mubr.msk.bf16.mxu0 %vm1236_vm3, %v1706_v24  ;;  %v1666_v36 = vmax.f32 %v1544_v28, 0.0 }
 0x200   : > { %v1546_v32 = vpop.f32.mrf.mxu1  ;;  %7223 = vmatmul.mubr.msk.bf16.gmra.mxu0 %vm1236_vm3, %v1707_v25 }
 0x201   : > { %v1547_v33 = vadd.f32 %v8099_v38, %v1546_v32  ;;  %v1669_v34 = vmax.f32 %v1555_v29, 0.0  ;;  %v7740_v29 = vld [vmem:[%s7951_s18 + $0x188] sm:$0xff]   ;;  %v7741_v32 = vld [vmem:[%s7951_s18 + $0x190] sm:$0xff]  }
 0x202   : > { %v7166_v35 = vpop.f32.mrf.mxu1  ;;  %7329 = vmatmul.mubr.msk.bf16.gmra.mxu1 %vm732_vm2, %v7732_v27 }
 0x203   : > { %v1667_v37 = vmax.f32 %v1547_v33, 0.0  ;;  %7332 = vmatprep.mubr.msk.bf16.mxu1 %vm732_vm2, %v7733_v30  ;;  %v1709_v43 = vpack.c.bf16 %v1669_v34, %v1668_v39  ;;  %v1568_v49 = vadd.f32 %v7166_v35, %v8099_v38 }
 0x204   : > { %v1559_v40 = vpop.f32.mrf.mxu1 }
 0x205   : > { %v1708_v41 = vpack.c.bf16 %v1667_v37, %v1666_v36  ;;  %v1560_v46 = vadd.f32 %v8099_v38, %v1559_v40  ;;  %v1672_v56 = vmax.f32 %v1568_v49, 0.0 }
 0x206   : > { %v7167_v44 = vpop.f32.mrf.mxu1 }
 0x207   : > { %v1571_v47 = vadd.f32 %v7167_v44, %v8099_v38  ;;  %7226 = vmatprep.mubr.msk.bf16.mxu0 %vm1236_vm3, %v1708_v41  ;;  %v1670_v54 = vmax.f32 %v1560_v46, 0.0 }
 0x208   : > { %v1562_v50 = vpop.f32.mrf.mxu1  ;;  %7227 = vmatmul.mubr.msk.bf16.gmra.mxu0 %vm1236_vm3, %v1709_v43 }
 0x209   : > { %v1563_v51 = vadd.f32 %v8099_v38, %v1562_v50  ;;  %v1673_v52 = vmax.f32 %v1571_v47, 0.0  ;;  %v7743_v50 = vld [vmem:[%s7951_s18 + $0x1a0] sm:$0xff]  }
 0x20a   : > { %v7170_v53 = vpop.f32.mrf.mxu1  ;;  %7333 = vmatmul.mubr.msk.bf16.gmra.mxu1 %vm732_vm2, %v7734_v45  ;;  %v8269_v45 = vld [vmem:[%s9753_s9] ss:$0 sm:$0xff] }
 0x20b   : > { %v1671_v55 = vmax.f32 %v1563_v51, 0.0  ;;  %7336 = vmatprep.mubr.msk.bf16.mxu1 %vm732_vm2, %v7735_v48  ;;  %v1711_v59 = vpack.c.bf16 %v1673_v52, %v1672_v56  ;;  %v1584_v1 = vadd.f32 %v7170_v53, %v8099_v38 }
 0x20c   : > { %v1575_v57 = vpop.f32.mrf.mxu1 }
 0x20d   : > { %v1710_v58 = vpack.c.bf16 %v1671_v55, %v1670_v54  ;;  %v1576_v63 = vadd.f32 %v8099_v38, %v1575_v57  ;;  %v1676_v9 = vmax.f32 %v1584_v1, 0.0  ;;  %v7745_v1 = vld [vmem:[%s7951_s18 + $0x1b0] sm:$0xff]  }
 0x20e   : > { %v7171_v60 = vpop.f32.mrf.mxu1 }
 0x20f   : > { %v1587_v0 = vadd.f32 %v7171_v60, %v8099_v38  ;;  %7230 = vmatprep.mubr.msk.bf16.mxu0 %vm1236_vm3, %v1710_v58  ;;  %v1674_v7 = vmax.f32 %v1576_v63, 0.0  ;;  %v7744_v63 = vld [vmem:[%s7951_s18 + $0x1a8] sm:$0xff]  }
 0x210   : > { %v1578_v2 = vpop.f32.mrf.mxu1  ;;  %7231 = vmatmul.mubr.msk.bf16.gmra.mxu0 %vm1236_vm3, %v1711_v59 }
 0x211   : > { %v1579_v3 = vadd.f32 %v8099_v38, %v1578_v2  ;;  %v1677_v4 = vmax.f32 %v1587_v0, 0.0 }
 0x212   : > { %v7174_v5 = vpop.f32.mrf.mxu1  ;;  %7337 = vmatmul.mubr.msk.bf16.gmra.mxu1 %vm732_vm2, %v7736_v61 }
 0x213   : > { %v1675_v8 = vmax.f32 %v1579_v3, 0.0  ;;  %7340 = vmatprep.mubr.msk.bf16.mxu1 %vm732_vm2, %v7737_v6  ;;  %v1713_v16 = vpack.c.bf16 %v1677_v4, %v1676_v9  ;;  %v1600_v18 = vadd.f32 %v7174_v5, %v8099_v38 }
 0x214   : > { %v1591_v10 = vpop.f32.mrf.mxu1 }
 0x215   : > { %v1712_v11 = vpack.c.bf16 %v1675_v8, %v1674_v7  ;;  %v1592_v14 = vadd.f32 %v8099_v38, %v1591_v10  ;;  %v1680_v24 = vmax.f32 %v1600_v18, 0.0  ;;  %v7747_v18 = vld [vmem:[%s7951_s18 + $0x1c0] sm:$0xff]  }
 0x216   : > { %v7175_v12 = vpop.f32.mrf.mxu1 }
 0x217   : > { %v1603_v15 = vadd.f32 %v7175_v12, %v8099_v38  ;;  %7234 = vmatprep.mubr.msk.bf16.mxu0 %vm1236_vm3, %v1712_v11  ;;  %v1678_v22 = vmax.f32 %v1592_v14, 0.0  ;;  %v7746_v14 = vld [vmem:[%s7951_s18 + $0x1b8] sm:$0xff]  }
 0x218   : > { %v1594_v42 = vpop.f32.mrf.mxu1  ;;  %7235 = vmatmul.mubr.msk.bf16.gmra.mxu0 %vm1236_vm3, %v1713_v16 }
 0x219   : > { %v1595_v19 = vadd.f32 %v8099_v38, %v1594_v42  ;;  %v1681_v20 = vmax.f32 %v1603_v15, 0.0 }
 0x21a   : > { %v7178_v21 = vpop.f32.mrf.mxu1  ;;  %7341 = vmatmul.mubr.msk.bf16.gmra.mxu1 %vm732_vm2, %v7738_v13 }
 0x21b   : > { %v1679_v23 = vmax.f32 %v1595_v19, 0.0  ;;  %7344 = vmatprep.mubr.msk.bf16.mxu1 %vm732_vm2, %v7739_v17  ;;  %v1715_v27 = vpack.c.bf16 %v1681_v20, %v1680_v24  ;;  %v1616_v33 = vadd.f32 %v7178_v21, %v8099_v38 }
 0x21c   : > { %v1607_v25 = vpop.f32.mrf.mxu1 }
 0x21d   : > { %v1714_v26 = vpack.c.bf16 %v1679_v23, %v1678_v22  ;;  %v1608_v30 = vadd.f32 %v8099_v38, %v1607_v25  ;;  %v1684_v41 = vmax.f32 %v1616_v33, 0.0  ;;  %v7749_v33 = vld [vmem:[%s7951_s18 + $0x1d0] sm:$0xff]  }
 0x21e   : > { %v7179_v28 = vpop.f32.mrf.mxu1 }
 0x21f   : > { %v1619_v31 = vadd.f32 %v7179_v28, %v8099_v38  ;;  %7238 = vmatprep.mubr.msk.bf16.mxu0 %vm1236_vm3, %v1714_v26  ;;  %v1682_v39 = vmax.f32 %v1608_v30, 0.0  ;;  %v7748_v30 = vld [vmem:[%s7951_s18 + $0x1c8] sm:$0xff]  }
 0x220   : > { %v1610_v34 = vpop.f32.mrf.mxu1  ;;  %7239 = vmatmul.mubr.msk.bf16.gmra.mxu0 %vm1236_vm3, %v1715_v27 }
 0x221   : > { %v1611_v35 = vadd.f32 %v8099_v38, %v1610_v34  ;;  %v1685_v36 = vmax.f32 %v1619_v31, 0.0  ;;  %v7742_v38 = vld [vmem:[%s7951_s18 + $0x198] sm:$0xff]  }
 0x222   : > { %v7250_v37 = vpop.f32.mrf.mxu1  ;;  %7345 = vmatmul.mubr.msk.bf16.gmra.mxu1 %vm732_vm2, %v7740_v29 }
 0x223   : > { %v1683_v40 = vmax.f32 %v1611_v35, 0.0  ;;  %7348 = vmatprep.mubr.msk.bf16.mxu1 %vm732_vm2, %v7741_v32  ;;  %v1717_v46 = vpack.c.bf16 %v1685_v36, %v1684_v41  ;;  %v3171_v51 = vadd.f32 %v7250_v37, %v8269_v45 }
 0x224   : > { %v3162_v43 = vpop.f32.mrf.mxu1 }
 0x225   : > { %v1716_v44 = vpack.c.bf16 %v1683_v40, %v1682_v39  ;;  %v3163_v48 = vadd.f32 %v8269_v45, %v3162_v43  ;;  %v3675_v58 = vmax.f32 %v3171_v51, 0.0  ;;  %v7751_v51 = vld [vmem:[%s7951_s18 + $0x1e0] sm:$0xff]  }
 0x226   : > { %v7251_v47 = vpop.f32.mrf.mxu1 }
 0x227   : > { %v3174_v49 = vadd.f32 %v7251_v47, %v8269_v45  ;;  %7242 = vmatprep.mubr.msk.bf16.mxu0 %vm1236_vm3, %v1716_v44  ;;  %v3673_v56 = vmax.f32 %v3163_v48, 0.0  ;;  %v7750_v48 = vld [vmem:[%s7951_s18 + $0x1d8] sm:$0xff]  }
 0x228   : > { %7243 = vmatmul.mubr.msk.bf16.gmra.mxu0 %vm1236_vm3, %v1717_v46  ;;  %v3165_v52 = vpop.f32.mrf.mxu1 }
 0x229   : > { %v3166_v53 = vadd.f32 %v8269_v45, %v3165_v52  ;;  %v3676_v54 = vmax.f32 %v3174_v49, 0.0 }
 0x22a   : > { %v7254_v55 = vpop.f32.mrf.mxu1  ;;  %7349 = vmatmul.mubr.msk.bf16.gmra.mxu1 %vm732_vm2, %v7742_v38 }
 0x22b   : > { %v3674_v57 = vmax.f32 %v3166_v53, 0.0  ;;  %7352 = vmatprep.mubr.msk.bf16.mxu1 %vm732_vm2, %v7743_v50  ;;  %v3802_v61 = vpack.c.bf16 %v3676_v54, %v3675_v58  ;;  %v3187_v2 = vadd.f32 %v7254_v55, %v8269_v45 }
 0x22c   : > { %v3178_v59 = vpop.f32.mrf.mxu1 }
 0x22d   : > { %v3801_v60 = vpack.c.bf16 %v3674_v57, %v3673_v56  ;;  %v3179_v0 = vadd.f32 %v8269_v45, %v3178_v59  ;;  %v3679_v10 = vmax.f32 %v3187_v2, 0.0  ;;  %v7753_v2 = vld [vmem:[%s7951_s18 + $0x1f0] sm:$0xff]  }
 0x22e   : > { %v7255_v62 = vpop.f32.mrf.mxu1 }
 0x22f   : > { %v3190_v6 = vadd.f32 %v7255_v62, %v8269_v45  ;;  %7380 = vmatprep.mubr.msk.bf16.mxu0 %vm2182_vm4, %v3801_v60  ;;  %v3677_v8 = vmax.f32 %v3179_v0, 0.0  ;;  %v7752_v0 = vld [vmem:[%s7951_s18 + $0x1e8] sm:$0xff]  }
 0x230   : > { %v3181_v3 = vpop.f32.mrf.mxu1  ;;  %7381 = vmatmul.mubr.msk.bf16.vlgmr.msra.gmra.mxu0 %vm2182_vm4, %v3802_v61 }
 0x231   : > { %v3182_v4 = vadd.f32 %v8269_v45, %v3181_v3  ;;  %v3680_v5 = vmax.f32 %v3190_v6, 0.0 }
 0x232   : > { %v7258_v7 = vpop.f32.mrf.mxu1  ;;  %7353 = vmatmul.mubr.msk.bf16.gmra.mxu1 %vm732_vm2, %v7744_v63 }
 0x233   : > { %v3678_v9 = vmax.f32 %v3182_v4, 0.0  ;;  %7356 = vmatprep.mubr.msk.bf16.mxu1 %vm732_vm2, %v7745_v1  ;;  %v3804_v12 = vpack.c.bf16 %v3680_v5, %v3679_v10  ;;  %v3203_v42 = vadd.f32 %v7258_v7, %v8269_v45 }
 0x234   : > { %v3194_v11 = vpop.f32.mrf.mxu1 }
 0x235   : > { %v3803_v16 = vpack.c.bf16 %v3678_v9, %v3677_v8  ;;  %v3195_v15 = vadd.f32 %v8269_v45, %v3194_v11  ;;  %v3683_v25 = vmax.f32 %v3203_v42, 0.0 }
 0x236   : > { %v7259_v13 = vpop.f32.mrf.mxu1 }
 0x237   : > { %v3206_v17 = vadd.f32 %v7259_v13, %v8269_v45  ;;  %7384 = vmatprep.mubr.msk.bf16.mxu0 %vm2182_vm4, %v3803_v16  ;;  %v3681_v23 = vmax.f32 %v3195_v15, 0.0  ;;  %v7754_v15 = vld [vmem:[%s7951_s18 + $0x1f8] sm:$0xff]   ;;  %s7770_s18 = smov 32  }
 0x238   : > { %v3197_v19 = vpop.f32.mrf.mxu1  ;;  %7385 = vmatmul.mubr.msk.bf16.gmra.mxu0 %vm2182_vm4, %v3804_v12 }
 0x239   : > { %v3198_v20 = vadd.f32 %v8269_v45, %v3197_v19  ;;  %v3684_v21 = vmax.f32 %v3206_v17, 0.0 }
 0x23a   : > { %v7262_v22 = vpop.f32.mrf.mxu1  ;;  %7357 = vmatmul.mubr.msk.bf16.gmra.mxu1 %vm732_vm2, %v7746_v14 }
 0x23b   : > { %v3682_v24 = vmax.f32 %v3198_v20, 0.0  ;;  %7360 = vmatprep.mubr.msk.bf16.mxu1 %vm732_vm2, %v7747_v18  ;;  %v3806_v28 = vpack.c.bf16 %v3684_v21, %v3683_v25  ;;  %v3219_v34 = vadd.f32 %v7262_v22, %v8269_v45 }
 0x23c   : > { %v3210_v26 = vpop.f32.mrf.mxu1 }
 0x23d   : > { %v3805_v27 = vpack.c.bf16 %v3682_v24, %v3681_v23  ;;  %v3211_v31 = vadd.f32 %v8269_v45, %v3210_v26  ;;  %v3687_v43 = vmax.f32 %v3219_v34, 0.0 }
 0x23e   : > { %v7263_v29 = vpop.f32.mrf.mxu1 }
 0x23f   : > { %v3222_v32 = vadd.f32 %v7263_v29, %v8269_v45  ;;  %7388 = vmatprep.mubr.msk.bf16.mxu0 %vm2182_vm4, %v3805_v27  ;;  %v3685_v40 = vmax.f32 %v3211_v31, 0.0 }
 0x240   : > { %v3213_v35 = vpop.f32.mrf.mxu1  ;;  %7389 = vmatmul.mubr.msk.bf16.gmra.mxu0 %vm2182_vm4, %v3806_v28 }
 0x241   : > { %v3214_v36 = vadd.f32 %v8269_v45, %v3213_v35  ;;  %v3688_v37 = vmax.f32 %v3222_v32, 0.0 }
 0x242   : > { %v7266_v39 = vpop.f32.mrf.mxu1  ;;  %7361 = vmatmul.mubr.msk.bf16.gmra.mxu1 %vm732_vm2, %v7748_v30 }
 0x243   : > { %v3686_v41 = vmax.f32 %v3214_v36, 0.0  ;;  %7364 = vmatprep.mubr.msk.bf16.mxu1 %vm732_vm2, %v7749_v33  ;;  %v3808_v47 = vpack.c.bf16 %v3688_v37, %v3687_v43  ;;  %v3235_v52 = vadd.f32 %v7266_v39, %v8269_v45 }
 0x244   : > { %v3226_v44 = vpop.f32.mrf.mxu1 }
 0x245   : > { %v3807_v46 = vpack.c.bf16 %v3686_v41, %v3685_v40  ;;  %v3227_v49 = vadd.f32 %v8269_v45, %v3226_v44  ;;  %v3691_v59 = vmax.f32 %v3235_v52, 0.0 }
 0x246   : > { %v7267_v38 = vpop.f32.mrf.mxu1 }
 0x247   : > { %v3238_v50 = vadd.f32 %v7267_v38, %v8269_v45  ;;  %7392 = vmatprep.mubr.msk.bf16.mxu0 %vm2182_vm4, %v3807_v46  ;;  %v3689_v57 = vmax.f32 %v3227_v49, 0.0 }
 0x248   : > { %v3229_v53 = vpop.f32.mrf.mxu1  ;;  %7393 = vmatmul.mubr.msk.bf16.gmra.mxu0 %vm2182_vm4, %v3808_v47 }
 0x249   : > { %v3230_v54 = vadd.f32 %v8269_v45, %v3229_v53  ;;  %v3692_v55 = vmax.f32 %v3238_v50, 0.0 }
 0x24a   : > { %v7270_v56 = vpop.f32.mrf.mxu1  ;;  %7365 = vmatmul.mubr.msk.bf16.gmra.mxu1 %vm732_vm2, %v7750_v48 }
 0x24b   : > { %v3690_v58 = vmax.f32 %v3230_v54, 0.0  ;;  %7368 = vmatprep.mubr.msk.bf16.mxu1 %vm732_vm2, %v7751_v51  ;;  %v3810_v62 = vpack.c.bf16 %v3692_v55, %v3691_v59  ;;  %v3251_v3 = vadd.f32 %v7270_v56, %v8269_v45 }
 0x24c   : > { %v3242_v60 = vpop.f32.mrf.mxu1 }
 0x24d   : > { %v3809_v61 = vpack.c.bf16 %v3690_v58, %v3689_v57  ;;  %v3243_v6 = vadd.f32 %v8269_v45, %v3242_v60  ;;  %v3695_v11 = vmax.f32 %v3251_v3, 0.0  ;;  %v8354_v60 = vld [vmem:[%s9751_s7] ss:$0 sm:$0xff] }
 0x24e   : > { %v7271_v63 = vpop.f32.mrf.mxu1 }
 0x24f   : > { %v3254_v1 = vadd.f32 %v7271_v63, %v8269_v45  ;;  %7396 = vmatprep.mubr.msk.bf16.mxu0 %vm2182_vm4, %v3809_v61  ;;  %v3693_v9 = vmax.f32 %v3243_v6, 0.0 }
 0x250   : > { %v3245_v4 = vpop.f32.mrf.mxu1  ;;  %7397 = vmatmul.mubr.msk.bf16.gmra.mxu0 %vm2182_vm4, %v3810_v62 }
 0x251   : > { %v3246_v5 = vadd.f32 %v8269_v45, %v3245_v4  ;;  %v3696_v7 = vmax.f32 %v3254_v1, 0.0 }
 0x252   : > { %v7274_v8 = vpop.f32.mrf.mxu1  ;;  %7369 = vmatmul.mubr.msk.bf16.gmra.mxu1 %vm732_vm2, %v7752_v0 }
 0x253   : > { %v3694_v10 = vmax.f32 %v3246_v5, 0.0  ;;  %7372 = vmatprep.mubr.msk.bf16.mxu1 %vm732_vm2, %v7753_v2  ;;  %v3812_v13 = vpack.c.bf16 %v3696_v7, %v3695_v11  ;;  %v3267_v42 = vadd.f32 %v7274_v8, %v8269_v45 }
 0x254   : > { %v3258_v16 = vpop.f32.mrf.mxu1 }
 0x255   : > { %v3811_v12 = vpack.c.bf16 %v3694_v10, %v3693_v9  ;;  %v3259_v17 = vadd.f32 %v8269_v45, %v3258_v16  ;;  %v3699_v25 = vmax.f32 %v3267_v42, 0.0 }
 0x256   : > { %v7275_v14 = vpop.f32.mrf.mxu1 }
 0x257   : > { %v3270_v18 = vadd.f32 %v7275_v14, %v8269_v45  ;;  %7400 = vmatprep.mubr.msk.bf16.mxu0 %vm2182_vm4, %v3811_v12  ;;  %v3697_v23 = vmax.f32 %v3259_v17, 0.0 }
 0x258   : > { %v3261_v19 = vpop.f32.mrf.mxu1  ;;  %7401 = vmatmul.mubr.msk.bf16.gmra.mxu0 %vm2182_vm4, %v3812_v13 }
 0x259   : > { %v3262_v20 = vadd.f32 %v8269_v45, %v3261_v19  ;;  %v3700_v21 = vmax.f32 %v3270_v18, 0.0 }
 0x25a   : > { %v7278_v22 = vpop.f32.mrf.mxu1  ;;  %7373 = vmatmul.mubr.msk.bf16.gmra.mxu1 %vm732_vm2, %v7754_v15 }
 0x25b   : > { %v3698_v24 = vmax.f32 %v3262_v20, 0.0  ;;  %v3814_v28 = vpack.c.bf16 %v3700_v21, %v3699_v25  ;;  %v3283_v32 = vadd.f32 %v7278_v22, %v8269_v45 }
 0x25c   : > { %v3274_v26 = vpop.f32.mrf.mxu1 }
 0x25d   : > { %v3813_v27 = vpack.c.bf16 %v3698_v24, %v3697_v23  ;;  %v3275_v30 = vadd.f32 %v8269_v45, %v3274_v26  ;;  %v3703_v40 = vmax.f32 %v3283_v32, 0.0 }
 0x25e   : > { %v7279_v29 = vpop.f32.mrf.mxu1 }
 0x25f   : > { %v3286_v31 = vadd.f32 %v7279_v29, %v8269_v45  ;;  %7404 = vmatprep.mubr.msk.bf16.mxu0 %vm2182_vm4, %v3813_v27  ;;  %v3701_v37 = vmax.f32 %v3275_v30, 0.0 }
 0x260   : > { %v3277_v33 = vpop.f32.mrf.mxu1  ;;  %7405 = vmatmul.mubr.msk.bf16.gmra.mxu0 %vm2182_vm4, %v3814_v28 }
 0x261   : > { %v3278_v34 = vadd.f32 %v8269_v45, %v3277_v33  ;;  %v3704_v35 = vmax.f32 %v3286_v31, 0.0 }
 0x262   : > { %v7282_v36 = vpop.f32.mrf.mxu1 }
 0x263   : > { %v3702_v39 = vmax.f32 %v3278_v34, 0.0  ;;  %v3816_v44 = vpack.c.bf16 %v3704_v35, %v3703_v40  ;;  %v3299_v48 = vadd.f32 %v7282_v36, %v8269_v45 }
 0x264   : > { %v3290_v41 = vpop.f32.mrf.mxu1 }
 0x265   : > { %v3815_v43 = vpack.c.bf16 %v3702_v39, %v3701_v37  ;;  %v3291_v47 = vadd.f32 %v8269_v45, %v3290_v41  ;;  %v3707_v55 = vmax.f32 %v3299_v48, 0.0 }
 0x266   : > { %v7283_v46 = vpop.f32.mrf.mxu1 }
 0x267   : > { %v3302_v38 = vadd.f32 %v7283_v46, %v8269_v45  ;;  %7408 = vmatprep.mubr.msk.bf16.mxu0 %vm2182_vm4, %v3815_v43  ;;  %v3705_v53 = vmax.f32 %v3291_v47, 0.0 }
 0x268   : > { %v3293_v49 = vpop.f32.mrf.mxu1  ;;  %7409 = vmatmul.mubr.msk.bf16.gmra.mxu0 %vm2182_vm4, %v3816_v44 }
 0x269   : > { %v3294_v50 = vadd.f32 %v8269_v45, %v3293_v49  ;;  %v3708_v51 = vmax.f32 %v3302_v38, 0.0 }
 0x26a   : > { %v7286_v52 = vpop.f32.mrf.mxu1 }
 0x26b   : > { %v3706_v54 = vmax.f32 %v3294_v50, 0.0  ;;  %v3818_v58 = vpack.c.bf16 %v3708_v51, %v3707_v55  ;;  %v3315_v63 = vadd.f32 %v7286_v52, %v8269_v45 }
 0x26c   : > { %v3306_v56 = vpop.f32.mrf.mxu1 }
 0x26d   : > { %v3817_v57 = vpack.c.bf16 %v3706_v54, %v3705_v53  ;;  %v3307_v61 = vadd.f32 %v8269_v45, %v3306_v56  ;;  %v3711_v10 = vmax.f32 %v3315_v63, 0.0 }
 0x26e   : > { %v7287_v59 = vpop.f32.mrf.mxu1 }
 0x26f   : > { %v3318_v62 = vadd.f32 %v7287_v59, %v8269_v45  ;;  %7412 = vmatprep.mubr.msk.bf16.mxu0 %vm2182_vm4, %v3817_v57  ;;  %v3709_v7 = vmax.f32 %v3307_v61, 0.0 }
 0x270   : > { %v7184_v0 = vpop.f32.mrf.mxu0  ;;  %v3309_v6 = vpop.f32.mrf.mxu1  ;;  %7413 = vmatmul.mubr.msk.bf16.gmra.mxu0 %vm2182_vm4, %v3818_v58 }
 0x271   : > { %v1872_v1 = vadd.f32 %v7184_v0, %v8354_v60  ;;  %v3310_v2 = vadd.f32 %v8269_v45, %v3309_v6  ;;  %v3712_v3 = vmax.f32 %v3318_v62, 0.0 }
 0x272   : > { %v1863_v4 = vpop.f32.mrf.mxu0  ;;  %v7290_v5 = vpop.f32.mrf.mxu1 }
 0x273   : > { %v3710_v8 = vmax.f32 %v3310_v2, 0.0  ;;  %v1864_v9 = vadd.f32 %v8354_v60, %v1863_v4  ;;  %v2120_v12 = vmax.f32 %v1872_v1, 0.0  ;;  %v3820_v15 = vpack.c.bf16 %v3712_v3, %v3711_v10 }
 0x274   : > { %v7185_v11 = vpop.f32.mrf.mxu0  ;;  %v3322_v16 = vpop.f32.mrf.mxu1  ;;  %v3331_v17 = vadd.f32 %v7290_v5, %v8269_v45 }
 0x275   : > { %v3819_v13 = vpack.c.bf16 %v3710_v8, %v3709_v7  ;;  %v1875_v14 = vadd.f32 %v7185_v11, %v8354_v60  ;;  %v2118_v19 = vmax.f32 %v1864_v9, 0.0  ;;  %v3323_v23 = vadd.f32 %v8269_v45, %v3322_v16 }
 0x276   : > { %v1866_v18 = vpop.f32.mrf.mxu0  ;;  %v7291_v42 = vpop.f32.mrf.mxu1  ;;  %v2192_v26 = vsel %vm2182_vm4, %v2120_v12, -inf  ;;  %v3715_v30 = vmax.f32 %v3331_v17, 0.0 }
 0x277   : > { %v2121_v20 = vmax.f32 %v1875_v14, 0.0  ;;  %v1867_v21 = vadd.f32 %v8354_v60, %v1866_v18  ;;  %v3334_v22 = vadd.f32 %v7291_v42, %v8269_v45  ;;  %7416 = vmatprep.mubr.msk.bf16.mxu0 %vm2182_vm4, %v3819_v13  ;;  %v2183_v36 = vsel %vm2182_vm4, %v2118_v19, -inf }
 0x278   : > { %v7188_v24 = vpop.f32.mrf.mxu0  ;;  %v3325_v25 = vpop.f32.mrf.mxu1  ;;  %7417 = vmatmul.mubr.msk.bf16.gmra.mxu0 %vm2182_vm4, %v3820_v15  ;;  %v3713_v43 = vmax.f32 %v3323_v23, 0.0 }
 0x279   : > { %v2193_v27 = vsel %vm2182_vm4, %v2121_v20, -inf  ;;  %v2119_v28 = vmax.f32 %v1867_v21, 0.0  ;;  %v1888_v29 = vadd.f32 %v7188_v24, %v8354_v60  ;;  %v3716_v32 = vmax.f32 %v3334_v22, 0.0 }
 0x27a   : > { %v2194_v31 = vmax.f32 %v2192_v26, %v2193_v27  ;;  %v3326_v33 = vadd.f32 %v8269_v45, %v3325_v25  ;;  %v1879_v34 = vpop.f32.mrf.mxu0  ;;  %v7294_v35 = vpop.f32.mrf.mxu1 }
 0x27b   : > { %v2184_v37 = vsel %vm2182_vm4, %v2119_v28, -inf  ;;  %v2124_v39 = vmax.f32 %v1888_v29, 0.0  ;;  %v1880_v40 = vadd.f32 %v8354_v60, %v1879_v34  ;;  %v3822_v53 = vpack.c.bf16 %v3716_v32, %v3715_v30 }
 0x27c   : > { %v2195_v41 = vrot.slane %v2194_v31, 4  ;;  %v2185_v44 = vmax.f32 %v2183_v36, %v2184_v37  ;;  %v3714_v46 = vmax.f32 %v3326_v33, 0.0  ;;  %v7189_v47 = vpop.f32.mrf.mxu0  ;;  %v3338_v38 = vpop.f32.mrf.mxu1  ;;  %v3347_v58 = vadd.f32 %v7294_v35, %v8269_v45 }
 0x27d   : > { %v2122_v48 = vmax.f32 %v1880_v40, 0.0  ;;  %v1891_v49 = vadd.f32 %v7189_v47, %v8354_v60  ;;  %v3339_v50 = vadd.f32 %v8269_v45, %v3338_v38  ;;  %v2210_v57 = vsel %vm2182_vm4, %v2124_v39, -inf }
 0x27e   : > { %v2196_v51 = vmax.f32 %v2194_v31, %v2195_v41  ;;  %v2186_v52 = vrot.slane %v2185_v44, 4  ;;  %v3821_v54 = vpack.c.bf16 %v3714_v46, %v3713_v43  ;;  %v1882_v55 = vpop.f32.mrf.mxu0  ;;  %v7295_v56 = vpop.f32.mrf.mxu1  ;;  %v3719_v22 = vmax.f32 %v3347_v58, 0.0 }
 0x27f   : > { %v2125_v59 = vmax.f32 %v1891_v49, 0.0  ;;  %v1883_v61 = vadd.f32 %v8354_v60, %v1882_v55  ;;  %v2201_v0 = vsel %vm2182_vm4, %v2122_v48, -inf  ;;  %v3350_v6 = vadd.f32 %v7295_v56, %v8269_v45 }
 0x280   : > { %v2197_v62 = vrot.slane %v2196_v51, 2  ;;  %v2187_v63 = vmax.f32 %v2185_v44, %v2186_v52  ;;  %7420 = vmatprep.mubr.msk.bf16.mxu0 %vm2182_vm4, %v3821_v54  ;;  %v7192_v1 = vpop.f32.mrf.mxu0  ;;  %v3341_v2 = vpop.f32.mrf.mxu1  ;;  %v3717_v4 = vmax.f32 %v3339_v50, 0.0 }
 0x281   : > { %v2211_v3 = vsel %vm2182_vm4, %v2125_v59, -inf  ;;  %v2123_v5 = vmax.f32 %v1883_v61, 0.0  ;;  %v3342_v7 = vadd.f32 %v8269_v45, %v3341_v2  ;;  %7421 = vmatmul.mubr.msk.bf16.gmra.mxu0 %vm2182_vm4, %v3822_v53  ;;  %v1904_v11 = vadd.f32 %v7192_v1, %v8354_v60 }
 0x282   : > { %v2198_v8 = vmax.f32 %v2196_v51, %v2197_v62  ;;  %v2188_v9 = vrot.slane %v2187_v63, 2  ;;  %v2212_v10 = vmax.f32 %v2210_v57, %v2211_v3  ;;  %v1895_v16 = vpop.f32.mrf.mxu0  ;;  %v7298_v12 = vpop.f32.mrf.mxu1  ;;  %v3720_v14 = vmax.f32 %v3350_v6, 0.0 }
 0x283   : > { %v2202_v13 = vsel %vm2182_vm4, %v2123_v5, -inf  ;;  %v3718_v15 = vmax.f32 %v3342_v7, 0.0  ;;  %v1896_v17 = vadd.f32 %v8354_v60, %v1895_v16  ;;  %v2128_v28 = vmax.f32 %v1904_v11, 0.0 }
 0x284   : > { %v2199_v18 = vrot.slane %v2198_v8, 1  ;;  %v2189_v42 = vmax.f32 %v2187_v63, %v2188_v9  ;;  %v8392_v19 = vmax.f32 %v2201_v0, %v2202_v13  ;;  %v7193_v20 = vpop.f32.mrf.mxu0  ;;  %v3354_v21 = vpop.f32.mrf.mxu1  ;;  %v3824_v27 = vpack.c.bf16 %v3720_v14, %v3719_v22 }
 0x285   : > { %v3823_v23 = vpack.c.bf16 %v3718_v15, %v3717_v4  ;;  %v2126_v29 = vmax.f32 %v1896_v17, 0.0  ;;  %v1907_v30 = vadd.f32 %v7193_v20, %v8354_v60  ;;  %v3355_v37 = vadd.f32 %v8269_v45, %v3354_v21 }
 0x286   : > { %v2190_v24 = vrot.slane %v2189_v42, 1  ;;  %v1898_v25 = vpop.f32.mrf.mxu0  ;;  %v7299_v26 = vpop.f32.mrf.mxu1  ;;  %v2200_v31 = vmax.f32 %v2198_v8, %v2199_v18  ;;  %v2213_v41 = vrot.slane %v2212_v10, 4  ;;  %v3363_v43 = vadd.f32 %v7298_v12, %v8269_v45 }
 0x287   : > { %7424 = vmatprep.mubr.msk.bf16.mxu0 %vm2182_vm4, %v3823_v23  ;;  %v1899_v33 = vadd.f32 %v8354_v60, %v1898_v25  ;;  %v2129_v36 = vmax.f32 %v1907_v30, 0.0  ;;  %v3366_v39 = vadd.f32 %v7299_v26, %v8269_v45  ;;  %v2228_v38 = vsel %vm2182_vm4, %v2128_v28, -inf }
 0x288   : > { %v2191_v32 = vmax.f32 %v2189_v42, %v2190_v24  ;;  %v7196_v34 = vpop.f32.mrf.mxu0  ;;  %v3357_v35 = vpop.f32.mrf.mxu1  ;;  %v2219_v48 = vsel %vm2182_vm4, %v2126_v29, -inf  ;;  %v3721_v57 = vmax.f32 %v3355_v37, 0.0  ;;  %v2214_v61 = vmax.f32 %v2212_v10, %v2213_v41 }
 0x289   : > { %7425 = vmatmul.mubr.msk.bf16.gmra.mxu0 %vm2182_vm4, %v3824_v27  ;;  %v2127_v44 = vmax.f32 %v1899_v33, 0.0  ;;  %v2229_v49 = vsel %vm2182_vm4, %v2129_v36, -inf  ;;  %v3358_v50 = vadd.f32 %v8269_v45, %v3357_v35  ;;  %v3724_v53 = vmax.f32 %v3366_v39, 0.0 }
 0x28a   : > { %v8401_v40 = vsel %vm6154_vm5, %v2200_v31, %v2191_v32  ;;  %v1911_v46 = vpop.f32.mrf.mxu0  ;;  %v7302_v47 = vpop.f32.mrf.mxu1  ;;  %v2230_v51 = vmax.f32 %v2228_v38, %v2229_v49  ;;  %v1920_v54 = vadd.f32 %v7196_v34, %v8354_v60  ;;  %v3723_v62 = vmax.f32 %v3363_v43, 0.0 }
 0x28b   : > { %v2220_v52 = vsel %vm2182_vm4, %v2127_v44, -inf  ;;  %v3722_v59 = vmax.f32 %v3358_v50, 0.0  ;;  %v1912_v63 = vadd.f32 %v8354_v60, %v1911_v46  ;;  %v2204_v9 = vrot.slane %v8392_v19, 4 }
 0x28c   : > { %v7197_v55 = vpop.f32.mrf.mxu0  ;;  %v3370_v56 = vpop.f32.mrf.mxu1  ;;  %v2221_v58 = vmax.f32 %v2219_v48, %v2220_v52  ;;  %v3826_v2 = vpack.c.bf16 %v3724_v53, %v3723_v62  ;;  %v2132_v3 = vmax.f32 %v1920_v54, 0.0  ;;  %v2215_v10 = vrot.slane %v2214_v61, 2 }
 0x28d   : > { %v3825_v1 = vpack.c.bf16 %v3722_v59, %v3721_v57  ;;  %v2130_v4 = vmax.f32 %v1912_v63, 0.0  ;;  %v1923_v5 = vadd.f32 %v7197_v55, %v8354_v60  ;;  %v3371_v12 = vadd.f32 %v8269_v45, %v3370_v56 }
 0x28e   : > { %v1914_v0 = vpop.f32.mrf.mxu0  ;;  %v7303_v6 = vpop.f32.mrf.mxu1  ;;  %v2231_v17 = vrot.slane %v2230_v51, 4  ;;  %v2222_v18 = vrot.slane %v2221_v58, 4  ;;  %v3379_v42 = vadd.f32 %v7302_v47, %v8269_v45  ;;  %v2246_v21 = vsel %vm2182_vm4, %v2132_v3, -inf }
 0x28f   : > { %v1915_v11 = vadd.f32 %v8354_v60, %v1914_v0  ;;  %7428 = vmatprep.mubr.msk.bf16.mxu0 %vm2182_vm4, %v3825_v1  ;;  %v2133_v16 = vmax.f32 %v1923_v5, 0.0  ;;  %v3382_v13 = vadd.f32 %v7303_v6, %v8269_v45  ;;  %v2237_v22 = vsel %vm2182_vm4, %v2130_v4, -inf }
 0x290   : > { %v7200_v7 = vpop.f32.mrf.mxu0  ;;  %v3373_v8 = vpop.f32.mrf.mxu1  ;;  %v8428_v31 = vmax.f32 %v8392_v19, %v2204_v9  ;;  %v3725_v32 = vmax.f32 %v3371_v12, 0.0  ;;  %v8432_v37 = vmax.f32 %v2214_v61, %v2215_v10  ;;  %v3727_v39 = vmax.f32 %v3379_v42, 0.0 }
 0x291   : > { %7429 = vmatmul.mubr.msk.bf16.gmra.mxu0 %vm2182_vm4, %v3826_v2  ;;  %v2131_v20 = vmax.f32 %v1915_v11, 0.0  ;;  %v2247_v23 = vsel %vm2182_vm4, %v2133_v16, -inf  ;;  %v3374_v24 = vadd.f32 %v8269_v45, %v3373_v8  ;;  %v3728_v29 = vmax.f32 %v3382_v13, 0.0 }
 0x292   : > { %v1927_v14 = vpop.f32.mrf.mxu0  ;;  %v7306_v15 = vpop.f32.mrf.mxu1  ;;  %v8423_v27 = vmax.f32 %v2246_v21, %v2247_v23  ;;  %v1936_v30 = vadd.f32 %v7200_v7, %v8354_v60  ;;  %v8435_v43 = vmax.f32 %v2230_v51, %v2231_v17  ;;  %v8437_v38 = vmax.f32 %v2221_v58, %v2222_v18 }
 0x293   : > { %v2238_v28 = vsel %vm2182_vm4, %v2131_v20, -inf  ;;  %v3726_v34 = vmax.f32 %v3374_v24, 0.0  ;;  %v1928_v41 = vadd.f32 %v8354_v60, %v1927_v14  ;;  %v3828_v19 = vpack.c.bf16 %v3728_v29, %v3727_v39 }
 0x294   : > { %v7201_v25 = vpop.f32.mrf.mxu0  ;;  %v3386_v26 = vpop.f32.mrf.mxu1  ;;  %v8430_v33 = vmax.f32 %v2237_v22, %v2238_v28  ;;  %v2136_v48 = vmax.f32 %v1936_v30, 0.0  ;;  %v2206_v50 = vrot.slane %v8428_v31, 2  ;;  %v2217_v51 = vrot.slane %v8432_v37, 1 }
 0x295   : > { %v3827_v44 = vpack.c.bf16 %v3726_v34, %v3725_v32  ;;  %v1939_v49 = vadd.f32 %v7201_v25, %v8354_v60  ;;  %v2134_v52 = vmax.f32 %v1928_v41, 0.0  ;;  %v3387_v57 = vadd.f32 %v8269_v45, %v3386_v26 }
 0x296   : > { %v1930_v35 = vpop.f32.mrf.mxu0  ;;  %v7307_v36 = vpop.f32.mrf.mxu1  ;;  %v2233_v59 = vrot.slane %v8435_v43, 2  ;;  %v3395_v61 = vadd.f32 %v7306_v15, %v8269_v45  ;;  %v2224_v1 = vrot.slane %v8437_v38, 2  ;;  %v2264_v2 = vsel %vm2182_vm4, %v2136_v48, -inf }
 0x297   : > { %v1931_v53 = vadd.f32 %v8354_v60, %v1930_v35  ;;  %7432 = vmatprep.mubr.msk.bf16.mxu0 %vm2182_vm4, %v3827_v44  ;;  %v2137_v56 = vmax.f32 %v1939_v49, 0.0  ;;  %v3398_v58 = vadd.f32 %v7307_v36, %v8269_v45  ;;  %v2255_v5 = vsel %vm2182_vm4, %v2134_v52, -inf }
 0x298   : > { %v7204_v46 = vpop.f32.mrf.mxu0  ;;  %v3389_v47 = vpop.f32.mrf.mxu1  ;;  %v2249_v16 = vrot.slane %v8423_v27, 4  ;;  %v3729_v12 = vmax.f32 %v3387_v57, 0.0  ;;  %v3731_v15 = vmax.f32 %v3395_v61, 0.0  ;;  %v2240_v22 = vrot.slane %v8430_v33, 4 }
 0x299   : > { %7433 = vmatmul.mubr.msk.bf16.gmra.mxu0 %vm2182_vm4, %v3828_v19  ;;  %v2135_v62 = vmax.f32 %v1931_v53, 0.0  ;;  %v1952_v63 = vadd.f32 %v7204_v46, %v8354_v60  ;;  %v2265_v3 = vsel %vm2182_vm4, %v2137_v56, -inf  ;;  %v3390_v4 = vadd.f32 %v8269_v45, %v3389_v47 }
 0x29a   : > { %v1943_v54 = vpop.f32.mrf.mxu0  ;;  %v7310_v55 = vpop.f32.mrf.mxu1  ;;  %v2266_v7 = vmax.f32 %v2264_v2, %v2265_v3  ;;  %v3732_v9 = vmax.f32 %v3398_v58, 0.0 }
 0x29b   : > { %v2256_v8 = vsel %vm2182_vm4, %v2135_v62, -inf  ;;  %v3730_v14 = vmax.f32 %v3390_v4, 0.0  ;;  %v2140_v18 = vmax.f32 %v1952_v63, 0.0  ;;  %v1944_v42 = vadd.f32 %v8354_v60, %v1943_v54 }
 0x29c   : > { %v7205_v0 = vpop.f32.mrf.mxu0  ;;  %v3402_v6 = vpop.f32.mrf.mxu1  ;;  %v2257_v13 = vmax.f32 %v2255_v5, %v2256_v8  ;;  %v2267_v17 = vrot.slane %v2266_v7, 4  ;;  %v3830_v28 = vpack.c.bf16 %v3732_v9, %v3731_v15  ;;  %v3411_v36 = vadd.f32 %v7310_v55, %v8269_v45 }
 0x29d   : > { %v3829_v24 = vpack.c.bf16 %v3730_v14, %v3729_v12  ;;  %v1955_v25 = vadd.f32 %v7205_v0, %v8354_v60  ;;  %v2138_v29 = vmax.f32 %v1944_v42, 0.0  ;;  %v2282_v46 = vsel %vm2182_vm4, %v2140_v18, -inf }
 0x29e   : > { %v1946_v11 = vpop.f32.mrf.mxu0  ;;  %v7311_v10 = vpop.f32.mrf.mxu1  ;;  %v2258_v23 = vrot.slane %v2257_v13, 4  ;;  %v2268_v26 = vmax.f32 %v2266_v7, %v2267_v17  ;;  %v3403_v47 = vadd.f32 %v8269_v45, %v3402_v6  ;;  %v3735_v6 = vmax.f32 %v3411_v36, 0.0 }
 0x29f   : > { %v1947_v30 = vadd.f32 %v8354_v60, %v1946_v11  ;;  %v2141_v39 = vmax.f32 %v1955_v25, 0.0  ;;  %v3414_v41 = vadd.f32 %v7311_v10, %v8269_v45  ;;  %7436 = vmatprep.mubr.msk.bf16.mxu0 %vm2182_vm4, %v3829_v24  ;;  %v2273_v53 = vsel %vm2182_vm4, %v2138_v29, -inf }
 0x2a0   : > { %v7208_v20 = vpop.f32.mrf.mxu0  ;;  %v3405_v21 = vpop.f32.mrf.mxu1  ;;  %v2259_v35 = vmax.f32 %v2257_v13, %v2258_v23  ;;  %v2269_v44 = vrot.slane %v2268_v26, 2  ;;  %v3733_v5 = vmax.f32 %v3403_v47, 0.0  ;;  %v8476_v10 = vmax.f32 %v8432_v37, %v2217_v51 }
 0x2a1   : > { %v2139_v19 = vmax.f32 %v1947_v30, 0.0  ;;  %7437 = vmatmul.mubr.msk.bf16.gmra.mxu0 %vm2182_vm4, %v3830_v28  ;;  %v2283_v54 = vsel %vm2182_vm4, %v2141_v39, -inf  ;;  %v3736_v55 = vmax.f32 %v3414_v41, 0.0  ;;  %v3406_v61 = vadd.f32 %v8269_v45, %v3405_v21 }
 0x2a2   : > { %v1959_v32 = vpop.f32.mrf.mxu0  ;;  %v7314_v34 = vpop.f32.mrf.mxu1  ;;  %v2260_v52 = vrot.slane %v2259_v35, 2  ;;  %v2270_v56 = vmax.f32 %v2268_v26, %v2269_v44  ;;  %v2284_v57 = vmax.f32 %v2282_v46, %v2283_v54  ;;  %v1968_v3 = vadd.f32 %v7208_v20, %v8354_v60 }
 0x2a3   : > { %v2274_v58 = vsel %vm2182_vm4, %v2139_v19, -inf  ;;  %v3734_v7 = vmax.f32 %v3406_v61, 0.0  ;;  %v1960_v8 = vadd.f32 %v8354_v60, %v1959_v32  ;;  %v8481_v12 = vmax.f32 %v8428_v31, %v2206_v50 }
 0x2a4   : > { %v7209_v48 = vpop.f32.mrf.mxu0  ;;  %v3418_v49 = vpop.f32.mrf.mxu1  ;;  %v2261_v0 = vmax.f32 %v2259_v35, %v2260_v52  ;;  %v2275_v2 = vmax.f32 %v2273_v53, %v2274_v58  ;;  %v2271_v4 = vrot.slane %v2270_v56, 1  ;;  %v8486_v14 = vmax.f32 %v8435_v43, %v2233_v59 }
 0x2a5   : > { %v8491_v15 = vmax.f32 %v8437_v38, %v2224_v1  ;;  %v3832_v17 = vpack.c.bf16 %v3736_v55, %v3735_v6  ;;  %v3831_v18 = vpack.c.bf16 %v3734_v7, %v3733_v5  ;;  %v2144_v31 = vmax.f32 %v1968_v3, 0.0 }
 0x2a6   : > { %v1962_v62 = vpop.f32.mrf.mxu0  ;;  %v7315_v63 = vpop.f32.mrf.mxu1  ;;  %v2262_v13 = vrot.slane %v2261_v0, 1  ;;  %v2272_v42 = vmax.f32 %v2270_v56, %v2271_v4  ;;  %v1971_v50 = vadd.f32 %v7209_v48, %v8354_v60  ;;  %v2250_v43 = vmax.f32 %v8423_v27, %v2249_v16 }
 0x2a7   : > { %v2241_v59 = vmax.f32 %v8430_v33, %v2240_v22  ;;  %v2142_v21 = vmax.f32 %v1960_v8, 0.0  ;;  %v1963_v38 = vadd.f32 %v8354_v60, %v1962_v62  ;;  %7440 = vmatprep.mubr.msk.bf16.mxu0 %vm2182_vm4, %v3831_v18  ;;  %v3419_v26 = vadd.f32 %v8269_v45, %v3418_v49 }
 0x2a8   : > { %v7212_v9 = vpop.f32.mrf.mxu0  ;;  %v3421_v11 = vpop.f32.mrf.mxu1  ;;  %v2263_v20 = vmax.f32 %v2261_v0, %v2262_v13  ;;  %v2145_v25 = vmax.f32 %v1971_v50, 0.0  ;;  %v3430_v28 = vadd.f32 %v7315_v63, %v8269_v45  ;;  %v2285_v27 = vrot.slane %v2284_v57, 4 }
 0x2a9   : > { %7441 = vmatmul.mubr.msk.bf16.gmra.mxu0 %vm2182_vm4, %v3832_v17  ;;  %v2276_v16 = vrot.slane %v2275_v2, 4  ;;  %v3427_v33 = vadd.f32 %v7314_v34, %v8269_v45  ;;  %v2143_v22 = vmax.f32 %v1963_v38, 0.0  ;;  %v2300_v32 = vsel %vm2182_vm4, %v2144_v31, -inf  ;;  %v8539_v38 = vld [vmem:[%s9753_s9] ss:$0 sm:$0xff] }
 0x2aa   : > { %v1975_v37 = vpop.f32.mrf.mxu0  ;;  %v8493_v51 = vpop.f32.mrf.mxu1  ;;  %v8503_v24 = vsel %vm6154_vm5, %v2272_v42, %v2263_v20  ;;  %v2301_v35 = vsel %vm2182_vm4, %v2145_v25, -inf  ;;  %v1984_v36 = vadd.f32 %v7212_v9, %v8354_v60  ;;  %v3422_v39 = vadd.f32 %v8269_v45, %v3421_v11 }
 0x2ab   : > { %v2291_v41 = vsel %vm2182_vm4, %v2142_v21, -inf  ;;  %v8514_v44 = vmax.f32 %v2300_v32, %v2301_v35  ;;  %v2292_v46 = vsel %vm2182_vm4, %v2143_v22, -inf  ;;  %v3740_v47 = vmax.f32 %v3430_v28, 0.0 }
 0x2ac   : > { %v7213_v1 = vpop.f32.mrf.mxu0  ;;  %v3434_v23 = vpop.f32.mrf.mxu1  ;;  %v2251_v48 = vrot.slane %v2250_v43, 2  ;;  %v3737_v49 = vmax.f32 %v3419_v26, 0.0  ;;  %v8517_v52 = vmax.f32 %v2291_v41, %v2292_v46  ;;  %v3738_v53 = vmax.f32 %v3422_v39, 0.0 }
 0x2ad   : > { %v2242_v54 = vrot.slane %v2241_v59, 2  ;;  %v2286_v55 = vmax.f32 %v2284_v57, %v2285_v27  ;;  %v3739_v56 = vmax.f32 %v3427_v33, 0.0  ;;  %v1976_v58 = vadd.f32 %v8354_v60, %v1975_v37 }
 0x2ae   : > { %v1978_v29 = vpop.f32.mrf.mxu0  ;;  %v7319_v30 = vpop.f32.mrf.mxu1  ;;  %v2208_v63 = vrot.slane %v8481_v12, 1  ;;  %v2277_v0 = vmax.f32 %v2275_v2, %v2276_v16  ;;  %v2148_v6 = vmax.f32 %v1984_v36, 0.0  ;;  %v3833_v3 = vpack.c.bf16 %v3738_v53, %v3737_v49 }
 0x2af   : > { %v2235_v4 = vrot.slane %v8486_v14, 1  ;;  %v3834_v5 = vpack.c.bf16 %v3740_v47, %v3739_v56  ;;  %v2146_v7 = vmax.f32 %v1976_v58, 0.0  ;;  %v1987_v8 = vadd.f32 %v7213_v1, %v8354_v60 }
 0x2b0   : > { %v7216_v19 = vpop.f32.mrf.mxu0  ;;  %v3437_v34 = vpop.f32.mrf.mxu1  ;;  %v2226_v57 = vrot.slane %v8491_v15, 1  ;;  %v8526_v13 = vmax.f32 %v2250_v43, %v2251_v48  ;;  %v1979_v17 = vadd.f32 %v8354_v60, %v1978_v29  ;;  %v3446_v18 = vadd.f32 %v7319_v30, %v8269_v45  ;;  %7444 = vmatprep.mubr.msk.bf16.mxu0 %vm2182_vm4, %v3833_v3 }
 0x2b1   : > { %v8531_v2 = vmax.f32 %v2241_v59, %v2242_v54  ;;  %v2287_v37 = vrot.slane %v2286_v55, 2  ;;  %v2149_v42 = vmax.f32 %v1987_v8, 0.0  ;;  %v3435_v20 = vadd.f32 %v8269_v45, %v3434_v23  ;;  %7445 = vmatmul.mubr.msk.bf16.gmra.mxu0 %vm2182_vm4, %v3834_v5 }
 0x2b2   : > { %v1991_v61 = vpop.f32.mrf.mxu0  ;;  %v8520_v62 = vpop.f32.mrf.mxu1  ;;  %v2278_v21 = vrot.slane %v2277_v0, 2  ;;  %v2318_v43 = vsel %vm2182_vm4, %v2148_v6, -inf  ;;  %v3443_v59 = vadd.f32 %v8539_v38, %v8493_v51  ;;  %v2147_v1 = vmax.f32 %v1979_v17, 0.0 }
 0x2b3   : > { %v2309_v25 = vsel %vm2182_vm4, %v2146_v7, -inf  ;;  %v2319_v45 = vsel %vm2182_vm4, %v2149_v42, -inf  ;;  %v3744_v23 = vmax.f32 %v3446_v18, 0.0  ;;  %v3438_v26 = vadd.f32 %v8539_v38, %v3437_v34 }
 0x2b4   : > { %v7217_v9 = vpop.f32.mrf.mxu0  ;;  %v3450_v11 = vpop.f32.mrf.mxu1  ;;  %v8546_v16 = vmax.f32 %v2318_v43, %v2319_v45  ;;  %v2310_v33 = vsel %vm2182_vm4, %v2147_v1, -inf  ;;  %v2000_v22 = vadd.f32 %v7216_v19, %v8354_v60  ;;  %v1992_v29 = vadd.f32 %v8354_v60, %v1991_v61 }
 0x2b5   : > { %v8551_v30 = vmax.f32 %v2286_v55, %v2287_v37  ;;  %v3741_v51 = vmax.f32 %v3435_v20, 0.0  ;;  %v8553_v32 = vmax.f32 %v2309_v25, %v2310_v33  ;;  %v3742_v35 = vmax.f32 %v3438_v26, 0.0 }
 0x2b6   : > { %v1994_v31 = vpop.f32.mrf.mxu0  ;;  %v7323_v50 = vpop.f32.mrf.mxu1  ;;  %v8558_v41 = vmax.f32 %v8481_v12, %v2208_v63  ;;  %v8561_v46 = vmax.f32 %v8486_v14, %v2235_v4  ;;  %v8564_v47 = vmax.f32 %v8491_v15, %v2226_v57  ;;  %v3743_v19 = vmax.f32 %v3443_v59, 0.0 }
 0x2b7   : > { %v2303_v49 = vrot.slane %v8514_v44, 4  ;;  %v3835_v53 = vpack.c.bf16 %v3742_v35, %v3741_v51  ;;  %v8569_v56 = vmax.f32 %v2277_v0, %v2278_v21  ;;  %v2152_v58 = vmax.f32 %v2000_v22, 0.0 }
 0x2b8   : > { %v7220_v28 = vpop.f32.mrf.mxu0  ;;  %v3453_v27 = vpop.f32.mrf.mxu1  ;;  %v3836_v12 = vpack.c.bf16 %v3744_v23, %v3743_v19  ;;  %v2150_v61 = vmax.f32 %v1992_v29, 0.0  ;;  %v2289_v14 = vrot.slane %v8551_v30, 1  ;;  %v2003_v15 = vadd.f32 %v7217_v9, %v8354_v60 }
 0x2b9   : > { %v3451_v63 = vadd.f32 %v8539_v38, %v3450_v11  ;;  %v1995_v6 = vadd.f32 %v8354_v60, %v1994_v31  ;;  %7448 = vmatprep.mubr.msk.bf16.mxu0 %vm2182_vm4, %v3835_v53  ;;  %v3459_v5 = vadd.f32 %v8539_v38, %v8520_v62  ;;  %v3462_v0 = vadd.f32 %v8539_v38, %v7323_v50 }
 0x2ba   : > { %v2007_v36 = vpop.f32.mrf.mxu0  ;;  %v8555_v39 = vpop.f32.mrf.mxu1  ;;  %v2016_v7 = vadd.f32 %v7220_v28, %v8354_v60  ;;  %v3454_v8 = vadd.f32 %v8539_v38, %v3453_v27  ;;  %7449 = vmatmul.mubr.msk.bf16.gmra.mxu0 %vm2182_vm4, %v3836_v12  ;;  %v8583_v9 = vmax.f32 %v8514_v44, %v2303_v49  ;;  %v2294_v11 = vrot.slane %v8517_v52, 4 }
 0x2bb   : > { %v2153_v57 = vmax.f32 %v2003_v15, 0.0  ;;  %v2151_v17 = vmax.f32 %v1995_v6, 0.0  ;;  %v2336_v42 = vsel %vm2182_vm4, %v2152_v58, -inf  ;;  %v2327_v62 = vsel %vm2182_vm4, %v2150_v61, -inf }
 0x2bc   : > { %v7221_v54 = vpop.f32.mrf.mxu0  ;;  %v3466_v55 = vpop.f32.mrf.mxu1  ;;  %v3748_v20 = vmax.f32 %v3462_v0, 0.0  ;;  %v3746_v31 = vmax.f32 %v3454_v8, 0.0  ;;  %v3745_v21 = vmax.f32 %v3451_v63, 0.0  ;;  %v2008_v44 = vadd.f32 %v8354_v60, %v2007_v36 }
 0x2bd   : > { %v2337_v50 = vsel %vm2182_vm4, %v2153_v57, -inf  ;;  %v2328_v43 = vsel %vm2182_vm4, %v2151_v17, -inf  ;;  %v3747_v25 = vmax.f32 %v3459_v5, 0.0  ;;  %v2156_v26 = vmax.f32 %v2016_v7, 0.0 }
 0x2be   : > { %v2010_v3 = vpop.f32.mrf.mxu0  ;;  %v7327_v4 = vpop.f32.mrf.mxu1  ;;  %v2338_v45 = vmax.f32 %v2336_v42, %v2337_v50  ;;  %v2329_v23 = vmax.f32 %v2327_v62, %v2328_v43  ;;  %v2305_v28 = vrot.slane %v8583_v9, 2  ;;  %v2295_v27 = vmax.f32 %v8517_v52, %v2294_v11 }
 0x2bf   : > { %v3837_v33 = vpack.c.bf16 %v3746_v31, %v3745_v21  ;;  %v2154_v22 = vmax.f32 %v2008_v44, 0.0  ;;  %v3838_v49 = vpack.c.bf16 %v3748_v20, %v3747_v25  ;;  %v2019_v36 = vadd.f32 %v7221_v54, %v8354_v60 }
 0x2c0   : > { %v7224_v18 = vpop.f32.mrf.mxu0  ;;  %v3469_v37 = vpop.f32.mrf.mxu1  ;;  %v2339_v35 = vrot.slane %v2338_v45, 4  ;;  %v2330_v19 = vrot.slane %v2329_v23, 4  ;;  %v2321_v53 = vrot.slane %v8546_v16, 4  ;;  %v3467_v12 = vadd.f32 %v8539_v38, %v3466_v55 }
 0x2c1   : > { %v2011_v58 = vadd.f32 %v8354_v60, %v2010_v3  ;;  %v3478_v61 = vadd.f32 %v8539_v38, %v7327_v4  ;;  %7452 = vmatprep.mubr.msk.bf16.mxu0 %vm2182_vm4, %v3837_v33  ;;  %v2354_v5 = vsel %vm2182_vm4, %v2156_v26, -inf  ;;  %v2157_v0 = vmax.f32 %v2019_v36, 0.0 }
 0x2c2   : > { %v2023_v59 = vpop.f32.mrf.mxu0  ;;  %v8591_v1 = vpop.f32.mrf.mxu1  ;;  %v2340_v63 = vmax.f32 %v2338_v45, %v2339_v35  ;;  %v2331_v6 = vmax.f32 %v2329_v23, %v2330_v19  ;;  %7453 = vmatmul.mubr.msk.bf16.gmra.mxu0 %vm2182_vm4, %v3838_v49  ;;  %v2345_v54 = vsel %vm2182_vm4, %v2154_v22, -inf  ;;  %v3475_v55 = vadd.f32 %v8539_v38, %v8555_v39 }
 0x2c3   : > { %v3749_v7 = vmax.f32 %v3467_v12, 0.0  ;;  %v2155_v3 = vmax.f32 %v2011_v58, 0.0  ;;  %v2355_v17 = vsel %vm2182_vm4, %v2157_v0, -inf  ;;  %v3470_v42 = vadd.f32 %v8539_v38, %v3469_v37 }
 0x2c4   : > { %v7225_v29 = vpop.f32.mrf.mxu0  ;;  %v8595_v51 = vpop.f32.mrf.mxu1  ;;  %v2341_v11 = vrot.slane %v2340_v63, 2  ;;  %v2332_v57 = vrot.slane %v2331_v6, 2  ;;  %v8610_v62 = vmax.f32 %v2354_v5, %v2355_v17  ;;  %v3752_v31 = vmax.f32 %v3478_v61, 0.0 }
 0x2c5   : > { %v2346_v20 = vsel %vm2182_vm4, %v2155_v3, -inf  ;;  %v2032_v50 = vadd.f32 %v7224_v18, %v8354_v60  ;;  %v3750_v45 = vmax.f32 %v3470_v42, 0.0  ;;  %v2280_v23 = vrot.slane %v8569_v56, 1 }
 0x2c6   : > { %v2026_v52 = vpop.f32.mrf.mxu0  ;;  %v7331_v15 = vpop.f32.mrf.mxu1  ;;  %v2342_v39 = vmax.f32 %v2340_v63, %v2341_v11  ;;  %v2333_v44 = vmax.f32 %v2331_v6, %v2332_v57  ;;  %v8616_v25 = vmax.f32 %v2345_v54, %v2346_v20  ;;  %v2296_v26 = vrot.slane %v2295_v27, 2 }
 0x2c7   : > { %v3751_v33 = vmax.f32 %v3475_v55, 0.0  ;;  %v2024_v37 = vadd.f32 %v8354_v60, %v2023_v59  ;;  %v2312_v19 = vrot.slane %v8553_v32, 4  ;;  %v3839_v36 = vpack.c.bf16 %v3750_v45, %v3749_v7 }
 0x2c8   : > { %v7228_v8 = vpop.f32.mrf.mxu0  ;;  %v3485_v4 = vpop.f32.mrf.mxu1  ;;  %v2343_v18 = vrot.slane %v2342_v39, 1  ;;  %v2334_v49 = vrot.slane %v2333_v44, 1  ;;  %v8626_v12 = vmax.f32 %v8551_v30, %v2289_v14  ;;  %v2160_v61 = vmax.f32 %v2032_v50, 0.0 }
 0x2c9   : > { %v3840_v58 = vpack.c.bf16 %v3752_v31, %v3751_v33  ;;  %v2035_v63 = vadd.f32 %v7225_v29, %v8354_v60  ;;  %v8630_v59 = vmax.f32 %v8583_v9, %v2305_v28  ;;  %v2322_v0 = vmax.f32 %v8546_v16, %v2321_v53  ;;  %7456 = vmatprep.mubr.msk.bf16.mxu0 %vm2182_vm4, %v3839_v36 }
 0x2ca   : > { %v2039_v21 = vpop.f32.mrf.mxu0  ;;  %v8614_v43 = vpop.f32.mrf.mxu1  ;;  %v2344_v54 = vmax.f32 %v2342_v39, %v2343_v18  ;;  %v2335_v55 = vmax.f32 %v2333_v44, %v2334_v49  ;;  %v8634_v7 = vmax.f32 %v2295_v27, %v2296_v26  ;;  %v2158_v3 = vmax.f32 %v2024_v37, 0.0 }
 0x2cb   : > { %v2161_v30 = vmax.f32 %v2035_v63, 0.0  ;;  %v2027_v14 = vadd.f32 %v8354_v60, %v2026_v52  ;;  %7457 = vmatmul.mubr.msk.bf16.gmra.mxu0 %vm2182_vm4, %v3840_v58  ;;  %v2313_v57 = vmax.f32 %v8553_v32, %v2312_v19  ;;  %v2357_v16 = vrot.slane %v8610_v62, 4 }
 0x2cc   : > { %v7229_v22 = vpop.f32.mrf.mxu0  ;;  %v8620_v35 = vpop.f32.mrf.mxu1  ;;  %v8640_v9 = vsel %vm6154_vm5, %v2344_v54, %v2335_v55  ;;  %v3494_v28 = vadd.f32 %v8539_v38, %v7331_v15  ;;  %v2372_v27 = vsel %vm2182_vm4, %v2160_v61, -inf  ;;  %v3483_v52 = vadd.f32 %v8539_v38, %v8595_v51 }
 0x2cd   : > { %v2373_v53 = vsel %vm2182_vm4, %v2161_v30, -inf  ;;  %v2159_v17 = vmax.f32 %v2027_v14, 0.0  ;;  %v2323_v31 = vrot.slane %v2322_v0, 2  ;;  %v3491_v32 = vadd.f32 %v8539_v38, %v8591_v1 }
 0x2ce   : > { %v2042_v6 = vpop.f32.mrf.mxu0  ;;  %v7335_v5 = vpop.f32.mrf.mxu1  ;;  %v8652_v50 = vmax.f32 %v2372_v27, %v2373_v53  ;;  %v3486_v39 = vadd.f32 %v8539_v38, %v3485_v4  ;;  %v2363_v15 = vsel %vm2182_vm4, %v2158_v3, -inf  ;;  %v2048_v45 = vadd.f32 %v7228_v8, %v8354_v60 }
 0x2cf   : > { %v2364_v44 = vsel %vm2182_vm4, %v2159_v17, -inf  ;;  %v2040_v51 = vadd.f32 %v8354_v60, %v2039_v21  ;;  %v2314_v37 = vrot.slane %v2313_v57, 2  ;;  %v2348_v19 = vrot.slane %v8616_v25, 4 }
 0x2d0   : > { %v7232_v29 = vpop.f32.mrf.mxu0  ;;  %v3501_v11 = vpop.f32.mrf.mxu1  ;;  %v8662_v18 = vmax.f32 %v2363_v15, %v2364_v44  ;;  %v3756_v1 = vmax.f32 %v3494_v28, 0.0  ;;  %v8665_v49 = vmax.f32 %v8569_v56, %v2280_v23  ;;  %v2358_v4 = vmax.f32 %v8610_v62, %v2357_v16  ;;  %v8677_v56 = vld [vmem:[%s9751_s7] ss:$0 sm:$0xff] }
 0x2d1   : > { %v3753_v36 = vmax.f32 %v3483_v52, 0.0  ;;  %v3754_v58 = vmax.f32 %v3486_v39, 0.0  ;;  %v2307_v60 = vrot.slane %v8630_v59, 1  ;;  %v2298_v21 = vrot.slane %v8634_v7, 1 }
 0x2d2   : > { %v2055_v42 = vpop.f32.mrf.mxu0  ;;  %v8648_v20 = vpop.f32.mrf.mxu1  ;;  %v8672_v63 = vmax.f32 %v2322_v0, %v2323_v31  ;;  %v3755_v54 = vmax.f32 %v3491_v32, 0.0  ;;  %v2164_v55 = vmax.f32 %v2048_v45, 0.0  ;;  %v2162_v30 = vmax.f32 %v2040_v51, 0.0 }
 0x2d3   : > { %v3841_v3 = vpack.c.bf16 %v3754_v58, %v3753_v36  ;;  %v2051_v62 = vadd.f32 %v8677_v56, %v7229_v22  ;;  %v8680_v16 = vmax.f32 %v2313_v57, %v2314_v37  ;;  %v2349_v28 = vmax.f32 %v8616_v25, %v2348_v19 }
 0x2d4   : > { %v7233_v26 = vpop.f32.mrf.mxu0  ;;  %v8659_v33 = vpop.f32.mrf.mxu1  ;;  %v3842_v27 = vpack.c.bf16 %v3756_v1, %v3755_v54  ;;  %v2043_v0 = vadd.f32 %v8677_v56, %v2042_v6  ;;  %v2359_v53 = vrot.slane %v2358_v4, 2  ;;  %v3499_v17 = vadd.f32 %v8539_v38, %v8620_v35 }
 0x2d5   : > { %v2165_v52 = vmax.f32 %v2051_v62, 0.0  ;;  %v3510_v31 = vadd.f32 %v8539_v38, %v7335_v5  ;;  %7460 = vmatprep.mubr.msk.bf16.mxu0 %vm2182_vm4, %v3841_v3  ;;  %v2375_v57 = vrot.slane %v8652_v50, 4  ;;  %v3507_v25 = vadd.f32 %v8539_v38, %v8614_v43 }
 0x2d6   : > { %v2058_v61 = vpop.f32.mrf.mxu0  ;;  %v8668_v8 = vpop.f32.mrf.mxu1  ;;  %v2163_v39 = vmax.f32 %v2043_v0, 0.0  ;;  %v3502_v6 = vadd.f32 %v8539_v38, %v3501_v11  ;;  %7461 = vmatmul.mubr.msk.bf16.gmra.mxu0 %vm2182_vm4, %v3842_v27  ;;  %v2390_v15 = vsel %vm2182_vm4, %v2164_v55, -inf  ;;  %v2381_v35 = vsel %vm2182_vm4, %v2162_v30, -inf }
 0x2d7   : > { %v2391_v5 = vsel %vm2182_vm4, %v2165_v52, -inf  ;;  %v2064_v44 = vadd.f32 %v8677_v56, %v7232_v29  ;;  %v3760_v19 = vmax.f32 %v3510_v31, 0.0  ;;  %v2056_v11 = vadd.f32 %v8677_v56, %v2055_v42 }
 0x2d8   : > { %v7236_v23 = vpop.f32.mrf.mxu0  ;;  %v3517_v14 = vpop.f32.mrf.mxu1  ;;  %v8703_v37 = vmax.f32 %v2390_v15, %v2391_v5  ;;  %v2382_v43 = vsel %vm2182_vm4, %v2163_v39, -inf  ;;  %v2350_v1 = vrot.slane %v2349_v28, 2  ;;  %v3757_v36 = vmax.f32 %v3499_v17, 0.0 }
 0x2d9   : > { %v8707_v58 = vmax.f32 %v2381_v35, %v2382_v43  ;;  %v3758_v54 = vmax.f32 %v3502_v6, 0.0  ;;  %v8710_v29 = vmax.f32 %v8630_v59, %v2307_v60  ;;  %v8713_v30 = vmax.f32 %v8634_v7, %v2298_v21 }
 0x2da   : > { %v2071_v32 = vpop.f32.mrf.mxu0  ;;  %v8688_v22 = vpop.f32.mrf.mxu1  ;;  %v3759_v27 = vmax.f32 %v3507_v25, 0.0  ;;  %v2168_v52 = vmax.f32 %v2064_v44, 0.0  ;;  %v2067_v17 = vadd.f32 %v8677_v56, %v7233_v26  ;;  %v8722_v6 = vmax.f32 %v2358_v4, %v2359_v53 }
 0x2db   : > { %9761 = vst [vmem:[#allocation2_spill] sm:$0xff] %v8710_v29  ;;  %v3843_v42 = vpack.c.bf16 %v3758_v54, %v3757_v36  ;;  %v2376_v59 = vmax.f32 %v8652_v50, %v2375_v57  ;;  %v2166_v7 = vmax.f32 %v2056_v11, 0.0  ;;  %v8725_v21 = vmax.f32 %v2349_v28, %v2350_v1 }
 0x2dc   : > { %v8699_v45 = vpop.f32.mrf.mxu0  ;;  %v8701_v51 = vpop.f32.mrf.mxu1  ;;  %v3844_v60 = vpack.c.bf16 %v3760_v19, %v3759_v27  ;;  %v2169_v15 = vmax.f32 %v2067_v17, 0.0  ;;  %v3515_v25 = vadd.f32 %v8539_v38, %v8659_v33  ;;  %v2059_v35 = vadd.f32 %v8677_v56, %v2058_v61 }
 0x2dd   : > { %7464 = vmatprep.mubr.msk.bf16.mxu0 %vm2182_vm4, %v3843_v42  ;;  %v2366_v4 = vrot.slane %v8662_v18, 4  ;;  %v3523_v50 = vadd.f32 %v8539_v38, %v8648_v20  ;;  %v3526_v28 = vadd.f32 %v8539_v38, %v8668_v8  ;;  %v2080_v53 = vadd.f32 %v8677_v56, %v7236_v23 }
 0x2de   : > { %v2074_v55 = vpop.f32.mrf.mxu0  ;;  %v7343_v3 = vpop.f32.mrf.mxu1  ;;  %7465 = vmatmul.mubr.msk.bf16.gmra.mxu0 %vm2182_vm4, %v3844_v60  ;;  %v2408_v33 = vsel %vm2182_vm4, %v2168_v52, -inf  ;;  %v2409_v61 = vsel %vm2182_vm4, %v2169_v15, -inf  ;;  %v2167_v57 = vmax.f32 %v2059_v35, 0.0  ;;  %v3518_v44 = vadd.f32 %v8539_v38, %v3517_v14 }
 0x2df   : > { %v2377_v11 = vrot.slane %v2376_v59, 2  ;;  %v2399_v20 = vsel %vm2182_vm4, %v2166_v7, -inf  ;;  %v2410_v1 = vmax.f32 %v2408_v33, %v2409_v61  ;;  %v3764_v8 = vmax.f32 %v3526_v28, 0.0 }
 0x2e0   : > { %v8718_v31 = vpop.f32.mrf.mxu0  ;;  %v8720_v39 = vpop.f32.mrf.mxu1  ;;  %v3761_v36 = vmax.f32 %v3515_v25, 0.0  ;;  %v2400_v23 = vsel %vm2182_vm4, %v2167_v57, -inf  ;;  %v3762_v54 = vmax.f32 %v3518_v44, 0.0  ;;  %v2072_v27 = vadd.f32 %v8677_v56, %v2071_v32 }
 0x2e1   : > { %v3763_v14 = vmax.f32 %v3523_v50, 0.0  ;;  %v2411_v17 = vrot.slane %v2410_v1, 4  ;;  %v2401_v60 = vmax.f32 %v2399_v20, %v2400_v23  ;;  %v2172_v15 = vmax.f32 %v2080_v53, 0.0 }
 0x2e2   : > { %v8731_v26 = vpop.f32.mrf.mxu0  ;;  %v8733_v5 = vpop.f32.mrf.mxu1  ;;  %v2367_v7 = vmax.f32 %v8662_v18, %v2366_v4  ;;  %v3845_v33 = vpack.c.bf16 %v3762_v54, %v3761_v36  ;;  %v2170_v28 = vmax.f32 %v2072_v27, 0.0  ;;  %v2083_v62 = vadd.f32 %v8677_v56, %v8699_v45 }
 0x2e3   : > { %v2412_v57 = vmax.f32 %v2410_v1, %v2411_v17  ;;  %v2402_v32 = vrot.slane %v2401_v60, 4  ;;  %v3846_v44 = vpack.c.bf16 %v3764_v8, %v3763_v14  ;;  %v8764_v50 = vmax.f32 %v2376_v59, %v2377_v11 }
 0x2e4   : > { %v8745_v43 = vpop.f32.mrf.mxu0  ;;  %v8747_v19 = vpop.f32.mrf.mxu1  ;;  %v3531_v53 = vadd.f32 %v8539_v38, %v8701_v51  ;;  %v2075_v20 = vadd.f32 %v8677_v56, %v2074_v55  ;;  %v3542_v18 = vadd.f32 %v8539_v38, %v7343_v3  ;;  %7468 = vmatprep.mubr.msk.bf16.mxu0 %vm2182_vm4, %v3845_v33  ;;  %v2426_v23 = vsel %vm2182_vm4, %v2172_v15, -inf }
 0x2e5   : > { %v2413_v1 = vrot.slane %v2412_v57, 2  ;;  %v2403_v8 = vmax.f32 %v2401_v60, %v2402_v32  ;;  %v2173_v45 = vmax.f32 %v2083_v62, 0.0  ;;  %v2417_v59 = vsel %vm2182_vm4, %v2170_v28, -inf }
 0x2e6   : > { %v8752_v52 = vpop.f32.mrf.mxu0  ;;  %v8754_v42 = vpop.f32.mrf.mxu1  ;;  %7469 = vmatmul.mubr.msk.bf16.gmra.mxu0 %vm2182_vm4, %v3846_v44  ;;  %v3539_v51 = vadd.f32 %v8539_v38, %v8688_v22  ;;  %v3765_v55 = vmax.f32 %v3531_v53, 0.0  ;;  %v2171_v3 = vmax.f32 %v2075_v20, 0.0  ;;  %v3534_v62 = vadd.f32 %v8539_v38, %v8720_v39 }
 0x2e7   : > { %v2414_v27 = vmax.f32 %v2412_v57, %v2413_v1  ;;  %v2404_v14 = vrot.slane %v2403_v8, 2  ;;  %v2427_v17 = vsel %vm2182_vm4, %v2173_v45, -inf  ;;  %v3768_v33 = vmax.f32 %v3542_v18, 0.0 }
 0x2e8   : > { %v8758_v25 = vpop.f32.mrf.mxu0  ;;  %v8760_v61 = vpop.f32.mrf.mxu1  ;;  %v8787_v60 = vmax.f32 %v2426_v23, %v2427_v17  ;;  %v2418_v15 = vsel %vm2182_vm4, %v2171_v3, -inf  ;;  %v2096_v22 = vadd.f32 %v8677_v56, %v8718_v31  ;;  %v3766_v20 = vmax.f32 %v3534_v62, 0.0 }
 0x2e9   : > { %v2415_v44 = vrot.slane %v2414_v27, 1  ;;  %v2405_v57 = vmax.f32 %v2403_v8, %v2404_v14  ;;  %v8796_v53 = vmax.f32 %v2417_v59, %v2418_v15  ;;  %v2368_v1 = vrot.slane %v2367_v7, 2 }
 0x2ea   : > { %v8771_v4 = vpop.f32.mrf.mxu0  ;;  %v8773_v36 = vpop.f32.mrf.mxu1  ;;  %v2393_v39 = vrot.slane %v8703_v37, 4  ;;  %v3767_v23 = vmax.f32 %v3539_v51, 0.0  ;;  %v2088_v45 = vadd.f32 %v8677_v56, %v8731_v26  ;;  %v2352_v31 = vrot.slane %v8725_v21, 1 }
 0x2eb   : > { %v2384_v17 = vrot.slane %v8707_v58, 4  ;;  %v2406_v0 = vrot.slane %v2405_v57, 1  ;;  %v3847_v8 = vpack.c.bf16 %v3766_v20, %v3765_v55  ;;  %v2176_v14 = vmax.f32 %v2096_v22, 0.0 }
 0x2ec   : > { %v8780_v11 = vpop.f32.mrf.mxu0  ;;  %v8782_v54 = vpop.f32.mrf.mxu1  ;;  %v3848_v59 = vpack.c.bf16 %v3768_v33, %v3767_v23  ;;  %v2174_v62 = vmax.f32 %v2088_v45, 0.0  ;;  %v2099_v15 = vadd.f32 %v8677_v56, %v8745_v43  ;;  %v2379_v26 = vrot.slane %v8764_v50, 1 }
 0x2ed   : > { %v2416_v48 = vmax.f32 %v2414_v27, %v2415_v44  ;;  %v2407_v35 = vmax.f32 %v2405_v57, %v2406_v0  ;;  %v2091_v29 = vadd.f32 %v8677_v56, %v8752_v52  ;;  %7472 = vmatprep.mubr.msk.bf16.mxu0 %vm2182_vm4, %v3847_v8  ;;  %v2369_v55 = vmax.f32 %v2367_v7, %v2368_v1 }
 0x2ee   : > { %v8792_v28 = vpop.f32.mrf.mxu0  ;;  %v8794_v32 = vpop.f32.mrf.mxu1  ;;  %v2394_v33 = vmax.f32 %v8703_v37, %v2393_v39  ;;  %v2177_v22 = vmax.f32 %v2099_v15, 0.0  ;;  %v3558_v43 = vadd.f32 %v8539_v38, %v8754_v42  ;;  %7473 = vmatmul.mubr.msk.bf16.gmra.mxu0 %vm2182_vm4, %v3848_v59  ;;  %v2385_v0 = vmax.f32 %v8707_v58, %v2384_v17 }
 0x2ef   : > { %v8827_v27 = vsel %vm6154_vm5, %v2416_v48, %v2407_v35  ;;  %v3547_v52 = vadd.f32 %v8539_v38, %v8747_v19  ;;  %v2175_v7 = vmax.f32 %v2091_v29, 0.0  ;;  %v2444_v37 = vsel %vm2182_vm4, %v2176_v14, -inf }
 0x2f0   : > { %v8801_v18 = vpop.f32.mrf.mxu1  ;;  %v8803_v3 = vpop.f32.mrf.mxu0  ;;  %9762 = vst [vmem:[#allocation3_spill] sm:$0xff] %v8827_v27  ;;  %v2435_v44 = vsel %vm2182_vm4, %v2174_v62, -inf  ;;  %v3555_v42 = vadd.f32 %v8539_v38, %v8733_v5  ;;  %v2445_v57 = vsel %vm2182_vm4, %v2177_v22, -inf  ;;  %v2112_v29 = vadd.f32 %v8677_v56, %v8758_v25 }
 0x2f1   : > { %v8840_v58 = vmax.f32 %v2444_v37, %v2445_v57  ;;  %v2436_v48 = vsel %vm2182_vm4, %v2175_v7, -inf  ;;  %v3550_v19 = vadd.f32 %v8539_v38, %v8760_v61  ;;  %v9763_v35 = vrot.slane %v8722_v6, 1 }
 0x2f2   : > { %v8809_v51 = vpop.f32.mrf.mxu1  ;;  %v8811_v34 = vpop.f32.mrf.mxu0  ;;  %v2370_v45 = vrot.slane %v2369_v55, 1  ;;  %v8852_v17 = vmax.f32 %v2435_v44, %v2436_v48  ;;  %v3772_v8 = vmax.f32 %v3558_v43, 0.0  ;;  %v2429_v62 = vrot.slane %v8787_v60, 4 }
 0x2f3   : > { %v8850_v5 = vmax.f32 %v8722_v6, %v9763_v35  ;;  %v3769_v15 = vmax.f32 %v3547_v52, 0.0  ;;  %v3770_v25 = vmax.f32 %v3550_v19, 0.0  ;;  %v2104_v61 = vadd.f32 %v8677_v56, %v8771_v4 }
 0x2f4   : > { %v8821_v20 = vpop.f32.mrf.mxu1  ;;  %v8823_v23 = vpop.f32.mrf.mxu0  ;;  %v8862_v22 = vmax.f32 %v8725_v21, %v2352_v31  ;;  %v8865_v6 = vmax.f32 %v8764_v50, %v2379_v26  ;;  %v2395_v7 = vrot.slane %v2394_v33, 2  ;;  %v3771_v37 = vmax.f32 %v3555_v42, 0.0 }
 0x2f5   : > { %9764 = vst [vmem:[#allocation4_spill] sm:$0xff] %v8850_v5  ;;  %v2386_v57 = vrot.slane %v2385_v0, 2  ;;  %v2420_v48 = vrot.slane %v8796_v53, 4  ;;  %v2180_v52 = vmax.f32 %v2112_v29, 0.0  ;;  %v3849_v19 = vpack.c.bf16 %v3770_v25, %v3769_v15 }
 0x2f6   : > { %v8836_v1 = vpop.f32.mrf.mxu1  ;;  %v8838_v39 = vpop.f32.mrf.mxu0  ;;  %9765 = vst [vmem:[#allocation5_spill] sm:$0xff] %v8865_v6  ;;  %v8872_v35 = vmax.f32 %v2369_v55, %v2370_v45  ;;  %v3850_v4 = vpack.c.bf16 %v3772_v8, %v3771_v37  ;;  %v2115_v21 = vadd.f32 %v8677_v56, %v8780_v11  ;;  %v3563_v50 = vadd.f32 %v8539_v38, %v8782_v54 }
 0x2f7   : > { %v2430_v42 = vmax.f32 %v8787_v60, %v2429_v62  ;;  %v2178_v6 = vmax.f32 %v2104_v61, 0.0  ;;  %v2107_v29 = vadd.f32 %v8677_v56, %v8792_v28  ;;  %v3574_v55 = vadd.f32 %v8539_v38, %v8794_v32  ;;  %7476 = vmatprep.mubr.msk.bf16.mxu0 %vm2182_vm4, %v3849_v19 }
 0x2f8   : > { %v8854_v59 = vpop.f32.mrf.mxu1  ;;  %v8856_v14 = vpop.f32.mrf.mxu0  ;;  %9766 = vst [vmem:[#allocation6_spill] sm:$0xff] %v8872_v35  ;;  %v8888_v45 = vmax.f32 %v2394_v33, %v2395_v7  ;;  %v3571_v11 = vadd.f32 %v8539_v38, %v8773_v36  ;;  %v2181_v54 = vmax.f32 %v2115_v21, 0.0  ;;  %v3566_v8 = vadd.f32 %v8539_v38, %v8801_v18  ;;  %7477 = vmatmul.mubr.msk.bf16.gmra.mxu0 %vm2182_vm4, %v3850_v4 }
 0x2f9   : > { %v8899_v56 = vmax.f32 %v2385_v0, %v2386_v57  ;;  %v2421_v28 = vmax.f32 %v8796_v53, %v2420_v48  ;;  %v2462_v32 = vsel %vm2182_vm4, %v2180_v52, -inf  ;;  %v2179_v33 = vmax.f32 %v2107_v29, 0.0  ;;  %v8915_v53 = vld [vmem:[%s9755_s11] ss:$0 sm:$0xff] }
 0x2fa   : > { %v8867_v43 = vpop.f32.mrf.mxu1  ;;  %v8869_v44 = vpop.f32.mrf.mxu0  ;;  %9767 = vst [vmem:[#allocation7_spill] sm:$0xff] %v8888_v45  ;;  %v2463_v15 = vsel %vm2182_vm4, %v2181_v54, -inf  ;;  %v3773_v36 = vmax.f32 %v3563_v50, 0.0  ;;  %v3776_v25 = vmax.f32 %v3574_v55, 0.0  ;;  %v3774_v61 = vmax.f32 %v3566_v8, 0.0 }
 0x2fb   : > { %v2431_v37 = vrot.slane %v2430_v42, 2  ;;  %v2453_v19 = vsel %vm2182_vm4, %v2178_v6, -inf  ;;  %v8909_v4 = vmax.f32 %v2462_v32, %v2463_v15  ;;  %v2454_v0 = vsel %vm2182_vm4, %v2179_v33, -inf }
 0x2fc   : > { %v8878_v31 = vpop.f32.mrf.mxu1  ;;  %v8880_v26 = vpop.f32.mrf.mxu0  ;;  %v2447_v57 = vrot.slane %v8840_v58, 4  ;;  %v3775_v48 = vmax.f32 %v3571_v11, 0.0  ;;  %v8918_v52 = vmax.f32 %v2453_v19, %v2454_v0  ;;  %v3851_v21 = vpack.c.bf16 %v3774_v61, %v3773_v36 }
 0x2fd   : > { %v2422_v55 = vrot.slane %v2421_v28, 2  ;;  %v2438_v54 = vrot.slane %v8852_v17, 4  ;;  %v4115_v8 = vadd.f32 %v8915_v53, %v8811_v34  ;;  %v4123_v33 = vadd.f32 %v8803_v3, %v8915_v53 }
 0x2fe   : > { %v8895_v60 = vpop.f32.mrf.mxu1  ;;  %v8897_v62 = vpop.f32.mrf.mxu0  ;;  %v3852_v32 = vpack.c.bf16 %v3776_v25, %v3775_v48  ;;  %v3579_v11 = vadd.f32 %v8539_v38, %v8821_v20  ;;  %v4126_v15 = vadd.f32 %v8823_v23, %v8915_v53  ;;  %7480 = vmatprep.mubr.msk.bf16.mxu0 %vm2182_vm4, %v3851_v21  ;;  %v8939_v19 = vmax.f32 %v2430_v42, %v2431_v37 }
 0x2ff   : > { %v3587_v34 = vadd.f32 %v8539_v38, %v8809_v51  ;;  %v3590_v3 = vadd.f32 %v8539_v38, %v8836_v1  ;;  %v4118_v20 = vadd.f32 %v8915_v53, %v8838_v39  ;;  %v2448_v23 = vmax.f32 %v8840_v58, %v2447_v57 }
 0x300   : > { %v8904_v7 = vpop.f32.mrf.mxu1  ;;  %v8906_v18 = vpop.f32.mrf.mxu0  ;;  %v4628_v0 = vmax.f32 %v4126_v15, 0.0  ;;  %v3582_v48 = vadd.f32 %v8539_v38, %v8854_v59  ;;  %7481 = vmatmul.mubr.msk.bf16.gmra.mxu0 %vm2182_vm4, %v3852_v32  ;;  %v8954_v51 = vmax.f32 %v2421_v28, %v2422_v55  ;;  %v4625_v21 = vmax.f32 %v4115_v8, 0.0 }
 0x301   : > { %v3780_v1 = vmax.f32 %v3590_v3, 0.0  ;;  %v4626_v6 = vmax.f32 %v4118_v20, 0.0  ;;  %v2439_v39 = vmax.f32 %v8852_v17, %v2438_v54  ;;  %v4627_v45 = vmax.f32 %v4123_v33, 0.0 }
 0x302   : > { %v8920_v50 = vpop.f32.mrf.mxu1  ;;  %v8922_v29 = vpop.f32.mrf.mxu0  ;;  %v3777_v25 = vmax.f32 %v3579_v11, 0.0  ;;  %v3778_v27 = vmax.f32 %v3582_v48, 0.0  ;;  %v2433_v59 = vrot.slane %v8939_v19, 1  ;;  %v2465_v32 = vrot.slane %v8909_v4, 4 }
 0x303   : > { %v3779_v15 = vmax.f32 %v3587_v34, 0.0  ;;  %v4753_v35 = vpack.c.bf16 %v4626_v6, %v4625_v21  ;;  %v2449_v5 = vrot.slane %v2448_v23, 2  ;;  %v4754_v28 = vpack.c.bf16 %v4628_v0, %v4627_v45 }
 0x304   : > { %v8935_v36 = vpop.f32.mrf.mxu1  ;;  %v8937_v61 = vpop.f32.mrf.mxu0  ;;  %v3853_v55 = vpack.c.bf16 %v3778_v27, %v3777_v25  ;;  %v4131_v8 = vadd.f32 %v8915_v53, %v8869_v44  ;;  %v4139_v33 = vadd.f32 %v8856_v14, %v8915_v53  ;;  %v3595_v11 = vadd.f32 %v8539_v38, %v8878_v31 }
 0x305   : > { %v3854_v54 = vpack.c.bf16 %v3780_v1, %v3779_v15  ;;  %v4142_v34 = vadd.f32 %v8880_v26, %v8915_v53  ;;  %7512 = vmatprep.mubr.msk.bf16.mxu1 %vm2182_vm4, %v4753_v35  ;;  %v2440_v45 = vrot.slane %v2439_v39, 2  ;;  %v3606_v27 = vadd.f32 %v8539_v38, %v8895_v60 }
 0x306   : > { %v8952_v42 = vpop.f32.mrf.mxu1  ;;  %v4149_v37 = vpop.f32.mrf.mxu0  ;;  %v4134_v44 = vadd.f32 %v8915_v53, %v8897_v62  ;;  %7513 = vmatmul.mubr.msk.bf16.vlgmr.msra.gmra.mxu1 %vm2182_vm4, %v4754_v28  ;;  %7484 = vmatprep.mubr.msk.bf16.mxu0 %vm2182_vm4, %v3853_v55  ;;  %v3598_v14 = vadd.f32 %v8539_v38, %v8904_v7  ;;  %v2466_v26 = vmax.f32 %v8909_v4, %v2465_v32  ;;  %v2456_v35 = vrot.slane %v8918_v52, 4 }
 0x307   : > { %v3603_v60 = vadd.f32 %v8539_v38, %v8867_v43  ;;  %v4629_v20 = vmax.f32 %v4131_v8, 0.0  ;;  %v3781_v25 = vmax.f32 %v3595_v11, 0.0  ;;  %v4632_v62 = vmax.f32 %v4142_v34, 0.0 }
 0x308   : > { %v3613_v58 = vpop.f32.mrf.mxu1  ;;  %v8957_v57 = vpop.f32.mrf.mxu0  ;;  %v4630_v0 = vmax.f32 %v4134_v44, 0.0  ;;  %v3782_v48 = vmax.f32 %v3598_v14, 0.0  ;;  %7485 = vmatmul.mubr.msk.bf16.gmra.mxu0 %vm2182_vm4, %v3854_v54  ;;  %v2424_v1 = vrot.slane %v8954_v51, 1  ;;  %v8990_v15 = vmax.f32 %v2448_v23, %v2449_v5 }
 0x309   : > { %v4631_v4 = vmax.f32 %v4139_v33, 0.0  ;;  %v4147_v32 = vadd.f32 %v8915_v53, %v8922_v29  ;;  %v3784_v28 = vmax.f32 %v3606_v27, 0.0  ;;  %v3611_v8 = vadd.f32 %v8539_v38, %v8935_v36 }
 0x30a   : > { %v8963_v3 = vpop.f32.mrf.mxu1  ;;  %v4162_v17 = vpop.f32.mrf.mxu0  ;;  %v4755_v43 = vpack.c.bf16 %v4630_v0, %v4629_v20  ;;  %v3855_v55 = vpack.c.bf16 %v3782_v48, %v3781_v25  ;;  %v8998_v54 = vmax.f32 %v2439_v39, %v2440_v45  ;;  %v2467_v44 = vrot.slane %v2466_v26, 2 }
 0x30b   : > { %v2457_v14 = vmax.f32 %v8918_v52, %v2456_v35  ;;  %v4150_v5 = vadd.f32 %v8915_v53, %v4149_v37  ;;  %v3783_v23 = vmax.f32 %v3603_v60, 0.0  ;;  %v4756_v33 = vpack.c.bf16 %v4632_v62, %v4631_v4 }
 0x30c   : > { %v3626_v31 = vpop.f32.mrf.mxu1  ;;  %v8980_v6 = vpop.f32.mrf.mxu0  ;;  %v4158_v29 = vadd.f32 %v8937_v61, %v8915_v53  ;;  %7516 = vmatprep.mubr.msk.bf16.mxu1 %vm2182_vm4, %v4755_v43  ;;  %7488 = vmatprep.mubr.msk.bf16.mxu0 %vm2182_vm4, %v3855_v55  ;;  %v3614_v36 = vadd.f32 %v8539_v38, %v3613_v58  ;;  %v4155_v45 = vadd.f32 %v8906_v18, %v8915_v53  ;;  %v4633_v52 = vmax.f32 %v4147_v32, 0.0 }
 0x30d   : > { %v3622_v37 = vadd.f32 %v8539_v38, %v8952_v42  ;;  %v4634_v35 = vmax.f32 %v4150_v5, 0.0  ;;  %v3856_v60 = vpack.c.bf16 %v3784_v28, %v3783_v23  ;;  %v3619_v61 = vadd.f32 %v8539_v38, %v8920_v50 }
 0x30e   : > { %v8987_v21 = vpop.f32.mrf.mxu1  ;;  %v4165_v7 = vpop.f32.mrf.mxu0  ;;  %v3785_v20 = vmax.f32 %v3611_v8, 0.0  ;;  %7517 = vmatmul.mubr.msk.bf16.gmra.mxu1 %vm2182_vm4, %v4756_v33  ;;  %v3786_v25 = vmax.f32 %v3614_v36, 0.0  ;;  %v9019_v0 = vmax.f32 %v8939_v19, %v2433_v59  ;;  %v4163_v48 = vadd.f32 %v8915_v53, %v4162_v17 }
 0x30f   : > { %v4757_v18 = vpack.c.bf16 %v4634_v35, %v4633_v52  ;;  %v3627_v42 = vadd.f32 %v8539_v38, %v3626_v31  ;;  %v9024_v4 = vmax.f32 %v8954_v51, %v2424_v1  ;;  %v2458_v50 = vrot.slane %v2457_v14, 2 }
 0x310   : > { %v3629_v11 = vpop.f32.mrf.mxu1  ;;  %v8996_v34 = vpop.f32.mrf.mxu0  ;;  %v4636_v32 = vmax.f32 %v4158_v29, 0.0  ;;  %v3857_v28 = vpack.c.bf16 %v3786_v25, %v3785_v20  ;;  %7489 = vmatmul.mubr.msk.bf16.gmra.mxu0 %vm2182_vm4, %v3856_v60  ;;  %v2451_v8 = vrot.slane %v8990_v15, 1  ;;  %v3788_v5 = vmax.f32 %v3622_v37, 0.0 }
 0x311   : > { %7520 = vmatprep.mubr.msk.bf16.mxu1 %vm2182_vm4, %v4757_v18  ;;  %v4166_v19 = vadd.f32 %v8915_v53, %v4165_v7  ;;  %v3630_v59 = vadd.f32 %v8539_v38, %v3629_v11  ;;  %v2442_v51 = vrot.slane %v8998_v54, 1  ;;  %v9032_v17 = vmax.f32 %v2466_v26, %v2467_v44 }
 0x312   : > { %v9007_v27 = vpop.f32.mrf.mxu1  ;;  %v4178_v39 = vpop.f32.mrf.mxu0  ;;  %v4635_v31 = vmax.f32 %v4155_v45, 0.0  ;;  %v3787_v1 = vmax.f32 %v3619_v61, 0.0  ;;  %7492 = vmatprep.mubr.msk.bf16.mxu0 %vm2182_vm4, %v3857_v28  ;;  %v4637_v29 = vmax.f32 %v4163_v48, 0.0  ;;  %v3789_v36 = vmax.f32 %v3627_v42, 0.0 }
 0x313   : > { %v4638_v52 = vmax.f32 %v4166_v19, 0.0  ;;  %v3790_v37 = vmax.f32 %v3630_v59, 0.0  ;;  %v9037_v7 = vmax.f32 %v2457_v14, %v2458_v50  ;;  %v4171_v11 = vadd.f32 %v8957_v57, %v8915_v53  ;;  %v9049_v14 = vld [vmem:[%s9753_s9] ss:$0 sm:$0xff] }
 0x314   : > { %v3642_v58 = vpop.f32.mrf.mxu1  ;;  %v7399_v62 = vpop.f32.mrf.mxu0  ;;  %v4758_v38 = vpack.c.bf16 %v4636_v32, %v4635_v31  ;;  %v4174_v26 = vadd.f32 %v8980_v6, %v8915_v53  ;;  %v3858_v35 = vpack.c.bf16 %v3788_v5, %v3787_v1  ;;  %v4179_v20 = vadd.f32 %v8915_v53, %v4178_v39 }
 0x315   : > { %v4759_v60 = vpack.c.bf16 %v4638_v52, %v4637_v29  ;;  %v3859_v61 = vpack.c.bf16 %v3790_v37, %v3789_v36  ;;  %v3638_v57 = vadd.f32 %v9049_v14, %v8987_v21  ;;  %v3643_v6 = vadd.f32 %v9049_v14, %v3642_v58 }
 0x316   : > { %v7371_v43 = vpop.f32.mrf.mxu1  ;;  %v4181_v55 = vpop.f32.mrf.mxu0  ;;  %7521 = vmatmul.mubr.msk.bf16.gmra.mxu1 %vm2182_vm4, %v4758_v38  ;;  %v9060_v39 = vmax.f32 %v8990_v15, %v2451_v8  ;;  %v9063_v50 = vmax.f32 %v8998_v54, %v2442_v51  ;;  %v4190_v21 = vadd.f32 %v7399_v62, %v8915_v53  ;;  %v2469_v32 = vrot.slane %v9032_v17, 1 }
 0x317   : > { %v4182_v25 = vadd.f32 %v8915_v53, %v4181_v55  ;;  %7524 = vmatprep.mubr.msk.bf16.mxu1 %vm2182_vm4, %v4759_v60  ;;  %v3654_v58 = vadd.f32 %v9049_v14, %v7371_v43  ;;  %v3635_v28 = vadd.f32 %v9049_v14, %v8963_v3  ;;  %v4640_v55 = vmax.f32 %v4174_v26, 0.0 }
 0x318   : > { %v3645_v23 = vpop.f32.mrf.mxu1  ;;  %v9035_v33 = vpop.f32.mrf.mxu0  ;;  %7493 = vmatmul.mubr.msk.bf16.gmra.mxu0 %vm2182_vm4, %v3858_v35  ;;  %v4187_v62 = vadd.f32 %v8996_v34, %v8915_v53  ;;  %v3651_v43 = vadd.f32 %v9049_v14, %v9007_v27  ;;  %v4641_v5 = vmax.f32 %v4179_v20, 0.0  ;;  %v2460_v3 = vrot.slane %v9037_v7, 1 }
 0x319   : > { %v3646_v18 = vadd.f32 %v9049_v14, %v3645_v23  ;;  %v4642_v15 = vmax.f32 %v4182_v25, 0.0  ;;  %7496 = vmatprep.mubr.msk.bf16.mxu0 %vm2182_vm4, %v3859_v61  ;;  %v4639_v59 = vmax.f32 %v4171_v11, 0.0  ;;  %v3792_v51 = vmax.f32 %v3638_v57, 0.0 }
 0x31a   : > { %v9043_v44 = vpop.f32.mrf.mxu1  ;;  %v4194_v45 = vpop.f32.mrf.mxu0  ;;  %v3793_v31 = vmax.f32 %v3643_v6, 0.0  ;;  %v4644_v29 = vmax.f32 %v4190_v21, 0.0  ;;  %v3796_v36 = vmax.f32 %v3654_v58, 0.0  ;;  %v3791_v37 = vmax.f32 %v3635_v28, 0.0 }
 0x31b   : > { %v3794_v19 = vmax.f32 %v3646_v18, 0.0  ;;  %v4761_v52 = vpack.c.bf16 %v4642_v15, %v4641_v5  ;;  %v4760_v38 = vpack.c.bf16 %v4640_v55, %v4639_v59  ;;  %v4195_v27 = vadd.f32 %v8915_v53, %v4194_v45 }
 0x31c   : > { %v3658_v48 = vpop.f32.mrf.mxu1  ;;  %v9057_v42 = vpop.f32.mrf.mxu0  ;;  %v6157_v35 = vsel %vm6156_vm6, %v8558_v41, %v8401_v40  ;;  %v4643_v11 = vmax.f32 %v4187_v62, 0.0  ;;  %v3795_v60 = vmax.f32 %v3651_v43, 0.0  ;;  %v3860_v57 = vpack.c.bf16 %v3792_v51, %v3791_v37 }
 0x31d   : > { %v3861_v61 = vpack.c.bf16 %v3794_v19, %v3793_v31  ;;  %v3659_v6 = vadd.f32 %v9049_v14, %v3658_v48  ;;  %v9768_v18 = vrot.slane %v8531_v2, 1  ;;  %v6159_v21 = vsel %vm6158_vm7, %v8476_v10, %v6157_v35 }
 0x31e   : > { %v9072_v8 = vpop.f32.mrf.mxu1  ;;  %v4197_v54 = vpop.f32.mrf.mxu0  ;;  %7525 = vmatmul.mubr.msk.bf16.gmra.mxu1 %vm2182_vm4, %v4760_v38  ;;  %v4762_v40 = vpack.c.bf16 %v4644_v29, %v4643_v11  ;;  %v3862_v41 = vpack.c.bf16 %v3796_v36, %v3795_v60  ;;  %v9099_v58 = vadd.f32 %v9035_v33, %v8915_v53  ;;  %v4645_v48 = vmax.f32 %v4195_v27, 0.0  ;;  %v9772_v36 = vld [vmem:[#allocation2_spill] sm:$0xff] }
 0x31f   : > { %v4198_v34 = vadd.f32 %v8915_v53, %v4197_v54  ;;  %v2245_v45 = vmax.f32 %v8531_v2, %v9768_v18  ;;  %7528 = vmatprep.mubr.msk.bf16.mxu1 %vm2182_vm4, %v4761_v52  ;;  %v9769_v15 = vrot.slane %v8526_v13, 1  ;;  %v6161_v10 = vsel %vm6160_vm8, %v8564_v47, %v6159_v21  ;;  %v9775_v11 = vld [vmem:[#allocation6_spill] sm:$0xff]  ;;  %v9779_v18 = vld [vmem:[#allocation5_spill] sm:$0xff] }
 0x320   : > { %v3661_v1 = vpop.f32.mrf.mxu1  ;;  %v9080_v23 = vpop.f32.mrf.mxu0  ;;  %7497 = vmatmul.mubr.msk.bf16.gmra.mxu0 %vm2182_vm4, %v3860_v57  ;;  %v6169_v54 = vsel %vm6156_vm6, %v8665_v49, %v8503_v24  ;;  %v6163_v62 = vsel %vm6162_vm9, %v8561_v46, %v6161_v10  ;;  %v9770_v43 = vrot.slane %v8680_v16, 1  ;;  %v3797_v19 = vmax.f32 %v3659_v6, 0.0 }
 0x321   : > { %v3662_v20 = vadd.f32 %v9049_v14, %v3661_v1  ;;  %v4646_v28 = vmax.f32 %v4198_v34, 0.0  ;;  %v2254_v2 = vmax.f32 %v8526_v13, %v9769_v15  ;;  %7500 = vmatprep.mubr.msk.bf16.mxu0 %vm2182_vm4, %v3861_v61  ;;  %v6170_v13 = vsel %vm6158_vm7, %v8626_v12, %v6169_v54  ;;  %v9776_v61 = vld [vmem:[#allocation3_spill] sm:$0xff] }
 0x322   : > { %v4210_v26 = vpop.f32.mrf.mxu0  ;;  %v2317_v5 = vmax.f32 %v8680_v16, %v9770_v43  ;;  %v6165_v47 = vsel %vm6164_vm10, %v2245_v45, %v6163_v62  ;;  %v6171_v24 = vsel %vm6160_vm8, %v8713_v30, %v6170_v13  ;;  %v6176_v49 = vsel %vm6156_vm6, %v8862_v22, %v8640_v9  ;;  %v9774_v22 = vld [vmem:[#allocation4_spill] sm:$0xff] }
 0x323   : > { %v3798_v33 = vmax.f32 %v3662_v20, 0.0  ;;  %v4206_v46 = vadd.f32 %v9057_v42, %v8915_v53  ;;  %v4763_v51 = vpack.c.bf16 %v4646_v28, %v4645_v48  ;;  %v9131_v12 = vsel %vm6166_vm11, %v2254_v2, %v6165_v47  ;;  %v9777_v20 = vld [vmem:[#allocation7_spill] sm:$0xff] }
 0x324   : > { %v9090_v25 = vpop.f32.mrf.mxu0  ;;  %v9771_v1 = vrot.slane %v8672_v63, 1  ;;  %v6172_v30 = vsel %vm6162_vm9, %v9772_v36, %v6171_v24  ;;  %v9773_v52 = vrot.slane %v8899_v56, 1  ;;  %v6177_v42 = vsel %vm6158_vm7, %v9774_v22, %v6176_v49 }
 0x325   : > { %v3670_v34 = vadd.f32 %v9049_v14, %v9072_v8  ;;  %v3863_v37 = vpack.c.bf16 %v3798_v33, %v3797_v19  ;;  %v4211_v38 = vadd.f32 %v8915_v53, %v4210_v26  ;;  %v6173_v27 = vsel %vm6164_vm10, %v2317_v5, %v6172_v30 }
 0x326   : > { %v4213_v55 = vpop.f32.mrf.mxu0  ;;  %v2326_v29 = vmax.f32 %v8672_v63, %v9771_v1  ;;  %v2389_v9 = vmax.f32 %v8899_v56, %v9773_v52  ;;  %7529 = vmatmul.mubr.msk.bf16.gmra.mxu1 %vm2182_vm4, %v4762_v40  ;;  %v6178_v56 = vsel %vm6160_vm8, %v9775_v11, %v6177_v42  ;;  %v2461_v60 = vmax.f32 %v9037_v7, %v2460_v3 }
 0x327   : > { %v4214_v16 = vadd.f32 %v8915_v53, %v4213_v55  ;;  %v6183_v8 = vsel %vm6156_vm6, %v9024_v4, %v9776_v61  ;;  %7532 = vmatprep.mubr.msk.bf16.mxu1 %vm2182_vm4, %v4763_v51  ;;  %v9778_v57 = vrot.slane %v9777_v20, 1  ;;  %v6179_v45 = vsel %vm6162_vm9, %v9779_v18, %v6178_v56 }
 0x328   : > { %v9119_v59 = vpop.f32.mrf.mxu0  ;;  %v9149_v35 = vsel %vm6166_vm11, %v2326_v29, %v6173_v27  ;;  %v6184_v21 = vsel %vm6158_vm7, %v9019_v0, %v6183_v8  ;;  %v3667_v7 = vadd.f32 %v9049_v14, %v9043_v44  ;;  %v4648_v3 = vmax.f32 %v4206_v46, 0.0  ;;  %7501 = vmatmul.mubr.msk.bf16.gmra.mxu0 %vm2182_vm4, %v3862_v41 }
 0x329   : > { %v4650_v26 = vmax.f32 %v4214_v16, 0.0  ;;  %v2398_v6 = vmax.f32 %v9777_v20, %v9778_v57  ;;  %v6180_v40 = vsel %vm6164_vm10, %v2389_v9, %v6179_v45  ;;  %v6185_v28 = vsel %vm6160_vm8, %v9063_v50, %v6184_v21  ;;  %7504 = vmatprep.mubr.msk.bf16.mxu0 %vm2182_vm4, %v3863_v37 }
 0x32a   : > { %v4226_v31 = vpop.f32.mrf.mxu0  ;;  %v4649_v48 = vmax.f32 %v4211_v38, 0.0  ;;  %v2470_v0 = vmax.f32 %v9032_v17, %v2469_v32  ;;  %v6186_v44 = vsel %vm6162_vm9, %v9060_v39, %v6185_v28  ;;  %v4647_v14 = vmax.f32 %v9099_v58, 0.0 }
 0x32b   : > { %v9175_v55 = vsel %vm6166_vm11, %v2398_v6, %v6180_v40  ;;  %v3800_v41 = vmax.f32 %v3670_v34, 0.0  ;;  %v6187_v2 = vsel %vm6164_vm10, %v2461_v60, %v6186_v44  ;;  %v3799_v33 = vmax.f32 %v3667_v7, 0.0 }
 0x32c   : > { %v7411_v63 = vpop.f32.mrf.mxu0  ;;  %v4765_v50 = vpack.c.bf16 %v4650_v26, %v4649_v48  ;;  %v9186_v54 = vsel %vm6166_vm11, %v2470_v0, %v6187_v2  ;;  %v4764_v62 = vpack.c.bf16 %v4648_v3, %v4647_v14  ;;  %v4222_v17 = vadd.f32 %v9090_v25, %v8915_v53 }
 0x32d   : > { %v4227_v39 = vadd.f32 %v8915_v53, %v4226_v31  ;;  %v3864_v43 = vpack.c.bf16 %v3800_v41, %v3799_v33  ;;  %v4219_v58 = vadd.f32 %v9080_v23, %v8915_v53  ;;  %v4238_v31 = vadd.f32 %v7411_v63, %v8915_v53 }
 0x32e   : > { %v4229_v4 = vpop.f32.mrf.mxu0  ;;  %7533 = vmatmul.mubr.msk.bf16.gmra.mxu1 %vm2182_vm4, %v4764_v62  ;;  %v4652_v19 = vmax.f32 %v4222_v17, 0.0  ;;  %v4235_v29 = vadd.f32 %v9119_v59, %v8915_v53 }
 0x32f   : > { %v4230_v10 = vadd.f32 %v8915_v53, %v4229_v4  ;;  %7536 = vmatprep.mubr.msk.bf16.mxu1 %vm2182_vm4, %v4765_v50  ;;  %v4653_v24 = vmax.f32 %v4227_v39, 0.0  ;;  %v4651_v49 = vmax.f32 %v4219_v58, 0.0  ;;  %v4656_v52 = vmax.f32 %v4238_v31, 0.0 }
 0x330   : > { %v7414_v15 = vpop.f32.mrf.mxu0  ;;  %7505 = vmatmul.mubr.msk.bf16.gmra.mxu0 %vm2182_vm4, %v3864_v43  ;;  %v4655_v42 = vmax.f32 %v4235_v29, 0.0 }
 0x331   : > { %v4654_v13 = vmax.f32 %v4230_v10, 0.0  ;;  %v4766_v16 = vpack.c.bf16 %v4652_v19, %v4651_v49  ;;  %v4251_v56 = vadd.f32 %v7414_v15, %v8915_v53 }
 0x332   : > { %v4242_v32 = vpop.f32.mrf.mxu0  ;;  %v4768_v27 = vpack.c.bf16 %v4656_v52, %v4655_v42 }
 0x333   : > { %v4767_v46 = vpack.c.bf16 %v4654_v13, %v4653_v24  ;;  %v4243_v1 = vadd.f32 %v8915_v53, %v4242_v32  ;;  %v4659_v57 = vmax.f32 %v4251_v56, 0.0 }
 0x334   : > { %v7415_v5 = vpop.f32.mrf.mxu0 }
 0x335   : > { %v4657_v22 = vmax.f32 %v4243_v1, 0.0  ;;  %v4254_v63 = vadd.f32 %v7415_v5, %v8915_v53 }
 0x336   : > { %v4245_v47 = vpop.f32.mrf.mxu0  ;;  %7537 = vmatmul.mubr.msk.bf16.gmra.mxu1 %vm2182_vm4, %v4766_v16 }
 0x337   : > { %v4246_v51 = vadd.f32 %v8915_v53, %v4245_v47  ;;  %7540 = vmatprep.mubr.msk.bf16.mxu1 %vm2182_vm4, %v4767_v46  ;;  %v4660_v8 = vmax.f32 %v4254_v63, 0.0 }
 0x338   : > { %v7418_v25 = vpop.f32.mrf.mxu0 }
 0x339   : > { %v4658_v30 = vmax.f32 %v4246_v51, 0.0  ;;  %v4770_v21 = vpack.c.bf16 %v4660_v8, %v4659_v57  ;;  %v4267_v40 = vadd.f32 %v7418_v25, %v8915_v53 }
 0x33a   : > { %v4258_v23 = vpop.f32.mrf.mxu0 }
 0x33b   : > { %v4769_v34 = vpack.c.bf16 %v4658_v30, %v4657_v22  ;;  %v4259_v11 = vadd.f32 %v8915_v53, %v4258_v23  ;;  %v4663_v41 = vmax.f32 %v4267_v40, 0.0 }
 0x33c   : > { %v7419_v36 = vpop.f32.mrf.mxu0 }
 0x33d   : > { %v4661_v26 = vmax.f32 %v4259_v11, 0.0  ;;  %v4270_v7 = vadd.f32 %v7419_v36, %v8915_v53 }
 0x33e   : > { %v4261_v9 = vpop.f32.mrf.mxu0  ;;  %7541 = vmatmul.mubr.msk.bf16.gmra.mxu1 %vm2182_vm4, %v4768_v27 }
 0x33f   : > { %v4262_v37 = vadd.f32 %v8915_v53, %v4261_v9  ;;  %7544 = vmatprep.mubr.msk.bf16.mxu1 %vm2182_vm4, %v4769_v34  ;;  %v4664_v0 = vmax.f32 %v4270_v7, 0.0 }
 0x341   : > { %v7422_v38 = vpop.f32.mrf.mxu0  ;;  %v4662_v60 = vmax.f32 %v4262_v37, 0.0  ;;  %v4772_v50 = vpack.c.bf16 %v4664_v0, %v4663_v41 }
 0x342   : > { %v4283_v17 = vadd.f32 %v7422_v38, %v8915_v53 }
 0x343   : > { %v4274_v59 = vpop.f32.mrf.mxu0  ;;  %v4771_v6 = vpack.c.bf16 %v4662_v60, %v4661_v26 }
 0x344   : > { %v4275_v3 = vadd.f32 %v8915_v53, %v4274_v59  ;;  %v4667_v13 = vmax.f32 %v4283_v17, 0.0 }
 0x345   : > { %v7423_v61 = vpop.f32.mrf.mxu0 }
 0x346   : > { %7545 = vmatmul.mubr.msk.bf16.gmra.mxu1 %vm2182_vm4, %v4770_v21  ;;  %v4665_v44 = vmax.f32 %v4275_v3, 0.0  ;;  %v4286_v10 = vadd.f32 %v7423_v61, %v8915_v53 }
 0x347   : > { %v4277_v20 = vpop.f32.mrf.mxu0  ;;  %7548 = vmatprep.mubr.msk.bf16.mxu1 %vm2182_vm4, %v4771_v6 }
 0x348   : > { %v4278_v18 = vadd.f32 %v8915_v53, %v4277_v20  ;;  %v4668_v43 = vmax.f32 %v4286_v10, 0.0 }
 0x349   : > { %v7426_v45 = vpop.f32.mrf.mxu0 }
 0x34a   : > { %v4666_v28 = vmax.f32 %v4278_v18, 0.0  ;;  %v4774_v49 = vpack.c.bf16 %v4668_v43, %v4667_v13  ;;  %v4299_v16 = vadd.f32 %v7426_v45, %v8915_v53 }
 0x34b   : > { %v4290_v4 = vpop.f32.mrf.mxu0 }
 0x34c   : > { %v4773_v15 = vpack.c.bf16 %v4666_v28, %v4665_v44  ;;  %v4291_v62 = vadd.f32 %v8915_v53, %v4290_v4  ;;  %v4671_v30 = vmax.f32 %v4299_v16, 0.0 }
 0x34d   : > { %v7427_v48 = vpop.f32.mrf.mxu0 }
 0x34e   : > { %7549 = vmatmul.mubr.msk.bf16.gmra.mxu1 %vm2182_vm4, %v4772_v50  ;;  %v4669_v5 = vmax.f32 %v4291_v62, 0.0  ;;  %v4302_v25 = vadd.f32 %v7427_v48, %v8915_v53 }
 0x34f   : > { %v4293_v14 = vpop.f32.mrf.mxu0  ;;  %7552 = vmatprep.mubr.msk.bf16.mxu1 %vm2182_vm4, %v4773_v15 }
 0x350   : > { %v4294_v2 = vadd.f32 %v8915_v53, %v4293_v14  ;;  %v4672_v1 = vmax.f32 %v4302_v25, 0.0 }
 0x351   : > { %v7430_v33 = vpop.f32.mrf.mxu0 }
 0x352   : > { %v4670_v39 = vmax.f32 %v4294_v2, 0.0  ;;  %v4776_v22 = vpack.c.bf16 %v4672_v1, %v4671_v30  ;;  %v4315_v38 = vadd.f32 %v7430_v33, %v8915_v53 }
 0x353   : > { %v4306_v32 = vpop.f32.mrf.mxu0 }
 0x354   : > { %v4775_v47 = vpack.c.bf16 %v4670_v39, %v4669_v5  ;;  %v4307_v46 = vadd.f32 %v8915_v53, %v4306_v32  ;;  %v4675_v60 = vmax.f32 %v4315_v38, 0.0 }
 0x355   : > { %v7431_v58 = vpop.f32.mrf.mxu0 }
 0x356   : > { %7553 = vmatmul.mubr.msk.bf16.gmra.mxu1 %vm2182_vm4, %v4774_v49  ;;  %v4673_v29 = vmax.f32 %v4307_v46, 0.0  ;;  %v4318_v42 = vadd.f32 %v7431_v58, %v8915_v53 }
 0x357   : > { %v4309_v19 = vpop.f32.mrf.mxu0  ;;  %7556 = vmatprep.mubr.msk.bf16.mxu1 %vm2182_vm4, %v4775_v47 }
 0x358   : > { %v4310_v24 = vadd.f32 %v8915_v53, %v4309_v19  ;;  %v4676_v11 = vmax.f32 %v4318_v42, 0.0 }
 0x359   : > { %v7434_v51 = vpop.f32.mrf.mxu0 }
 0x35a   : > { %v4674_v31 = vmax.f32 %v4310_v24, 0.0  ;;  %v4778_v26 = vpack.c.bf16 %v4676_v11, %v4675_v60  ;;  %v4331_v45 = vadd.f32 %v7434_v51, %v8915_v53 }
 0x35b   : > { %v4322_v23 = vpop.f32.mrf.mxu0 }
 0x35c   : > { %v4777_v52 = vpack.c.bf16 %v4674_v31, %v4673_v29  ;;  %v4323_v37 = vadd.f32 %v8915_v53, %v4322_v23  ;;  %v4679_v28 = vmax.f32 %v4331_v45, 0.0 }
 0x35d   : > { %v7435_v36 = vpop.f32.mrf.mxu0 }
 0x35e   : > { %7557 = vmatmul.mubr.msk.bf16.gmra.mxu1 %vm2182_vm4, %v4776_v22  ;;  %v4677_v56 = vmax.f32 %v4323_v37, 0.0  ;;  %v4334_v20 = vadd.f32 %v7435_v36, %v8915_v53 }
 0x35f   : > { %v4325_v9 = vpop.f32.mrf.mxu0  ;;  %7560 = vmatprep.mubr.msk.bf16.mxu1 %vm2182_vm4, %v4777_v52 }
 0x360   : > { %v4326_v34 = vadd.f32 %v8915_v53, %v4325_v9  ;;  %v4680_v3 = vmax.f32 %v4334_v20, 0.0 }
 0x361   : > { %v7438_v27 = vpop.f32.mrf.mxu0 }
 0x362   : > { %v4678_v63 = vmax.f32 %v4326_v34, 0.0  ;;  %v4780_v44 = vpack.c.bf16 %v4680_v3, %v4679_v28  ;;  %v4347_v2 = vadd.f32 %v7438_v27, %v8915_v53 }
 0x363   : > { %v4338_v59 = vpop.f32.mrf.mxu0 }
 0x364   : > { %v4779_v8 = vpack.c.bf16 %v4678_v63, %v4677_v56  ;;  %v4339_v6 = vadd.f32 %v8915_v53, %v4338_v59  ;;  %v4683_v32 = vmax.f32 %v4347_v2, 0.0 }
 0x365   : > { %v7439_v61 = vpop.f32.mrf.mxu0 }
 0x366   : > { %7561 = vmatmul.mubr.msk.bf16.gmra.mxu1 %vm2182_vm4, %v4778_v26  ;;  %v4681_v4 = vmax.f32 %v4339_v6, 0.0  ;;  %v4350_v14 = vadd.f32 %v7439_v61, %v8915_v53 }
 0x367   : > { %v4341_v57 = vpop.f32.mrf.mxu0  ;;  %7564 = vmatprep.mubr.msk.bf16.mxu1 %vm2182_vm4, %v4779_v8 }
 0x368   : > { %v4342_v18 = vadd.f32 %v8915_v53, %v4341_v57  ;;  %v4684_v10 = vmax.f32 %v4350_v14, 0.0 }
 0x369   : > { %v7442_v7 = vpop.f32.mrf.mxu0 }
 0x36a   : > { %v4682_v21 = vmax.f32 %v4342_v18, 0.0  ;;  %v4782_v58 = vpack.c.bf16 %v4684_v10, %v4683_v32  ;;  %v4363_v47 = vadd.f32 %v7442_v7, %v8915_v53 }
 0x36b   : > { %v4354_v40 = vpop.f32.mrf.mxu0 }
 0x36c   : > { %v4781_v48 = vpack.c.bf16 %v4682_v21, %v4681_v4  ;;  %v4355_v41 = vadd.f32 %v8915_v53, %v4354_v40  ;;  %v4687_v31 = vmax.f32 %v4363_v47, 0.0 }
 0x36d   : > { %v7443_v0 = vpop.f32.mrf.mxu0 }
 0x36e   : > { %7565 = vmatmul.mubr.msk.bf16.gmra.mxu1 %vm2182_vm4, %v4780_v44  ;;  %v4685_v17 = vmax.f32 %v4355_v41, 0.0  ;;  %v4366_v5 = vadd.f32 %v7443_v0, %v8915_v53 }
 0x36f   : > { %v4357_v15 = vpop.f32.mrf.mxu0  ;;  %7568 = vmatprep.mubr.msk.bf16.mxu1 %vm2182_vm4, %v4781_v48 }
 0x370   : > { %v4358_v50 = vadd.f32 %v8915_v53, %v4357_v15  ;;  %v4688_v25 = vmax.f32 %v4366_v5, 0.0 }
 0x371   : > { %v7446_v62 = vpop.f32.mrf.mxu0 }
 0x372   : > { %v4686_v33 = vmax.f32 %v4358_v50, 0.0  ;;  %v4784_v29 = vpack.c.bf16 %v4688_v25, %v4687_v31  ;;  %v4379_v52 = vadd.f32 %v7446_v62, %v8915_v53 }
 0x373   : > { %v4370_v39 = vpop.f32.mrf.mxu0 }
 0x374   : > { %v4783_v43 = vpack.c.bf16 %v4686_v33, %v4685_v17  ;;  %v4371_v19 = vadd.f32 %v8915_v53, %v4370_v39  ;;  %v4691_v38 = vmax.f32 %v4379_v52, 0.0 }
 0x375   : > { %v7447_v13 = vpop.f32.mrf.mxu0 }
 0x376   : > { %7569 = vmatmul.mubr.msk.bf16.gmra.mxu1 %vm2182_vm4, %v4782_v58  ;;  %v4689_v46 = vmax.f32 %v4371_v19, 0.0  ;;  %v4382_v36 = vadd.f32 %v7447_v13, %v8915_v53 }
 0x377   : > { %v4373_v24 = vpop.f32.mrf.mxu0  ;;  %7572 = vmatprep.mubr.msk.bf16.mxu1 %vm2182_vm4, %v4783_v43 }
 0x378   : > { %v4374_v49 = vadd.f32 %v8915_v53, %v4373_v24  ;;  %v4692_v42 = vmax.f32 %v4382_v36, 0.0 }
 0x37a   : > { %v4690_v51 = vmax.f32 %v4374_v49, 0.0  ;;  %v7450_v16 = vpop.f32.mrf.mxu0  ;;  %v4786_v59 = vpack.c.bf16 %v4692_v42, %v4691_v38 }
 0x37b   : > { %v4395_v8 = vadd.f32 %v7450_v16, %v8915_v53 }
 0x37c   : > { %v4785_v23 = vpack.c.bf16 %v4690_v51, %v4689_v46  ;;  %v4386_v1 = vpop.f32.mrf.mxu0 }
 0x37d   : > { %v4387_v9 = vadd.f32 %v8915_v53, %v4386_v1  ;;  %v4695_v18 = vmax.f32 %v4395_v8, 0.0 }
 0x37e   : > { %v7451_v30 = vpop.f32.mrf.mxu0  ;;  %7573 = vmatmul.mubr.msk.bf16.gmra.mxu1 %vm2182_vm4, %v4784_v29 }
 0x37f   : > { %7576 = vmatprep.mubr.msk.bf16.mxu1 %vm2182_vm4, %v4785_v23  ;;  %v4693_v27 = vmax.f32 %v4387_v9, 0.0  ;;  %v4398_v56 = vadd.f32 %v7451_v30, %v8915_v53 }
 0x380   : > { %v4389_v22 = vpop.f32.mrf.mxu0 }
 0x381   : > { %v4390_v34 = vadd.f32 %v8915_v53, %v4389_v22  ;;  %v4696_v57 = vmax.f32 %v4398_v56, 0.0 }
 0x382   : > { %v7454_v37 = vpop.f32.mrf.mxu0 }
 0x383   : > { %v4694_v63 = vmax.f32 %v4390_v34, 0.0  ;;  %v4788_v3 = vpack.c.bf16 %v4696_v57, %v4695_v18  ;;  %v4411_v48 = vadd.f32 %v7454_v37, %v8915_v53 }
 0x384   : > { %v4402_v11 = vpop.f32.mrf.mxu0 }
 0x385   : > { %v4787_v60 = vpack.c.bf16 %v4694_v63, %v4693_v27  ;;  %v4403_v26 = vadd.f32 %v8915_v53, %v4402_v11  ;;  %v4699_v2 = vmax.f32 %v4411_v48, 0.0 }
 0x386   : > { %v7455_v61 = vpop.f32.mrf.mxu0  ;;  %7577 = vmatmul.mubr.msk.bf16.gmra.mxu1 %vm2182_vm4, %v4786_v59 }
 0x387   : > { %7580 = vmatprep.mubr.msk.bf16.mxu1 %vm2182_vm4, %v4787_v60  ;;  %v4697_v45 = vmax.f32 %v4403_v26, 0.0  ;;  %v4414_v4 = vadd.f32 %v7455_v61, %v8915_v53 }
 0x388   : > { %v4405_v20 = vpop.f32.mrf.mxu0 }
 0x389   : > { %v4406_v6 = vadd.f32 %v8915_v53, %v4405_v20  ;;  %v4700_v14 = vmax.f32 %v4414_v4, 0.0 }
 0x38b   : > { %v4698_v21 = vmax.f32 %v4406_v6, 0.0  ;;  %v7458_v7 = vpop.f32.mrf.mxu0  ;;  %v4790_v33 = vpack.c.bf16 %v4700_v14, %v4699_v2  ;;  %v9290_v6 = vld [vmem:[%s9755_s11] ss:$0 sm:$0xff] }
 0x38c   : > { %v4427_v39 = vadd.f32 %v7458_v7, %v8915_v53 }
 0x38d   : > { %v4789_v40 = vpack.c.bf16 %v4698_v21, %v4697_v45  ;;  %v4418_v28 = vpop.f32.mrf.mxu0 }
 0x38e   : > { %7581 = vmatmul.mubr.msk.bf16.gmra.mxu1 %vm2182_vm4, %v4788_v3  ;;  %v4419_v44 = vadd.f32 %v8915_v53, %v4418_v28  ;;  %v4703_v13 = vmax.f32 %v4427_v39, 0.0 }
 0x38f   : > { %v7459_v0 = vpop.f32.mrf.mxu0  ;;  %7584 = vmatprep.mubr.msk.bf16.mxu1 %vm2182_vm4, %v4789_v40 }
 0x390   : > { %v4701_v50 = vmax.f32 %v4419_v44, 0.0  ;;  %v4430_v62 = vadd.f32 %v7459_v0, %v8915_v53 }
 0x391   : > { %v4421_v41 = vpop.f32.mrf.mxu0 }
 0x392   : > { %v4422_v15 = vadd.f32 %v8915_v53, %v4421_v41  ;;  %v4704_v58 = vmax.f32 %v4430_v62, 0.0 }
 0x394   : > { %v4702_v10 = vmax.f32 %v4422_v15, 0.0  ;;  %v4792_v24 = vpack.c.bf16 %v4704_v58, %v4703_v13 }
 0x396   : > { %v4791_v17 = vpack.c.bf16 %v4702_v10, %v4701_v50  ;;  %v7462_v32 = vpop.f32.mrf.mxu0  ;;  %7585 = vmatmul.mubr.msk.bf16.gmra.mxu1 %vm2182_vm4, %v4790_v33 }
 0x397   : > { %v4443_v51 = vadd.f32 %v7462_v32, %v8915_v53 }
 0x398   : > { %v4434_v43 = vpop.f32.mrf.mxu0  ;;  %7588 = vmatprep.mubr.msk.bf16.mxu1 %vm2182_vm4, %v4791_v17 }
 0x399   : > { %v4435_v19 = vadd.f32 %v8915_v53, %v4434_v43  ;;  %v4707_v30 = vmax.f32 %v4443_v51, 0.0 }
 0x39a   : > { %v7463_v5 = vpop.f32.mrf.mxu0 }
 0x39b   : > { %v4446_v49 = vadd.f32 %v7463_v5, %v8915_v53  ;;  %v4705_v16 = vmax.f32 %v4435_v19, 0.0 }
 0x39c   : > { %v4437_v47 = vpop.f32.mrf.mxu0 }
 0x39d   : > { %v4438_v25 = vadd.f32 %v8915_v53, %v4437_v47  ;;  %v4708_v1 = vmax.f32 %v4446_v49, 0.0 }
 0x39e   : > { %v7466_v46 = vpop.f32.mrf.mxu0  ;;  %7589 = vmatmul.mubr.msk.bf16.gmra.mxu1 %vm2182_vm4, %v4792_v24 }
 0x39f   : > { %v4706_v31 = vmax.f32 %v4438_v25, 0.0  ;;  %v4794_v22 = vpack.c.bf16 %v4708_v1, %v4707_v30  ;;  %v4459_v38 = vadd.f32 %v7466_v46, %v8915_v53 }
 0x3a0   : > { %v4450_v23 = vpop.f32.mrf.mxu0 }
 0x3a1   : > { %v4793_v29 = vpack.c.bf16 %v4706_v31, %v4705_v16  ;;  %v4451_v52 = vadd.f32 %v8915_v53, %v4450_v23  ;;  %v4711_v61 = vmax.f32 %v4459_v38, 0.0 }
 0x3a2   : > { %v7467_v36 = vpop.f32.mrf.mxu0 }
 0x3a3   : > { %7592 = vmatprep.mubr.msk.bf16.mxu1 %vm2182_vm4, %v4793_v29  ;;  %v4462_v42 = vadd.f32 %v7467_v36, %v8915_v53  ;;  %v4709_v27 = vmax.f32 %v4451_v52, 0.0 }
 0x3a4   : > { %v4453_v9 = vpop.f32.mrf.mxu0 }
 0x3a5   : > { %v4454_v34 = vadd.f32 %v8915_v53, %v4453_v9  ;;  %v4712_v59 = vmax.f32 %v4462_v42, 0.0 }
 0x3a6   : > { %v7470_v37 = vpop.f32.mrf.mxu0  ;;  %7593 = vmatmul.mubr.msk.bf16.gmra.mxu1 %vm2182_vm4, %v4794_v22 }
 0x3a7   : > { %v4710_v63 = vmax.f32 %v4454_v34, 0.0  ;;  %v4796_v20 = vpack.c.bf16 %v4712_v59, %v4711_v61  ;;  %v4475_v45 = vadd.f32 %v9290_v6, %v7470_v37 }
 0x3a8   : > { %v4466_v11 = vpop.f32.mrf.mxu0 }
 0x3a9   : > { %v4795_v56 = vpack.c.bf16 %v4710_v63, %v4709_v27  ;;  %v4467_v8 = vadd.f32 %v8915_v53, %v4466_v11  ;;  %v4715_v48 = vmax.f32 %v4475_v45, 0.0 }
 0x3aa   : > { %v7471_v60 = vpop.f32.mrf.mxu0 }
 0x3ab   : > { %7596 = vmatprep.mubr.msk.bf16.mxu1 %vm2182_vm4, %v4795_v56  ;;  %v4478_v57 = vadd.f32 %v7471_v60, %v8915_v53  ;;  %v4713_v21 = vmax.f32 %v4467_v8, 0.0 }
 0x3ac   : > { %v4469_v26 = vpop.f32.mrf.mxu0 }
 0x3ad   : > { %v4470_v18 = vadd.f32 %v9290_v6, %v4469_v26  ;;  %v4716_v4 = vmax.f32 %v4478_v57, 0.0 }
 0x3ae   : > { %7597 = vmatmul.mubr.msk.bf16.gmra.mxu1 %vm2182_vm4, %v4796_v20  ;;  %v7474_v3 = vpop.f32.mrf.mxu0 }
 0x3af   : > { %v4714_v7 = vmax.f32 %v4470_v18, 0.0  ;;  %v4798_v44 = vpack.c.bf16 %v4716_v4, %v4715_v48  ;;  %v4491_v2 = vadd.f32 %v9290_v6, %v7474_v3 }
 0x3b0   : > { %v4482_v28 = vpop.f32.mrf.mxu0 }
 0x3b1   : > { %v4797_v40 = vpack.c.bf16 %v4714_v7, %v4713_v21  ;;  %v4483_v53 = vadd.f32 %v9290_v6, %v4482_v28  ;;  %v4719_v32 = vmax.f32 %v4491_v2, 0.0 }
 0x3b2   : > { %v7475_v0 = vpop.f32.mrf.mxu0 }
 0x3b3   : > { %7600 = vmatprep.mubr.msk.bf16.mxu1 %vm2182_vm4, %v4797_v40  ;;  %v4494_v14 = vadd.f32 %v9290_v6, %v7475_v0  ;;  %v4717_v50 = vmax.f32 %v4483_v53, 0.0 }
 0x3b4   : > { %v4485_v41 = vpop.f32.mrf.mxu0 }
 0x3b5   : > { %v4486_v15 = vadd.f32 %v9290_v6, %v4485_v41  ;;  %v4720_v33 = vmax.f32 %v4494_v14, 0.0  ;;  %v9324_v41 = vld [vmem:[%s9757_s13] ss:$0 sm:$0xff] }
 0x3b6   : > { %7601 = vmatmul.mubr.msk.bf16.gmra.mxu1 %vm2182_vm4, %v4798_v44 }
 0x3b7   : > { %v4718_v10 = vmax.f32 %v4486_v15, 0.0  ;;  %v4800_v43 = vpack.c.bf16 %v4720_v33, %v4719_v32 }
 0x3b8   : > { %v7478_v62 = vpop.f32.mrf.mxu0 }
 0x3b9   : > { %v4799_v17 = vpack.c.bf16 %v4718_v10, %v4717_v50  ;;  %v4507_v19 = vadd.f32 %v9290_v6, %v7478_v62 }
 0x3ba   : > { %v4498_v39 = vpop.f32.mrf.mxu0 }
 0x3bb   : > { %7604 = vmatprep.mubr.msk.bf16.mxu1 %vm2182_vm4, %v4799_v17  ;;  %v4499_v5 = vadd.f32 %v9290_v6, %v4498_v39  ;;  %v4723_v16 = vmax.f32 %v4507_v19, 0.0 }
 0x3bc   : > { %v7479_v58 = vpop.f32.mrf.mxu0 }
 0x3bd   : > { %v4510_v13 = vadd.f32 %v9290_v6, %v7479_v58  ;;  %v4721_v46 = vmax.f32 %v4499_v5, 0.0 }
 0x3be   : > { %v4501_v47 = vpop.f32.mrf.mxu0  ;;  %7605 = vmatmul.mubr.msk.bf16.gmra.mxu1 %vm2182_vm4, %v4800_v43 }
 0x3bf   : > { %v4502_v24 = vadd.f32 %v9290_v6, %v4501_v47  ;;  %v4724_v49 = vmax.f32 %v4510_v13, 0.0 }
 0x3c0   : > { %v7482_v25 = vpop.f32.mrf.mxu0 }
 0x3c1   : > { %v4722_v51 = vmax.f32 %v4502_v24, 0.0  ;;  %v4802_v1 = vpack.c.bf16 %v4724_v49, %v4723_v16  ;;  %v4523_v52 = vadd.f32 %v9290_v6, %v7482_v25 }
 0x3c2   : > { %v4514_v31 = vpop.f32.mrf.mxu0 }
 0x3c3   : > { %v4801_v23 = vpack.c.bf16 %v4722_v51, %v4721_v46  ;;  %v4515_v36 = vadd.f32 %v9290_v6, %v4514_v31  ;;  %v4727_v11 = vmax.f32 %v4523_v52, 0.0 }
 0x3c4   : > { %v7483_v29 = vpop.f32.mrf.mxu0 }
 0x3c5   : > { %v4526_v30 = vadd.f32 %v9290_v6, %v7483_v29  ;;  %7608 = vmatprep.mubr.msk.bf16.mxu1 %vm2182_vm4, %v4801_v23  ;;  %v4725_v27 = vmax.f32 %v4515_v36, 0.0 }
 0x3c6   : > { %v4517_v9 = vpop.f32.mrf.mxu0  ;;  %v7514_v22 = vpop.f32.mrf.mxu1  ;;  %7609 = vmatmul.mubr.msk.bf16.gmra.mxu1 %vm2182_vm4, %v4802_v1 }
 0x3c7   : > { %v4518_v42 = vadd.f32 %v9290_v6, %v4517_v9  ;;  %v4728_v34 = vmax.f32 %v4526_v30, 0.0  ;;  %v5075_v25 = vadd.f32 %v7514_v22, %v9324_v41 }
 0x3c8   : > { %v7486_v37 = vpop.f32.mrf.mxu0  ;;  %v5066_v38 = vpop.f32.mrf.mxu1 }
 0x3c9   : > { %v4726_v63 = vmax.f32 %v4518_v42, 0.0  ;;  %v4804_v61 = vpack.c.bf16 %v4728_v34, %v4727_v11  ;;  %v4539_v18 = vadd.f32 %v9290_v6, %v7486_v37  ;;  %v5067_v43 = vadd.f32 %v9324_v41, %v5066_v38 }
 0x3ca   : > { %v4530_v59 = vpop.f32.mrf.mxu0  ;;  %v9313_v56 = vpop.f32.mrf.mxu1  ;;  %v5579_v22 = vmax.f32 %v5075_v25, 0.0 }
 0x3cb   : > { %v4803_v60 = vpack.c.bf16 %v4726_v63, %v4725_v27  ;;  %v4531_v20 = vadd.f32 %v9290_v6, %v4530_v59  ;;  %v4731_v0 = vmax.f32 %v4539_v18, 0.0  ;;  %v5577_v31 = vmax.f32 %v5067_v43, 0.0 }
 0x3cc   : > { %v7487_v8 = vpop.f32.mrf.mxu0  ;;  %v5069_v26 = vpop.f32.mrf.mxu1  ;;  %v5078_v11 = vadd.f32 %v9313_v56, %v9324_v41 }
 0x3cd   : > { %v4542_v57 = vadd.f32 %v9290_v6, %v7487_v8  ;;  %7612 = vmatprep.mubr.msk.bf16.mxu1 %vm2182_vm4, %v4803_v60  ;;  %v4729_v28 = vmax.f32 %v4531_v20, 0.0  ;;  %v5070_v10 = vadd.f32 %v9324_v41, %v5069_v26  ;;  %v5706_v63 = vsel %vm5705_vm12, %v5577_v31, -inf }
 0x3ce   : > { %v4533_v45 = vpop.f32.mrf.mxu0  ;;  %v7518_v21 = vpop.f32.mrf.mxu1  ;;  %7613 = vmatmul.mubr.msk.bf16.gmra.mxu1 %vm2182_vm4, %v4804_v61 }
 0x3cf   : > { %v4534_v7 = vadd.f32 %v9290_v6, %v4533_v45  ;;  %v4732_v3 = vmax.f32 %v4542_v57, 0.0  ;;  %v5578_v47 = vmax.f32 %v5070_v10, 0.0  ;;  %v5091_v8 = vadd.f32 %v7518_v21, %v9324_v41 }
 0x3d0   : > { %v7490_v4 = vpop.f32.mrf.mxu0  ;;  %v5082_v40 = vpop.f32.mrf.mxu1 }
 0x3d1   : > { %v4730_v48 = vmax.f32 %v4534_v7, 0.0  ;;  %v4806_v15 = vpack.c.bf16 %v4732_v3, %v4731_v0  ;;  %v4555_v17 = vadd.f32 %v9290_v6, %v7490_v4  ;;  %v5707_v52 = vsel %vm5705_vm12, %v5578_v47, -inf }
 0x3d2   : > { %v4546_v53 = vpop.f32.mrf.mxu0  ;;  %v7519_v44 = vpop.f32.mrf.mxu1  ;;  %v5083_v9 = vadd.f32 %v9324_v41, %v5082_v40  ;;  %v5708_v61 = vmax.f32 %v5706_v63, %v5707_v52  ;;  %v5709_v4 = vsel %vm5705_vm12, %v5579_v22, -inf  ;;  %v5580_v0 = vmax.f32 %v5078_v11, 0.0 }
 0x3d3   : > { %v4805_v14 = vpack.c.bf16 %v4730_v48, %v4729_v28  ;;  %v4547_v33 = vadd.f32 %v9290_v6, %v4546_v53  ;;  %v4735_v46 = vmax.f32 %v4555_v17, 0.0  ;;  %v5094_v40 = vadd.f32 %v7519_v44, %v9324_v41 }
 0x3d4   : > { %v7491_v2 = vpop.f32.mrf.mxu0  ;;  %v5085_v50 = vpop.f32.mrf.mxu1  ;;  %v5581_v18 = vmax.f32 %v5083_v9, 0.0 }
 0x3d5   : > { %v4558_v62 = vadd.f32 %v9290_v6, %v7491_v2  ;;  %7616 = vmatprep.mubr.msk.bf16.mxu1 %vm2182_vm4, %v4805_v14  ;;  %v4733_v24 = vmax.f32 %v4547_v33, 0.0  ;;  %v5086_v23 = vadd.f32 %v9324_v41, %v5085_v50  ;;  %v5583_v2 = vmax.f32 %v5091_v8, 0.0 }
 0x3d6   : > { %v4549_v32 = vpop.f32.mrf.mxu0  ;;  %v7522_v39 = vpop.f32.mrf.mxu1  ;;  %7617 = vmatmul.mubr.msk.bf16.gmra.mxu1 %vm2182_vm4, %v4806_v15  ;;  %v5710_v15 = vmax.f32 %v5708_v61, %v5709_v4  ;;  %v5719_v17 = vsel %vm5705_vm12, %v5581_v18, -inf }
 0x3d7   : > { %v4550_v58 = vadd.f32 %v9290_v6, %v4549_v32  ;;  %v4736_v5 = vmax.f32 %v4558_v62, 0.0  ;;  %v5582_v59 = vmax.f32 %v5086_v23, 0.0  ;;  %v5107_v50 = vadd.f32 %v7522_v39, %v9324_v41 }
 0x3d8   : > { %v7494_v13 = vpop.f32.mrf.mxu0  ;;  %v5098_v19 = vpop.f32.mrf.mxu1  ;;  %v5722_v31 = vsel %vm5705_vm12, %v5583_v2, -inf }
 0x3d9   : > { %v4734_v49 = vmax.f32 %v4550_v58, 0.0  ;;  %v4808_v29 = vpack.c.bf16 %v4736_v5, %v4735_v46  ;;  %v4571_v37 = vadd.f32 %v9290_v6, %v7494_v13  ;;  %v5720_v53 = vsel %vm5705_vm12, %v5582_v59, -inf }
 0x3da   : > { %v4562_v51 = vpop.f32.mrf.mxu0  ;;  %v7523_v16 = vpop.f32.mrf.mxu1  ;;  %v5099_v21 = vadd.f32 %v9324_v41, %v5098_v19  ;;  %v5584_v58 = vmax.f32 %v5094_v40, 0.0  ;;  %v5721_v5 = vmax.f32 %v5719_v17, %v5720_v53  ;;  %v5587_v23 = vmax.f32 %v5107_v50, 0.0 }
 0x3db   : > { %v4807_v1 = vpack.c.bf16 %v4734_v49, %v4733_v24  ;;  %v4563_v42 = vadd.f32 %v9290_v6, %v4562_v51  ;;  %v4739_v28 = vmax.f32 %v4571_v37, 0.0  ;;  %v5110_v13 = vadd.f32 %v7523_v16, %v9324_v41 }
 0x3dc   : > { %v7495_v36 = vpop.f32.mrf.mxu0  ;;  %v5101_v30 = vpop.f32.mrf.mxu1  ;;  %v5711_v24 = vsel %vm5705_vm12, %v5580_v0, -inf  ;;  %v5585_v49 = vmax.f32 %v5099_v21, 0.0  ;;  %v5735_v8 = vsel %vm5705_vm12, %v5587_v23, -inf }
 0x3dd   : > { %v4574_v34 = vadd.f32 %v9290_v6, %v7495_v36  ;;  %7620 = vmatprep.mubr.msk.bf16.mxu1 %vm2182_vm4, %v4807_v1  ;;  %v4737_v45 = vmax.f32 %v4563_v42, 0.0  ;;  %v5102_v7 = vadd.f32 %v9324_v41, %v5101_v30  ;;  %v9368_v51 = vmax.f32 %v5710_v15, %v5711_v24 }
 0x3de   : > { %v4565_v38 = vpop.f32.mrf.mxu0  ;;  %v9342_v27 = vpop.f32.mrf.mxu1  ;;  %7621 = vmatmul.mubr.msk.bf16.gmra.mxu1 %vm2182_vm4, %v4808_v29  ;;  %v5724_v42 = vsel %vm5705_vm12, %v5584_v58, -inf  ;;  %v5588_v22 = vmax.f32 %v5110_v13, 0.0  ;;  %v5732_v11 = vsel %vm5705_vm12, %v5585_v49, -inf }
 0x3df   : > { %v4566_v60 = vadd.f32 %v9290_v6, %v4565_v38  ;;  %v4740_v26 = vmax.f32 %v4574_v34, 0.0  ;;  %v5586_v44 = vmax.f32 %v5102_v7, 0.0  ;;  %v5723_v34 = vmax.f32 %v5721_v5, %v5722_v31 }
 0x3e0   : > { %v7498_v20 = vpop.f32.mrf.mxu0  ;;  %v5114_v57 = vpop.f32.mrf.mxu1 }
 0x3e1   : > { %v4738_v3 = vmax.f32 %v4566_v60, 0.0  ;;  %v4810_v10 = vpack.c.bf16 %v4740_v26, %v4739_v28  ;;  %v4587_v19 = vadd.f32 %v9290_v6, %v7498_v20  ;;  %v5733_v36 = vsel %vm5705_vm12, %v5586_v44, -inf }
 0x3e2   : > { %v4578_v56 = vpop.f32.mrf.mxu0  ;;  %v9353_v48 = vpop.f32.mrf.mxu1  ;;  %v5115_v30 = vadd.f32 %v9324_v41, %v5114_v57  ;;  %v5734_v26 = vmax.f32 %v5732_v11, %v5733_v36  ;;  %v5123_v20 = vadd.f32 %v9342_v27, %v9324_v41  ;;  %v9383_v28 = vmax.f32 %v5723_v34, %v5724_v42 }
 0x3e3   : > { %v4809_v14 = vpack.c.bf16 %v4738_v3, %v4737_v45  ;;  %v4579_v32 = vadd.f32 %v9290_v6, %v4578_v56  ;;  %v4743_v37 = vmax.f32 %v4587_v19, 0.0  ;;  %v5737_v56 = vsel %vm5705_vm12, %v5588_v22, -inf }
 0x3e4   : > { %v7499_v33 = vpop.f32.mrf.mxu0  ;;  %v5117_v62 = vpop.f32.mrf.mxu1  ;;  %v5589_v7 = vmax.f32 %v5115_v30, 0.0 }
 0x3e5   : > { %v4590_v43 = vadd.f32 %v9290_v6, %v7499_v33  ;;  %7624 = vmatprep.mubr.msk.bf16.mxu1 %vm2182_vm4, %v4809_v14  ;;  %v5118_v25 = vadd.f32 %v9324_v41, %v5117_v62  ;;  %v4741_v52 = vmax.f32 %v4579_v32, 0.0  ;;  %v5591_v33 = vmax.f32 %v5123_v20, 0.0 }
 0x3e6   : > { %v4581_v47 = vpop.f32.mrf.mxu0  ;;  %v7530_v39 = vpop.f32.mrf.mxu1  ;;  %7625 = vmatmul.mubr.msk.bf16.gmra.mxu1 %vm2182_vm4, %v4810_v10  ;;  %v5736_v10 = vmax.f32 %v5734_v26, %v5735_v8  ;;  %v5126_v62 = vadd.f32 %v9353_v48, %v9324_v41 }
 0x3e7   : > { %v4582_v46 = vadd.f32 %v9290_v6, %v4581_v47  ;;  %v4744_v1 = vmax.f32 %v4590_v43, 0.0  ;;  %v5590_v59 = vmax.f32 %v5118_v25, 0.0  ;;  %v5139_v0 = vadd.f32 %v7530_v39, %v9324_v41 }
 0x3e8   : > { %v7502_v16 = vpop.f32.mrf.mxu0  ;;  %v5130_v29 = vpop.f32.mrf.mxu1  ;;  %v5745_v43 = vsel %vm5705_vm12, %v5589_v7, -inf }
 0x3e9   : > { %v4742_v9 = vmax.f32 %v4582_v46, 0.0  ;;  %v5131_v61 = vadd.f32 %v9324_v41, %v5130_v29  ;;  %v4812_v57 = vpack.c.bf16 %v4744_v1, %v4743_v37  ;;  %v4603_v27 = vadd.f32 %v9290_v6, %v7502_v16 }
 0x3ea   : > { %v4594_v38 = vpop.f32.mrf.mxu0  ;;  %v7531_v63 = vpop.f32.mrf.mxu1  ;;  %v5746_v14 = vsel %vm5705_vm12, %v5590_v59, -inf  ;;  %v5595_v47 = vmax.f32 %v5139_v0, 0.0  ;;  %v5592_v37 = vmax.f32 %v5126_v62, 0.0 }
 0x3eb   : > { %v4811_v60 = vpack.c.bf16 %v4742_v9, %v4741_v52  ;;  %v4595_v3 = vadd.f32 %v9290_v6, %v4594_v38  ;;  %v5593_v15 = vmax.f32 %v5131_v61, 0.0  ;;  %v5747_v19 = vmax.f32 %v5745_v43, %v5746_v14 }
 0x3ec   : > { %v7503_v18 = vpop.f32.mrf.mxu0  ;;  %v5133_v45 = vpop.f32.mrf.mxu1  ;;  %v4747_v39 = vmax.f32 %v4603_v27, 0.0  ;;  %v5142_v24 = vadd.f32 %v7531_v63, %v9324_v41  ;;  %v5748_v9 = vsel %vm5705_vm12, %v5591_v33, -inf  ;;  %v5761_v63 = vsel %vm5705_vm12, %v5595_v47, -inf }
 0x3ed   : > { %v4606_v4 = vadd.f32 %v9290_v6, %v7503_v18  ;;  %v5134_v40 = vadd.f32 %v9324_v41, %v5133_v45  ;;  %7628 = vmatprep.mubr.msk.bf16.mxu1 %vm2182_vm4, %v4811_v60  ;;  %v4745_v58 = vmax.f32 %v4595_v3, 0.0  ;;  %v5758_v46 = vsel %vm5705_vm12, %v5593_v15, -inf }
 0x3ee   : > { %v4597_v53 = vpop.f32.mrf.mxu0  ;;  %v7534_v21 = vpop.f32.mrf.mxu1  ;;  %7629 = vmatmul.mubr.msk.bf16.gmra.mxu1 %vm2182_vm4, %v4812_v57  ;;  %v5749_v38 = vmax.f32 %v5747_v19, %v5748_v9  ;;  %v5596_v61 = vmax.f32 %v5142_v24, 0.0  ;;  %v5726_v19 = vrot.slane %v9383_v28, 4 }
 0x3ef   : > { %v5594_v2 = vmax.f32 %v5134_v40, 0.0  ;;  %v4598_v50 = vadd.f32 %v9290_v6, %v4597_v53  ;;  %v4748_v17 = vmax.f32 %v4606_v4, 0.0  ;;  %v5155_v48 = vadd.f32 %v7534_v21, %v9324_v41 }
 0x3f0   : > { %v7506_v44 = vpop.f32.mrf.mxu0  ;;  %v5146_v32 = vpop.f32.mrf.mxu1  ;;  %v5738_v53 = vmax.f32 %v5736_v10, %v5737_v56  ;;  %v5750_v21 = vsel %vm5705_vm12, %v5592_v37, -inf }
 0x3f1   : > { %v5759_v5 = vsel %vm5705_vm12, %v5594_v2, -inf  ;;  %v4746_v13 = vmax.f32 %v4598_v50, 0.0  ;;  %v5147_v23 = vadd.f32 %v9324_v41, %v5146_v32  ;;  %v4814_v1 = vpack.c.bf16 %v4748_v17, %v4747_v39 }
 0x3f2   : > { %v4610_v49 = vpop.f32.mrf.mxu0  ;;  %v7535_v25 = vpop.f32.mrf.mxu1  ;;  %v5760_v16 = vmax.f32 %v5758_v46, %v5759_v5  ;;  %v4619_v11 = vadd.f32 %v9290_v6, %v7506_v44  ;;  %v5599_v8 = vmax.f32 %v5155_v48, 0.0  ;;  %v5751_v17 = vmax.f32 %v5749_v38, %v5750_v21 }
 0x3f3   : > { %v4813_v31 = vpack.c.bf16 %v4746_v13, %v4745_v58  ;;  %v4611_v29 = vadd.f32 %v9290_v6, %v4610_v49  ;;  %v5158_v36 = vadd.f32 %v7535_v25, %v9324_v41  ;;  %v5597_v42 = vmax.f32 %v5147_v23, 0.0 }
 0x3f4   : > { %v7507_v30 = vpop.f32.mrf.mxu0  ;;  %v5149_v52 = vpop.f32.mrf.mxu1  ;;  %v5762_v57 = vmax.f32 %v5760_v16, %v5761_v63  ;;  %v4751_v14 = vmax.f32 %v4619_v11, 0.0  ;;  %v5774_v50 = vsel %vm5705_vm12, %v5599_v8, -inf  ;;  %v5739_v24 = vrot.slane %v5738_v53, 4 }
 0x3f5   : > { %v4622_v34 = vadd.f32 %v9290_v6, %v7507_v30  ;;  %v5150_v22 = vadd.f32 %v9324_v41, %v5149_v52  ;;  %7632 = vmatprep.mubr.msk.bf16.mxu1 %vm2182_vm4, %v4813_v31  ;;  %v4749_v18 = vmax.f32 %v4611_v29, 0.0  ;;  %v5600_v45 = vmax.f32 %v5158_v36, 0.0 }
 0x3f6   : > { %v4613_v59 = vpop.f32.mrf.mxu0  ;;  %v7538_v60 = vpop.f32.mrf.mxu1  ;;  %7633 = vmatmul.mubr.msk.bf16.gmra.mxu1 %vm2182_vm4, %v4814_v1  ;;  %v5771_v4 = vsel %vm5705_vm12, %v5597_v42, -inf  ;;  %v5713_v46 = vrot.slane %v9368_v51, 4  ;;  %v5752_v31 = vrot.slane %v5751_v17, 4  ;;  %v5727_v30 = vmax.f32 %v9383_v28, %v5726_v19 }
 0x3f7   : > { %v5598_v26 = vmax.f32 %v5150_v22, 0.0  ;;  %v4614_v20 = vadd.f32 %v9290_v6, %v4613_v59  ;;  %v4752_v7 = vmax.f32 %v4622_v34, 0.0  ;;  %v5763_v6 = vsel %vm5705_vm12, %v5596_v61, -inf }
 0x3f8   : > { %v5162_v3 = vpop.f32.mrf.mxu1  ;;  %v5171_v62 = vadd.f32 %v7538_v60, %v9324_v41  ;;  %v5764_v44 = vmax.f32 %v5762_v57, %v5763_v6  ;;  %v5776_v5 = vsel %vm5705_vm12, %v5600_v45, -inf  ;;  %v5740_v34 = vmax.f32 %v5738_v53, %v5739_v24 }
 0x3f9   : > { %v5772_v40 = vsel %vm5705_vm12, %v5598_v26, -inf  ;;  %v4750_v0 = vmax.f32 %v4614_v20, 0.0  ;;  %v5163_v27 = vadd.f32 %v9324_v41, %v5162_v3  ;;  %v4816_v32 = vpack.c.bf16 %v4752_v7, %v4751_v14 }
 0x3fa   : > { %v5773_v15 = vmax.f32 %v5771_v4, %v5772_v40  ;;  %v7539_v2 = vpop.f32.mrf.mxu1  ;;  %v5603_v49 = vmax.f32 %v5171_v62, 0.0  ;;  %v5765_v48 = vrot.slane %v5764_v44, 4  ;;  %v5714_v38 = vmax.f32 %v9368_v51, %v5713_v46 }
 0x3fb   : > { %v4815_v33 = vpack.c.bf16 %v4750_v0, %v4749_v18  ;;  %v5601_v56 = vmax.f32 %v5163_v27, 0.0  ;;  %v5174_v10 = vadd.f32 %v7539_v2, %v9324_v41  ;;  %v5753_v63 = vmax.f32 %v5751_v17, %v5752_v31 }
 0x3fc   : > { %v5775_v43 = vmax.f32 %v5773_v15, %v5774_v50  ;;  %v5165_v58 = vpop.f32.mrf.mxu1  ;;  %v5787_v22 = vsel %vm5705_vm12, %v5603_v49, -inf  ;;  %v5766_v11 = vmax.f32 %v5764_v44, %v5765_v48  ;;  %v5728_v20 = vrot.slane %v5727_v30, 2 }
 0x3fd   : > { %v5166_v13 = vadd.f32 %v9324_v41, %v5165_v58  ;;  %7636 = vmatprep.mubr.msk.bf16.mxu1 %vm2182_vm4, %v4815_v33  ;;  %v5784_v1 = vsel %vm5705_vm12, %v5601_v56, -inf  ;;  %v5604_v16 = vmax.f32 %v5174_v10, 0.0  ;;  %v5741_v7 = vrot.slane %v5740_v34, 2 }
 0x3fe   : > { %v5777_v47 = vmax.f32 %v5775_v43, %v5776_v5  ;;  %v7542_v39 = vpop.f32.mrf.mxu1  ;;  %7637 = vmatmul.mubr.msk.bf16.gmra.mxu1 %vm2182_vm4, %v4816_v32  ;;  %v5715_v51 = vrot.slane %v5714_v38, 2  ;;  %v5754_v40 = vrot.slane %v5753_v63, 2  ;;  %v5767_v53 = vrot.slane %v5766_v11, 2 }
 0x3ff   : > { %v5602_v25 = vmax.f32 %v5166_v13, 0.0  ;;  %v5187_v37 = vadd.f32 %v7542_v39, %v9324_v41  ;;  %v5789_v61 = vsel %vm5705_vm12, %v5604_v16, -inf  ;;  %v5729_v2 = vmax.f32 %v5727_v30, %v5728_v20 }
 0x400   : > { %v5178_v23 = vpop.f32.mrf.mxu1  ;;  %v5778_v52 = vrot.slane %v5777_v47, 4  ;;  %v5742_v17 = vmax.f32 %v5740_v34, %v5741_v7  ;;  %v5716_v32 = vmax.f32 %v5714_v38, %v5715_v51  ;;  %v5755_v43 = vmax.f32 %v5753_v63, %v5754_v40 }
 0x401   : > { %v5785_v29 = vsel %vm5705_vm12, %v5602_v25, -inf  ;;  %v5179_v36 = vadd.f32 %v9324_v41, %v5178_v23  ;;  %v5607_v3 = vmax.f32 %v5187_v37, 0.0  ;;  %v5768_v10 = vmax.f32 %v5766_v11, %v5767_v53 }
 0x402   : > { %v5786_v9 = vmax.f32 %v5784_v1, %v5785_v29  ;;  %v7543_v42 = vpop.f32.mrf.mxu1  ;;  %v5779_v57 = vmax.f32 %v5777_v47, %v5778_v52  ;;  %v5730_v19 = vrot.slane %v5729_v2, 1  ;;  %v5743_v49 = vrot.slane %v5742_v17, 1 }
 0x403   : > { %v5605_v8 = vmax.f32 %v5179_v36, 0.0  ;;  %v5190_v26 = vadd.f32 %v7543_v42, %v9324_v41  ;;  %v5800_v44 = vsel %vm5705_vm12, %v5607_v3, -inf  ;;  %v5717_v46 = vrot.slane %v5716_v32, 1 }
 0x404   : > { %v5788_v59 = vmax.f32 %v5786_v9, %v5787_v22  ;;  %v5181_v60 = vpop.f32.mrf.mxu1  ;;  %v5780_v6 = vrot.slane %v5779_v57, 2  ;;  %v5756_v31 = vrot.slane %v5755_v43, 1  ;;  %v5769_v1 = vrot.slane %v5768_v10, 1 }
 0x405   : > { %v5182_v28 = vadd.f32 %v9324_v41, %v5181_v60  ;;  %v5797_v21 = vsel %vm5705_vm12, %v5605_v8, -inf  ;;  %v5608_v14 = vmax.f32 %v5190_v26, 0.0  ;;  %v5731_v16 = vmax.f32 %v5729_v2, %v5730_v19 }
 0x406   : > { %v5790_v18 = vmax.f32 %v5788_v59, %v5789_v61  ;;  %v9433_v45 = vpop.f32.mrf.mxu1  ;;  %v5781_v24 = vmax.f32 %v5779_v57, %v5780_v6  ;;  %v5744_v52 = vmax.f32 %v5742_v17, %v5743_v49  ;;  %v5718_v42 = vmax.f32 %v5716_v32, %v5717_v46 }
 0x407   : > { %v5606_v4 = vmax.f32 %v5182_v28, 0.0  ;;  %v5802_v13 = vsel %vm5705_vm12, %v5608_v14, -inf  ;;  %v5757_v22 = vmax.f32 %v5755_v43, %v5756_v31  ;;  %v5770_v38 = vmax.f32 %v5768_v10, %v5769_v1 }
 0x408   : > { %v5791_v0 = vrot.slane %v5790_v18, 4  ;;  %v9435_v27 = vpop.f32.mrf.mxu1  ;;  %v5782_v36 = vrot.slane %v5781_v24, 1  ;;  %v6225_v60 = vsel %vm6154_vm5, %v5731_v16, %v5718_v42 }
 0x409   : > { %v5798_v15 = vsel %vm5705_vm12, %v5606_v4, -inf  ;;  %v6226_v8 = vsel %vm6156_vm6, %v5744_v52, %v6225_v60  ;;  %v5195_v2 = vadd.f32 %v9324_v41, %v9435_v27 }
 0x40a   : > { %v5792_v50 = vmax.f32 %v5790_v18, %v5791_v0  ;;  %v5799_v33 = vmax.f32 %v5797_v21, %v5798_v15  ;;  %v9439_v62 = vpop.f32.mrf.mxu1  ;;  %v5783_v11 = vmax.f32 %v5781_v24, %v5782_v36  ;;  %v6227_v20 = vsel %vm6158_vm7, %v5757_v22, %v6226_v8 }
 0x40b   : > { %v6228_v57 = vsel %vm6160_vm8, %v5770_v38, %v6227_v20  ;;  %v5203_v15 = vadd.f32 %v9433_v45, %v9324_v41 }
 0x40c   : > { %v5801_v58 = vmax.f32 %v5799_v33, %v5800_v44  ;;  %v5197_v5 = vpop.f32.mrf.mxu1  ;;  %v5793_v56 = vrot.slane %v5792_v50, 2  ;;  %v6229_v3 = vsel %vm6162_vm9, %v5783_v11, %v6228_v57 }
 0x40d   : > { %v5198_v21 = vadd.f32 %v9324_v41, %v5197_v5  ;;  %v5611_v43 = vmax.f32 %v5203_v15, 0.0 }
 0x40e   : > { %v5803_v47 = vmax.f32 %v5801_v58, %v5802_v13  ;;  %v7550_v39 = vpop.f32.mrf.mxu1  ;;  %v5794_v25 = vmax.f32 %v5792_v50, %v5793_v56  ;;  %v5609_v58 = vmax.f32 %v5195_v2, 0.0  ;;  %v9464_v56 = vadd.f32 %v9439_v62, %v9324_v41 }
 0x40f   : > { %v5219_v6 = vadd.f32 %v7550_v39, %v9324_v41  ;;  %v5610_v33 = vmax.f32 %v5198_v21, 0.0 }
 0x410   : > { %v5804_v48 = vrot.slane %v5803_v47, 4  ;;  %v5210_v23 = vpop.f32.mrf.mxu1  ;;  %v5795_v9 = vrot.slane %v5794_v25, 1  ;;  %v5810_v46 = vsel %vm5705_vm12, %v5609_v58, -inf }
 0x411   : > { %v5211_v44 = vadd.f32 %v9324_v41, %v5210_v23  ;;  %v5615_v45 = vmax.f32 %v5219_v6, 0.0  ;;  %v5811_v27 = vsel %vm5705_vm12, %v5610_v33, -inf }
 0x412   : > { %v9443_v29 = vpop.f32.mrf.mxu1  ;;  %v5805_v30 = vmax.f32 %v5803_v47, %v5804_v48  ;;  %v5796_v61 = vmax.f32 %v5794_v25, %v5795_v9  ;;  %v5813_v25 = vsel %vm5705_vm12, %v5611_v43, -inf  ;;  %v5612_v48 = vmax.f32 %v9464_v56, 0.0 }
 0x413   : > { %v5613_v39 = vmax.f32 %v5211_v44, 0.0  ;;  %v5812_v23 = vmax.f32 %v5810_v46, %v5811_v27  ;;  %v5826_v1 = vsel %vm5705_vm12, %v5615_v45, -inf  ;;  %v5222_v22 = vadd.f32 %v9443_v29, %v9324_v41 }
 0x414   : > { %v5213_v34 = vpop.f32.mrf.mxu1  ;;  %v5806_v37 = vrot.slane %v5805_v30, 2  ;;  %v6230_v4 = vsel %vm6164_vm10, %v5796_v61, %v6229_v3 }
 0x415   : > { %v5214_v17 = vadd.f32 %v9324_v41, %v5213_v34  ;;  %v5823_v34 = vsel %vm5705_vm12, %v5613_v39, -inf  ;;  %v5814_v8 = vmax.f32 %v5812_v23, %v5813_v25 }
 0x416   : > { %v7554_v63 = vpop.f32.mrf.mxu1  ;;  %v5807_v59 = vmax.f32 %v5805_v30, %v5806_v37 }
 0x417   : > { %v5614_v13 = vmax.f32 %v5214_v17, 0.0  ;;  %v5235_v16 = vadd.f32 %v7554_v63, %v9324_v41 }
 0x418   : > { %v5226_v26 = vpop.f32.mrf.mxu1  ;;  %v5808_v28 = vrot.slane %v5807_v59, 1 }
 0x419   : > { %v5227_v19 = vadd.f32 %v9324_v41, %v5226_v26  ;;  %v5824_v30 = vsel %vm5705_vm12, %v5614_v13, -inf }
 0x41a   : > { %v7555_v18 = vpop.f32.mrf.mxu1  ;;  %v5809_v7 = vmax.f32 %v5807_v59, %v5808_v28  ;;  %v5825_v26 = vmax.f32 %v5823_v34, %v5824_v30  ;;  %v5619_v28 = vmax.f32 %v5235_v16, 0.0 }
 0x41b   : > { %v5617_v52 = vmax.f32 %v5227_v19, 0.0  ;;  %v5238_v20 = vadd.f32 %v7555_v18, %v9324_v41 }
 0x41c   : > { %v5229_v51 = vpop.f32.mrf.mxu1  ;;  %v6231_v40 = vsel %vm6166_vm11, %v5809_v7, %v6230_v4  ;;  %v5839_v43 = vsel %vm5705_vm12, %v5619_v28, -inf  ;;  %v5827_v45 = vmax.f32 %v5825_v26, %v5826_v1 }
 0x41d   : > { %6253 = vrot.lane.b32.xlu0 %v6231_v40, %s7770_s18  ;;  %v5230_v5 = vadd.f32 %v9324_v41, %v5229_v51  ;;  %v5836_v7 = vsel %vm5705_vm12, %v5617_v52, -inf  ;;  %v5620_v33 = vmax.f32 %v5238_v20, 0.0  ;;  %v5815_v52 = vsel %vm5705_vm12, %v5612_v48, -inf }
 0x41e   : > { %v7558_v0 = vpop.f32.mrf.mxu1 }
 0x41f   : > { %v5618_v31 = vmax.f32 %v5230_v5, 0.0  ;;  %v5251_v37 = vadd.f32 %v7558_v0, %v9324_v41  ;;  %v5841_v46 = vsel %vm5705_vm12, %v5620_v33, -inf }
 0x420   : > { %v5242_v53 = vpop.f32.mrf.mxu1 }
 0x421   : > { %v5243_v24 = vadd.f32 %v9324_v41, %v5242_v53  ;;  %v5837_v59 = vsel %vm5705_vm12, %v5618_v31, -inf  ;;  %v5623_v40 = vmax.f32 %v5251_v37, 0.0 }
 0x422   : > { %v7559_v14 = vpop.f32.mrf.mxu1  ;;  %v5838_v51 = vmax.f32 %v5836_v7, %v5837_v59 }
 0x423   : > { %v5621_v38 = vmax.f32 %v5243_v24, 0.0  ;;  %v5254_v53 = vadd.f32 %v7559_v14, %v9324_v41  ;;  %v5852_v27 = vsel %vm5705_vm12, %v5623_v40, -inf }
 0x424   : > { %v5245_v50 = vpop.f32.mrf.mxu1 }
 0x425   : > { %v5246_v47 = vadd.f32 %v9324_v41, %v5245_v50  ;;  %v5849_v0 = vsel %vm5705_vm12, %v5621_v38, -inf  ;;  %v5616_v50 = vmax.f32 %v5222_v22, 0.0  ;;  %v5624_v13 = vmax.f32 %v5254_v53, 0.0 }
 0x426   : > { %v7562_v32 = vpop.f32.mrf.mxu1 }
 0x427   : > { %v5622_v9 = vmax.f32 %v5246_v47, 0.0  ;;  %v5267_v63 = vadd.f32 %v7562_v32, %v9324_v41  ;;  %v5828_v25 = vsel %vm5705_vm12, %v5616_v50, -inf  ;;  %v5854_v37 = vsel %vm5705_vm12, %v5624_v13, -inf }
 0x428   : > { %v5258_v10 = vpop.f32.mrf.mxu1 }
 0x429   : > { %v5259_v62 = vadd.f32 %v9324_v41, %v5258_v10  ;;  %v5850_v29 = vsel %vm5705_vm12, %v5622_v9, -inf  ;;  %v5627_v15 = vmax.f32 %v5267_v63, 0.0  ;;  %v5840_v10 = vmax.f32 %v5838_v51, %v5839_v43 }
 0x42a   : > { %v7563_v49 = vpop.f32.mrf.mxu1  ;;  %v5851_v17 = vmax.f32 %v5849_v0, %v5850_v29  ;;  %v5829_v9 = vmax.f32 %v5827_v45, %v5828_v25  ;;  %v5816_v63 = vmax.f32 %v5814_v8, %v5815_v52 }
 0x42b   : > { %v5625_v60 = vmax.f32 %v5259_v62, 0.0  ;;  %v5270_v18 = vadd.f32 %v7563_v49, %v9324_v41  ;;  %v5865_v47 = vsel %vm5705_vm12, %v5627_v15, -inf }
 0x42c   : > { %v5261_v36 = vpop.f32.mrf.mxu1  ;;  %v5853_v31 = vmax.f32 %v5851_v17, %v5852_v27  ;;  %v5830_v7 = vrot.slane %v5829_v9, 4  ;;  %v5817_v0 = vrot.slane %v5816_v63, 4 }
 0x42d   : > { %v5262_v42 = vadd.f32 %v9324_v41, %v5261_v36  ;;  %v5862_v2 = vsel %vm5705_vm12, %v5625_v60, -inf  ;;  %v5628_v39 = vmax.f32 %v5270_v18, 0.0 }
 0x42e   : > { %v7566_v11 = vpop.f32.mrf.mxu1  ;;  %v5855_v60 = vmax.f32 %v5853_v31, %v5854_v37  ;;  %v5831_v50 = vmax.f32 %v5829_v9, %v5830_v7 }
 0x42f   : > { %v5626_v61 = vmax.f32 %v5262_v42, 0.0  ;;  %v5283_v6 = vadd.f32 %v7566_v11, %v9324_v41  ;;  %v5842_v42 = vmax.f32 %v5840_v10, %v5841_v46  ;;  %v5867_v38 = vsel %vm5705_vm12, %v5628_v39, -inf }
 0x430   : > { %v5274_v57 = vpop.f32.mrf.mxu1  ;;  %v5856_v53 = vrot.slane %v5855_v60, 4 }
 0x431   : > { %v5863_v3 = vsel %vm5705_vm12, %v5626_v61, -inf  ;;  %v5275_v4 = vadd.f32 %v9324_v41, %v5274_v57  ;;  %v5631_v24 = vmax.f32 %v5283_v6, 0.0 }
 0x432   : > { %v7567_v21 = vpop.f32.mrf.mxu1  ;;  %v5864_v44 = vmax.f32 %v5862_v2, %v5863_v3 }
 0x433   : > { %v5629_v58 = vmax.f32 %v5275_v4, 0.0  ;;  %v5286_v5 = vadd.f32 %v7567_v21, %v9324_v41  ;;  %v5878_v11 = vsel %vm5705_vm12, %v5631_v24, -inf  ;;  %v5843_v4 = vrot.slane %v5842_v42, 4 }
 0x434   : > { %v5277_v32 = vpop.f32.mrf.mxu1  ;;  %v5866_v62 = vmax.f32 %v5864_v44, %v5865_v47  ;;  %v5832_v24 = vrot.slane %v5831_v50, 2 }
 0x435   : > { %v5278_v14 = vadd.f32 %v9324_v41, %v5277_v32  ;;  %v5875_v16 = vsel %vm5705_vm12, %v5629_v58, -inf  ;;  %v5632_v1 = vmax.f32 %v5286_v5, 0.0  ;;  %v5844_v32 = vmax.f32 %v5842_v42, %v5843_v4 }
 0x436   : > { %v7570_v19 = vpop.f32.mrf.mxu1  ;;  %v5868_v61 = vmax.f32 %v5866_v62, %v5867_v38  ;;  %v5818_v5 = vmax.f32 %v5816_v63, %v5817_v0 }
 0x437   : > { %v5630_v49 = vmax.f32 %v5278_v14, 0.0  ;;  %v5299_v59 = vadd.f32 %v7570_v19, %v9324_v41  ;;  %v5880_v56 = vsel %vm5705_vm12, %v5632_v1, -inf  ;;  %v5857_v14 = vmax.f32 %v5855_v60, %v5856_v53 }
 0x438   : > { %v5290_v23 = vpop.f32.mrf.mxu1  ;;  %v5869_v8 = vrot.slane %v5868_v61, 4  ;;  %v5845_v31 = vrot.slane %v5844_v32, 2 }
 0x439   : > { %v5876_v36 = vsel %vm5705_vm12, %v5630_v49, -inf  ;;  %v5291_v30 = vadd.f32 %v9324_v41, %v5290_v23  ;;  %v5635_v51 = vmax.f32 %v5299_v59, 0.0  ;;  %v5858_v1 = vrot.slane %v5857_v14, 2 }
 0x43a   : > { %v5877_v34 = vmax.f32 %v5875_v16, %v5876_v36  ;;  %v7571_v22 = vpop.f32.mrf.mxu1  ;;  %v5870_v45 = vmax.f32 %v5868_v61, %v5869_v8  ;;  %v5819_v16 = vrot.slane %v5818_v5, 2  ;;  %v5846_v63 = vmax.f32 %v5844_v32, %v5845_v31 }
 0x43b   : > { %v5633_v48 = vmax.f32 %v5291_v30, 0.0  ;;  %v5302_v20 = vadd.f32 %v7571_v22, %v9324_v41  ;;  %v5891_v43 = vsel %vm5705_vm12, %v5635_v51, -inf  ;;  %v5833_v22 = vmax.f32 %v5831_v50, %v5832_v24 }
 0x43c   : > { %v5879_v26 = vmax.f32 %v5877_v34, %v5878_v11  ;;  %v5293_v28 = vpop.f32.mrf.mxu1  ;;  %v5871_v52 = vrot.slane %v5870_v45, 2  ;;  %v5820_v61 = vmax.f32 %v5818_v5, %v5819_v16  ;;  %v5847_v51 = vrot.slane %v5846_v63, 1 }
 0x43d   : > { %v5294_v57 = vadd.f32 %v9324_v41, %v5293_v28  ;;  %v5888_v15 = vsel %vm5705_vm12, %v5633_v48, -inf  ;;  %v5636_v2 = vmax.f32 %v5302_v20, 0.0  ;;  %v5834_v7 = vrot.slane %v5833_v22, 1 }
 0x43e   : > { %v5881_v29 = vmax.f32 %v5879_v26, %v5880_v56  ;;  %v7574_v3 = vpop.f32.mrf.mxu1  ;;  %v5859_v26 = vmax.f32 %v5857_v14, %v5858_v1  ;;  %v5872_v20 = vmax.f32 %v5870_v45, %v5871_v52  ;;  %v5821_v0 = vrot.slane %v5820_v61, 1 }
 0x43f   : > { %v5634_v40 = vmax.f32 %v5294_v57, 0.0  ;;  %v5315_v58 = vadd.f32 %v7574_v3, %v9324_v41  ;;  %v5893_v13 = vsel %vm5705_vm12, %v5636_v2, -inf  ;;  %v5835_v2 = vmax.f32 %v5833_v22, %v5834_v7 }
 0x440   : > { %v5306_v21 = vpop.f32.mrf.mxu1  ;;  %v5882_v33 = vrot.slane %v5881_v29, 4  ;;  %v5860_v53 = vrot.slane %v5859_v26, 1 }
 0x441   : > { %v5889_v18 = vsel %vm5705_vm12, %v5634_v40, -inf  ;;  %v5307_v6 = vadd.f32 %v9324_v41, %v5306_v21  ;;  %v5639_v62 = vmax.f32 %v5315_v58, 0.0 }
 0x442   : > { %v5890_v17 = vmax.f32 %v5888_v15, %v5889_v18  ;;  %v7575_v44 = vpop.f32.mrf.mxu1  ;;  %v5883_v49 = vmax.f32 %v5881_v29, %v5882_v33  ;;  %v5873_v15 = vrot.slane %v5872_v20, 1  ;;  %v5848_v33 = vmax.f32 %v5846_v63, %v5847_v51  ;;  %v9551_v63 = vld [vmem:[%s9757_s13] ss:$0 sm:$0xff] }
 0x443   : > { %v5637_v19 = vmax.f32 %v5307_v6, 0.0  ;;  %v5318_v47 = vadd.f32 %v7575_v44, %v9324_v41  ;;  %v5904_v60 = vsel %vm5705_vm12, %v5639_v62, -inf  ;;  %v5822_v44 = vmax.f32 %v5820_v61, %v5821_v0 }
 0x444   : > { %v5892_v10 = vmax.f32 %v5890_v17, %v5891_v43  ;;  %v5309_v27 = vpop.f32.mrf.mxu1  ;;  %v5884_v37 = vrot.slane %v5883_v49, 2  ;;  %v5861_v32 = vmax.f32 %v5859_v26, %v5860_v53  ;;  %v5874_v5 = vmax.f32 %v5872_v20, %v5873_v15 }
 0x445   : > { %v5310_v39 = vadd.f32 %v9324_v41, %v5309_v27  ;;  %v5901_v9 = vsel %vm5705_vm12, %v5637_v19, -inf  ;;  %v5640_v42 = vmax.f32 %v5318_v47, 0.0  ;;  %v6232_v27 = vsel %vm6154_vm5, %v5835_v2, %v5822_v44 }
 0x446   : > { %v5894_v25 = vmax.f32 %v5892_v10, %v5893_v13  ;;  %v9522_v46 = vpop.f32.mrf.mxu1  ;;  %v5885_v29 = vmax.f32 %v5883_v49, %v5884_v37  ;;  %v6233_v19 = vsel %vm6156_vm6, %v5848_v33, %v6232_v27 }
 0x447   : > { %v5638_v23 = vmax.f32 %v5310_v39, 0.0  ;;  %v5906_v57 = vsel %vm5705_vm12, %v5640_v42, -inf  ;;  %v6234_v24 = vsel %vm6158_vm7, %v5861_v32, %v6233_v19 }
 0x448   : > { %v5895_v36 = vrot.slane %v5894_v25, 4  ;;  %v9524_v30 = vpop.f32.mrf.mxu1  ;;  %v5886_v50 = vrot.slane %v5885_v29, 1  ;;  %v6235_v49 = vsel %vm6160_vm8, %v5874_v5, %v6234_v24 }
 0x449   : > { %v5902_v34 = vsel %vm5705_vm12, %v5638_v23, -inf  ;;  %v5323_v22 = vadd.f32 %v9324_v41, %v9524_v30 }
 0x44a   : > { %v5896_v38 = vmax.f32 %v5894_v25, %v5895_v36  ;;  %v5903_v11 = vmax.f32 %v5901_v9, %v5902_v34  ;;  %v9528_v59 = vpop.f32.mrf.mxu1  ;;  %v5887_v45 = vmax.f32 %v5885_v29, %v5886_v50  ;;  %v5331_v34 = vadd.f32 %v9522_v46, %v9324_v41 }
 0x44b   : > { %v9558_v30 = vadd.f32 %v9551_v63, %v9528_v59 }
 0x44c   : > { %v5897_v28 = vrot.slane %v5896_v38, 2  ;;  %v5905_v56 = vmax.f32 %v5903_v11, %v5904_v60  ;;  %v5325_v48 = vpop.f32.mrf.mxu1  ;;  %v6236_v62 = vsel %vm6162_vm9, %v5887_v45, %v6235_v49 }
 0x44d   : > { %v5326_v9 = vadd.f32 %v9324_v41, %v5325_v48 }
 0x44e   : > { %v5907_v3 = vmax.f32 %v5905_v56, %v5906_v57  ;;  %v7582_v4 = vpop.f32.mrf.mxu1  ;;  %v5898_v40 = vmax.f32 %v5896_v38, %v5897_v28  ;;  %v5643_v28 = vmax.f32 %v5331_v34, 0.0  ;;  %v5641_v56 = vmax.f32 %v5323_v22, 0.0 }
 0x44f   : > { %v5347_v37 = vadd.f32 %v7582_v4, %v9324_v41  ;;  %v5642_v11 = vmax.f32 %v5326_v9, 0.0 }
 0x450   : > { %v5908_v8 = vrot.slane %v5907_v3, 4  ;;  %v5338_v21 = vpop.f32.mrf.mxu1  ;;  %v5899_v17 = vrot.slane %v5898_v40, 1  ;;  %v5914_v0 = vsel %vm5705_vm12, %v5641_v56, -inf }
 0x451   : > { %v5339_v61 = vadd.f32 %v9551_v63, %v5338_v21  ;;  %v5647_v41 = vmax.f32 %v5347_v37, 0.0  ;;  %v5915_v20 = vsel %vm5705_vm12, %v5642_v11, -inf }
 0x452   : > { %v5909_v18 = vmax.f32 %v5907_v3, %v5908_v8  ;;  %v9532_v6 = vpop.f32.mrf.mxu1  ;;  %v5900_v13 = vmax.f32 %v5898_v40, %v5899_v17  ;;  %v5917_v40 = vsel %vm5705_vm12, %v5643_v28, -inf  ;;  %v5644_v8 = vmax.f32 %v9558_v30, 0.0 }
 0x453   : > { %v5645_v3 = vmax.f32 %v5339_v61, 0.0  ;;  %v5916_v21 = vmax.f32 %v5914_v0, %v5915_v20  ;;  %v5930_v15 = vsel %vm5705_vm12, %v5647_v41, -inf }
 0x454   : > { %v5341_v43 = vpop.f32.mrf.mxu1  ;;  %v5910_v58 = vrot.slane %v5909_v18, 2  ;;  %v6237_v23 = vsel %vm6164_vm10, %v5900_v13, %v6236_v62 }
 0x455   : > { %v5342_v60 = vadd.f32 %v9551_v63, %v5341_v43  ;;  %v5927_v32 = vsel %vm5705_vm12, %v5645_v3, -inf  ;;  %v5350_v43 = vadd.f32 %v9551_v63, %v9532_v6  ;;  %v5918_v19 = vmax.f32 %v5916_v21, %v5917_v40 }
 0x456   : > { %v7586_v14 = vpop.f32.mrf.mxu1  ;;  %v5911_v10 = vmax.f32 %v5909_v18, %v5910_v58 }
 0x457   : > { %v5646_v57 = vmax.f32 %v5342_v60, 0.0  ;;  %v5363_v2 = vadd.f32 %v9551_v63, %v7586_v14 }
 0x458   : > { %v5354_v47 = vpop.f32.mrf.mxu1  ;;  %v5912_v39 = vrot.slane %v5911_v10, 1 }
 0x459   : > { %v5355_v7 = vadd.f32 %v9551_v63, %v5354_v47  ;;  %v5928_v50 = vsel %vm5705_vm12, %v5646_v57, -inf }
 0x45a   : > { %v7587_v25 = vpop.f32.mrf.mxu1  ;;  %v5913_v31 = vmax.f32 %v5911_v10, %v5912_v39  ;;  %v5929_v47 = vmax.f32 %v5927_v32, %v5928_v50  ;;  %v5651_v39 = vmax.f32 %v5363_v2, 0.0 }
 0x45b   : > { %v5649_v33 = vmax.f32 %v5355_v7, 0.0  ;;  %v5366_v24 = vadd.f32 %v9551_v63, %v7587_v25 }
 0x45c   : > { %v5357_v16 = vpop.f32.mrf.mxu1  ;;  %v6238_v1 = vsel %vm6166_vm11, %v5913_v31, %v6237_v23  ;;  %v5943_v28 = vsel %vm5705_vm12, %v5651_v39, -inf  ;;  %v5931_v41 = vmax.f32 %v5929_v47, %v5930_v15 }
 0x45d   : > { %6255 = vrot.lane.b32.xlu0 %v6238_v1, %s7770_s18  ;;  %v5358_v46 = vadd.f32 %v9551_v63, %v5357_v16  ;;  %v5940_v31 = vsel %vm5705_vm12, %v5649_v33, -inf  ;;  %v5652_v11 = vmax.f32 %v5366_v24, 0.0  ;;  %v5919_v33 = vsel %vm5705_vm12, %v5644_v8, -inf }
 0x45e   : > { %v7590_v36 = vpop.f32.mrf.mxu1 }
 0x45f   : > { %v5650_v53 = vmax.f32 %v5358_v46, 0.0  ;;  %v5379_v58 = vadd.f32 %v9551_v63, %v7590_v36  ;;  %v5945_v0 = vsel %vm5705_vm12, %v5652_v11, -inf }
 0x460   : > { %v5370_v52 = vpop.f32.mrf.mxu1 }
 0x461   : > { %v5371_v4 = vadd.f32 %v9551_v63, %v5370_v52  ;;  %v5941_v10 = vsel %vm5705_vm12, %v5650_v53, -inf  ;;  %v5655_v1 = vmax.f32 %v5379_v58, 0.0 }
 0x462   : > { %v7591_v42 = vpop.f32.mrf.mxu1  ;;  %v5942_v16 = vmax.f32 %v5940_v31, %v5941_v10 }
 0x463   : > { %v5653_v5 = vmax.f32 %v5371_v4, 0.0  ;;  %v5382_v52 = vadd.f32 %v9551_v63, %v7591_v42  ;;  %v5956_v20 = vsel %vm5705_vm12, %v5655_v1, -inf }
 0x464   : > { %v5373_v38 = vpop.f32.mrf.mxu1 }
 0x465   : > { %v5374_v29 = vadd.f32 %v9551_v63, %v5373_v38  ;;  %v5953_v36 = vsel %vm5705_vm12, %v5653_v5, -inf  ;;  %v5648_v38 = vmax.f32 %v5350_v43, 0.0  ;;  %v5656_v57 = vmax.f32 %v5382_v52, 0.0 }
 0x466   : > { %v7594_v26 = vpop.f32.mrf.mxu1 }
 0x467   : > { %v5654_v17 = vmax.f32 %v5374_v29, 0.0  ;;  %v5395_v14 = vadd.f32 %v9551_v63, %v7594_v26  ;;  %v5932_v40 = vsel %vm5705_vm12, %v5648_v38, -inf  ;;  %v5958_v58 = vsel %vm5705_vm12, %v5656_v57, -inf }
 0x468   : > { %v5386_v48 = vpop.f32.mrf.mxu1 }
 0x469   : > { %v5387_v59 = vadd.f32 %v9551_v63, %v5386_v48  ;;  %v5954_v6 = vsel %vm5705_vm12, %v5654_v17, -inf  ;;  %v5659_v34 = vmax.f32 %v5395_v14, 0.0  ;;  %v5944_v48 = vmax.f32 %v5942_v16, %v5943_v28 }
 0x46a   : > { %v7595_v51 = vpop.f32.mrf.mxu1  ;;  %v5955_v60 = vmax.f32 %v5953_v36, %v5954_v6  ;;  %v5933_v17 = vmax.f32 %v5931_v41, %v5932_v40  ;;  %v5920_v14 = vmax.f32 %v5918_v19, %v5919_v33 }
 0x46b   : > { %v5657_v27 = vmax.f32 %v5387_v59, 0.0  ;;  %v5398_v25 = vadd.f32 %v9551_v63, %v7595_v51  ;;  %v5969_v29 = vsel %vm5705_vm12, %v5659_v34, -inf }
 0x46c   : > { %v5389_v18 = vpop.f32.mrf.mxu1  ;;  %v5957_v53 = vmax.f32 %v5955_v60, %v5956_v20  ;;  %v5934_v31 = vrot.slane %v5933_v17, 4  ;;  %v5921_v36 = vrot.slane %v5920_v14, 4 }
 0x46d   : > { %v5390_v44 = vadd.f32 %v9551_v63, %v5389_v18  ;;  %v5966_v22 = vsel %vm5705_vm12, %v5657_v27, -inf  ;;  %v5660_v3 = vmax.f32 %v5398_v25, 0.0 }
 0x46e   : > { %v7598_v45 = vpop.f32.mrf.mxu1  ;;  %v5959_v27 = vmax.f32 %v5957_v53, %v5958_v58  ;;  %v5935_v38 = vmax.f32 %v5933_v17, %v5934_v31 }
 0x46f   : > { %v5658_v13 = vmax.f32 %v5390_v44, 0.0  ;;  %v5411_v37 = vadd.f32 %v9551_v63, %v7598_v45  ;;  %v5946_v44 = vmax.f32 %v5944_v48, %v5945_v0  ;;  %v5971_v5 = vsel %vm5705_vm12, %v5660_v3, -inf }
 0x470   : > { %v5402_v49 = vpop.f32.mrf.mxu1  ;;  %v5960_v19 = vrot.slane %v5959_v27, 4 }
 0x471   : > { %v5967_v62 = vsel %vm5705_vm12, %v5658_v13, -inf  ;;  %v5403_v23 = vadd.f32 %v9551_v63, %v5402_v49  ;;  %v5663_v4 = vmax.f32 %v5411_v37, 0.0 }
 0x472   : > { %v7599_v9 = vpop.f32.mrf.mxu1  ;;  %v5968_v61 = vmax.f32 %v5966_v22, %v5967_v62 }
 0x473   : > { %v5661_v56 = vmax.f32 %v5403_v23, 0.0  ;;  %v5414_v46 = vadd.f32 %v9551_v63, %v7599_v9  ;;  %v5982_v45 = vsel %vm5705_vm12, %v5663_v4, -inf  ;;  %v5947_v23 = vrot.slane %v5946_v44, 4 }
 0x474   : > { %v5405_v26 = vpop.f32.mrf.mxu1  ;;  %v5970_v59 = vmax.f32 %v5968_v61, %v5969_v29  ;;  %v5936_v4 = vrot.slane %v5935_v38, 2 }
 0x475   : > { %v5406_v42 = vadd.f32 %v9551_v63, %v5405_v26  ;;  %v5979_v2 = vsel %vm5705_vm12, %v5661_v56, -inf  ;;  %v5664_v15 = vmax.f32 %v5414_v46, 0.0  ;;  %v5948_v26 = vmax.f32 %v5946_v44, %v5947_v23 }
 0x476   : > { %v7602_v7 = vpop.f32.mrf.mxu1  ;;  %v5972_v13 = vmax.f32 %v5970_v59, %v5971_v5  ;;  %v5922_v46 = vmax.f32 %v5920_v14, %v5921_v36 }
 0x477   : > { %v5662_v51 = vmax.f32 %v5406_v42, 0.0  ;;  %v5427_v10 = vadd.f32 %v9551_v63, %v7602_v7  ;;  %v5984_v8 = vsel %vm5705_vm12, %v5664_v15, -inf  ;;  %v5961_v42 = vmax.f32 %v5959_v27, %v5960_v19 }
 0x478   : > { %v5418_v21 = vpop.f32.mrf.mxu1  ;;  %v5973_v52 = vrot.slane %v5972_v13, 4  ;;  %v5949_v53 = vrot.slane %v5948_v26, 2 }
 0x479   : > { %v5980_v18 = vsel %vm5705_vm12, %v5662_v51, -inf  ;;  %v5419_v50 = vadd.f32 %v9551_v63, %v5418_v21  ;;  %v5667_v16 = vmax.f32 %v5427_v10, 0.0  ;;  %v5962_v15 = vrot.slane %v5961_v42, 2 }
 0x47a   : > { %v5981_v32 = vmax.f32 %v5979_v2, %v5980_v18  ;;  %v7603_v43 = vpop.f32.mrf.mxu1  ;;  %v5974_v41 = vmax.f32 %v5972_v13, %v5973_v52  ;;  %v5923_v2 = vrot.slane %v5922_v46, 2  ;;  %v5950_v14 = vmax.f32 %v5948_v26, %v5949_v53 }
 0x47b   : > { %v5665_v39 = vmax.f32 %v5419_v50, 0.0  ;;  %v5430_v24 = vadd.f32 %v9551_v63, %v7603_v43  ;;  %v5995_v28 = vsel %vm5705_vm12, %v5667_v16, -inf  ;;  %v5937_v43 = vmax.f32 %v5935_v38, %v5936_v4 }
 0x47c   : > { %v5983_v47 = vmax.f32 %v5981_v32, %v5982_v45  ;;  %v5421_v30 = vpop.f32.mrf.mxu1  ;;  %v5975_v33 = vrot.slane %v5974_v41, 2  ;;  %v5924_v13 = vmax.f32 %v5922_v46, %v5923_v2  ;;  %v5951_v16 = vrot.slane %v5950_v14, 1 }
 0x47d   : > { %v5422_v49 = vadd.f32 %v9551_v63, %v5421_v30  ;;  %v5992_v34 = vsel %vm5705_vm12, %v5665_v39, -inf  ;;  %v5668_v22 = vmax.f32 %v5430_v24, 0.0  ;;  %v5938_v31 = vrot.slane %v5937_v43, 1 }
 0x47e   : > { %v5985_v6 = vmax.f32 %v5983_v47, %v5984_v8  ;;  %v7606_v62 = vpop.f32.mrf.mxu1  ;;  %v5963_v47 = vmax.f32 %v5961_v42, %v5962_v15  ;;  %v5976_v24 = vmax.f32 %v5974_v41, %v5975_v33  ;;  %v5925_v19 = vrot.slane %v5924_v13, 1 }
 0x47f   : > { %v5666_v1 = vmax.f32 %v5422_v49, 0.0  ;;  %v5443_v56 = vadd.f32 %v9551_v63, %v7606_v62  ;;  %v5997_v57 = vsel %vm5705_vm12, %v5668_v22, -inf }
 0x480   : > { %v5434_v9 = vpop.f32.mrf.mxu1  ;;  %v5986_v11 = vrot.slane %v5985_v6, 4  ;;  %v5964_v52 = vrot.slane %v5963_v47, 1 }
 0x481   : > { %v5993_v25 = vsel %vm5705_vm12, %v5666_v1, -inf  ;;  %v5435_v37 = vadd.f32 %v9551_v63, %v5434_v9  ;;  %v5671_v59 = vmax.f32 %v5443_v56, 0.0 }
 0x482   : > { %v5994_v60 = vmax.f32 %v5992_v34, %v5993_v25  ;;  %v7607_v61 = vpop.f32.mrf.mxu1  ;;  %v5987_v51 = vmax.f32 %v5985_v6, %v5986_v11  ;;  %v5977_v25 = vrot.slane %v5976_v24, 1  ;;  %v5965_v46 = vmax.f32 %v5963_v47, %v5964_v52 }
 0x483   : > { %v5669_v7 = vmax.f32 %v5435_v37, 0.0  ;;  %v5446_v29 = vadd.f32 %v9551_v63, %v7607_v61  ;;  %v6008_v27 = vsel %vm5705_vm12, %v5671_v59, -inf  ;;  %v5939_v37 = vmax.f32 %v5937_v43, %v5938_v31 }
 0x484   : > { %v5996_v48 = vmax.f32 %v5994_v60, %v5995_v28  ;;  %v5437_v20 = vpop.f32.mrf.mxu1  ;;  %v5988_v58 = vrot.slane %v5987_v51, 2  ;;  %v5952_v61 = vmax.f32 %v5950_v14, %v5951_v16  ;;  %v5926_v28 = vmax.f32 %v5924_v13, %v5925_v19 }
 0x485   : > { %v5438_v3 = vadd.f32 %v9551_v63, %v5437_v20  ;;  %v6005_v17 = vsel %vm5705_vm12, %v5669_v7, -inf  ;;  %v5672_v44 = vmax.f32 %v5446_v29, 0.0  ;;  %v5978_v41 = vmax.f32 %v5976_v24, %v5977_v25 }
 0x486   : > { %v5998_v40 = vmax.f32 %v5996_v48, %v5997_v57  ;;  %v9621_v0 = vpop.f32.mrf.mxu1  ;;  %v5989_v23 = vmax.f32 %v5987_v51, %v5988_v58 }
 0x487   : > { %v5670_v21 = vmax.f32 %v5438_v3, 0.0  ;;  %v6010_v49 = vsel %vm5705_vm12, %v5672_v44, -inf  ;;  %v5459_v43 = vadd.f32 %v9551_v63, %v9621_v0 }
 0x488   : > { %v5999_v18 = vrot.slane %v5998_v40, 4  ;;  %v9625_v50 = vpop.f32.mrf.mxu1  ;;  %v5990_v11 = vrot.slane %v5989_v23, 1 }
 0x489   : > { %v6006_v32 = vsel %vm5705_vm12, %v5670_v21, -inf  ;;  %v5451_v58 = vadd.f32 %v9551_v63, %v9625_v50 }
 0x48a   : > { %v6000_v5 = vmax.f32 %v5998_v40, %v5999_v18  ;;  %v6007_v45 = vmax.f32 %v6005_v17, %v6006_v32  ;;  %v9629_v10 = vpop.f32.mrf.mxu1  ;;  %v5991_v20 = vmax.f32 %v5989_v23, %v5990_v11 }
 0x48b   : > { %v9662_v24 = vadd.f32 %v9551_v63, %v9629_v10 }
 0x48c   : > { %v6009_v30 = vmax.f32 %v6007_v45, %v6008_v27  ;;  %v5453_v8 = vpop.f32.mrf.mxu1  ;;  %v6001_v39 = vrot.slane %v6000_v5, 2 }
 0x48d   : > { %v5454_v44 = vadd.f32 %v9551_v63, %v5453_v8 }
 0x48e   : > { %v6011_v6 = vmax.f32 %v6009_v30, %v6010_v49  ;;  %v7614_v62 = vpop.f32.mrf.mxu1  ;;  %v6002_v36 = vmax.f32 %v6000_v5, %v6001_v39  ;;  %v5675_v30 = vmax.f32 %v5459_v43, 0.0  ;;  %v5673_v39 = vmax.f32 %v5451_v58, 0.0 }
 0x48f   : > { %v6254_v1 = vpop.permute.xlu0 %6253  ;;  %v5475_v5 = vadd.f32 %v9551_v63, %v7614_v62  ;;  %v5674_v14 = vmax.f32 %v5454_v44, 0.0 }
 0x490   : > { %v6012_v9 = vrot.slane %v6011_v6, 4  ;;  %v6265_v34 = vsel %vm2182_vm4, %v9131_v12, %v6254_v1  ;;  %v5466_v22 = vpop.f32.mrf.mxu1  ;;  %v6003_v26 = vrot.slane %v6002_v36, 1  ;;  %v6239_v12 = vsel %vm6154_vm5, %v5939_v37, %v5926_v28 }
 0x491   : > { %6269 = vst [vmem:[%s9636_s26] sm:$0xff] %v6265_v34  ;;  %v6240_v29 = vsel %vm6156_vm6, %v5952_v61, %v6239_v12  ;;  %v5467_v13 = vadd.f32 %v9551_v63, %v5466_v22  ;;  %v5679_v0 = vmax.f32 %v5475_v5, 0.0  ;;  %v6019_v50 = vsel %vm5705_vm12, %v5674_v14, -inf }
 0x492   : > { %v9641_v38 = vpop.f32.mrf.mxu1  ;;  %v6013_v60 = vmax.f32 %v6011_v6, %v6012_v9  ;;  %v6004_v7 = vmax.f32 %v6002_v36, %v6003_v26  ;;  %v6241_v51 = vsel %vm6158_vm7, %v5965_v46, %v6240_v29  ;;  %v6021_v36 = vsel %vm5705_vm12, %v5675_v30, -inf }
 0x493   : > { %v6242_v40 = vsel %vm6160_vm8, %v5978_v41, %v6241_v51  ;;  %v5677_v23 = vmax.f32 %v5467_v13, 0.0  ;;  %v6018_v19 = vsel %vm5705_vm12, %v5673_v39, -inf  ;;  %v5676_v9 = vmax.f32 %v9662_v24, 0.0 }
 0x494   : > { %v5469_v56 = vpop.f32.mrf.mxu1  ;;  %v6014_v42 = vrot.slane %v6013_v60, 2  ;;  %v6243_v21 = vsel %vm6162_vm9, %v5991_v20, %v6242_v40  ;;  %v6020_v34 = vmax.f32 %v6018_v19, %v6019_v50  ;;  %v6034_v22 = vsel %vm5705_vm12, %v5679_v0, -inf }
 0x495   : > { %v6244_v2 = vsel %vm6164_vm10, %v6004_v7, %v6243_v21  ;;  %v5470_v27 = vadd.f32 %v9551_v63, %v5469_v56  ;;  %v6031_v28 = vsel %vm5705_vm12, %v5677_v23, -inf  ;;  %v5478_v56 = vadd.f32 %v9551_v63, %v9641_v38 }
 0x496   : > { %v7618_v48 = vpop.f32.mrf.mxu1  ;;  %v6015_v57 = vmax.f32 %v6013_v60, %v6014_v42  ;;  %v6022_v7 = vmax.f32 %v6020_v34, %v6021_v36 }
 0x497   : > { %v5678_v31 = vmax.f32 %v5470_v27, 0.0  ;;  %v5491_v25 = vadd.f32 %v9551_v63, %v7618_v48  ;;  %v5680_v5 = vmax.f32 %v5478_v56, 0.0 }
 0x498   : > { %v5482_v3 = vpop.f32.mrf.mxu1  ;;  %v6016_v4 = vrot.slane %v6015_v57, 1 }
 0x499   : > { %v5483_v6 = vadd.f32 %v9551_v63, %v5482_v3  ;;  %v6032_v11 = vsel %vm5705_vm12, %v5678_v31, -inf  ;;  %v5683_v3 = vmax.f32 %v5491_v25, 0.0 }
 0x49a   : > { %v7619_v53 = vpop.f32.mrf.mxu1  ;;  %v6017_v59 = vmax.f32 %v6015_v57, %v6016_v4  ;;  %v6033_v29 = vmax.f32 %v6031_v28, %v6032_v11  ;;  %v6023_v11 = vsel %vm5705_vm12, %v5676_v9, -inf }
 0x49b   : > { %v5681_v60 = vmax.f32 %v5483_v6, 0.0  ;;  %v5494_v4 = vadd.f32 %v9551_v63, %v7619_v53 }
 0x49c   : > { %v5485_v15 = vpop.f32.mrf.mxu1  ;;  %v6245_v18 = vsel %vm6166_vm11, %v6017_v59, %v6244_v2 }
 0x49d   : > { %6257 = vrot.lane.b32.xlu1 %v6245_v18, %s7770_s18  ;;  %v5486_v8 = vadd.f32 %v9551_v63, %v5485_v15  ;;  %v6044_v40 = vsel %vm5705_vm12, %v5681_v60, -inf }
 0x49e   : > { %v7622_v33 = vpop.f32.mrf.mxu1 }
 0x49f   : > { %v5682_v52 = vmax.f32 %v5486_v8, 0.0  ;;  %v5507_v46 = vadd.f32 %v9551_v63, %v7622_v33  ;;  %v6035_v8 = vmax.f32 %v6033_v29, %v6034_v22 }
 0x4a0   : > { %v5498_v17 = vpop.f32.mrf.mxu1 }
 0x4a1   : > { %v5499_v16 = vadd.f32 %v9551_v63, %v5498_v17  ;;  %v6045_v20 = vsel %vm5705_vm12, %v5682_v52, -inf  ;;  %v5687_v15 = vmax.f32 %v5507_v46, 0.0 }
 0x4a2   : > { %v7623_v32 = vpop.f32.mrf.mxu1  ;;  %v6046_v2 = vmax.f32 %v6044_v40, %v6045_v20  ;;  %v6024_v20 = vmax.f32 %v6022_v7, %v6023_v11 }
 0x4a3   : > { %v5685_v42 = vmax.f32 %v5499_v16, 0.0  ;;  %v5510_v33 = vadd.f32 %v9551_v63, %v7623_v32 }
 0x4a4   : > { %v5501_v45 = vpop.f32.mrf.mxu1 }
 0x4a5   : > { %v5502_v62 = vadd.f32 %v9551_v63, %v5501_v45  ;;  %v6057_v18 = vsel %vm5705_vm12, %v5685_v42, -inf  ;;  %v5684_v45 = vmax.f32 %v5494_v4, 0.0  ;;  %v5688_v50 = vmax.f32 %v5510_v33, 0.0 }
 0x4a6   : > { %v7626_v47 = vpop.f32.mrf.mxu1 }
 0x4a7   : > { %v5686_v61 = vmax.f32 %v5502_v62, 0.0  ;;  %v5523_v48 = vadd.f32 %v9551_v63, %v7626_v47  ;;  %v6047_v47 = vsel %vm5705_vm12, %v5683_v3, -inf  ;;  %v6049_v36 = vsel %vm5705_vm12, %v5684_v45, -inf }
 0x4a8   : > { %v5514_v49 = vpop.f32.mrf.mxu1  ;;  %v6048_v0 = vmax.f32 %v6046_v2, %v6047_v47  ;;  %v6062_v56 = vsel %vm5705_vm12, %v5688_v50, -inf }
 0x4a9   : > { %v5515_v10 = vadd.f32 %v9551_v63, %v5514_v49  ;;  %v6058_v38 = vsel %vm5705_vm12, %v5686_v61, -inf  ;;  %v5691_v44 = vmax.f32 %v5523_v48, 0.0  ;;  %v6060_v49 = vsel %vm5705_vm12, %v5687_v15, -inf }
 0x4aa   : > { %v7627_v1 = vpop.f32.mrf.mxu1  ;;  %v6059_v14 = vmax.f32 %v6057_v18, %v6058_v38  ;;  %v6050_v61 = vmax.f32 %v6048_v0, %v6049_v36  ;;  %v6025_v15 = vrot.slane %v6024_v20, 4 }
 0x4ab   : > { %v5689_v57 = vmax.f32 %v5515_v10, 0.0  ;;  %v5526_v53 = vadd.f32 %v9551_v63, %v7627_v1  ;;  %v6073_v6 = vsel %vm5705_vm12, %v5691_v44, -inf  ;;  %v6036_v1 = vsel %vm5705_vm12, %v5680_v5, -inf }
 0x4ac   : > { %v5517_v37 = vpop.f32.mrf.mxu1  ;;  %v6061_v19 = vmax.f32 %v6059_v14, %v6060_v49  ;;  %v6037_v60 = vmax.f32 %v6035_v8, %v6036_v1 }
 0x4ad   : > { %v5518_v26 = vadd.f32 %v9551_v63, %v5517_v37  ;;  %v6070_v43 = vsel %vm5705_vm12, %v5689_v57, -inf  ;;  %v5692_v62 = vmax.f32 %v5526_v53, 0.0 }
 0x4ae   : > { %v7630_v41 = vpop.f32.mrf.mxu1  ;;  %v6063_v48 = vmax.f32 %v6061_v19, %v6062_v56 }
 0x4af   : > { %v5690_v12 = vmax.f32 %v5518_v26, 0.0  ;;  %v5539_v58 = vadd.f32 %v9551_v63, %v7630_v41  ;;  %v6075_v46 = vsel %vm5705_vm12, %v5692_v62, -inf }
 0x4b0   : > { %v5530_v51 = vpop.f32.mrf.mxu1  ;;  %v6064_v18 = vrot.slane %v6063_v48, 4 }
 0x4b1   : > { %v6071_v59 = vsel %vm5705_vm12, %v5690_v12, -inf  ;;  %v5531_v21 = vadd.f32 %v9551_v63, %v5530_v51  ;;  %v5695_v23 = vmax.f32 %v5539_v58, 0.0  ;;  %v6038_v51 = vrot.slane %v6037_v60, 4 }
 0x4b2   : > { %v7631_v17 = vpop.f32.mrf.mxu1  ;;  %v6072_v27 = vmax.f32 %v6070_v43, %v6071_v59  ;;  %v6051_v59 = vrot.slane %v6050_v61, 4 }
 0x4b3   : > { %v5693_v30 = vmax.f32 %v5531_v21, 0.0  ;;  %v5542_v39 = vadd.f32 %v9551_v63, %v7631_v17  ;;  %v6086_v42 = vsel %vm5705_vm12, %v5695_v23, -inf  ;;  %v6039_v58 = vmax.f32 %v6037_v60, %v6038_v51 }
 0x4b4   : > { %v5533_v13 = vpop.f32.mrf.mxu1  ;;  %v6074_v52 = vmax.f32 %v6072_v27, %v6073_v6  ;;  %v6052_v27 = vmax.f32 %v6050_v61, %v6051_v59 }
 0x4b5   : > { %v5534_v32 = vadd.f32 %v9551_v63, %v5533_v13  ;;  %v6083_v34 = vsel %vm5705_vm12, %v5693_v30, -inf  ;;  %v5696_v22 = vmax.f32 %v5542_v39, 0.0  ;;  %v6026_v30 = vmax.f32 %v6024_v20, %v6025_v15 }
 0x4b6   : > { %v7634_v31 = vpop.f32.mrf.mxu1  ;;  %v6076_v57 = vmax.f32 %v6074_v52, %v6075_v46  ;;  %v6065_v39 = vmax.f32 %v6063_v48, %v6064_v18  ;;  %v6040_v62 = vrot.slane %v6039_v58, 2  ;;  %v6053_v1 = vrot.slane %v6052_v27, 2 }
 0x4b7   : > { %v5694_v16 = vmax.f32 %v5534_v32, 0.0  ;;  %v5555_v41 = vadd.f32 %v9551_v63, %v7634_v31  ;;  %v6088_v24 = vsel %vm5705_vm12, %v5696_v22, -inf  ;;  %v6027_v52 = vrot.slane %v6026_v30, 2 }
 0x4b8   : > { %v5546_v10 = vpop.f32.mrf.mxu1  ;;  %v6077_v7 = vrot.slane %v6076_v57, 4  ;;  %v6041_v60 = vmax.f32 %v6039_v58, %v6040_v62 }
 0x4b9   : > { %v6084_v25 = vsel %vm5705_vm12, %v5694_v16, -inf  ;;  %v5547_v37 = vadd.f32 %v9551_v63, %v5546_v10  ;;  %v5699_v21 = vmax.f32 %v5555_v41, 0.0  ;;  %v6066_v10 = vrot.slane %v6065_v39, 2 }
 0x4ba   : > { %v6085_v26 = vmax.f32 %v6083_v34, %v6084_v25  ;;  %v7635_v28 = vpop.f32.mrf.mxu1  ;;  %v6078_v32 = vmax.f32 %v6076_v57, %v6077_v7  ;;  %v6028_v46 = vmax.f32 %v6026_v30, %v6027_v52 }
 0x4bb   : > { %v5697_v9 = vmax.f32 %v5547_v37, 0.0  ;;  %v5558_v3 = vadd.f32 %v9551_v63, %v7635_v28  ;;  %v6099_v13 = vsel %vm5705_vm12, %v5699_v21, -inf }
 0x4bc   : > { %v6087_v12 = vmax.f32 %v6085_v26, %v6086_v42  ;;  %v5549_v29 = vpop.f32.mrf.mxu1  ;;  %v6079_v22 = vrot.slane %v6078_v32, 2  ;;  %v6067_v42 = vmax.f32 %v6065_v39, %v6066_v10  ;;  %v6029_v51 = vrot.slane %v6028_v46, 1 }
 0x4bd   : > { %v5550_v4 = vadd.f32 %v9551_v63, %v5549_v29  ;;  %v6096_v17 = vsel %vm5705_vm12, %v5697_v9, -inf  ;;  %v5700_v44 = vmax.f32 %v5558_v3, 0.0 }
 0x4be   : > { %v6089_v40 = vmax.f32 %v6087_v12, %v6088_v24  ;;  %v7638_v38 = vpop.f32.mrf.mxu1  ;;  %v6080_v48 = vmax.f32 %v6078_v32, %v6079_v22  ;;  %v6042_v12 = vrot.slane %v6041_v60, 1 }
 0x4bf   : > { %v5698_v2 = vmax.f32 %v5550_v4, 0.0  ;;  %v5571_v47 = vadd.f32 %v9551_v63, %v7638_v38  ;;  %v6101_v49 = vsel %vm5705_vm12, %v5700_v44, -inf }
 0x4c0   : > { %v5562_v33 = vpop.f32.mrf.mxu1  ;;  %v6090_v5 = vrot.slane %v6089_v40, 4  ;;  %v6081_v21 = vrot.slane %v6080_v48, 1 }
 0x4c1   : > { %v6097_v43 = vsel %vm5705_vm12, %v5698_v2, -inf  ;;  %v5563_v53 = vadd.f32 %v9551_v63, %v5562_v33  ;;  %v5703_v36 = vmax.f32 %v5571_v47, 0.0  ;;  %v6043_v2 = vmax.f32 %v6041_v60, %v6042_v12 }
 0x4c2   : > { %v6098_v45 = vmax.f32 %v6096_v17, %v6097_v43  ;;  %v7639_v14 = vpop.f32.mrf.mxu1  ;;  %v6091_v23 = vmax.f32 %v6089_v40, %v6090_v5  ;;  %v6068_v40 = vrot.slane %v6067_v42, 1  ;;  %v6030_v17 = vmax.f32 %v6028_v46, %v6029_v51 }
 0x4c3   : > { %v5701_v50 = vmax.f32 %v5563_v53, 0.0  ;;  %v5574_v31 = vadd.f32 %v9551_v63, %v7639_v14  ;;  %v6112_v56 = vsel %vm5705_vm12, %v5703_v36, -inf  ;;  %v6082_v53 = vmax.f32 %v6080_v48, %v6081_v21 }
 0x4c4   : > { %v6100_v8 = vmax.f32 %v6098_v45, %v6099_v13  ;;  %v5565_v0 = vpop.f32.mrf.mxu1  ;;  %v6092_v61 = vrot.slane %v6091_v23, 2  ;;  %v6069_v44 = vmax.f32 %v6067_v42, %v6068_v40  ;;  %v6246_v45 = vsel %vm6154_vm5, %v6043_v2, %v6030_v17 }
 0x4c5   : > { %v5566_v6 = vadd.f32 %v9551_v63, %v5565_v0  ;;  %v6109_v25 = vsel %vm5705_vm12, %v5701_v50, -inf  ;;  %v5704_v37 = vmax.f32 %v5574_v31, 0.0  ;;  %v6054_v63 = vmax.f32 %v6052_v27, %v6053_v1 }
 0x4c6   : > { %v6102_v16 = vmax.f32 %v6100_v8, %v6101_v49  ;;  %v6093_v29 = vmax.f32 %v6091_v23, %v6092_v61 }
 0x4c7   : > { %v5702_v19 = vmax.f32 %v5566_v6, 0.0  ;;  %v6114_v57 = vsel %vm5705_vm12, %v5704_v37, -inf  ;;  %v6055_v9 = vrot.slane %v6054_v63, 1 }
 0x4c8   : > { %v6103_v34 = vrot.slane %v6102_v16, 4  ;;  %v6094_v18 = vrot.slane %v6093_v29, 1 }
 0x4c9   : > { %v6110_v11 = vsel %vm5705_vm12, %v5702_v19, -inf  ;;  %v6056_v7 = vmax.f32 %v6054_v63, %v6055_v9 }
 0x4ca   : > { %v6104_v26 = vmax.f32 %v6102_v16, %v6103_v34  ;;  %v6111_v28 = vmax.f32 %v6109_v25, %v6110_v11  ;;  %v6095_v58 = vmax.f32 %v6093_v29, %v6094_v18 }
 0x4cc   : > { %v6105_v41 = vrot.slane %v6104_v26, 2  ;;  %v6113_v20 = vmax.f32 %v6111_v28, %v6112_v56 }
 0x4ce   : > { %v6115_v24 = vmax.f32 %v6113_v20, %v6114_v57  ;;  %v6106_v4 = vmax.f32 %v6104_v26, %v6105_v41 }
 0x4cf   : > { %v6256_v3 = vpop.permute.xlu0 %6255 }
 0x4d0   : > { %v6116_v38 = vrot.slane %v6115_v24, 4  ;;  %v6266_v59 = vsel %vm2182_vm4, %v9149_v35, %v6256_v3  ;;  %v6107_v33 = vrot.slane %v6106_v4, 1  ;;  %v6247_v35 = vsel %vm6156_vm6, %v6056_v7, %v6246_v45 }
 0x4d1   : > { %6270 = vst [vmem:[%s9636_s26 + $0x8] sm:$0xff] %v6266_v59  ;;  %v6248_v13 = vsel %vm6158_vm7, %v6069_v44, %v6247_v35 }
 0x4d2   : > { %v6117_v15 = vmax.f32 %v6115_v24, %v6116_v38  ;;  %v6108_v14 = vmax.f32 %v6106_v4, %v6107_v33  ;;  %v6249_v47 = vsel %vm6160_vm8, %v6082_v53, %v6248_v13 }
 0x4d3   : > { %v6250_v39 = vsel %vm6162_vm9, %v6095_v58, %v6249_v47 }
 0x4d4   : > { %v6118_v43 = vrot.slane %v6117_v15, 2  ;;  %v6251_v32 = vsel %vm6164_vm10, %v6108_v14, %v6250_v39 }
 0x4d6   : > { %v6119_v5 = vmax.f32 %v6117_v15, %v6118_v43 }
 0x4d8   : > { %v6120_v27 = vrot.slane %v6119_v5, 1 }
 0x4da   : > { %v6121_v30 = vmax.f32 %v6119_v5, %v6120_v27 }
 0x4dc   : > { %v6252_v8 = vsel %vm6166_vm11, %v6121_v30, %v6251_v32 }
 0x4dd   : > { %6259 = vrot.lane.b32.xlu1 %v6252_v8, %s7770_s18 }
 0x50f   : > { %v6258_v0 = vpop.permute.xlu1 %6257 }
 0x510   : > { %v6267_v49 = vsel %vm2182_vm4, %v9175_v55, %v6258_v0 }
 0x511   : > { %6271 = vst [vmem:[%s9636_s26 + $0x10] sm:$0xff] %v6267_v49 }
 0x54f   : > { %v6260_v50 = vpop.permute.xlu1 %6259 }
 0x550   : > { %v6268_v31 = vsel %vm2182_vm4, %v9186_v54, %v6260_v50 }
 0x551   : > { %6272 = vst [vmem:[%s9636_s26 + $0x18] sm:$0xff] %v6268_v31 }
 0x552 PF: > { %s24_s29 = sadd.s32 1, %s7767_s29  }
 0x553   : > { %p21_p6 = scmp.ge.s32.totalorder %s24_s29, 4  }
 0x555   :  { %23 = sbr.rel (!%p21_p6) target bundleno = 1 (0x1), region = 109 }

// kernel: pointnet2_encoder_forward.3
= control target key start
LH: loop header
LB: loop body
LE: loop exit
PB: predicated region body
PF: predicated region fallthrough
CT: control target
= control target key end

     0   :  { %s4951_s21 = smov 0   ;;  %s5829_s0 = inlined_call_operand.vmem [shape: bf16[512,99], index: 0, kind: input, shape index: {}]   ;;  %s5830_s1 = inlined_call_operand.vmem [shape: bf16[1024,99], index: 1, kind: input, shape index: {}]   ;;  %s5831_s2 = inlined_call_operand.vmem [shape: bf16[99,64], index: 2, kind: input, shape index: {}]   ;;  %s5832_s3 = inlined_call_operand.vmem [shape: f32[1,64], index: 3, kind: input, shape index: {}]   ;;  %s5833_s4 = inlined_call_operand.vmem [shape: bf16[64,64], index: 4, kind: input, shape index: {}]   ;;  %s5834_s5 = inlined_call_operand.vmem [shape: f32[1,64], index: 5, kind: input, shape index: {}]   ;;  %s5835_s6 = inlined_call_operand.vmem [shape: bf16[64,128], index: 6, kind: input, shape index: {}]   ;;  %s5836_s7 = inlined_call_operand.vmem [shape: f32[1,128], index: 7, kind: input, shape index: {}]   ;;  %s5837_s8 = inlined_call_operand.vmem [shape: bf16[99,64], index: 8, kind: input, shape index: {}]   ;;  %s5838_s9 = inlined_call_operand.vmem [shape: f32[1,64], index: 9, kind: input, shape index: {}]   ;;  %s5839_s10 = inlined_call_operand.vmem [shape: bf16[64,96], index: 10, kind: input, shape index: {}]   ;;  %s5840_s11 = inlined_call_operand.vmem [shape: f32[1,96], index: 11, kind: input, shape index: {}]   ;;  %s5841_s12 = inlined_call_operand.vmem [shape: bf16[96,128], index: 12, kind: input, shape index: {}]   ;;  %s5842_s13 = inlined_call_operand.vmem [shape: f32[1,128], index: 13, kind: input, shape index: {}]   ;;  %s5843_s14 = inlined_call_operand.vmem [shape: bf16[256,128], index: 14, kind: input, shape index: {}]   ;;  %s5844_s15 = inlined_call_operand.vmem [shape: f32[1,128], index: 15, kind: input, shape index: {}]   ;;  %s5845_s16 = inlined_call_operand.vmem [shape: f32[32,128], index: 16, kind: output, shape index: {}]  }
   0x1   :  { %5846 = sst [smem:[#allocation2_spill]] %s5829_s0 }
   0x2 LB: > { %s4957_s22 = sadd.s32 4294967295, %s4863_s21   ;;  %p3932_p0 = scmp.ge.s32.totalorder %s4863_s21, 1  ;;  %s4863_s21 = sphi %s4951_s21, %s26_s21  }
   0x3   : > { %p474_p1 = scmp.lt.s32.totalorder %s4863_s21, 3 }
   0x5   : > { %p475_p2 = pnand %p3932_p0, %p474_p1 }
   0x6   : > { %s3933_s27 = sshll.u32 (!%p475_p2), %s4957_s22, 5  ;;  %s5847_s20 = sld [smem:[#allocation2_spill]] (!%p475_p2) }
   0x7   : > { %478 = sbr.rel (%p475_p2) target bundleno = 1386 (0x56a), region = 84  ;;  %p530_p3 = scmp.lt.s32.totalorder (!%p475_p2), %s3933_s27, 63 }
   0x8   : > { %s3935_s0 = sshll.u32 (!%p475_p2), %s4957_s22, 6 }
   0x9   : > { %p536_p4 = scmp.lt.s32.totalorder (!%p475_p2), %s3935_s0, 127 }
   0xc   : > { %v4761_v0 = vld [vmem:[%s5831_s2 + $0x30] ss:$0 sps:$4 sm:$0x33]   ;;  %vm768_vm0 = vcmask 1040384   ;;  %vm769_vm1 = vcmask 1041408   ;;  %v4865_v1 = vmov 65535  }
   0xd   : > { %v770_v2 = vsel %vm768_vm0, 4294967295, %v4865_v1  ;;  %v4763_v5 = vld [vmem:[%s5831_s2 + $0x28] sm:$0xff]   ;;  %s5849_s27 = smov (!%p530_p3, %s3933_s27), 63  ;;  %v4764_v6 = vld [vmem:[%s5831_s2 + $0x20] sm:$0xff]   ;;  %vm719_vm2 = vcmask 809984   ;;  %v4785_v7 = vld [vmem:[%s5833_s4 + $0x18] sm:$0xff]  }
   0xe   : > { %v771_v3 = vsel %vm769_vm1, %v770_v2, 0  ;;  %s3934_s30 = sshll.u32 %s5849_s27, 2  ;;  %4432 = vmatprep.subr.bf16.mxu1 %v4785_v7  ;;  %v4765_v9 = vld [vmem:[%s5831_s2 + $0x18] sm:$0xff]   ;;  %v4766_v10 = vld [vmem:[%s5831_s2 + $0x10] sm:$0xff]   ;;  %v4767_v11 = vld [vmem:[%s5831_s2 + $0x8] sm:$0xff]   ;;  %s5851_s0 = smov (!%p536_p4, %s3935_s0), 127 }
   0xf   : > { %v773_v4 = vand.u32 %v4761_v0, %v771_v3  ;;  %s4977_s23 = scalar_lea.vmem %s5847_s20, %s3934_s30  ;;  %4433 = vmatpush3.bf16.msra.mxu1 %v4785_v7  ;;  %v4762_v12 = vld [vmem:[%s5837_s8 + $0x30] ss:$0 sps:$4 sm:$0x33]   ;;  %v4768_v13 = vld [vmem:[%s5831_s2] sm:$0xff]   ;;  %v4787_v31 = vld [vmem:[%s5833_s4 + $0x8] sm:$0xff]   ;;  %s3936_s24 = sshll.u32 %s5851_s0, 2 }
  0x10   : > { %v4769_v8 = vld [vmem:[%s4977_s23] sm:$0xff]   ;;  %v4996_v14 = vand.u32 %v4762_v12, %v771_v3  ;;  %v4770_v15 = vld [vmem:[%s4977_s23 + $0x8] sm:$0xff]   ;;  %v4771_v16 = vld [vmem:[%s4977_s23 + $0x10] sm:$0xff]   ;;  %s5067_s27 = scalar_lea.vmem %s5830_s1, %s3936_s24  ;;  %vm1023_vm3 = vcmask 523264   ;;  %vm3625_vm4 = vcmask 1041409   ;;  %vm3627_vm5 = vcmask 1042434  }
  0x11   : > { %4386 = vmatprep.subr.bf16.mxu0 %v773_v4  ;;  %4400 = vmatprep.mubr.msk.bf16.mxu0 %vm719_vm2, %v4769_v8  ;;  %v4772_v17 = vld [vmem:[%s4977_s23 + $0x18] sm:$0xff]   ;;  %v4773_v18 = vld [vmem:[%s4977_s23 + $0x20] sm:$0xff]   ;;  %v4774_v19 = vld [vmem:[%s4977_s23 + $0x28] sm:$0xff]   ;;  %vm3629_vm6 = vcmask 1043459   ;;  %vm3631_vm7 = vcmask 1044484   ;;  %vm3633_vm8 = vcmask 1045509  }
  0x12   : > { %4387 = vmatpush3.bf16.msra.mxu0 %v773_v4  ;;  %v4775_v20 = vld [vmem:[%s4977_s23 + $0x30] sm:$0xff]   ;;  %v4776_v21 = vld [vmem:[%s4977_s23 + $0x38] sm:$0xff]   ;;  %v4777_v22 = vld [vmem:[%s4977_s23 + $0x40] sm:$0xff]   ;;  %vm3635_vm9 = vcmask 1046534   ;;  %vm3637_vm10 = vcmask 1047559   ;;  %vm3015_vm11 = vcmask 785408  }
  0x13   : > { %4388 = vmatprep.subr.bf16.mxu0 %v4763_v5  ;;  %v4778_v23 = vld [vmem:[%s4977_s23 + $0x48] sm:$0xff]   ;;  %v4779_v24 = vld [vmem:[%s4977_s23 + $0x50] sm:$0xff]   ;;  %v4780_v25 = vld [vmem:[%s4977_s23 + $0x58] sm:$0xff]  }
  0x14   : > { %v4781_v26 = vld [vmem:[%s4977_s23 + $0x60] sm:$0xff]   ;;  %v4782_v27 = vld [vmem:[%s4977_s23 + $0x68] sm:$0xff]   ;;  %v4783_v28 = vld [vmem:[%s4977_s23 + $0x70] sm:$0xff]  }
  0x15   : > { %v4784_v29 = vld [vmem:[%s4977_s23 + $0x78] sm:$0xff]   ;;  %v4786_v30 = vld [vmem:[%s5833_s4 + $0x10] sm:$0xff]   ;;  %v4788_v32 = vld [vmem:[%s5833_s4] sm:$0xff]   ;;  %s3937_s23 = sshll.u32 %s4957_s22, 1 }
  0x16   : > { %4389 = vmatpush3.bf16.msra.mxu0 %v4763_v5  ;;  %4434 = vmatprep.subr.bf16.mxu1 %v4786_v30  ;;  %v5042_v33 = vld [vmem:[%s5837_s8 + $0x28] sm:$0xff]   ;;  %v5047_v34 = vld [vmem:[%s5837_s8 + $0x20] sm:$0xff]   ;;  %v5054_v35 = vld [vmem:[%s5835_s6 + $0x18] sm:$0xff]   ;;  %p542_p5 = scmp.lt.s32.totalorder %s3937_s23, 3 }
  0x17   : > { %4390 = vmatprep.subr.bf16.mxu0 %v4764_v6  ;;  %4435 = vmatpush3.bf16.msra.mxu1 %v4786_v30  ;;  %v5061_v36 = vld [vmem:[%s5837_s8 + $0x18] sm:$0xff]   ;;  %v4795_v37 = vld [vmem:[%s5067_s27] sm:$0xff]   ;;  %v5075_v38 = vld [vmem:[%s5837_s8 + $0x10] sm:$0xff]  }
  0x18   : > { %4436 = vmatprep.subr.bf16.mxu1 %v4787_v31  ;;  %v5083_v39 = vld [vmem:[%s5837_s8 + $0x8] sm:$0xff]   ;;  %v5090_v40 = vld [vmem:[%s5837_s8] sm:$0xff]   ;;  %v4797_v42 = vld [vmem:[%s5067_s27 + $0x10] sm:$0xff]   ;;  %s5853_s23 = smov (!%p542_p5, %s3937_s23), 3 }
  0x19   : > { %v4796_v41 = vld [vmem:[%s5067_s27 + $0x8] sm:$0xff]   ;;  %v4798_v43 = vld [vmem:[%s5067_s27 + $0x18] sm:$0xff]   ;;  %v4799_v44 = vld [vmem:[%s5067_s27 + $0x20] sm:$0xff]   ;;  %s3938_s28 = sshll.u32 %s5853_s23, 3 }
  0x1a   : > { %4391 = vmatpush3.bf16.msra.mxu0 %v4764_v6  ;;  %v4800_v45 = vld [vmem:[%s5067_s27 + $0x28] sm:$0xff]   ;;  %v4801_v46 = vld [vmem:[%s5067_s27 + $0x30] sm:$0xff]   ;;  %v4802_v47 = vld [vmem:[%s5067_s27 + $0x38] sm:$0xff]   ;;  %s545_s17 = scalar_lea.vmem %s5845_s16, %s3938_s28 }
  0x1b   : > { %4392 = vmatprep.subr.bf16.mxu0 %v4765_v9  ;;  %4437 = vmatpush3.bf16.msra.mxu1 %v4787_v31  ;;  %v4803_v48 = vld [vmem:[%s5067_s27 + $0x40] sm:$0xff]   ;;  %v4804_v49 = vld [vmem:[%s5067_s27 + $0x48] sm:$0xff]   ;;  %v4805_v50 = vld [vmem:[%s5067_s27 + $0x50] sm:$0xff]  }
  0x1c   : > { %4438 = vmatprep.subr.bf16.mxu1 %v4788_v32  ;;  %v5118_v53 = vld [vmem:[%s5832_s3] ss:$0 sm:$0xff]  ;;  %v4806_v55 = vld [vmem:[%s5067_s27 + $0x58] sm:$0xff]   ;;  %v4809_v7 = vld [vmem:[%s5067_s27 + $0x68] sm:$0xff]  }
  0x1d   : > { %v4808_v58 = vld [vmem:[%s5067_s27 + $0x60] sm:$0xff]   ;;  %v4812_v8 = vld [vmem:[%s5835_s6 + $0x10] sm:$0xff]  }
  0x1e   : > { %4393 = vmatpush3.bf16.msra.mxu0 %v4765_v9  ;;  %v4814_v30 = vld [vmem:[%s5067_s27 + $0x80] sm:$0xff]  }
  0x1f   : > { %4394 = vmatprep.subr.bf16.mxu0 %v4766_v10  ;;  %4439 = vmatpush3.bf16.msra.mxu1 %v4788_v32 }
  0x20   : > { %4472 = vmatprep.subr.bf16.mxu1 %v5054_v35 }
  0x22   : > { %4395 = vmatpush3.bf16.msra.mxu0 %v4766_v10 }
  0x23   : > { %4396 = vmatprep.subr.bf16.mxu0 %v4767_v11 }
  0x26   : > { %4397 = vmatpush3.bf16.msra.mxu0 %v4767_v11  ;;  %v4810_v11 = vld [vmem:[%s5067_s27 + $0x70] sm:$0xff]  }
  0x27   : > { %4398 = vmatprep.subr.bf16.mxu0 %v4768_v13 }
  0x2a   : > { %4399 = vmatpush3.bf16.msra.mxu0 %v4768_v13 }
  0x2b   : > { %4512 = vmatprep.subr.bf16.mxu0 %v4996_v14 }
  0x2d   : > { %4401 = vmatmul.mubr.msk.bf16.vlgmr.msra.gmra.mxu0 %vm719_vm2, %v4770_v15 }
  0x2e   : > { %4404 = vmatprep.mubr.msk.bf16.mxu0 %vm719_vm2, %v4771_v16  ;;  %4513 = vmatpush3.bf16.msra.mxu0 %v4996_v14 }
  0x2f   : > { %4514 = vmatprep.subr.bf16.mxu0 %v5042_v33 }
  0x32   : > { %4515 = vmatpush3.bf16.msra.mxu0 %v5042_v33 }
  0x33   : > { %4516 = vmatprep.subr.bf16.mxu0 %v5047_v34 }
  0x35   : > { %4405 = vmatmul.mubr.msk.bf16.gmra.mxu0 %vm719_vm2, %v4772_v17 }
  0x36   : > { %4408 = vmatprep.mubr.msk.bf16.mxu0 %vm719_vm2, %v4773_v18  ;;  %4517 = vmatpush3.bf16.msra.mxu0 %v5047_v34  ;;  %v4813_v18 = vld [vmem:[%s5835_s6 + $0x8] sm:$0xff]  }
  0x37   : > { %4518 = vmatprep.subr.bf16.mxu0 %v5061_v36 }
  0x3a   : > { %4519 = vmatpush3.bf16.msra.mxu0 %v5061_v36 }
  0x3b   : > { %4520 = vmatprep.subr.bf16.mxu0 %v5075_v38 }
  0x3d   : > { %4409 = vmatmul.mubr.msk.bf16.gmra.mxu0 %vm719_vm2, %v4774_v19 }
  0x3e   : > { %4412 = vmatprep.mubr.msk.bf16.mxu0 %vm719_vm2, %v4775_v20  ;;  %4521 = vmatpush3.bf16.msra.mxu0 %v5075_v38 }
  0x3f   : > { %4522 = vmatprep.subr.bf16.mxu0 %v5083_v39 }
  0x42   : > { %4523 = vmatpush3.bf16.msra.mxu0 %v5083_v39 }
  0x43   : > { %4524 = vmatprep.subr.bf16.mxu0 %v5090_v40 }
  0x45   : > { %4413 = vmatmul.mubr.msk.bf16.gmra.mxu0 %vm719_vm2, %v4776_v21 }
  0x46   : > { %4416 = vmatprep.mubr.msk.bf16.mxu0 %vm719_vm2, %v4777_v22  ;;  %4525 = vmatpush3.bf16.msra.mxu0 %v5090_v40 }
  0x4d   : > { %4417 = vmatmul.mubr.msk.bf16.gmra.mxu0 %vm719_vm2, %v4778_v23 }
  0x4e   : > { %4420 = vmatprep.mubr.msk.bf16.mxu0 %vm719_vm2, %v4779_v24 }
  0x55   : > { %4421 = vmatmul.mubr.msk.bf16.gmra.mxu0 %vm719_vm2, %v4780_v25 }
  0x56   : > { %4424 = vmatprep.mubr.msk.bf16.mxu0 %vm719_vm2, %v4781_v26  ;;  %v4811_v26 = vld [vmem:[%s5067_s27 + $0x78] sm:$0xff]  }
  0x5d   : > { %4425 = vmatmul.mubr.msk.bf16.gmra.mxu0 %vm719_vm2, %v4782_v27  ;;  %v4816_v27 = vld [vmem:[%s5835_s6] sm:$0xff]  }
  0x5e   : > { %4428 = vmatprep.mubr.msk.bf16.mxu0 %vm719_vm2, %v4783_v28 }
  0x65   : > { %4429 = vmatmul.mubr.msk.bf16.gmra.mxu0 %vm719_vm2, %v4784_v29 }
  0x66   : > { %4526 = vmatprep.mubr.msk.bf16.mxu0 %vm719_vm2, %v4795_v37 }
  0x6d   : > { %4527 = vmatmul.mubr.msk.bf16.vlgmr.msra.gmra.mxu0 %vm719_vm2, %v4796_v41 }
  0x6e   : > { %4530 = vmatprep.mubr.msk.bf16.mxu0 %vm719_vm2, %v4797_v42 }
  0x75   : > { %4531 = vmatmul.mubr.msk.bf16.gmra.mxu0 %vm719_vm2, %v4798_v43 }
  0x76   : > { %4534 = vmatprep.mubr.msk.bf16.mxu0 %vm719_vm2, %v4799_v44 }
  0x7d   : > { %4535 = vmatmul.mubr.msk.bf16.gmra.mxu0 %vm719_vm2, %v4800_v45 }
  0x7e   : > { %4538 = vmatprep.mubr.msk.bf16.mxu0 %vm719_vm2, %v4801_v46 }
  0x85   : > { %4539 = vmatmul.mubr.msk.bf16.gmra.mxu0 %vm719_vm2, %v4802_v47 }
  0x86   : > { %4542 = vmatprep.mubr.msk.bf16.mxu0 %vm719_vm2, %v4803_v48 }
  0x8d   : > { %4543 = vmatmul.mubr.msk.bf16.gmra.mxu0 %vm719_vm2, %v4804_v49  ;;  %v4815_v49 = vld [vmem:[%s5067_s27 + $0x88] sm:$0xff]  }
  0x8e   : > { %4546 = vmatprep.mubr.msk.bf16.mxu0 %vm719_vm2, %v4805_v50 }
  0x95   : > { %4547 = vmatmul.mubr.msk.bf16.gmra.mxu0 %vm719_vm2, %v4806_v55 }
  0x96   : > { %4550 = vmatprep.mubr.msk.bf16.mxu0 %vm719_vm2, %v4808_v58 }
  0x9d   : > { %4551 = vmatmul.mubr.msk.bf16.gmra.mxu0 %vm719_vm2, %v4809_v7 }
  0x9e   : > { %4554 = vmatprep.mubr.msk.bf16.mxu0 %vm719_vm2, %v4810_v11 }
  0xa5   : > { %4555 = vmatmul.mubr.msk.bf16.gmra.mxu0 %vm719_vm2, %v4811_v26 }
  0xa6   : > { %4558 = vmatprep.mubr.msk.bf16.mxu0 %vm719_vm2, %v4814_v30 }
  0xad   : > { %4559 = vmatmul.mubr.msk.bf16.gmra.mxu0 %vm719_vm2, %v4815_v49 }
  0xed   : > { %v4402_v51 = vpop.f32.mrf.mxu0 }
  0xee   : > { %v818_v59 = vadd.f32 %v4402_v51, %v5118_v53 }
  0xef   : > { %v809_v52 = vpop.f32.mrf.mxu0 }
  0xf0   : > { %v810_v56 = vadd.f32 %v5118_v53, %v809_v52  ;;  %v938_v2 = vmax.f32 %v818_v59, 0.0 }
  0xf1   : > { %v4403_v54 = vpop.f32.mrf.mxu0 }
  0xf2   : > { %v821_v57 = vadd.f32 %v4403_v54, %v5118_v53  ;;  %v936_v0 = vmax.f32 %v810_v56, 0.0 }
  0xf3   : > { %v812_v60 = vpop.f32.mrf.mxu0 }
  0xf4   : > { %v813_v61 = vadd.f32 %v5118_v53, %v812_v60  ;;  %v939_v62 = vmax.f32 %v821_v57, 0.0 }
  0xf5   : > { %v4406_v63 = vpop.f32.mrf.mxu0 }
  0xf6   : > { %v937_v1 = vmax.f32 %v813_v61, 0.0  ;;  %v969_v5 = vpack.c.bf16 %v939_v62, %v938_v2  ;;  %v834_v12 = vadd.f32 %v4406_v63, %v5118_v53 }
  0xf7   : > { %v825_v3 = vpop.f32.mrf.mxu0 }
  0xf8   : > { %v968_v4 = vpack.c.bf16 %v937_v1, %v936_v0  ;;  %v826_v9 = vadd.f32 %v5118_v53, %v825_v3  ;;  %v942_v21 = vmax.f32 %v834_v12, 0.0 }
  0xf9   : > { %v4407_v6 = vpop.f32.mrf.mxu0 }
  0xfa   : > { %v837_v10 = vadd.f32 %v4407_v6, %v5118_v53  ;;  %4440 = vmatprep.mubr.msk.bf16.mxu1 %vm1023_vm3, %v968_v4  ;;  %v940_v19 = vmax.f32 %v826_v9, 0.0 }
  0xfb   : > { %v828_v13 = vpop.f32.mrf.mxu0  ;;  %4441 = vmatmul.mubr.msk.bf16.vlgmr.msra.gmra.mxu1 %vm1023_vm3, %v969_v5 }
  0xfc   : > { %v829_v15 = vadd.f32 %v5118_v53, %v828_v13  ;;  %4473 = vmatpush3.bf16.msra.mxu1 %v5054_v35  ;;  %v943_v16 = vmax.f32 %v837_v10, 0.0 }
  0xfd   : > { %v4410_v17 = vpop.f32.mrf.mxu0  ;;  %4474 = vmatprep.subr.bf16.mxu1 %v4812_v8 }
  0xfe   : > { %v941_v20 = vmax.f32 %v829_v15, 0.0  ;;  %v971_v24 = vpack.c.bf16 %v943_v16, %v942_v21  ;;  %v850_v31 = vadd.f32 %v4410_v17, %v5118_v53 }
  0xff   : > { %v841_v22 = vpop.f32.mrf.mxu0 }
 0x100   : > { %v970_v23 = vpack.c.bf16 %v941_v20, %v940_v19  ;;  %4475 = vmatpush3.bf16.msra.mxu1 %v4812_v8  ;;  %v842_v28 = vadd.f32 %v5118_v53, %v841_v22  ;;  %v946_v44 = vmax.f32 %v850_v31, 0.0 }
 0x101   : > { %v4411_v25 = vpop.f32.mrf.mxu0  ;;  %4476 = vmatprep.subr.bf16.mxu1 %v4813_v18 }
 0x102   : > { %v853_v29 = vadd.f32 %v4411_v25, %v5118_v53  ;;  %4444 = vmatprep.mubr.msk.bf16.mxu1 %vm1023_vm3, %v970_v23  ;;  %v944_v42 = vmax.f32 %v842_v28, 0.0 }
 0x103   : > { %v844_v32 = vpop.f32.mrf.mxu0  ;;  %4445 = vmatmul.mubr.msk.bf16.gmra.mxu1 %vm1023_vm3, %v971_v24 }
 0x104   : > { %v845_v35 = vadd.f32 %v5118_v53, %v844_v32  ;;  %4477 = vmatpush3.bf16.msra.mxu1 %v4813_v18  ;;  %v947_v37 = vmax.f32 %v853_v29, 0.0 }
 0x105   : > { %v4414_v41 = vpop.f32.mrf.mxu0  ;;  %4478 = vmatprep.subr.bf16.mxu1 %v4816_v27 }
 0x106   : > { %v945_v43 = vmax.f32 %v845_v35, 0.0  ;;  %v973_v47 = vpack.c.bf16 %v947_v37, %v946_v44  ;;  %v866_v52 = vadd.f32 %v4414_v41, %v5118_v53 }
 0x107   : > { %v857_v45 = vpop.f32.mrf.mxu0 }
 0x108   : > { %v972_v46 = vpack.c.bf16 %v945_v43, %v944_v42  ;;  %4479 = vmatpush3.bf16.msra.mxu1 %v4816_v27  ;;  %v858_v50 = vadd.f32 %v5118_v53, %v857_v45  ;;  %v950_v60 = vmax.f32 %v866_v52, 0.0 }
 0x109   : > { %v4415_v48 = vpop.f32.mrf.mxu0  ;;  %4738 = vmatprep.subr.bf16.mxu1 %v4996_v14 }
 0x10a   : > { %v869_v51 = vadd.f32 %v4415_v48, %v5118_v53  ;;  %4448 = vmatprep.mubr.msk.bf16.mxu1 %vm1023_vm3, %v972_v46  ;;  %v948_v58 = vmax.f32 %v858_v50, 0.0 }
 0x10b   : > { %v860_v54 = vpop.f32.mrf.mxu0  ;;  %4449 = vmatmul.mubr.msk.bf16.gmra.mxu1 %vm1023_vm3, %v973_v47 }
 0x10c   : > { %v861_v55 = vadd.f32 %v5118_v53, %v860_v54  ;;  %v951_v56 = vmax.f32 %v869_v51, 0.0 }
 0x10d   : > { %v4418_v57 = vpop.f32.mrf.mxu0 }
 0x10e   : > { %v949_v59 = vmax.f32 %v861_v55, 0.0  ;;  %v975_v63 = vpack.c.bf16 %v951_v56, %v950_v60  ;;  %v882_v3 = vadd.f32 %v4418_v57, %v5118_v53 }
 0x10f   : > { %v873_v61 = vpop.f32.mrf.mxu0 }
 0x110   : > { %v974_v62 = vpack.c.bf16 %v949_v59, %v948_v58  ;;  %v874_v1 = vadd.f32 %v5118_v53, %v873_v61  ;;  %v954_v10 = vmax.f32 %v882_v3, 0.0 }
 0x111   : > { %v4419_v0 = vpop.f32.mrf.mxu0 }
 0x112   : > { %v885_v2 = vadd.f32 %v4419_v0, %v5118_v53  ;;  %4452 = vmatprep.mubr.msk.bf16.mxu1 %vm1023_vm3, %v974_v62  ;;  %v952_v8 = vmax.f32 %v874_v1, 0.0  ;;  %v4817_v62 = vld [vmem:[%s5067_s27 + $0x90] sm:$0xff]   ;;  %v4819_v0 = vld [vmem:[%s5067_s27 + $0xa0] sm:$0xff]  }
 0x113   : > { %v876_v4 = vpop.f32.mrf.mxu0  ;;  %4453 = vmatmul.mubr.msk.bf16.gmra.mxu1 %vm1023_vm3, %v975_v63  ;;  %v4818_v63 = vld [vmem:[%s5067_s27 + $0x98] sm:$0xff]   ;;  %4562 = vmatprep.mubr.msk.bf16.mxu0 %vm719_vm2, %v4817_v62  ;;  %v4821_v1 = vld [vmem:[%s5067_s27 + $0xb0] sm:$0xff]  }
 0x114   : > { %v877_v5 = vadd.f32 %v5118_v53, %v876_v4  ;;  %v955_v6 = vmax.f32 %v885_v2, 0.0  ;;  %4563 = vmatmul.mubr.msk.bf16.gmra.mxu0 %vm719_vm2, %v4818_v63  ;;  %v4822_v2 = vld [vmem:[%s5067_s27 + $0xb8] sm:$0xff]  }
 0x115   : > { %v4422_v7 = vpop.f32.mrf.mxu0  ;;  %4566 = vmatprep.mubr.msk.bf16.mxu0 %vm719_vm2, %v4819_v0 }
 0x116   : > { %v953_v9 = vmax.f32 %v877_v5, 0.0  ;;  %v977_v13 = vpack.c.bf16 %v955_v6, %v954_v10  ;;  %v898_v18 = vadd.f32 %v4422_v7, %v5118_v53 }
 0x117   : > { %v889_v11 = vpop.f32.mrf.mxu0 }
 0x118   : > { %v976_v12 = vpack.c.bf16 %v953_v9, %v952_v8  ;;  %v890_v16 = vadd.f32 %v5118_v53, %v889_v11  ;;  %v958_v25 = vmax.f32 %v898_v18, 0.0  ;;  %v5216_v9 = vld [vmem:[%s5834_s5] ss:$0 sm:$0xff] }
 0x119   : > { %v4423_v15 = vpop.f32.mrf.mxu0 }
 0x11a   : > { %v901_v17 = vadd.f32 %v4423_v15, %v5118_v53  ;;  %4456 = vmatprep.mubr.msk.bf16.mxu1 %vm1023_vm3, %v976_v12  ;;  %v956_v23 = vmax.f32 %v890_v16, 0.0 }
 0x11b   : > { %v892_v19 = vpop.f32.mrf.mxu0  ;;  %4457 = vmatmul.mubr.msk.bf16.gmra.mxu1 %vm1023_vm3, %v977_v13 }
 0x11c   : > { %v893_v20 = vadd.f32 %v5118_v53, %v892_v19  ;;  %v959_v21 = vmax.f32 %v901_v17, 0.0 }
 0x11d   : > { %v4426_v22 = vpop.f32.mrf.mxu0 }
 0x11e   : > { %v957_v24 = vmax.f32 %v893_v20, 0.0  ;;  %v979_v28 = vpack.c.bf16 %v959_v21, %v958_v25  ;;  %v914_v32 = vadd.f32 %v4426_v22, %v5118_v53 }
 0x11f   : > { %v905_v26 = vpop.f32.mrf.mxu0 }
 0x120   : > { %v978_v27 = vpack.c.bf16 %v957_v24, %v956_v23  ;;  %v906_v30 = vadd.f32 %v5118_v53, %v905_v26  ;;  %v962_v45 = vmax.f32 %v914_v32, 0.0 }
 0x121   : > { %v4427_v29 = vpop.f32.mrf.mxu0 }
 0x122   : > { %v917_v31 = vadd.f32 %v4427_v29, %v5118_v53  ;;  %4460 = vmatprep.mubr.msk.bf16.mxu1 %vm1023_vm3, %v978_v27  ;;  %v960_v43 = vmax.f32 %v906_v30, 0.0 }
 0x123   : > { %v908_v35 = vpop.f32.mrf.mxu0  ;;  %4461 = vmatmul.mubr.msk.bf16.gmra.mxu1 %vm1023_vm3, %v979_v28 }
 0x124   : > { %v909_v37 = vadd.f32 %v5118_v53, %v908_v35  ;;  %v963_v41 = vmax.f32 %v917_v31, 0.0 }
 0x125   : > { %v4430_v42 = vpop.f32.mrf.mxu0 }
 0x126   : > { %v961_v44 = vmax.f32 %v909_v37, 0.0  ;;  %v981_v48 = vpack.c.bf16 %v963_v41, %v962_v45  ;;  %v930_v52 = vadd.f32 %v4430_v42, %v5118_v53 }
 0x127   : > { %v921_v46 = vpop.f32.mrf.mxu0 }
 0x128   : > { %v980_v47 = vpack.c.bf16 %v961_v44, %v960_v43  ;;  %v922_v50 = vadd.f32 %v5118_v53, %v921_v46  ;;  %v966_v59 = vmax.f32 %v930_v52, 0.0 }
 0x129   : > { %v4431_v49 = vpop.f32.mrf.mxu0 }
 0x12a   : > { %v933_v51 = vadd.f32 %v4431_v49, %v5118_v53  ;;  %4464 = vmatprep.mubr.msk.bf16.mxu1 %vm1023_vm3, %v980_v47  ;;  %v964_v57 = vmax.f32 %v922_v50, 0.0 }
 0x12b   : > { %v924_v54 = vpop.f32.mrf.mxu0  ;;  %4465 = vmatmul.mubr.msk.bf16.gmra.mxu1 %vm1023_vm3, %v981_v48 }
 0x12c   : > { %v925_v55 = vadd.f32 %v5118_v53, %v924_v54  ;;  %v967_v56 = vmax.f32 %v933_v51, 0.0  ;;  %v4820_v53 = vld [vmem:[%s5067_s27 + $0xa8] sm:$0xff]  }
 0x12d   : > { %4567 = vmatmul.mubr.msk.bf16.gmra.mxu0 %vm719_vm2, %v4820_v53  ;;  %v5205_v3 = vpop.f32.mrf.mxu0 }
 0x12e   : > { %v965_v58 = vmax.f32 %v925_v55, 0.0  ;;  %v983_v61 = vpack.c.bf16 %v967_v56, %v966_v59  ;;  %4570 = vmatprep.mubr.msk.bf16.mxu0 %vm719_vm2, %v4821_v1 }
 0x12f   : > { %v5207_v4 = vpop.f32.mrf.mxu0 }
 0x130   : > { %v982_v60 = vpack.c.bf16 %v965_v58, %v964_v57 }
 0x131   : > { %v5209_v5 = vpop.f32.mrf.mxu0 }
 0x132   : > { %4468 = vmatprep.mubr.msk.bf16.mxu1 %vm1023_vm3, %v982_v60 }
 0x133   : > { %4469 = vmatmul.mubr.msk.bf16.gmra.mxu1 %vm1023_vm3, %v983_v61  ;;  %v5211_v8 = vpop.f32.mrf.mxu0 }
 0x135   : > { %4571 = vmatmul.mubr.msk.bf16.gmra.mxu0 %vm719_vm2, %v4822_v2  ;;  %v5221_v16 = vpop.f32.mrf.mxu0 }
 0x137   : > { %v5224_v24 = vpop.f32.mrf.mxu0 }
 0x139   : > { %v5231_v32 = vpop.f32.mrf.mxu0 }
 0x13b   : > { %v5236_v46 = vpop.f32.mrf.mxu0 }
 0x13d   : > { %v5245_v54 = vpop.f32.mrf.mxu0 }
 0x13f   : > { %v5250_v61 = vpop.f32.mrf.mxu0 }
 0x1bb   : > { %v4442_v6 = vpop.f32.mrf.mxu1 }
 0x1bc   : > { %v1115_v13 = vadd.f32 %v4442_v6, %v5216_v9  ;;  %v5259_v6 = vpop.f32.mrf.mxu0 }
 0x1bd   : > { %v1106_v7 = vpop.f32.mrf.mxu1 }
 0x1be   : > { %v1107_v11 = vadd.f32 %v5216_v9, %v1106_v7  ;;  %v1235_v22 = vmax.f32 %v1115_v13, 0.0 }
 0x1bf   : > { %v4443_v10 = vpop.f32.mrf.mxu1 }
 0x1c0   : > { %v1118_v12 = vadd.f32 %v4443_v10, %v5216_v9  ;;  %v1233_v20 = vmax.f32 %v1107_v11, 0.0 }
 0x1c1   : > { %v1109_v15 = vpop.f32.mrf.mxu1 }
 0x1c2   : > { %v1110_v17 = vadd.f32 %v5216_v9, %v1109_v15  ;;  %v1236_v18 = vmax.f32 %v1118_v12, 0.0 }
 0x1c3   : > { %v4446_v19 = vpop.f32.mrf.mxu1 }
 0x1c4   : > { %v1234_v21 = vmax.f32 %v1110_v17, 0.0  ;;  %v1266_v26 = vpack.c.bf16 %v1236_v18, %v1235_v22  ;;  %v1131_v30 = vadd.f32 %v4446_v19, %v5216_v9  ;;  %v5264_v17 = vpop.f32.mrf.mxu0 }
 0x1c5   : > { %v1122_v23 = vpop.f32.mrf.mxu1 }
 0x1c6   : > { %v1265_v25 = vpack.c.bf16 %v1234_v21, %v1233_v20  ;;  %v1123_v28 = vadd.f32 %v5216_v9, %v1122_v23  ;;  %v1239_v44 = vmax.f32 %v1131_v30, 0.0 }
 0x1c7   : > { %v4447_v27 = vpop.f32.mrf.mxu1 }
 0x1c8   : > { %v1134_v29 = vadd.f32 %v4447_v27, %v5216_v9  ;;  %4480 = vmatprep.mubr.msk.bf16.mxu1 %vm1023_vm3, %v1265_v25  ;;  %v1237_v42 = vmax.f32 %v1123_v28, 0.0 }
 0x1c9   : > { %v1125_v31 = vpop.f32.mrf.mxu1  ;;  %4481 = vmatmul.mubr.msk.bf16.vlgmr.msra.gmra.mxu1 %vm1023_vm3, %v1266_v26 }
 0x1ca   : > { %v1126_v35 = vadd.f32 %v5216_v9, %v1125_v31  ;;  %4745 = vmatpush3.bf16.msra.mxu1 %v4996_v14  ;;  %v1240_v37 = vmax.f32 %v1134_v29, 0.0 }
 0x1cb   : > { %v4450_v41 = vpop.f32.mrf.mxu1  ;;  %4739 = vmatprep.subr.bf16.mxu1 %v5042_v33 }
 0x1cc   : > { %v1238_v43 = vmax.f32 %v1126_v35, 0.0  ;;  %v1268_v48 = vpack.c.bf16 %v1240_v37, %v1239_v44  ;;  %v1147_v51 = vadd.f32 %v4450_v41, %v5216_v9 }
 0x1cd   : > { %v1138_v45 = vpop.f32.mrf.mxu1 }
 0x1ce   : > { %v1267_v47 = vpack.c.bf16 %v1238_v43, %v1237_v42  ;;  %4746 = vmatpush3.bf16.msra.mxu1 %v5042_v33  ;;  %v1139_v50 = vadd.f32 %v5216_v9, %v1138_v45  ;;  %v1243_v59 = vmax.f32 %v1147_v51, 0.0 }
 0x1cf   : > { %v4451_v49 = vpop.f32.mrf.mxu1  ;;  %4740 = vmatprep.subr.bf16.mxu1 %v5047_v34 }
 0x1d0   : > { %v1150_v14 = vadd.f32 %v4451_v49, %v5216_v9  ;;  %4484 = vmatprep.mubr.msk.bf16.mxu1 %vm1023_vm3, %v1267_v47  ;;  %v1241_v57 = vmax.f32 %v1139_v50, 0.0 }
 0x1d1   : > { %v1141_v52 = vpop.f32.mrf.mxu1  ;;  %4485 = vmatmul.mubr.msk.bf16.gmra.mxu1 %vm1023_vm3, %v1268_v48 }
 0x1d2   : > { %v1142_v55 = vadd.f32 %v5216_v9, %v1141_v52  ;;  %4747 = vmatpush3.bf16.msra.mxu1 %v5047_v34  ;;  %v1244_v33 = vmax.f32 %v1150_v14, 0.0 }
 0x1d3   : > { %v4454_v56 = vpop.f32.mrf.mxu1  ;;  %4741 = vmatprep.subr.bf16.mxu1 %v5061_v36 }
 0x1d4   : > { %v1242_v58 = vmax.f32 %v1142_v55, 0.0  ;;  %v1270_v63 = vpack.c.bf16 %v1244_v33, %v1243_v59  ;;  %v1163_v1 = vadd.f32 %v4454_v56, %v5216_v9 }
 0x1d5   : > { %v1154_v60 = vpop.f32.mrf.mxu1 }
 0x1d6   : > { %v1269_v62 = vpack.c.bf16 %v1242_v58, %v1241_v57  ;;  %4748 = vmatpush3.bf16.msra.mxu1 %v5061_v36  ;;  %v1155_v53 = vadd.f32 %v5216_v9, %v1154_v60  ;;  %v1247_v13 = vmax.f32 %v1163_v1, 0.0 }
 0x1d7   : > { %v4455_v0 = vpop.f32.mrf.mxu1  ;;  %4742 = vmatprep.subr.bf16.mxu1 %v5075_v38 }
 0x1d8   : > { %v1166_v34 = vadd.f32 %v4455_v0, %v5216_v9  ;;  %4488 = vmatprep.mubr.msk.bf16.mxu1 %vm1023_vm3, %v1269_v62  ;;  %v1245_v11 = vmax.f32 %v1155_v53, 0.0 }
 0x1d9   : > { %v1157_v2 = vpop.f32.mrf.mxu1  ;;  %4489 = vmatmul.mubr.msk.bf16.gmra.mxu1 %vm1023_vm3, %v1270_v63 }
 0x1da   : > { %v1158_v7 = vadd.f32 %v5216_v9, %v1157_v2  ;;  %4749 = vmatpush3.bf16.msra.mxu1 %v5075_v38  ;;  %v1248_v36 = vmax.f32 %v1166_v34, 0.0  ;;  %v5271_v38 = vld [vmem:[%s5839_s10 + $0x18] sm:$0xff]  }
 0x1db   : > { %v4458_v10 = vpop.f32.mrf.mxu1  ;;  %4743 = vmatprep.subr.bf16.mxu1 %v5083_v39 }
 0x1dc   : > { %v1246_v12 = vmax.f32 %v1158_v7, 0.0  ;;  %v1272_v19 = vpack.c.bf16 %v1248_v36, %v1247_v13  ;;  %v1179_v23 = vadd.f32 %v4458_v10, %v5216_v9 }
 0x1dd   : > { %v1170_v15 = vpop.f32.mrf.mxu1 }
 0x1de   : > { %v1271_v18 = vpack.c.bf16 %v1246_v12, %v1245_v11  ;;  %4750 = vmatpush3.bf16.msra.mxu1 %v5083_v39  ;;  %v1171_v21 = vadd.f32 %v5216_v9, %v1170_v15  ;;  %v5278_v39 = vpop.f32.mrf.mxu0  ;;  %v1251_v31 = vmax.f32 %v1179_v23, 0.0 }
 0x1df   : > { %v4459_v20 = vpop.f32.mrf.mxu1  ;;  %4744 = vmatprep.subr.bf16.mxu1 %v5090_v40 }
 0x1e0   : > { %v1182_v22 = vadd.f32 %v4459_v20, %v5216_v9  ;;  %4492 = vmatprep.mubr.msk.bf16.mxu1 %vm1023_vm3, %v1271_v18  ;;  %v1249_v29 = vmax.f32 %v1171_v21, 0.0  ;;  %v5283_v37 = vpop.f32.mrf.mxu0 }
 0x1e1   : > { %v1173_v25 = vpop.f32.mrf.mxu1  ;;  %4493 = vmatmul.mubr.msk.bf16.gmra.mxu1 %vm1023_vm3, %v1272_v19 }
 0x1e2   : > { %v1174_v26 = vadd.f32 %v5216_v9, %v1173_v25  ;;  %4751 = vmatpush3.bf16.msra.mxu1 %v5090_v40  ;;  %v1252_v27 = vmax.f32 %v1182_v22, 0.0  ;;  %v5290_v48 = vpop.f32.mrf.mxu0 }
 0x1e3   : > { %v4462_v28 = vpop.f32.mrf.mxu1  ;;  %4590 = vmatprep.subr.bf16.mxu1 %v5271_v38 }
 0x1e4   : > { %v1250_v30 = vmax.f32 %v1174_v26, 0.0  ;;  %v1274_v42 = vpack.c.bf16 %v1252_v27, %v1251_v31  ;;  %v1195_v40 = vadd.f32 %v4462_v28, %v5216_v9  ;;  %v5293_v56 = vpop.f32.mrf.mxu0 }
 0x1e5   : > { %v1186_v35 = vpop.f32.mrf.mxu1 }
 0x1e6   : > { %v1273_v41 = vpack.c.bf16 %v1250_v30, %v1249_v29  ;;  %v1187_v44 = vadd.f32 %v5216_v9, %v1186_v35  ;;  %v1255_v55 = vmax.f32 %v1195_v40, 0.0  ;;  %v5300_v53 = vpop.f32.mrf.mxu0  ;;  %v4823_v35 = vld [vmem:[%s5067_s27 + $0xc0] sm:$0xff]  }
 0x1e7   : > { %v4463_v43 = vpop.f32.mrf.mxu1 }
 0x1e8   : > { %v1198_v45 = vadd.f32 %v4463_v43, %v5216_v9  ;;  %4496 = vmatprep.mubr.msk.bf16.mxu1 %vm1023_vm3, %v1273_v41  ;;  %v1253_v51 = vmax.f32 %v1187_v44, 0.0  ;;  %v5303_v12 = vpop.f32.mrf.mxu0  ;;  %v4825_v44 = vld [vmem:[%s5067_s27 + $0xd0] sm:$0xff]  }
 0x1e9   : > { %v1189_v47 = vpop.f32.mrf.mxu1  ;;  %4497 = vmatmul.mubr.msk.bf16.gmra.mxu1 %vm1023_vm3, %v1274_v42 }
 0x1ea   : > { %v1190_v49 = vadd.f32 %v5216_v9, %v1189_v47  ;;  %v1256_v50 = vmax.f32 %v1198_v45, 0.0  ;;  %v5310_v23 = vpop.f32.mrf.mxu0  ;;  %v4830_v45 = vld [vmem:[%s5839_s10 + $0x10] sm:$0xff]   ;;  %v4833_v47 = vld [vmem:[%s5839_s10 + $0x8] sm:$0xff]  }
 0x1eb   : > { %v4466_v14 = vpop.f32.mrf.mxu1 }
 0x1ec   : > { %v1254_v52 = vmax.f32 %v1190_v49, 0.0  ;;  %v1276_v58 = vpack.c.bf16 %v1256_v50, %v1255_v55  ;;  %v1211_v63 = vadd.f32 %v4466_v14, %v5216_v9  ;;  %v5313_v30 = vpop.f32.mrf.mxu0  ;;  %v4826_v49 = vld [vmem:[%s5067_s27 + $0xd8] sm:$0xff]   ;;  %v4827_v14 = vld [vmem:[%s5067_s27 + $0xe0] sm:$0xff]   ;;  %v4828_v55 = vld [vmem:[%s5067_s27 + $0xe8] sm:$0xff]  }
 0x1ed   : > { %v1202_v33 = vpop.f32.mrf.mxu1 }
 0x1ee   : > { %v1275_v57 = vpack.c.bf16 %v1254_v52, %v1253_v51  ;;  %v1203_v60 = vadd.f32 %v5216_v9, %v1202_v33  ;;  %v1259_v10 = vmax.f32 %v1211_v63, 0.0  ;;  %v5318_v42 = vpop.f32.mrf.mxu0  ;;  %v4834_v51 = vld [vmem:[%s5839_s10] sm:$0xff]  }
 0x1ef   : > { %v4467_v59 = vpop.f32.mrf.mxu1 }
 0x1f0   : > { %v1214_v62 = vadd.f32 %v4467_v59, %v5216_v9  ;;  %4500 = vmatprep.mubr.msk.bf16.mxu1 %vm1023_vm3, %v1275_v57  ;;  %v1257_v7 = vmax.f32 %v1203_v60, 0.0  ;;  %v5322_v43 = vpop.f32.mrf.mxu0 }
 0x1f1   : > { %v1205_v0 = vpop.f32.mrf.mxu1  ;;  %4501 = vmatmul.mubr.msk.bf16.gmra.mxu1 %vm1023_vm3, %v1276_v58  ;;  %v4831_v58 = vld [vmem:[%s5067_s27 + $0xf0] sm:$0xff]  }
 0x1f2   : > { %v1206_v34 = vadd.f32 %v5216_v9, %v1205_v0  ;;  %v1260_v1 = vmax.f32 %v1214_v62, 0.0  ;;  %v5329_v40 = vpop.f32.mrf.mxu0 }
 0x1f3   : > { %v4470_v2 = vpop.f32.mrf.mxu1 }
 0x1f4   : > { %v1258_v36 = vmax.f32 %v1206_v34, 0.0  ;;  %v1278_v15 = vpack.c.bf16 %v1260_v1, %v1259_v10  ;;  %v1227_v21 = vadd.f32 %v4470_v2, %v5216_v9  ;;  %v5337_v50 = vpop.f32.mrf.mxu0 }
 0x1f5   : > { %v1218_v11 = vpop.f32.mrf.mxu1 }
 0x1f6   : > { %v1277_v13 = vpack.c.bf16 %v1258_v36, %v1257_v7  ;;  %v1219_v19 = vadd.f32 %v5216_v9, %v1218_v11  ;;  %v1263_v29 = vmax.f32 %v1227_v21, 0.0  ;;  %v5344_v52 = vpop.f32.mrf.mxu0 }
 0x1f7   : > { %v4471_v18 = vpop.f32.mrf.mxu1 }
 0x1f8   : > { %v1230_v20 = vadd.f32 %v4471_v18, %v5216_v9  ;;  %4504 = vmatprep.mubr.msk.bf16.mxu1 %vm1023_vm3, %v1277_v13  ;;  %v1261_v27 = vmax.f32 %v1219_v19, 0.0  ;;  %v5353_v33 = vpop.f32.mrf.mxu0 }
 0x1f9   : > { %v1221_v22 = vpop.f32.mrf.mxu1  ;;  %4505 = vmatmul.mubr.msk.bf16.gmra.mxu1 %vm1023_vm3, %v1278_v15 }
 0x1fa   : > { %v1222_v25 = vadd.f32 %v5216_v9, %v1221_v22  ;;  %v1264_v26 = vmax.f32 %v1230_v20, 0.0  ;;  %v4824_v9 = vld [vmem:[%s5067_s27 + $0xc8] sm:$0xff]   ;;  %v5361_v60 = vpop.f32.mrf.mxu0 }
 0x1fc   : > { %v1262_v28 = vmax.f32 %v1222_v25, 0.0  ;;  %v1280_v41 = vpack.c.bf16 %v1264_v26, %v1263_v29  ;;  %v5369_v1 = vpop.f32.mrf.mxu0 }
 0x1fe   : > { %v1279_v31 = vpack.c.bf16 %v1262_v28, %v1261_v27  ;;  %v5376_v11 = vpop.f32.mrf.mxu0 }
 0x200   : > { %4508 = vmatprep.mubr.msk.bf16.mxu1 %vm1023_vm3, %v1279_v31  ;;  %v5383_v18 = vpop.f32.mrf.mxu0 }
 0x201   : > { %4509 = vmatmul.mubr.msk.bf16.gmra.mxu1 %vm1023_vm3, %v1280_v41 }
 0x202   : > { %4574 = vmatprep.mubr.msk.bf16.mxu1 %vm719_vm2, %v4823_v35  ;;  %v5390_v25 = vpop.f32.mrf.mxu0 }
 0x204   : > { %v2204_v28 = vpop.f32.mrf.mxu0 }
 0x206   : > { %v5401_v35 = vpop.f32.mrf.mxu0 }
 0x209   : > { %4575 = vmatmul.mubr.msk.bf16.vlgmr.msra.gmra.mxu1 %vm719_vm2, %v4824_v9 }
 0x20a   : > { %4578 = vmatprep.mubr.msk.bf16.mxu1 %vm719_vm2, %v4825_v44  ;;  %4591 = vmatpush3.bf16.msra.mxu1 %v5271_v38  ;;  %v5350_v38 = vld [vmem:[%s5838_s9] ss:$0 sm:$0xff] }
 0x20b   : > { %4592 = vmatprep.subr.bf16.mxu1 %v4830_v45  ;;  %v2090_v57 = vadd.f32 %v5350_v38, %v5207_v4  ;;  %v2093_v59 = vadd.f32 %v5350_v38, %v5211_v8  ;;  %v2098_v0 = vadd.f32 %v5205_v3, %v5350_v38  ;;  %v2101_v34 = vadd.f32 %v5209_v5, %v5350_v38  ;;  %v4832_v4 = vld [vmem:[%s5067_s27 + $0xf8] sm:$0xff]  }
 0x20c   : > { %v2106_v8 = vadd.f32 %v5350_v38, %v5224_v24  ;;  %v2109_v7 = vadd.f32 %v5350_v38, %v5236_v46  ;;  %v2114_v15 = vadd.f32 %v5221_v16, %v5350_v38  ;;  %v2117_v24 = vadd.f32 %v5231_v32, %v5350_v38 }
 0x20d   : > { %v2344_v62 = vmax.f32 %v2090_v57, 0.0  ;;  %v2345_v63 = vmax.f32 %v2093_v59, 0.0  ;;  %v2346_v36 = vmax.f32 %v2098_v0, 0.0  ;;  %v2347_v10 = vmax.f32 %v2101_v34, 0.0 }
 0x20e   : > { %4593 = vmatpush3.bf16.msra.mxu1 %v4830_v45  ;;  %v2348_v3 = vmax.f32 %v2106_v8, 0.0  ;;  %v2349_v5 = vmax.f32 %v2109_v7, 0.0  ;;  %v2122_v19 = vadd.f32 %v5350_v38, %v5250_v61  ;;  %v2125_v20 = vadd.f32 %v5350_v38, %v5264_v17  ;;  %v2217_v45 = vpop.f32.mrf.mxu0 }
 0x20f   : > { %4594 = vmatprep.subr.bf16.mxu1 %v4833_v47  ;;  %v2408_v2 = vpack.c.bf16 %v2345_v63, %v2344_v62  ;;  %v2409_v13 = vpack.c.bf16 %v2347_v10, %v2346_v36  ;;  %v2350_v21 = vmax.f32 %v2114_v15, 0.0  ;;  %v2351_v22 = vmax.f32 %v2117_v24, 0.0 }
 0x210   : > { %v2410_v46 = vpack.c.bf16 %v2349_v5, %v2348_v3  ;;  %v2352_v26 = vmax.f32 %v2122_v19, 0.0  ;;  %v2353_v16 = vmax.f32 %v2125_v20, 0.0  ;;  %v2130_v27 = vadd.f32 %v5245_v54, %v5350_v38 }
 0x211   : > { %4579 = vmatmul.mubr.msk.bf16.gmra.mxu1 %vm719_vm2, %v4826_v49  ;;  %v2411_v32 = vpack.c.bf16 %v2351_v22, %v2350_v21  ;;  %v2133_v61 = vadd.f32 %v5259_v6, %v5350_v38  ;;  %v2138_v17 = vadd.f32 %v5350_v38, %v5283_v37  ;;  %v2141_v31 = vadd.f32 %v5350_v38, %v5293_v56 }
 0x212   : > { %4582 = vmatprep.mubr.msk.bf16.mxu1 %vm719_vm2, %v4827_v14  ;;  %4595 = vmatpush3.bf16.msra.mxu1 %v4833_v47  ;;  %v2412_v29 = vpack.c.bf16 %v2353_v16, %v2352_v26  ;;  %v2354_v41 = vmax.f32 %v2130_v27, 0.0  ;;  %v2146_v47 = vadd.f32 %v5278_v39, %v5350_v38  ;;  %v2149_v37 = vadd.f32 %v5290_v48, %v5350_v38 }
 0x213   : > { %4596 = vmatprep.subr.bf16.mxu1 %v4834_v51  ;;  %v2355_v9 = vmax.f32 %v2133_v61, 0.0  ;;  %v2356_v44 = vmax.f32 %v2138_v17, 0.0  ;;  %v2357_v54 = vmax.f32 %v2141_v31, 0.0  ;;  %v2154_v56 = vadd.f32 %v5350_v38, %v5303_v12 }
 0x214   : > { %v2157_v14 = vadd.f32 %v5350_v38, %v5313_v30  ;;  %v2359_v57 = vmax.f32 %v2149_v37, 0.0  ;;  %v2162_v48 = vadd.f32 %v5300_v53, %v5350_v38  ;;  %v2165_v12 = vadd.f32 %v5310_v23, %v5350_v38 }
 0x215   : > { %v2413_v6 = vpack.c.bf16 %v2355_v9, %v2354_v41  ;;  %v2414_v49 = vpack.c.bf16 %v2357_v54, %v2356_v44  ;;  %v2170_v30 = vadd.f32 %v5350_v38, %v5322_v43  ;;  %v2173_v0 = vadd.f32 %v5350_v38, %v5337_v50 }
 0x216   : > { %4597 = vmatpush3.bf16.msra.mxu1 %v4834_v51  ;;  %v5413_v51 = vpop.f32.mrf.mxu0  ;;  %v2361_v39 = vmax.f32 %v2157_v14, 0.0  ;;  %v2178_v23 = vadd.f32 %v5318_v42, %v5350_v38  ;;  %v2181_v43 = vadd.f32 %v5329_v40, %v5350_v38  ;;  %v2186_v50 = vadd.f32 %v5350_v38, %v5353_v33 }
 0x217   : > { %v2364_v8 = vmax.f32 %v2170_v30, 0.0  ;;  %v2365_v53 = vmax.f32 %v2173_v0, 0.0  ;;  %v2189_v3 = vadd.f32 %v5350_v38, %v5369_v1  ;;  %v2194_v40 = vadd.f32 %v5344_v52, %v5350_v38  ;;  %v4837_v0 = vld [vmem:[%s5841_s12 + $0x18] sm:$0xff]  }
 0x218   : > { %v2220_v59 = vpop.f32.mrf.mxu0  ;;  %v2367_v15 = vmax.f32 %v2181_v43, 0.0  ;;  %v2368_v24 = vmax.f32 %v2186_v50, 0.0  ;;  %v2197_v33 = vadd.f32 %v5361_v60, %v5350_v38  ;;  %v2202_v1 = vadd.f32 %v5350_v38, %v5383_v18 }
 0x219   : > { %4583 = vmatmul.mubr.msk.bf16.gmra.mxu1 %vm719_vm2, %v4828_v55  ;;  %v2358_v55 = vmax.f32 %v2146_v47, 0.0  ;;  %v2418_v10 = vpack.c.bf16 %v2365_v53, %v2364_v8  ;;  %v2205_v21 = vadd.f32 %v5350_v38, %v2204_v28  ;;  %v2370_v26 = vmax.f32 %v2194_v40, 0.0 }
 0x21a   : > { %4586 = vmatprep.mubr.msk.bf16.mxu1 %vm719_vm2, %v4831_v58  ;;  %v2360_v58 = vmax.f32 %v2154_v56, 0.0  ;;  %v5425_v34 = vpop.f32.mrf.mxu0  ;;  %v2371_v16 = vmax.f32 %v2197_v33, 0.0  ;;  %v2210_v60 = vadd.f32 %v5376_v11, %v5350_v38  ;;  %v2218_v28 = vadd.f32 %v5350_v38, %v2217_v45  ;;  %v4835_v56 = vld [vmem:[%s5841_s12 + $0x28] sm:$0xff]  }
 0x21b   : > { %v2415_v62 = vpack.c.bf16 %v2359_v57, %v2358_v55  ;;  %v2373_v27 = vmax.f32 %v2205_v21, 0.0  ;;  %v2221_v17 = vadd.f32 %v5350_v38, %v2220_v59  ;;  %v2226_v11 = vadd.f32 %v5401_v35, %v5350_v38  ;;  %4662 = vmatprep.subr.bf16.mxu0 %v4835_v56 }
 0x21c   : > { %v2416_v63 = vpack.c.bf16 %v2361_v39, %v2360_v58  ;;  %v2233_v7 = vpop.f32.mrf.mxu0  ;;  %v2421_v52 = vpack.c.bf16 %v2371_v16, %v2370_v26  ;;  %v2374_v41 = vmax.f32 %v2210_v60, 0.0  ;;  %v2376_v44 = vmax.f32 %v2218_v28, 0.0  ;;  %4663 = vmatpush3.bf16.msra.mxu0 %v4835_v56  ;;  %v4836_v58 = vld [vmem:[%s5841_s12 + $0x20] sm:$0xff]  }
 0x21d   : > { %v2377_v54 = vmax.f32 %v2221_v17, 0.0  ;;  %v2234_v37 = vadd.f32 %v5350_v38, %v2233_v7  ;;  %v2378_v55 = vmax.f32 %v2226_v11, 0.0  ;;  %4664 = vmatprep.subr.bf16.mxu0 %v4836_v58  ;;  %v4838_v7 = vld [vmem:[%s5841_s12 + $0x10] sm:$0xff]  }
 0x21e   : > { %v4565_v5 = vpop.f32.mrf.mxu0 }
 0x21f   : > { %v2424_v45 = vpack.c.bf16 %v2377_v54, %v2376_v44  ;;  %v2380_v35 = vmax.f32 %v2234_v37, 0.0 }
 0x220   : > { %v2236_v42 = vpop.f32.mrf.mxu0  ;;  %4665 = vmatpush3.bf16.msra.mxu0 %v4836_v58 }
 0x221   : > { %4587 = vmatmul.mubr.msk.bf16.gmra.mxu1 %vm719_vm2, %v4832_v4  ;;  %v2362_v4 = vmax.f32 %v2162_v48, 0.0  ;;  %v2245_v48 = vadd.f32 %v4565_v5, %v5350_v38  ;;  %4666 = vmatprep.subr.bf16.mxu0 %v4837_v0 }
 0x222   : > { %4598 = vmatprep.mubr.msk.bf16.mxu1 %vm1023_vm3, %v2408_v2  ;;  %v2363_v2 = vmax.f32 %v2165_v12, 0.0  ;;  %v4568_v22 = vpop.f32.mrf.mxu0 }
 0x223   : > { %v2383_v8 = vmax.f32 %v2245_v48, 0.0  ;;  %v2258_v43 = vadd.f32 %v4568_v22, %v5350_v38 }
 0x224   : > { %v2417_v36 = vpack.c.bf16 %v2363_v2, %v2362_v4  ;;  %v2249_v61 = vpop.f32.mrf.mxu0  ;;  %4667 = vmatpush3.bf16.msra.mxu0 %v4837_v0 }
 0x225   : > { %4668 = vmatprep.subr.bf16.mxu0 %v4838_v7 }
 0x226   : > { %v4569_v31 = vpop.f32.mrf.mxu0 }
 0x228   : > { %4669 = vmatpush3.bf16.msra.mxu0 %v4838_v7 }
 0x229   : > { %4599 = vmatmul.mubr.msk.bf16.vlgmr.msra.gmra.mxu1 %vm1023_vm3, %v2409_v13  ;;  %v2366_v13 = vmax.f32 %v2178_v23, 0.0 }
 0x22a   : > { %4602 = vmatprep.mubr.msk.bf16.mxu1 %vm1023_vm3, %v2410_v46  ;;  %v2369_v46 = vmax.f32 %v2189_v3, 0.0 }
 0x22b   : > { %v2419_v19 = vpack.c.bf16 %v2367_v15, %v2366_v13  ;;  %v4839_v13 = vld [vmem:[%s5841_s12 + $0x8] sm:$0xff]   ;;  %v2386_v15 = vmax.f32 %v2258_v43, 0.0 }
 0x22c   : > { %v2420_v20 = vpack.c.bf16 %v2369_v46, %v2368_v24  ;;  %4670 = vmatprep.subr.bf16.mxu0 %v4839_v13 }
 0x22d   : > { %4671 = vmatpush3.bf16.msra.mxu0 %v4839_v13 }
 0x231   : > { %4603 = vmatmul.mubr.msk.bf16.gmra.mxu1 %vm1023_vm3, %v2411_v32  ;;  %v2372_v32 = vmax.f32 %v2202_v1, 0.0 }
 0x232   : > { %4606 = vmatprep.mubr.msk.bf16.mxu1 %vm1023_vm3, %v2412_v29  ;;  %v2213_v29 = vadd.f32 %v5390_v25, %v5350_v38  ;;  %v2229_v25 = vadd.f32 %v5413_v51, %v5350_v38 }
 0x233   : > { %v2422_v18 = vpack.c.bf16 %v2373_v27, %v2372_v32  ;;  %v5503_v32 = vld [vmem:[%s5836_s7] ss:$0 sm:$0xff] }
 0x234   : > { %v2375_v9 = vmax.f32 %v2213_v29, 0.0  ;;  %v2379_v57 = vmax.f32 %v2229_v25, 0.0 }
 0x236   : > { %v2423_v47 = vpack.c.bf16 %v2375_v9, %v2374_v41  ;;  %v2425_v59 = vpack.c.bf16 %v2379_v57, %v2378_v55 }
 0x239   : > { %4607 = vmatmul.mubr.msk.bf16.gmra.mxu1 %vm1023_vm3, %v2413_v6  ;;  %v2252_v6 = vpop.f32.mrf.mxu0 }
 0x23a   : > { %4610 = vmatprep.mubr.msk.bf16.mxu1 %vm1023_vm3, %v2414_v49  ;;  %v2237_v49 = vadd.f32 %v5350_v38, %v2236_v42  ;;  %v2253_v30 = vadd.f32 %v5350_v38, %v2252_v6 }
 0x23b   : > { %v4572_v14 = vpop.f32.mrf.mxu0 }
 0x23c   : > { %v2381_v51 = vmax.f32 %v2237_v49, 0.0  ;;  %v2385_v53 = vmax.f32 %v2253_v30, 0.0  ;;  %v2274_v33 = vadd.f32 %v4572_v14, %v5350_v38 }
 0x23d   : > { %v2265_v39 = vpop.f32.mrf.mxu0 }
 0x23e   : > { %v2426_v12 = vpack.c.bf16 %v2381_v51, %v2380_v35  ;;  %v2266_v3 = vadd.f32 %v5350_v38, %v2265_v39  ;;  %v2390_v21 = vmax.f32 %v2274_v33, 0.0 }
 0x23f   : > { %v4573_v4 = vpop.f32.mrf.mxu0 }
 0x240   : > { %v2388_v46 = vmax.f32 %v2266_v3, 0.0 }
 0x241   : > { %4611 = vmatmul.mubr.msk.bf16.gmra.mxu1 %vm1023_vm3, %v2415_v62  ;;  %v2242_v62 = vadd.f32 %v5425_v34, %v5350_v38 }
 0x242   : > { %4614 = vmatprep.mubr.msk.bf16.mxu1 %vm1023_vm3, %v2416_v63  ;;  %v2250_v63 = vadd.f32 %v5350_v38, %v2249_v61 }
 0x243   : > { %v2382_v2 = vmax.f32 %v2242_v62, 0.0 }
 0x244   : > { %v2384_v34 = vmax.f32 %v2250_v63, 0.0 }
 0x245   : > { %v2427_v23 = vpack.c.bf16 %v2383_v8, %v2382_v2 }
 0x246   : > { %v2428_v50 = vpack.c.bf16 %v2385_v53, %v2384_v34 }
 0x249   : > { %4615 = vmatmul.mubr.msk.bf16.gmra.mxu1 %vm1023_vm3, %v2417_v36  ;;  %v2268_v36 = vpop.f32.mrf.mxu0 }
 0x24a   : > { %4618 = vmatprep.mubr.msk.bf16.mxu1 %vm1023_vm3, %v2418_v10  ;;  %v2261_v10 = vadd.f32 %v4569_v31, %v5350_v38  ;;  %v2269_v5 = vadd.f32 %v5350_v38, %v2268_v36 }
 0x24c   : > { %v2387_v24 = vmax.f32 %v2261_v10, 0.0  ;;  %v2389_v42 = vmax.f32 %v2269_v5, 0.0 }
 0x24e   : > { %v2429_v40 = vpack.c.bf16 %v2387_v24, %v2386_v15  ;;  %v2430_v1 = vpack.c.bf16 %v2389_v42, %v2388_v46 }
 0x251   : > { %4619 = vmatmul.mubr.msk.bf16.gmra.mxu1 %vm1023_vm3, %v2419_v19  ;;  %v4840_v19 = vld [vmem:[%s5841_s12] sm:$0xff]  }
 0x252   : > { %4622 = vmatprep.mubr.msk.bf16.mxu1 %vm1023_vm3, %v2420_v20  ;;  %4672 = vmatprep.subr.bf16.mxu0 %v4840_v19  ;;  %v2277_v20 = vadd.f32 %v4573_v4, %v5350_v38 }
 0x253   : > { %4673 = vmatpush3.bf16.msra.mxu0 %v4840_v19 }
 0x254   : > { %v2391_v22 = vmax.f32 %v2277_v20, 0.0 }
 0x256   : > { %v2431_v26 = vpack.c.bf16 %v2391_v22, %v2390_v21 }
 0x259   : > { %4623 = vmatmul.mubr.msk.bf16.gmra.mxu1 %vm1023_vm3, %v2421_v52 }
 0x25a   : > { %4626 = vmatprep.mubr.msk.bf16.mxu1 %vm1023_vm3, %v2422_v18 }
 0x261   : > { %4627 = vmatmul.mubr.msk.bf16.gmra.mxu1 %vm1023_vm3, %v2423_v47 }
 0x262   : > { %4630 = vmatprep.mubr.msk.bf16.mxu1 %vm1023_vm3, %v2424_v45 }
 0x269   : > { %4631 = vmatmul.mubr.msk.bf16.gmra.mxu1 %vm1023_vm3, %v2425_v59 }
 0x26a   : > { %4634 = vmatprep.mubr.msk.bf16.mxu1 %vm1023_vm3, %v2426_v12 }
 0x271   : > { %4635 = vmatmul.mubr.msk.bf16.gmra.mxu1 %vm1023_vm3, %v2427_v23 }
 0x272   : > { %4638 = vmatprep.mubr.msk.bf16.mxu1 %vm1023_vm3, %v2428_v50 }
 0x279   : > { %4639 = vmatmul.mubr.msk.bf16.gmra.mxu1 %vm1023_vm3, %v2429_v40 }
 0x27a   : > { %4642 = vmatprep.mubr.msk.bf16.mxu1 %vm1023_vm3, %v2430_v1 }
 0x281   : > { %4643 = vmatmul.mubr.msk.bf16.gmra.mxu1 %vm1023_vm3, %v2431_v26 }
 0x289   : > { %v4482_v16 = vpop.f32.mrf.mxu1 }
 0x28a   : > { %v1411_v61 = vadd.f32 %v4482_v16, %v5503_v32 }
 0x28b   : > { %v1402_v27 = vpop.f32.mrf.mxu1 }
 0x28c   : > { %v1403_v60 = vadd.f32 %v5503_v32, %v1402_v27  ;;  %v1531_v28 = vmax.f32 %v1411_v61, 0.0 }
 0x28d   : > { %v4483_v52 = vpop.f32.mrf.mxu1 }
 0x28e   : > { %v1414_v29 = vadd.f32 %v4483_v52, %v5503_v32  ;;  %v1529_v9 = vmax.f32 %v1403_v60, 0.0 }
 0x28f   : > { %v1405_v18 = vpop.f32.mrf.mxu1 }
 0x290   : > { %v1532_v17 = vmax.f32 %v1414_v29, 0.0  ;;  %v1406_v31 = vadd.f32 %v5503_v32, %v1405_v18 }
 0x291   : > { %v4486_v41 = vpop.f32.mrf.mxu1 }
 0x292   : > { %v1568_v44 = vmax.f32 %v1531_v28, %v1532_v17  ;;  %v1530_v54 = vmax.f32 %v1406_v31, 0.0  ;;  %v1427_v6 = vadd.f32 %v4486_v41, %v5503_v32 }
 0x293   : > { %v1418_v47 = vpop.f32.mrf.mxu1 }
 0x294   : > { %v1569_v11 = vrot.slane %v1568_v44, 4  ;;  %v1561_v25 = vmax.f32 %v1529_v9, %v1530_v54  ;;  %v1419_v45 = vadd.f32 %v5503_v32, %v1418_v47  ;;  %v1535_v55 = vmax.f32 %v1427_v6, 0.0 }
 0x295   : > { %v4487_v37 = vpop.f32.mrf.mxu1 }
 0x296   : > { %v1570_v49 = vmax.f32 %v1568_v44, %v1569_v11  ;;  %v1562_v56 = vrot.slane %v1561_v25, 4  ;;  %v1430_v14 = vadd.f32 %v4487_v37, %v5503_v32  ;;  %v1533_v59 = vmax.f32 %v1419_v45, 0.0 }
 0x297   : > { %v1421_v57 = vpop.f32.mrf.mxu1 }
 0x298   : > { %v1571_v35 = vrot.slane %v1570_v49, 2  ;;  %v1563_v51 = vmax.f32 %v1561_v25, %v1562_v56  ;;  %v1536_v58 = vmax.f32 %v1430_v14, 0.0  ;;  %v1422_v39 = vadd.f32 %v5503_v32, %v1421_v57 }
 0x299   : > { %v4490_v62 = vpop.f32.mrf.mxu1 }
 0x29a   : > { %v1572_v48 = vmax.f32 %v1570_v49, %v1571_v35  ;;  %v1564_v12 = vrot.slane %v1563_v51, 2  ;;  %v1582_v63 = vmax.f32 %v1535_v55, %v1536_v58  ;;  %v1534_v30 = vmax.f32 %v1422_v39, 0.0 }
 0x29b   : > { %v1434_v0 = vpop.f32.mrf.mxu1  ;;  %v1443_v53 = vadd.f32 %v4490_v62, %v5503_v32 }
 0x29c   : > { %v1573_v4 = vrot.slane %v1572_v48, 1  ;;  %v1565_v2 = vmax.f32 %v1563_v51, %v1564_v12  ;;  %v1583_v8 = vrot.slane %v1582_v63, 4  ;;  %v1575_v34 = vmax.f32 %v1533_v59, %v1534_v30 }
 0x29d   : > { %v1435_v7 = vadd.f32 %v5503_v32, %v1434_v0  ;;  %v4491_v36 = vpop.f32.mrf.mxu1  ;;  %v1539_v42 = vmax.f32 %v1443_v53, 0.0 }
 0x29e   : > { %v1566_v23 = vrot.slane %v1565_v2, 1  ;;  %v1584_v43 = vmax.f32 %v1582_v63, %v1583_v8  ;;  %v1576_v10 = vrot.slane %v1575_v34, 4  ;;  %v1574_v50 = vmax.f32 %v1572_v48, %v1573_v4 }
 0x29f   : > { %v1446_v3 = vadd.f32 %v4491_v36, %v5503_v32  ;;  %v1437_v5 = vpop.f32.mrf.mxu1  ;;  %v1537_v19 = vmax.f32 %v1435_v7, 0.0 }
 0x2a0   : > { %v1567_v13 = vmax.f32 %v1565_v2, %v1566_v23  ;;  %v1585_v15 = vrot.slane %v1584_v43, 2  ;;  %v1577_v24 = vmax.f32 %v1575_v34, %v1576_v10  ;;  %v1438_v46 = vadd.f32 %v5503_v32, %v1437_v5 }
 0x2a1   : > { %v1540_v40 = vmax.f32 %v1446_v3, 0.0  ;;  %v4494_v33 = vpop.f32.mrf.mxu1 }
 0x2a2   : > { %v3626_v20 = vsel %vm3625_vm4, %v1574_v50, %v1567_v13  ;;  %v1586_v1 = vmax.f32 %v1584_v43, %v1585_v15  ;;  %v1578_v21 = vrot.slane %v1577_v24, 2  ;;  %v1538_v22 = vmax.f32 %v1438_v46, 0.0 }
 0x2a3   : > { %v1596_v26 = vmax.f32 %v1539_v42, %v1540_v40  ;;  %v1450_v16 = vpop.f32.mrf.mxu1  ;;  %v1459_v29 = vadd.f32 %v4494_v33, %v5503_v32 }
 0x2a4   : > { %v1579_v27 = vmax.f32 %v1577_v24, %v1578_v21  ;;  %v1589_v61 = vmax.f32 %v1537_v19, %v1538_v22  ;;  %v1587_v52 = vrot.slane %v1586_v1, 1  ;;  %v1451_v31 = vadd.f32 %v5503_v32, %v1450_v16 }
 0x2a5   : > { %v1597_v60 = vrot.slane %v1596_v26, 4  ;;  %v4495_v18 = vpop.f32.mrf.mxu1  ;;  %v1543_v45 = vmax.f32 %v1459_v29, 0.0 }
 0x2a6   : > { %v1580_v28 = vrot.slane %v1579_v27, 1  ;;  %v1590_v17 = vrot.slane %v1589_v61, 4  ;;  %v1462_v9 = vadd.f32 %v4495_v18, %v5503_v32  ;;  %v1588_v11 = vmax.f32 %v1586_v1, %v1587_v52 }
 0x2a7   : > { %v1598_v41 = vmax.f32 %v1596_v26, %v1597_v60  ;;  %v1453_v44 = vpop.f32.mrf.mxu1  ;;  %v1541_v55 = vmax.f32 %v1451_v31, 0.0 }
 0x2a8   : > { %v1581_v54 = vmax.f32 %v1579_v27, %v1580_v28  ;;  %v1591_v6 = vmax.f32 %v1589_v61, %v1590_v17  ;;  %v1454_v47 = vadd.f32 %v5503_v32, %v1453_v44  ;;  %v1544_v37 = vmax.f32 %v1462_v9, 0.0 }
 0x2a9   : > { %v1599_v25 = vrot.slane %v1598_v41, 2  ;;  %v4498_v49 = vpop.f32.mrf.mxu1 }
 0x2aa   : > { %v3628_v56 = vsel %vm3627_vm5, %v1581_v54, %v3626_v20  ;;  %v1592_v14 = vrot.slane %v1591_v6, 2  ;;  %v1542_v57 = vmax.f32 %v1454_v47, 0.0  ;;  %v1610_v58 = vmax.f32 %v1543_v45, %v1544_v37 }
 0x2ab   : > { %v1600_v35 = vmax.f32 %v1598_v41, %v1599_v25  ;;  %v3630_v51 = vsel %vm3629_vm6, %v1588_v11, %v3628_v56  ;;  %v1475_v39 = vadd.f32 %v4498_v49, %v5503_v32  ;;  %v1466_v59 = vpop.f32.mrf.mxu1 }
 0x2ac   : > { %v1593_v62 = vmax.f32 %v1591_v6, %v1592_v14  ;;  %v1603_v48 = vmax.f32 %v1541_v55, %v1542_v57  ;;  %v1611_v63 = vrot.slane %v1610_v58, 4  ;;  %v1467_v30 = vadd.f32 %v5503_v32, %v1466_v59 }
 0x2ad   : > { %v1601_v12 = vrot.slane %v1600_v35, 1  ;;  %v4499_v0 = vpop.f32.mrf.mxu1  ;;  %v1547_v53 = vmax.f32 %v1475_v39, 0.0 }
 0x2ae   : > { %v1594_v4 = vrot.slane %v1593_v62, 1  ;;  %v1604_v2 = vrot.slane %v1603_v48, 4  ;;  %v1478_v8 = vadd.f32 %v4499_v0, %v5503_v32  ;;  %v1612_v34 = vmax.f32 %v1610_v58, %v1611_v63 }
 0x2af   : > { %v1469_v7 = vpop.f32.mrf.mxu1  ;;  %v1602_v50 = vmax.f32 %v1600_v35, %v1601_v12  ;;  %v1545_v5 = vmax.f32 %v1467_v30, 0.0 }
 0x2b0   : > { %v1595_v36 = vmax.f32 %v1593_v62, %v1594_v4  ;;  %v1605_v23 = vmax.f32 %v1603_v48, %v1604_v2  ;;  %v1548_v43 = vmax.f32 %v1478_v8, 0.0  ;;  %v1470_v10 = vadd.f32 %v5503_v32, %v1469_v7 }
 0x2b1   : > { %v1613_v3 = vrot.slane %v1612_v34, 2  ;;  %v4502_v13 = vpop.f32.mrf.mxu1 }
 0x2b2   : > { %v3632_v15 = vsel %vm3631_vm7, %v1595_v36, %v3630_v51  ;;  %v1606_v24 = vrot.slane %v1605_v23, 2  ;;  %v1624_v46 = vmax.f32 %v1547_v53, %v1548_v43  ;;  %v1546_v42 = vmax.f32 %v1470_v10, 0.0 }
 0x2b3   : > { %v1614_v19 = vmax.f32 %v1612_v34, %v1613_v3  ;;  %v1482_v40 = vpop.f32.mrf.mxu1  ;;  %v3634_v33 = vsel %vm3633_vm8, %v1602_v50, %v3632_v15  ;;  %v1491_v22 = vadd.f32 %v4502_v13, %v5503_v32 }
 0x2b4   : > { %v1607_v20 = vmax.f32 %v1605_v23, %v1606_v24  ;;  %v1625_v1 = vrot.slane %v1624_v46, 4  ;;  %v1617_v21 = vmax.f32 %v1545_v5, %v1546_v42  ;;  %v1483_v52 = vadd.f32 %v5503_v32, %v1482_v40 }
 0x2b5   : > { %v4503_v26 = vpop.f32.mrf.mxu1  ;;  %v1615_v60 = vrot.slane %v1614_v19, 1  ;;  %v1551_v9 = vmax.f32 %v1491_v22, 0.0 }
 0x2b6   : > { %v1608_v16 = vrot.slane %v1607_v20, 1  ;;  %v1626_v27 = vmax.f32 %v1624_v46, %v1625_v1  ;;  %v1618_v61 = vrot.slane %v1617_v21, 4  ;;  %v1494_v29 = vadd.f32 %v4503_v26, %v5503_v32 }
 0x2b7   : > { %v1485_v18 = vpop.f32.mrf.mxu1  ;;  %v1549_v11 = vmax.f32 %v1483_v52, 0.0  ;;  %v1616_v45 = vmax.f32 %v1614_v19, %v1615_v60 }
 0x2b8   : > { %v1609_v28 = vmax.f32 %v1607_v20, %v1608_v16  ;;  %v1627_v17 = vrot.slane %v1626_v27, 2  ;;  %v1619_v31 = vmax.f32 %v1617_v21, %v1618_v61  ;;  %v1486_v41 = vadd.f32 %v5503_v32, %v1485_v18 }
 0x2b9   : > { %v1552_v44 = vmax.f32 %v1494_v29, 0.0  ;;  %v4506_v54 = vpop.f32.mrf.mxu1 }
 0x2ba   : > { %v1628_v6 = vmax.f32 %v1626_v27, %v1627_v17  ;;  %v1620_v47 = vrot.slane %v1619_v31, 2  ;;  %v1550_v25 = vmax.f32 %v1486_v41, 0.0  ;;  %v1507_v49 = vadd.f32 %v4506_v54, %v5503_v32 }
 0x2bb   : > { %v1638_v37 = vmax.f32 %v1551_v9, %v1552_v44  ;;  %v1498_v56 = vpop.f32.mrf.mxu1  ;;  %v3636_v14 = vsel %vm3635_vm9, %v1609_v28, %v3634_v33 }
 0x2bc   : > { %v1629_v55 = vrot.slane %v1628_v6, 1  ;;  %v1621_v57 = vmax.f32 %v1619_v31, %v1620_v47  ;;  %v1631_v35 = vmax.f32 %v1549_v11, %v1550_v25  ;;  %v1499_v58 = vadd.f32 %v5503_v32, %v1498_v56 }
 0x2bd   : > { %v1639_v51 = vrot.slane %v1638_v37, 4  ;;  %v4507_v39 = vpop.f32.mrf.mxu1  ;;  %v5538_v59 = vsel %vm3637_vm10, %v1616_v45, %v3636_v14  ;;  %v1555_v0 = vmax.f32 %v1507_v49, 0.0 }
 0x2be   : > { %v1622_v62 = vrot.slane %v1621_v57, 1  ;;  %v1632_v48 = vrot.slane %v1631_v35, 4  ;;  %v1510_v12 = vadd.f32 %v4507_v39, %v5503_v32  ;;  %v1630_v63 = vmax.f32 %v1628_v6, %v1629_v55 }
 0x2bf   : > { %v1640_v30 = vmax.f32 %v1638_v37, %v1639_v51  ;;  %v1501_v4 = vpop.f32.mrf.mxu1  ;;  %v1553_v36 = vmax.f32 %v1499_v58, 0.0 }
 0x2c0   : > { %v1623_v2 = vmax.f32 %v1621_v57, %v1622_v62  ;;  %v1633_v8 = vmax.f32 %v1631_v35, %v1632_v48  ;;  %v1556_v34 = vmax.f32 %v1510_v12, 0.0  ;;  %v1502_v53 = vadd.f32 %v5503_v32, %v1501_v4 }
 0x2c1   : > { %v1641_v7 = vrot.slane %v1640_v30, 2  ;;  %v4510_v23 = vpop.f32.mrf.mxu1 }
 0x2c2   : > { %v3639_v43 = vsel %vm3625_vm4, %v1630_v63, %v1623_v2  ;;  %v1634_v10 = vrot.slane %v1633_v8, 2  ;;  %v1652_v50 = vmax.f32 %v1555_v0, %v1556_v34  ;;  %v1554_v3 = vmax.f32 %v1502_v53, 0.0 }
 0x2c3   : > { %v1642_v5 = vmax.f32 %v1640_v30, %v1641_v7  ;;  %v1514_v13 = vpop.f32.mrf.mxu1  ;;  %v1523_v19 = vadd.f32 %v4510_v23, %v5503_v32 }
 0x2c4   : > { %v1635_v15 = vmax.f32 %v1633_v8, %v1634_v10  ;;  %v1653_v24 = vrot.slane %v1652_v50, 4  ;;  %v1645_v46 = vmax.f32 %v1553_v36, %v1554_v3  ;;  %v1515_v40 = vadd.f32 %v5503_v32, %v1514_v13 }
 0x2c5   : > { %v1643_v42 = vrot.slane %v1642_v5, 1  ;;  %v4511_v33 = vpop.f32.mrf.mxu1  ;;  %v1559_v29 = vmax.f32 %v1523_v19, 0.0 }
 0x2c6   : > { %v1636_v20 = vrot.slane %v1635_v15, 1  ;;  %v1654_v1 = vmax.f32 %v1652_v50, %v1653_v24  ;;  %v1646_v21 = vrot.slane %v1645_v46, 4  ;;  %v1526_v22 = vadd.f32 %v4511_v33, %v5503_v32 }
 0x2c7   : > { %v1517_v26 = vpop.f32.mrf.mxu1  ;;  %v1644_v60 = vmax.f32 %v1642_v5, %v1643_v42  ;;  %v1557_v18 = vmax.f32 %v1515_v40, 0.0 }
 0x2c8   : > { %v1637_v16 = vmax.f32 %v1635_v15, %v1636_v20  ;;  %v1655_v27 = vrot.slane %v1654_v1, 2  ;;  %v1647_v61 = vmax.f32 %v1645_v46, %v1646_v21  ;;  %v1518_v52 = vadd.f32 %v5503_v32, %v1517_v26 }
 0x2c9   : > { %v1560_v28 = vmax.f32 %v1526_v22, 0.0  ;;  %v4576_v17 = vpop.f32.mrf.mxu1 }
 0x2ca   : > { %v3640_v31 = vsel %vm3627_vm5, %v1637_v16, %v3639_v43  ;;  %v1656_v41 = vmax.f32 %v1654_v1, %v1655_v27  ;;  %v1648_v9 = vrot.slane %v1647_v61, 2  ;;  %v1558_v44 = vmax.f32 %v1518_v52, 0.0 }
 0x2cb   : > { %v3641_v54 = vsel %vm3629_vm6, %v1644_v60, %v3640_v31  ;;  %v1666_v6 = vmax.f32 %v1559_v29, %v1560_v28  ;;  %v2281_v47 = vpop.f32.mrf.mxu1  ;;  %v2290_v57 = vadd.f32 %v4576_v17, %v5350_v38 }
 0x2cc   : > { %v1649_v11 = vmax.f32 %v1647_v61, %v1648_v9  ;;  %v1659_v25 = vmax.f32 %v1557_v18, %v1558_v44  ;;  %v1657_v45 = vrot.slane %v1656_v41, 1  ;;  %v2282_v14 = vadd.f32 %v5350_v38, %v2281_v47 }
 0x2cd   : > { %v1667_v37 = vrot.slane %v1666_v6, 4  ;;  %v4577_v49 = vpop.f32.mrf.mxu1  ;;  %v2394_v53 = vmax.f32 %v2290_v57, 0.0  ;;  %v5582_v57 = vld [vmem:[%s5840_s11] ss:$0 sm:$0xff] }
 0x2ce   : > { %v1650_v32 = vrot.slane %v1649_v11, 1  ;;  %v1660_v56 = vrot.slane %v1659_v25, 4  ;;  %v2293_v35 = vadd.f32 %v4577_v49, %v5350_v38  ;;  %v1658_v48 = vmax.f32 %v1656_v41, %v1657_v45 }
 0x2cf   : > { %v1668_v55 = vmax.f32 %v1666_v6, %v1667_v37  ;;  %v2284_v51 = vpop.f32.mrf.mxu1  ;;  %v2392_v2 = vmax.f32 %v2282_v14, 0.0 }
 0x2d0   : > { %v1651_v58 = vmax.f32 %v1649_v11, %v1650_v32  ;;  %v1661_v39 = vmax.f32 %v1659_v25, %v1660_v56  ;;  %v2285_v62 = vadd.f32 %v5350_v38, %v2284_v51  ;;  %v2395_v63 = vmax.f32 %v2293_v35, 0.0 }
 0x2d1   : > { %v1669_v12 = vrot.slane %v1668_v55, 2  ;;  %v4580_v30 = vpop.f32.mrf.mxu1 }
 0x2d2   : > { %v3642_v0 = vsel %vm3631_vm7, %v1651_v58, %v3641_v54  ;;  %v1662_v4 = vrot.slane %v1661_v39, 2  ;;  %v2393_v8 = vmax.f32 %v2285_v62, 0.0  ;;  %v2433_v50 = vpack.c.bf16 %v2395_v63, %v2394_v53 }
 0x2d3   : > { %v1670_v34 = vmax.f32 %v1668_v55, %v1669_v12  ;;  %v2297_v7 = vpop.f32.mrf.mxu1  ;;  %v3643_v36 = vsel %vm3633_vm8, %v1658_v48, %v3642_v0  ;;  %v2306_v24 = vadd.f32 %v4580_v30, %v5350_v38 }
 0x2d4   : > { %v1663_v23 = vmax.f32 %v1661_v39, %v1662_v4  ;;  %v2432_v43 = vpack.c.bf16 %v2393_v8, %v2392_v2  ;;  %v2298_v13 = vadd.f32 %v5350_v38, %v2297_v7 }
 0x2d5   : > { %v1671_v10 = vrot.slane %v1670_v34, 1  ;;  %v4581_v3 = vpop.f32.mrf.mxu1  ;;  %v2398_v26 = vmax.f32 %v2306_v24, 0.0 }
 0x2d6   : > { %v1664_v5 = vrot.slane %v1663_v23, 1  ;;  %v2309_v15 = vadd.f32 %v4581_v3, %v5350_v38  ;;  %4646 = vmatprep.mubr.msk.bf16.mxu1 %vm1023_vm3, %v2432_v43  ;;  %v2396_v1 = vmax.f32 %v2298_v13, 0.0 }
 0x2d7   : > { %v2300_v46 = vpop.f32.mrf.mxu1  ;;  %4647 = vmatmul.mubr.msk.bf16.gmra.mxu1 %vm1023_vm3, %v2433_v50  ;;  %v1672_v40 = vmax.f32 %v1670_v34, %v1671_v10 }
 0x2d8   : > { %v1665_v42 = vmax.f32 %v1663_v23, %v1664_v5  ;;  %v2301_v19 = vadd.f32 %v5350_v38, %v2300_v46  ;;  %v2399_v33 = vmax.f32 %v2309_v15, 0.0 }
 0x2d9   : > { %v4584_v20 = vpop.f32.mrf.mxu1 }
 0x2da   : > { %v2397_v21 = vmax.f32 %v2301_v19, 0.0  ;;  %v3644_v22 = vsel %vm3635_vm9, %v1665_v42, %v3643_v36  ;;  %v2435_v60 = vpack.c.bf16 %v2399_v33, %v2398_v26  ;;  %v2322_v17 = vadd.f32 %v4584_v20, %v5350_v38 }
 0x2db   : > { %v2313_v16 = vpop.f32.mrf.mxu1  ;;  %v5563_v27 = vsel %vm3637_vm10, %v1672_v40, %v3644_v22 }
 0x2dc   : > { %v2434_v61 = vpack.c.bf16 %v2397_v21, %v2396_v1  ;;  %v3680_v52 = vpack.c.bf16 %v5563_v27, %v5538_v59  ;;  %v2314_v18 = vadd.f32 %v5350_v38, %v2313_v16  ;;  %v2402_v47 = vmax.f32 %v2322_v17, 0.0 }
 0x2dd   : > { %v4585_v29 = vpop.f32.mrf.mxu1 }
 0x2de   : > { %v2325_v28 = vadd.f32 %v4585_v29, %v5350_v38  ;;  %4650 = vmatprep.mubr.msk.bf16.mxu1 %vm1023_vm3, %v2434_v61  ;;  %v2400_v54 = vmax.f32 %v2314_v18, 0.0 }
 0x2df   : > { %v2316_v31 = vpop.f32.mrf.mxu1  ;;  %4651 = vmatmul.mubr.msk.bf16.gmra.mxu1 %vm1023_vm3, %v2435_v60 }
 0x2e0   : > { %v2317_v41 = vadd.f32 %v5350_v38, %v2316_v31  ;;  %v2403_v9 = vmax.f32 %v2325_v28, 0.0 }
 0x2e1   : > { %v4588_v44 = vpop.f32.mrf.mxu1 }
 0x2e2   : > { %v2401_v6 = vmax.f32 %v2317_v41, 0.0  ;;  %v2437_v45 = vpack.c.bf16 %v2403_v9, %v2402_v47  ;;  %v2338_v56 = vadd.f32 %v4588_v44, %v5350_v38 }
 0x2e3   : > { %v2329_v11 = vpop.f32.mrf.mxu1 }
 0x2e4   : > { %v2436_v25 = vpack.c.bf16 %v2401_v6, %v2400_v54  ;;  %v2330_v49 = vadd.f32 %v5350_v38, %v2329_v11  ;;  %v2406_v62 = vmax.f32 %v2338_v56, 0.0 }
 0x2e5   : > { %v4589_v37 = vpop.f32.mrf.mxu1 }
 0x2e6   : > { %v2341_v32 = vadd.f32 %v4589_v37, %v5350_v38  ;;  %4654 = vmatprep.mubr.msk.bf16.mxu1 %vm1023_vm3, %v2436_v25  ;;  %v2404_v58 = vmax.f32 %v2330_v49, 0.0 }
 0x2e7   : > { %v2332_v14 = vpop.f32.mrf.mxu1  ;;  %4655 = vmatmul.mubr.msk.bf16.gmra.mxu1 %vm1023_vm3, %v2437_v45 }
 0x2e8   : > { %v2333_v55 = vadd.f32 %v5350_v38, %v2332_v14  ;;  %v2407_v35 = vmax.f32 %v2341_v32, 0.0 }
 0x2e9   : > { %v4600_v51 = vpop.f32.mrf.mxu1 }
 0x2ea   : > { %v2405_v39 = vmax.f32 %v2333_v55, 0.0  ;;  %v2618_v48 = vadd.f32 %v4600_v51, %v5582_v57  ;;  %v2439_v0 = vpack.c.bf16 %v2407_v35, %v2406_v62 }
 0x2eb   : > { %v2609_v12 = vpop.f32.mrf.mxu1 }
 0x2ec   : > { %v2438_v63 = vpack.c.bf16 %v2405_v39, %v2404_v58  ;;  %v2610_v30 = vadd.f32 %v5582_v57, %v2609_v12  ;;  %v2866_v2 = vmax.f32 %v2618_v48, 0.0 }
 0x2ed   : > { %v4601_v4 = vpop.f32.mrf.mxu1 }
 0x2ee   : > { %v2621_v38 = vadd.f32 %v4601_v4, %v5582_v57  ;;  %4658 = vmatprep.mubr.msk.bf16.mxu1 %vm1023_vm3, %v2438_v63  ;;  %v2864_v34 = vmax.f32 %v2610_v30, 0.0 }
 0x2ef   : > { %v2612_v8 = vpop.f32.mrf.mxu1  ;;  %4659 = vmatmul.mubr.msk.bf16.gmra.mxu1 %vm1023_vm3, %v2439_v0 }
 0x2f0   : > { %v2867_v53 = vmax.f32 %v2621_v38, 0.0  ;;  %v2613_v7 = vadd.f32 %v5582_v57, %v2612_v8 }
 0x2f1   : > { %v4604_v36 = vpop.f32.mrf.mxu1 }
 0x2f2   : > { %v2865_v23 = vmax.f32 %v2613_v7, 0.0  ;;  %v2929_v43 = vpack.c.bf16 %v2867_v53, %v2866_v2  ;;  %v2634_v10 = vadd.f32 %v4604_v36, %v5582_v57 }
 0x2f3   : > { %v2625_v50 = vpop.f32.mrf.mxu1 }
 0x2f4   : > { %v2928_v3 = vpack.c.bf16 %v2865_v23, %v2864_v34  ;;  %v2626_v5 = vadd.f32 %v5582_v57, %v2625_v50  ;;  %v2870_v24 = vmax.f32 %v2634_v10, 0.0 }
 0x2f5   : > { %v4605_v13 = vpop.f32.mrf.mxu1 }
 0x2f6   : > { %v2637_v15 = vadd.f32 %v4605_v13, %v5582_v57  ;;  %4674 = vmatprep.mubr.msk.bf16.mxu0 %vm3015_vm11, %v2928_v3  ;;  %v2868_v42 = vmax.f32 %v2626_v5, 0.0 }
 0x2f7   : > { %v2628_v46 = vpop.f32.mrf.mxu1  ;;  %4675 = vmatmul.mubr.msk.bf16.vlgmr.msra.gmra.mxu0 %vm3015_vm11, %v2929_v43 }
 0x2f8   : > { %v2871_v19 = vmax.f32 %v2637_v15, 0.0  ;;  %v2629_v40 = vadd.f32 %v5582_v57, %v2628_v46 }
 0x2f9   : > { %v4608_v33 = vpop.f32.mrf.mxu1 }
 0x2fa   : > { %v2869_v20 = vmax.f32 %v2629_v40, 0.0  ;;  %v2931_v1 = vpack.c.bf16 %v2871_v19, %v2870_v24  ;;  %v2650_v21 = vadd.f32 %v4608_v33, %v5582_v57 }
 0x2fb   : > { %v2641_v22 = vpop.f32.mrf.mxu1 }
 0x2fc   : > { %v2930_v26 = vpack.c.bf16 %v2869_v20, %v2868_v42  ;;  %v2642_v16 = vadd.f32 %v5582_v57, %v2641_v22  ;;  %v2874_v29 = vmax.f32 %v2650_v21, 0.0 }
 0x2fd   : > { %v4609_v61 = vpop.f32.mrf.mxu1 }
 0x2fe   : > { %v2653_v60 = vadd.f32 %v4609_v61, %v5582_v57  ;;  %4678 = vmatprep.mubr.msk.bf16.mxu0 %vm3015_vm11, %v2930_v26  ;;  %v2872_v28 = vmax.f32 %v2642_v16, 0.0 }
 0x2ff   : > { %v2644_v18 = vpop.f32.mrf.mxu1  ;;  %4679 = vmatmul.mubr.msk.bf16.gmra.mxu0 %vm3015_vm11, %v2931_v1 }
 0x300   : > { %v2875_v17 = vmax.f32 %v2653_v60, 0.0  ;;  %v2645_v31 = vadd.f32 %v5582_v57, %v2644_v18 }
 0x301   : > { %v4612_v41 = vpop.f32.mrf.mxu1 }
 0x302   : > { %v2873_v9 = vmax.f32 %v2645_v31, 0.0  ;;  %v2933_v44 = vpack.c.bf16 %v2875_v17, %v2874_v29  ;;  %v2666_v54 = vadd.f32 %v4612_v41, %v5582_v57 }
 0x303   : > { %v2657_v6 = vpop.f32.mrf.mxu1 }
 0x304   : > { %v2932_v47 = vpack.c.bf16 %v2873_v9, %v2872_v28  ;;  %v2658_v11 = vadd.f32 %v5582_v57, %v2657_v6  ;;  %v2878_v37 = vmax.f32 %v2666_v54, 0.0 }
 0x305   : > { %v4613_v25 = vpop.f32.mrf.mxu1 }
 0x306   : > { %v2669_v45 = vadd.f32 %v4613_v25, %v5582_v57  ;;  %4682 = vmatprep.mubr.msk.bf16.mxu0 %vm3015_vm11, %v2932_v47  ;;  %v2876_v32 = vmax.f32 %v2658_v11, 0.0 }
 0x307   : > { %v2660_v49 = vpop.f32.mrf.mxu1  ;;  %4683 = vmatmul.mubr.msk.bf16.gmra.mxu0 %vm3015_vm11, %v2933_v44 }
 0x308   : > { %v2879_v56 = vmax.f32 %v2669_v45, 0.0  ;;  %v2661_v14 = vadd.f32 %v5582_v57, %v2660_v49 }
 0x309   : > { %v4616_v55 = vpop.f32.mrf.mxu1 }
 0x30a   : > { %v2877_v35 = vmax.f32 %v2661_v14, 0.0  ;;  %v2935_v51 = vpack.c.bf16 %v2879_v56, %v2878_v37  ;;  %v2682_v58 = vadd.f32 %v4616_v55, %v5582_v57 }
 0x30b   : > { %v2673_v39 = vpop.f32.mrf.mxu1 }
 0x30c   : > { %v2934_v62 = vpack.c.bf16 %v2877_v35, %v2876_v32  ;;  %v2674_v48 = vadd.f32 %v5582_v57, %v2673_v39  ;;  %v2882_v30 = vmax.f32 %v2682_v58, 0.0 }
 0x30d   : > { %v4617_v12 = vpop.f32.mrf.mxu1 }
 0x30e   : > { %v2685_v63 = vadd.f32 %v4617_v12, %v5582_v57  ;;  %4686 = vmatprep.mubr.msk.bf16.mxu0 %vm3015_vm11, %v2934_v62  ;;  %v2880_v4 = vmax.f32 %v2674_v48, 0.0 }
 0x30f   : > { %v2676_v0 = vpop.f32.mrf.mxu1  ;;  %4687 = vmatmul.mubr.msk.bf16.gmra.mxu0 %vm3015_vm11, %v2935_v51 }
 0x310   : > { %v2883_v38 = vmax.f32 %v2685_v63, 0.0  ;;  %v2677_v2 = vadd.f32 %v5582_v57, %v2676_v0 }
 0x311   : > { %v4620_v8 = vpop.f32.mrf.mxu1 }
 0x312   : > { %v2881_v34 = vmax.f32 %v2677_v2, 0.0  ;;  %v2937_v53 = vpack.c.bf16 %v2883_v38, %v2882_v30  ;;  %v2698_v7 = vadd.f32 %v4620_v8, %v5582_v57 }
 0x313   : > { %v2689_v36 = vpop.f32.mrf.mxu1 }
 0x314   : > { %v2936_v23 = vpack.c.bf16 %v2881_v34, %v2880_v4  ;;  %v2690_v43 = vadd.f32 %v5582_v57, %v2689_v36  ;;  %v2886_v3 = vmax.f32 %v2698_v7, 0.0 }
 0x315   : > { %v4621_v10 = vpop.f32.mrf.mxu1 }
 0x316   : > { %v2701_v50 = vadd.f32 %v4621_v10, %v5582_v57  ;;  %4690 = vmatprep.mubr.msk.bf16.mxu0 %vm3015_vm11, %v2936_v23  ;;  %v2884_v13 = vmax.f32 %v2690_v43, 0.0 }
 0x317   : > { %v2692_v5 = vpop.f32.mrf.mxu1  ;;  %4691 = vmatmul.mubr.msk.bf16.gmra.mxu0 %vm3015_vm11, %v2937_v53 }
 0x318   : > { %v2887_v15 = vmax.f32 %v2701_v50, 0.0  ;;  %v2693_v24 = vadd.f32 %v5582_v57, %v2692_v5 }
 0x319   : > { %v4624_v46 = vpop.f32.mrf.mxu1 }
 0x31a   : > { %v2885_v42 = vmax.f32 %v2693_v24, 0.0  ;;  %v2939_v19 = vpack.c.bf16 %v2887_v15, %v2886_v3  ;;  %v2714_v40 = vadd.f32 %v4624_v46, %v5582_v57 }
 0x31b   : > { %v2705_v33 = vpop.f32.mrf.mxu1 }
 0x31c   : > { %v2938_v20 = vpack.c.bf16 %v2885_v42, %v2884_v13  ;;  %v2706_v1 = vadd.f32 %v5582_v57, %v2705_v33  ;;  %v2890_v26 = vmax.f32 %v2714_v40, 0.0 }
 0x31d   : > { %v4625_v21 = vpop.f32.mrf.mxu1 }
 0x31e   : > { %v2717_v22 = vadd.f32 %v4625_v21, %v5582_v57  ;;  %4694 = vmatprep.mubr.msk.bf16.mxu0 %vm3015_vm11, %v2938_v20  ;;  %v2888_v61 = vmax.f32 %v2706_v1, 0.0 }
 0x31f   : > { %v2708_v16 = vpop.f32.mrf.mxu1  ;;  %4695 = vmatmul.mubr.msk.bf16.gmra.mxu0 %vm3015_vm11, %v2939_v19 }
 0x320   : > { %v2891_v60 = vmax.f32 %v2717_v22, 0.0  ;;  %v2709_v29 = vadd.f32 %v5582_v57, %v2708_v16 }
 0x321   : > { %v4628_v18 = vpop.f32.mrf.mxu1 }
 0x322   : > { %v2889_v28 = vmax.f32 %v2709_v29, 0.0  ;;  %v2941_v17 = vpack.c.bf16 %v2891_v60, %v2890_v26  ;;  %v2730_v31 = vadd.f32 %v4628_v18, %v5582_v57 }
 0x323   : > { %v2721_v41 = vpop.f32.mrf.mxu1 }
 0x324   : > { %v2940_v9 = vpack.c.bf16 %v2889_v28, %v2888_v61  ;;  %v2722_v44 = vadd.f32 %v5582_v57, %v2721_v41  ;;  %v2894_v47 = vmax.f32 %v2730_v31, 0.0 }
 0x325   : > { %v4629_v54 = vpop.f32.mrf.mxu1 }
 0x326   : > { %v2733_v6 = vadd.f32 %v4629_v54, %v5582_v57  ;;  %4698 = vmatprep.mubr.msk.bf16.mxu0 %vm3015_vm11, %v2940_v9  ;;  %v2892_v25 = vmax.f32 %v2722_v44, 0.0 }
 0x327   : > { %v2724_v11 = vpop.f32.mrf.mxu1  ;;  %4699 = vmatmul.mubr.msk.bf16.gmra.mxu0 %vm3015_vm11, %v2941_v17 }
 0x328   : > { %v2895_v45 = vmax.f32 %v2733_v6, 0.0  ;;  %v2725_v37 = vadd.f32 %v5582_v57, %v2724_v11 }
 0x329   : > { %v4632_v49 = vpop.f32.mrf.mxu1 }
 0x32a   : > { %v2893_v32 = vmax.f32 %v2725_v37, 0.0  ;;  %v2943_v56 = vpack.c.bf16 %v2895_v45, %v2894_v47  ;;  %v2746_v14 = vadd.f32 %v4632_v49, %v5582_v57  ;;  %v4841_v37 = vld [vmem:[%s5843_s14 + $0x78] sm:$0xff]  }
 0x32b   : > { %v2737_v55 = vpop.f32.mrf.mxu1  ;;  %v4842_v49 = vld [vmem:[%s5843_s14 + $0x38] sm:$0xff]   ;;  %4364 = vmatprep.subr.bf16.mxu1 %v4841_v37 }
 0x32c   : > { %v2942_v35 = vpack.c.bf16 %v2893_v32, %v2892_v25  ;;  %v2738_v51 = vadd.f32 %v5582_v57, %v2737_v55  ;;  %v2898_v62 = vmax.f32 %v2746_v14, 0.0  ;;  %4365 = vmatpush3.bf16.msra.mxu1 %v4842_v49 }
 0x32d   : > { %v4633_v58 = vpop.f32.mrf.mxu1 }
 0x32e   : > { %4702 = vmatprep.mubr.msk.bf16.mxu0 %vm3015_vm11, %v2942_v35  ;;  %v2749_v39 = vadd.f32 %v4633_v58, %v5582_v57  ;;  %v2896_v12 = vmax.f32 %v2738_v51, 0.0 }
 0x32f   : > { %4703 = vmatmul.mubr.msk.bf16.gmra.mxu0 %vm3015_vm11, %v2943_v56  ;;  %v2740_v48 = vpop.f32.mrf.mxu1 }
 0x330   : > { %v2899_v63 = vmax.f32 %v2749_v39, 0.0  ;;  %v2741_v30 = vadd.f32 %v5582_v57, %v2740_v48 }
 0x331   : > { %v4636_v0 = vpop.f32.mrf.mxu1 }
 0x332   : > { %v2897_v4 = vmax.f32 %v2741_v30, 0.0  ;;  %v2945_v38 = vpack.c.bf16 %v2899_v63, %v2898_v62  ;;  %v2762_v2 = vadd.f32 %v4636_v0, %v5582_v57 }
 0x333   : > { %v2753_v8 = vpop.f32.mrf.mxu1 }
 0x334   : > { %v2944_v34 = vpack.c.bf16 %v2897_v4, %v2896_v12  ;;  %v2754_v53 = vadd.f32 %v5582_v57, %v2753_v8  ;;  %v2902_v23 = vmax.f32 %v2762_v2, 0.0  ;;  %v4844_v2 = vld [vmem:[%s5843_s14 + $0x30] sm:$0xff]  }
 0x335   : > { %v4637_v7 = vpop.f32.mrf.mxu1 }
 0x336   : > { %v2765_v36 = vadd.f32 %v4637_v7, %v5582_v57  ;;  %4706 = vmatprep.mubr.msk.bf16.mxu0 %vm3015_vm11, %v2944_v34  ;;  %v2900_v10 = vmax.f32 %v2754_v53, 0.0 }
 0x337   : > { %v2756_v43 = vpop.f32.mrf.mxu1  ;;  %4707 = vmatmul.mubr.msk.bf16.gmra.mxu0 %vm3015_vm11, %v2945_v38  ;;  %v4843_v38 = vld [vmem:[%s5843_s14 + $0x70] sm:$0xff]  }
 0x338   : > { %v2903_v50 = vmax.f32 %v2765_v36, 0.0  ;;  %v2757_v3 = vadd.f32 %v5582_v57, %v2756_v43  ;;  %4366 = vmatprep.subr.bf16.mxu1 %v4843_v38 }
 0x339   : > { %v4640_v5 = vpop.f32.mrf.mxu1  ;;  %4367 = vmatpush3.bf16.msra.mxu1 %v4844_v2 }
 0x33a   : > { %v2901_v13 = vmax.f32 %v2757_v3, 0.0  ;;  %v2947_v15 = vpack.c.bf16 %v2903_v50, %v2902_v23  ;;  %v2778_v24 = vadd.f32 %v4640_v5, %v5582_v57 }
 0x33b   : > { %v2769_v46 = vpop.f32.mrf.mxu1 }
 0x33c   : > { %v2946_v42 = vpack.c.bf16 %v2901_v13, %v2900_v10  ;;  %v2770_v19 = vadd.f32 %v5582_v57, %v2769_v46  ;;  %v2906_v20 = vmax.f32 %v2778_v24, 0.0  ;;  %v4845_v46 = vld [vmem:[%s5843_s14 + $0x68] sm:$0xff]  }
 0x33d   : > { %v4641_v40 = vpop.f32.mrf.mxu1  ;;  %4368 = vmatprep.subr.bf16.mxu1 %v4845_v46 }
 0x33e   : > { %v2781_v33 = vadd.f32 %v4641_v40, %v5582_v57  ;;  %4710 = vmatprep.mubr.msk.bf16.mxu0 %vm3015_vm11, %v2946_v42  ;;  %v2904_v21 = vmax.f32 %v2770_v19, 0.0  ;;  %v4846_v42 = vld [vmem:[%s5843_s14 + $0x28] sm:$0xff]   ;;  %v4847_v19 = vld [vmem:[%s5843_s14 + $0x60] sm:$0xff]  }
 0x33f   : > { %v2772_v1 = vpop.f32.mrf.mxu1  ;;  %4711 = vmatmul.mubr.msk.bf16.gmra.mxu0 %vm3015_vm11, %v2947_v15  ;;  %4369 = vmatpush3.bf16.msra.mxu1 %v4846_v42 }
 0x340   : > { %v2907_v22 = vmax.f32 %v2781_v33, 0.0  ;;  %v2773_v26 = vadd.f32 %v5582_v57, %v2772_v1  ;;  %4370 = vmatprep.subr.bf16.mxu1 %v4847_v19 }
 0x341   : > { %v4644_v16 = vpop.f32.mrf.mxu1 }
 0x342   : > { %v2905_v61 = vmax.f32 %v2773_v26, 0.0  ;;  %v2949_v60 = vpack.c.bf16 %v2907_v22, %v2906_v20  ;;  %v2794_v29 = vadd.f32 %v4644_v16, %v5582_v57  ;;  %v4848_v26 = vld [vmem:[%s5843_s14 + $0x20] sm:$0xff]  }
 0x343   : > { %v2785_v18 = vpop.f32.mrf.mxu1  ;;  %4371 = vmatpush3.bf16.msra.mxu1 %v4848_v26 }
 0x344   : > { %v2948_v28 = vpack.c.bf16 %v2905_v61, %v2904_v21  ;;  %v2786_v17 = vadd.f32 %v5582_v57, %v2785_v18  ;;  %v2910_v9 = vmax.f32 %v2794_v29, 0.0  ;;  %v4849_v61 = vld [vmem:[%s5843_s14 + $0x58] sm:$0xff]  }
 0x345   : > { %v4645_v31 = vpop.f32.mrf.mxu1  ;;  %4372 = vmatprep.subr.bf16.mxu1 %v4849_v61 }
 0x346   : > { %v2797_v41 = vadd.f32 %v4645_v31, %v5582_v57  ;;  %4714 = vmatprep.mubr.msk.bf16.mxu0 %vm3015_vm11, %v2948_v28  ;;  %v2908_v54 = vmax.f32 %v2786_v17, 0.0 }
 0x347   : > { %v2788_v44 = vpop.f32.mrf.mxu1  ;;  %4715 = vmatmul.mubr.msk.bf16.gmra.mxu0 %vm3015_vm11, %v2949_v60 }
 0x348   : > { %v2911_v6 = vmax.f32 %v2797_v41, 0.0  ;;  %v2789_v47 = vadd.f32 %v5582_v57, %v2788_v44  ;;  %v4850_v41 = vld [vmem:[%s5843_s14 + $0x18] sm:$0xff]  }
 0x349   : > { %4373 = vmatpush3.bf16.msra.mxu1 %v4850_v41 }
 0x34a   : > { %v2909_v11 = vmax.f32 %v2789_v47, 0.0  ;;  %v2951_v25 = vpack.c.bf16 %v2911_v6, %v2910_v9 }
 0x34c   : > { %v2950_v45 = vpack.c.bf16 %v2909_v11, %v2908_v54 }
 0x34e   : > { %4718 = vmatprep.mubr.msk.bf16.mxu0 %vm3015_vm11, %v2950_v45 }
 0x34f   : > { %4719 = vmatmul.mubr.msk.bf16.gmra.mxu0 %vm3015_vm11, %v2951_v25 }
 0x397   : > { %v4648_v32 = vpop.f32.mrf.mxu1 }
 0x398   : > { %v2810_v51 = vadd.f32 %v4648_v32, %v5582_v57  ;;  %v5713_v32 = vld [vmem:[%s5842_s13] ss:$0 sm:$0xff] }
 0x399   : > { %v2801_v56 = vpop.f32.mrf.mxu1 }
 0x39a   : > { %v2802_v55 = vadd.f32 %v5582_v57, %v2801_v56  ;;  %v2914_v30 = vmax.f32 %v2810_v51, 0.0 }
 0x39b   : > { %v4649_v14 = vpop.f32.mrf.mxu1 }
 0x39c   : > { %v2813_v35 = vadd.f32 %v4649_v14, %v5582_v57  ;;  %v2912_v12 = vmax.f32 %v2802_v55, 0.0 }
 0x39d   : > { %v2804_v58 = vpop.f32.mrf.mxu1 }
 0x39e   : > { %v2805_v39 = vadd.f32 %v5582_v57, %v2804_v58  ;;  %v2915_v62 = vmax.f32 %v2813_v35, 0.0 }
 0x39f   : > { %v4652_v48 = vpop.f32.mrf.mxu1 }
 0x3a0   : > { %v2913_v63 = vmax.f32 %v2805_v39, 0.0  ;;  %v2953_v8 = vpack.c.bf16 %v2915_v62, %v2914_v30  ;;  %v2826_v36 = vadd.f32 %v4652_v48, %v5582_v57 }
 0x3a1   : > { %v2817_v0 = vpop.f32.mrf.mxu1 }
 0x3a2   : > { %v2952_v4 = vpack.c.bf16 %v2913_v63, %v2912_v12  ;;  %v2818_v53 = vadd.f32 %v5582_v57, %v2817_v0  ;;  %v2918_v13 = vmax.f32 %v2826_v36, 0.0 }
 0x3a3   : > { %v4653_v34 = vpop.f32.mrf.mxu1 }
 0x3a4   : > { %v2829_v7 = vadd.f32 %v4653_v34, %v5582_v57  ;;  %4722 = vmatprep.mubr.msk.bf16.mxu0 %vm3015_vm11, %v2952_v4  ;;  %v2916_v3 = vmax.f32 %v2818_v53, 0.0 }
 0x3a5   : > { %v2820_v23 = vpop.f32.mrf.mxu1  ;;  %4723 = vmatmul.mubr.msk.bf16.gmra.mxu0 %vm3015_vm11, %v2953_v8 }
 0x3a6   : > { %v2821_v43 = vadd.f32 %v5582_v57, %v2820_v23  ;;  %v2919_v10 = vmax.f32 %v2829_v7, 0.0 }
 0x3a7   : > { %v4656_v50 = vpop.f32.mrf.mxu1 }
 0x3a8   : > { %v2917_v5 = vmax.f32 %v2821_v43, 0.0  ;;  %v2955_v40 = vpack.c.bf16 %v2919_v10, %v2918_v13  ;;  %v2842_v21 = vadd.f32 %v4656_v50, %v5582_v57 }
 0x3a9   : > { %v2833_v15 = vpop.f32.mrf.mxu1 }
 0x3aa   : > { %v2954_v24 = vpack.c.bf16 %v2917_v5, %v2916_v3  ;;  %v2834_v20 = vadd.f32 %v5582_v57, %v2833_v15  ;;  %v2922_v17 = vmax.f32 %v2842_v21, 0.0 }
 0x3ab   : > { %v4657_v33 = vpop.f32.mrf.mxu1 }
 0x3ac   : > { %v2845_v1 = vadd.f32 %v4657_v33, %v5582_v57  ;;  %4726 = vmatprep.mubr.msk.bf16.mxu0 %vm3015_vm11, %v2954_v24  ;;  %v2920_v18 = vmax.f32 %v2834_v20, 0.0 }
 0x3ad   : > { %v2836_v22 = vpop.f32.mrf.mxu1  ;;  %4727 = vmatmul.mubr.msk.bf16.gmra.mxu0 %vm3015_vm11, %v2955_v40 }
 0x3ae   : > { %v2837_v16 = vadd.f32 %v5582_v57, %v2836_v22  ;;  %v2923_v60 = vmax.f32 %v2845_v1, 0.0 }
 0x3af   : > { %v4660_v29 = vpop.f32.mrf.mxu1 }
 0x3b0   : > { %v2921_v28 = vmax.f32 %v2837_v16, 0.0  ;;  %v2957_v44 = vpack.c.bf16 %v2923_v60, %v2922_v17  ;;  %v2858_v11 = vadd.f32 %v4660_v29, %v5582_v57 }
 0x3b1   : > { %v2849_v31 = vpop.f32.mrf.mxu1 }
 0x3b2   : > { %v2956_v9 = vpack.c.bf16 %v2921_v28, %v2920_v18  ;;  %v2850_v6 = vadd.f32 %v5582_v57, %v2849_v31  ;;  %v2926_v55 = vmax.f32 %v2858_v11, 0.0 }
 0x3b3   : > { %v4661_v54 = vpop.f32.mrf.mxu1 }
 0x3b4   : > { %v2861_v47 = vadd.f32 %v4661_v54, %v5582_v57  ;;  %4730 = vmatprep.mubr.msk.bf16.mxu0 %vm3015_vm11, %v2956_v9  ;;  %v2924_v56 = vmax.f32 %v2850_v6, 0.0 }
 0x3b5   : > { %v2852_v25 = vpop.f32.mrf.mxu1  ;;  %4731 = vmatmul.mubr.msk.bf16.gmra.mxu0 %vm3015_vm11, %v2957_v44 }
 0x3b6   : > { %v2853_v45 = vadd.f32 %v5582_v57, %v2852_v25  ;;  %v2927_v37 = vmax.f32 %v2861_v47, 0.0 }
 0x3b7   : > { %v4676_v49 = vpop.f32.mrf.mxu0 }
 0x3b8   : > { %v2925_v14 = vmax.f32 %v2853_v45, 0.0  ;;  %v2959_v39 = vpack.c.bf16 %v2927_v37, %v2926_v55  ;;  %v3155_v48 = vadd.f32 %v4676_v49, %v5713_v32 }
 0x3b9   : > { %v3146_v35 = vpop.f32.mrf.mxu0 }
 0x3ba   : > { %v2958_v51 = vpack.c.bf16 %v2925_v14, %v2924_v56  ;;  %v3147_v58 = vadd.f32 %v5713_v32, %v3146_v35  ;;  %v3403_v4 = vmax.f32 %v3155_v48, 0.0 }
 0x3bb   : > { %v4677_v62 = vpop.f32.mrf.mxu0 }
 0x3bc   : > { %4734 = vmatprep.mubr.msk.bf16.mxu0 %vm3015_vm11, %v2958_v51  ;;  %v3401_v12 = vmax.f32 %v3147_v58, 0.0  ;;  %v3158_v63 = vadd.f32 %v4677_v62, %v5713_v32 }
 0x3bd   : > { %v3149_v57 = vpop.f32.mrf.mxu0  ;;  %4735 = vmatmul.mubr.msk.bf16.gmra.mxu0 %vm3015_vm11, %v2959_v39 }
 0x3be   : > { %v3150_v30 = vadd.f32 %v5713_v32, %v3149_v57  ;;  %v3404_v8 = vmax.f32 %v3158_v63, 0.0 }
 0x3bf   : > { %v4680_v0 = vpop.f32.mrf.mxu0 }
 0x3c0   : > { %v3402_v38 = vmax.f32 %v3150_v30, 0.0  ;;  %v3171_v23 = vadd.f32 %v4680_v0, %v5713_v32 }
 0x3c1   : > { %v3162_v2 = vpop.f32.mrf.mxu0 }
 0x3c2   : > { %v3465_v34 = vmax.f32 %v3401_v12, %v3402_v38  ;;  %v3163_v53 = vadd.f32 %v5713_v32, %v3162_v2  ;;  %v3407_v24 = vmax.f32 %v3171_v23, 0.0 }
 0x3c3   : > { %v4681_v7 = vpop.f32.mrf.mxu0 }
 0x3c4   : > { %v3466_v36 = vmax.f32 %v3465_v34, %v3403_v4  ;;  %v3405_v50 = vmax.f32 %v3163_v53, 0.0  ;;  %v3174_v3 = vadd.f32 %v4681_v7, %v5713_v32 }
 0x3c5   : > { %v3165_v43 = vpop.f32.mrf.mxu0 }
 0x3c6   : > { %v3467_v10 = vmax.f32 %v3466_v36, %v3404_v8  ;;  %v3166_v5 = vadd.f32 %v5713_v32, %v3165_v43  ;;  %v3408_v40 = vmax.f32 %v3174_v3, 0.0 }
 0x3c7   : > { %v4684_v13 = vpop.f32.mrf.mxu0 }
 0x3c8   : > { %v3468_v15 = vrot.slane %v3467_v10, 4  ;;  %v3406_v46 = vmax.f32 %v3166_v5, 0.0  ;;  %v3187_v26 = vadd.f32 %v4684_v13, %v5713_v32 }
 0x3c9   : > { %v3178_v42 = vpop.f32.mrf.mxu0 }
 0x3ca   : > { %v3469_v19 = vmax.f32 %v3467_v10, %v3468_v15  ;;  %v3474_v33 = vmax.f32 %v3405_v50, %v3406_v46  ;;  %v3179_v20 = vadd.f32 %v5713_v32, %v3178_v42  ;;  %v3411_v41 = vmax.f32 %v3187_v26, 0.0 }
 0x3cb   : > { %v4685_v1 = vpop.f32.mrf.mxu0 }
 0x3cc   : > { %v3470_v21 = vrot.slane %v3469_v19, 2  ;;  %v3475_v22 = vmax.f32 %v3474_v33, %v3407_v24  ;;  %v3409_v60 = vmax.f32 %v3179_v20, 0.0  ;;  %v3190_v29 = vadd.f32 %v4685_v1, %v5713_v32 }
 0x3cd   : > { %v3181_v16 = vpop.f32.mrf.mxu0 }
 0x3ce   : > { %v3476_v61 = vmax.f32 %v3475_v22, %v3408_v40  ;;  %v3182_v18 = vadd.f32 %v5713_v32, %v3181_v16  ;;  %v3471_v28 = vmax.f32 %v3469_v19, %v3470_v21  ;;  %v3412_v6 = vmax.f32 %v3190_v29, 0.0 }
 0x3cf   : > { %v4688_v17 = vpop.f32.mrf.mxu0 }
 0x3d0   : > { %v3477_v31 = vrot.slane %v3476_v61, 4  ;;  %v3410_v9 = vmax.f32 %v3182_v18, 0.0  ;;  %v3472_v11 = vrot.slane %v3471_v28, 1  ;;  %v3203_v56 = vadd.f32 %v4688_v17, %v5713_v32 }
 0x3d1   : > { %v3194_v44 = vpop.f32.mrf.mxu0 }
 0x3d2   : > { %v3478_v54 = vmax.f32 %v3476_v61, %v3477_v31  ;;  %v3483_v47 = vmax.f32 %v3409_v60, %v3410_v9  ;;  %v3195_v25 = vadd.f32 %v5713_v32, %v3194_v44  ;;  %v3473_v62 = vmax.f32 %v3471_v28, %v3472_v11 }
 0x3d3   : > { %v4689_v45 = vpop.f32.mrf.mxu0  ;;  %v3415_v63 = vmax.f32 %v3203_v56, 0.0 }
 0x3d4   : > { %v3479_v37 = vrot.slane %v3478_v54, 2  ;;  %v3484_v49 = vmax.f32 %v3483_v47, %v3411_v41  ;;  %v3206_v14 = vadd.f32 %v4689_v45, %v5713_v32  ;;  %v3413_v58 = vmax.f32 %v3195_v25, 0.0 }
 0x3d5   : > { %v3197_v55 = vpop.f32.mrf.mxu0 }
 0x3d6   : > { %v3480_v35 = vmax.f32 %v3478_v54, %v3479_v37  ;;  %v3485_v51 = vmax.f32 %v3484_v49, %v3412_v6  ;;  %v3198_v39 = vadd.f32 %v5713_v32, %v3197_v55  ;;  %v3416_v2 = vmax.f32 %v3206_v14, 0.0 }
 0x3d7   : > { %v4692_v48 = vpop.f32.mrf.mxu0 }
 0x3d8   : > { %v3481_v57 = vrot.slane %v3480_v35, 1  ;;  %v3486_v12 = vrot.slane %v3485_v51, 4  ;;  %v3414_v30 = vmax.f32 %v3198_v39, 0.0  ;;  %v3219_v43 = vadd.f32 %v4692_v48, %v5713_v32 }
 0x3d9   : > { %v3210_v0 = vpop.f32.mrf.mxu0 }
 0x3da   : > { %v3482_v4 = vmax.f32 %v3480_v35, %v3481_v57  ;;  %v3487_v38 = vmax.f32 %v3485_v51, %v3486_v12  ;;  %v3492_v8 = vmax.f32 %v3413_v58, %v3414_v30  ;;  %v3211_v34 = vadd.f32 %v5713_v32, %v3210_v0 }
 0x3db   : > { %v4693_v53 = vpop.f32.mrf.mxu0  ;;  %v3419_v19 = vmax.f32 %v3219_v43, 0.0 }
 0x3dc   : > { %v3664_v7 = vsel %vm3625_vm4, %v3482_v4, %v3473_v62  ;;  %v3488_v36 = vrot.slane %v3487_v38, 2  ;;  %v3493_v23 = vmax.f32 %v3492_v8, %v3415_v63  ;;  %v3222_v10 = vadd.f32 %v4693_v53, %v5713_v32 }
 0x3dd   : > { %v3213_v50 = vpop.f32.mrf.mxu0  ;;  %v3417_v13 = vmax.f32 %v3211_v34, 0.0 }
 0x3de   : > { %v3489_v3 = vmax.f32 %v3487_v38, %v3488_v36  ;;  %v3494_v5 = vmax.f32 %v3493_v23, %v3416_v2  ;;  %v3214_v15 = vadd.f32 %v5713_v32, %v3213_v50  ;;  %v3420_v21 = vmax.f32 %v3222_v10, 0.0 }
 0x3df   : > { %v4696_v24 = vpop.f32.mrf.mxu0 }
 0x3e0   : > { %v3490_v46 = vrot.slane %v3489_v3, 1  ;;  %v3495_v42 = vrot.slane %v3494_v5, 4  ;;  %v3418_v40 = vmax.f32 %v3214_v15, 0.0  ;;  %v3235_v29 = vadd.f32 %v4696_v24, %v5713_v32 }
 0x3e1   : > { %v3226_v33 = vpop.f32.mrf.mxu0 }
 0x3e2   : > { %v3491_v20 = vmax.f32 %v3489_v3, %v3490_v46  ;;  %v3496_v1 = vmax.f32 %v3494_v5, %v3495_v42  ;;  %v3501_v22 = vmax.f32 %v3417_v13, %v3418_v40  ;;  %v3227_v26 = vadd.f32 %v5713_v32, %v3226_v33 }
 0x3e3   : > { %v4697_v16 = vpop.f32.mrf.mxu0  ;;  %v3423_v11 = vmax.f32 %v3235_v29, 0.0 }
 0x3e4   : > { %v3497_v61 = vrot.slane %v3496_v1, 2  ;;  %v3502_v60 = vmax.f32 %v3501_v22, %v3419_v19  ;;  %v3665_v18 = vsel %vm3627_vm5, %v3491_v20, %v3664_v7  ;;  %v3238_v28 = vadd.f32 %v4697_v16, %v5713_v32 }
 0x3e5   : > { %v3229_v17 = vpop.f32.mrf.mxu0  ;;  %v3421_v9 = vmax.f32 %v3227_v26, 0.0 }
 0x3e6   : > { %v3498_v31 = vmax.f32 %v3496_v1, %v3497_v61  ;;  %v3503_v41 = vmax.f32 %v3502_v60, %v3420_v21  ;;  %v3230_v44 = vadd.f32 %v5713_v32, %v3229_v17  ;;  %v3424_v56 = vmax.f32 %v3238_v28, 0.0 }
 0x3e7   : > { %v4700_v54 = vpop.f32.mrf.mxu0 }
 0x3e8   : > { %v3499_v6 = vrot.slane %v3498_v31, 1  ;;  %v3504_v47 = vrot.slane %v3503_v41, 4  ;;  %v3422_v25 = vmax.f32 %v3230_v44, 0.0  ;;  %v3251_v39 = vadd.f32 %v4700_v54, %v5713_v32  ;;  %v4851_v44 = vld [vmem:[%s5843_s14 + $0x50] sm:$0xff]  }
 0x3e9   : > { %v3242_v45 = vpop.f32.mrf.mxu0  ;;  %v4852_v54 = vld [vmem:[%s5843_s14 + $0x10] sm:$0xff]   ;;  %4374 = vmatprep.subr.bf16.mxu1 %v4851_v44 }
 0x3ea   : > { %v3500_v37 = vmax.f32 %v3498_v31, %v3499_v6  ;;  %v3505_v49 = vmax.f32 %v3503_v41, %v3504_v47  ;;  %v3510_v14 = vmax.f32 %v3421_v9, %v3422_v25  ;;  %v3243_v55 = vadd.f32 %v5713_v32, %v3242_v45  ;;  %4375 = vmatpush3.bf16.msra.mxu1 %v4852_v54 }
 0x3eb   : > { %v4701_v35 = vpop.f32.mrf.mxu0  ;;  %v3427_v8 = vmax.f32 %v3251_v39, 0.0 }
 0x3ec   : > { %v3506_v51 = vrot.slane %v3505_v49, 2  ;;  %v3511_v58 = vmax.f32 %v3510_v14, %v3423_v11  ;;  %v3666_v62 = vsel %vm3629_vm6, %v3500_v37, %v3665_v18  ;;  %v3254_v48 = vadd.f32 %v4701_v35, %v5713_v32  ;;  %v4853_v14 = vld [vmem:[%s5843_s14 + $0x48] sm:$0xff]   ;;  %v4855_v35 = vld [vmem:[%s5843_s14 + $0x40] sm:$0xff]  }
 0x3ed   : > { %v3245_v57 = vpop.f32.mrf.mxu0  ;;  %v3425_v30 = vmax.f32 %v3243_v55, 0.0  ;;  %v4854_v55 = vld [vmem:[%s5843_s14 + $0x8] sm:$0xff]   ;;  %4376 = vmatprep.subr.bf16.mxu1 %v4853_v14 }
 0x3ee   : > { %v3507_v12 = vmax.f32 %v3505_v49, %v3506_v51  ;;  %v3512_v63 = vmax.f32 %v3511_v58, %v3424_v56  ;;  %v3246_v0 = vadd.f32 %v5713_v32, %v3245_v57  ;;  %v3428_v23 = vmax.f32 %v3254_v48, 0.0  ;;  %4377 = vmatpush3.bf16.msra.mxu1 %v4854_v55  ;;  %v4856_v51 = vld [vmem:[%s5843_s14] sm:$0xff]  }
 0x3ef   : > { %v4704_v4 = vpop.f32.mrf.mxu0  ;;  %4378 = vmatprep.subr.bf16.mxu1 %v4855_v35 }
 0x3f0   : > { %v3508_v38 = vrot.slane %v3507_v12, 1  ;;  %v3513_v2 = vrot.slane %v3512_v63, 4  ;;  %v3426_v34 = vmax.f32 %v3246_v0, 0.0  ;;  %v3267_v13 = vadd.f32 %v4704_v4, %v5713_v32 }
 0x3f1   : > { %v3258_v53 = vpop.f32.mrf.mxu0 }
 0x3f2   : > { %v3509_v7 = vmax.f32 %v3507_v12, %v3508_v38  ;;  %v3514_v36 = vmax.f32 %v3512_v63, %v3513_v2  ;;  %v3519_v43 = vmax.f32 %v3425_v30, %v3426_v34  ;;  %v3259_v10 = vadd.f32 %v5713_v32, %v3258_v53  ;;  %4379 = vmatpush3.bf16.msra.mxu1 %v4856_v51 }
 0x3f3   : > { %v4705_v50 = vpop.f32.mrf.mxu0  ;;  %v3431_v21 = vmax.f32 %v3267_v13, 0.0 }
 0x3f4   : > { %v3515_v3 = vrot.slane %v3514_v36, 2  ;;  %v3520_v5 = vmax.f32 %v3519_v43, %v3427_v8  ;;  %v3667_v15 = vsel %vm3631_vm7, %v3509_v7, %v3666_v62  ;;  %v3270_v24 = vadd.f32 %v4705_v50, %v5713_v32 }
 0x3f5   : > { %v3261_v46 = vpop.f32.mrf.mxu0  ;;  %v3429_v40 = vmax.f32 %v3259_v10, 0.0 }
 0x3f6   : > { %v3516_v42 = vmax.f32 %v3514_v36, %v3515_v3  ;;  %v3521_v19 = vmax.f32 %v3520_v5, %v3428_v23  ;;  %v3262_v33 = vadd.f32 %v5713_v32, %v3261_v46  ;;  %v3432_v61 = vmax.f32 %v3270_v24, 0.0 }
 0x3f7   : > { %v4708_v58 = vpop.f32.mrf.mxu0 }
 0x3f8   : > { %v3517_v20 = vrot.slane %v3516_v42, 1  ;;  %v3522_v1 = vrot.slane %v3521_v19, 4  ;;  %v3430_v22 = vmax.f32 %v3262_v33, 0.0  ;;  %v3283_v50 = vadd.f32 %v4708_v58, %v5713_v32 }
 0x3f9   : > { %v3274_v39 = vpop.f32.mrf.mxu0 }
 0x3fa   : > { %v3518_v26 = vmax.f32 %v3516_v42, %v3517_v20  ;;  %v3523_v16 = vmax.f32 %v3521_v19, %v3522_v1  ;;  %v3528_v60 = vmax.f32 %v3429_v40, %v3430_v22  ;;  %v3275_v7 = vadd.f32 %v5713_v32, %v3274_v39 }
 0x3fb   : > { %v4709_v62 = vpop.f32.mrf.mxu0  ;;  %v3435_v33 = vmax.f32 %v3283_v50, 0.0 }
 0x3fc   : > { %v3524_v29 = vrot.slane %v3523_v16, 2  ;;  %v3529_v18 = vmax.f32 %v3528_v60, %v3431_v21  ;;  %v3668_v28 = vsel %vm3633_vm8, %v3518_v26, %v3667_v15  ;;  %v3433_v5 = vmax.f32 %v3275_v7, 0.0 }
 0x3fd   : > { %v3277_v48 = vpop.f32.mrf.mxu0  ;;  %v3286_v22 = vadd.f32 %v4709_v62, %v5713_v32 }
 0x3fe   : > { %v3525_v17 = vmax.f32 %v3523_v16, %v3524_v29  ;;  %v3530_v31 = vmax.f32 %v3529_v18, %v3432_v61  ;;  %v3278_v36 = vadd.f32 %v5713_v32, %v3277_v48 }
 0x3ff   : > { %v4712_v57 = vpop.f32.mrf.mxu0 }
 0x400   : > { %v3526_v41 = vrot.slane %v3525_v17, 1  ;;  %v3531_v9 = vrot.slane %v3530_v31, 4  ;;  %v3434_v13 = vmax.f32 %v3278_v36, 0.0  ;;  %v3299_v15 = vadd.f32 %v4712_v57, %v5713_v32 }
 0x401   : > { %v3290_v12 = vpop.f32.mrf.mxu0 }
 0x402   : > { %v3532_v6 = vmax.f32 %v3530_v31, %v3531_v9  ;;  %v3527_v47 = vmax.f32 %v3525_v17, %v3526_v41  ;;  %v3291_v23 = vadd.f32 %v5713_v32, %v3290_v12  ;;  %v3537_v26 = vmax.f32 %v3433_v5, %v3434_v13 }
 0x403   : > { %v4713_v63 = vpop.f32.mrf.mxu0  ;;  %v3439_v60 = vmax.f32 %v3299_v15, 0.0 }
 0x404   : > { %v3533_v11 = vrot.slane %v3532_v6, 2  ;;  %v3669_v25 = vsel %vm3635_vm9, %v3527_v47, %v3668_v28  ;;  %v3437_v24 = vmax.f32 %v3291_v23, 0.0  ;;  %v3302_v16 = vadd.f32 %v4713_v63, %v5713_v32 }
 0x405   : > { %v3293_v30 = vpop.f32.mrf.mxu0  ;;  %v3436_v47 = vmax.f32 %v3286_v22, 0.0 }
 0x406   : > { %v3534_v45 = vmax.f32 %v3532_v6, %v3533_v11  ;;  %v3294_v43 = vadd.f32 %v5713_v32, %v3293_v30  ;;  %v3538_v11 = vmax.f32 %v3537_v26, %v3435_v33 }
 0x407   : > { %v4716_v0 = vpop.f32.mrf.mxu0 }
 0x408   : > { %v3535_v37 = vrot.slane %v3534_v45, 1  ;;  %v3438_v46 = vmax.f32 %v3294_v43, 0.0  ;;  %v3315_v61 = vadd.f32 %v4716_v0, %v5713_v32  ;;  %v3539_v12 = vmax.f32 %v3538_v11, %v3436_v47 }
 0x409   : > { %v3306_v4 = vpop.f32.mrf.mxu0 }
 0x40a   : > { %v3536_v49 = vmax.f32 %v3534_v45, %v3535_v37  ;;  %v3307_v42 = vadd.f32 %v5713_v32, %v3306_v4  ;;  %v3546_v29 = vmax.f32 %v3437_v24, %v3438_v46  ;;  %v3443_v45 = vmax.f32 %v3315_v61, 0.0 }
 0x40b   : > { %v4717_v38 = vpop.f32.mrf.mxu0  ;;  %v3540_v5 = vrot.slane %v3539_v12, 4 }
 0x40c   : > { %v5762_v56 = vsel %vm3637_vm10, %v3536_v49, %v3669_v25  ;;  %v3441_v18 = vmax.f32 %v3307_v42, 0.0  ;;  %v3440_v25 = vmax.f32 %v3302_v16, 0.0  ;;  %v3547_v37 = vmax.f32 %v3546_v29, %v3439_v60 }
 0x40d   : > { %v3309_v2 = vpop.f32.mrf.mxu0  ;;  %v3318_v49 = vadd.f32 %v4717_v38, %v5713_v32 }
 0x40e   : > { %v3310_v19 = vadd.f32 %v5713_v32, %v3309_v2  ;;  %v3548_v30 = vmax.f32 %v3547_v37, %v3440_v25 }
 0x40f   : > { %v4720_v8 = vpop.f32.mrf.mxu0  ;;  %v3444_v0 = vmax.f32 %v3318_v49, 0.0 }
 0x410   : > { %v3442_v28 = vmax.f32 %v3310_v19, 0.0  ;;  %v3331_v31 = vadd.f32 %v4720_v8, %v5713_v32  ;;  %v3549_v13 = vrot.slane %v3548_v30, 4 }
 0x411   : > { %v3322_v34 = vpop.f32.mrf.mxu0 }
 0x412   : > { %v3323_v20 = vadd.f32 %v5713_v32, %v3322_v34  ;;  %v3555_v14 = vmax.f32 %v3441_v18, %v3442_v28  ;;  %v3447_v51 = vmax.f32 %v3331_v31, 0.0  ;;  %v3550_v16 = vmax.f32 %v3548_v30, %v3549_v13 }
 0x413   : > { %v4721_v53 = vpop.f32.mrf.mxu0 }
 0x414   : > { %v3445_v9 = vmax.f32 %v3323_v20, 0.0  ;;  %v3334_v58 = vadd.f32 %v4721_v53, %v5713_v32  ;;  %v3556_v4 = vmax.f32 %v3555_v14, %v3443_v45  ;;  %v3551_v47 = vrot.slane %v3550_v16, 2 }
 0x415   : > { %v3325_v10 = vpop.f32.mrf.mxu0 }
 0x416   : > { %v3326_v1 = vadd.f32 %v5713_v32, %v3325_v10  ;;  %v3448_v7 = vmax.f32 %v3334_v58, 0.0  ;;  %v3557_v15 = vmax.f32 %v3556_v4, %v3444_v0 }
 0x418   : > { %v3446_v44 = vmax.f32 %v3326_v1, 0.0  ;;  %v3558_v61 = vrot.slane %v3557_v15, 4 }
 0x41a   : > { %v3564_v39 = vmax.f32 %v3445_v9, %v3446_v44  ;;  %v3559_v11 = vmax.f32 %v3557_v15, %v3558_v61 }
 0x41c   : > { %v3565_v36 = vmax.f32 %v3564_v39, %v3447_v51 }
 0x465   : > { %v4724_v3 = vpop.f32.mrf.mxu0 }
 0x466   : > { %v3347_v62 = vadd.f32 %v4724_v3, %v5713_v32 }
 0x467   : > { %v3338_v40 = vpop.f32.mrf.mxu0 }
 0x468   : > { %v3339_v54 = vadd.f32 %v5713_v32, %v3338_v40  ;;  %v3451_v53 = vmax.f32 %v3347_v62, 0.0  ;;  %v3566_v40 = vmax.f32 %v3565_v36, %v3448_v7 }
 0x469   : > { %v4725_v21 = vpop.f32.mrf.mxu0 }
 0x46a   : > { %v3449_v48 = vmax.f32 %v3339_v54, 0.0  ;;  %v3350_v23 = vadd.f32 %v4725_v21, %v5713_v32  ;;  %v3541_v21 = vmax.f32 %v3539_v12, %v3540_v5  ;;  %v3567_v31 = vrot.slane %v3566_v40, 4 }
 0x46b   : > { %v3341_v17 = vpop.f32.mrf.mxu0 }
 0x46c   : > { %v3342_v41 = vadd.f32 %v5713_v32, %v3341_v17  ;;  %v3452_v33 = vmax.f32 %v3350_v23, 0.0 }
 0x46d   : > { %v4728_v6 = vpop.f32.mrf.mxu0 }
 0x46e   : > { %v3450_v55 = vmax.f32 %v3342_v41, 0.0  ;;  %v3363_v38 = vadd.f32 %v4728_v6, %v5713_v32  ;;  %v3542_v6 = vrot.slane %v3541_v21, 2 }
 0x46f   : > { %v3354_v35 = vpop.f32.mrf.mxu0 }
 0x470   : > { %v3355_v63 = vadd.f32 %v5713_v32, %v3354_v35  ;;  %v3573_v2 = vmax.f32 %v3449_v48, %v3450_v55  ;;  %v3455_v42 = vmax.f32 %v3363_v38, 0.0  ;;  %v3568_v55 = vmax.f32 %v3566_v40, %v3567_v31 }
 0x471   : > { %v4729_v57 = vpop.f32.mrf.mxu0  ;;  %v3543_v62 = vmax.f32 %v3541_v21, %v3542_v6  ;;  %v3552_v48 = vmax.f32 %v3550_v16, %v3551_v47 }
 0x472   : > { %v3453_v10 = vmax.f32 %v3355_v63, 0.0  ;;  %v3366_v50 = vadd.f32 %v4729_v57, %v5713_v32  ;;  %v3574_v24 = vmax.f32 %v3573_v2, %v3451_v53  ;;  %v3560_v57 = vrot.slane %v3559_v11, 2 }
 0x473   : > { %v3357_v8 = vpop.f32.mrf.mxu0  ;;  %v3544_v53 = vrot.slane %v3543_v62, 1  ;;  %v3553_v23 = vrot.slane %v3552_v48, 1 }
 0x474   : > { %v3358_v34 = vadd.f32 %v5713_v32, %v3357_v8  ;;  %v3456_v1 = vmax.f32 %v3366_v50, 0.0  ;;  %v3575_v60 = vmax.f32 %v3574_v24, %v3452_v33  ;;  %v3569_v8 = vrot.slane %v3568_v55, 2 }
 0x475   : > { %v4732_v43 = vpop.f32.mrf.mxu0  ;;  %v3545_v33 = vmax.f32 %v3543_v62, %v3544_v53 }
 0x476   : > { %v3454_v3 = vmax.f32 %v3358_v34, 0.0  ;;  %v3379_v28 = vadd.f32 %v4732_v43, %v5713_v32  ;;  %v3576_v25 = vrot.slane %v3575_v60, 4  ;;  %v3561_v43 = vmax.f32 %v3559_v11, %v3560_v57 }
 0x477   : > { %v3370_v46 = vpop.f32.mrf.mxu0  ;;  %v3570_v15 = vmax.f32 %v3568_v55, %v3569_v8 }
 0x478   : > { %v3582_v19 = vmax.f32 %v3453_v10, %v3454_v3  ;;  %v3371_v26 = vadd.f32 %v5713_v32, %v3370_v46  ;;  %v3459_v49 = vmax.f32 %v3379_v28, 0.0  ;;  %v3577_v12 = vmax.f32 %v3575_v60, %v3576_v25 }
 0x479   : > { %v4733_v20 = vpop.f32.mrf.mxu0 }
 0x47a   : > { %v3583_v22 = vmax.f32 %v3582_v19, %v3455_v42  ;;  %v3457_v9 = vmax.f32 %v3371_v26, 0.0  ;;  %v3382_v44 = vadd.f32 %v4733_v20, %v5713_v32  ;;  %v3578_v10 = vrot.slane %v3577_v12, 2 }
 0x47b   : > { %v3373_v29 = vpop.f32.mrf.mxu0  ;;  %v3562_v19 = vrot.slane %v3561_v43, 1  ;;  %v3554_v20 = vmax.f32 %v3552_v48, %v3553_v23  ;;  %v3571_v26 = vrot.slane %v3570_v15, 1 }
 0x47c   : > { %v3584_v18 = vmax.f32 %v3583_v22, %v3456_v1  ;;  %v3374_v17 = vadd.f32 %v5713_v32, %v3373_v29  ;;  %v3460_v51 = vmax.f32 %v3382_v44, 0.0  ;;  %v3579_v40 = vmax.f32 %v3577_v12, %v3578_v10 }
 0x47d   : > { %v4736_v41 = vpop.f32.mrf.mxu0  ;;  %v3563_v16 = vmax.f32 %v3561_v43, %v3562_v19  ;;  %v3671_v60 = vsel %vm3625_vm4, %v3554_v20, %v3545_v33 }
 0x47e   : > { %v3458_v54 = vmax.f32 %v3374_v17, 0.0  ;;  %v3585_v37 = vrot.slane %v3584_v18, 4  ;;  %v3395_v4 = vadd.f32 %v4736_v41, %v5713_v32  ;;  %v3580_v61 = vrot.slane %v3579_v40, 1 }
 0x47f   : > { %v3386_v45 = vpop.f32.mrf.mxu0  ;;  %v3572_v17 = vmax.f32 %v3570_v15, %v3571_v26 }
 0x480   : > { %v3591_v14 = vmax.f32 %v3457_v9, %v3458_v54  ;;  %v3387_v39 = vadd.f32 %v5713_v32, %v3386_v45  ;;  %v3586_v30 = vmax.f32 %v3584_v18, %v3585_v37  ;;  %v3463_v5 = vmax.f32 %v3395_v4, 0.0 }
 0x481   : > { %v4737_v35 = vpop.f32.mrf.mxu0  ;;  %v3581_v41 = vmax.f32 %v3579_v40, %v3580_v61  ;;  %v3672_v9 = vsel %vm3627_vm5, %v3563_v16, %v3671_v60 }
 0x482   : > { %v3592_v58 = vmax.f32 %v3591_v14, %v3459_v49  ;;  %v3461_v34 = vmax.f32 %v3387_v39, 0.0  ;;  %v3398_v7 = vadd.f32 %v4737_v35, %v5713_v32  ;;  %v3587_v50 = vrot.slane %v3586_v30, 2 }
 0x483   : > { %v3389_v63 = vpop.f32.mrf.mxu0  ;;  %v3673_v11 = vsel %vm3629_vm6, %v3572_v17, %v3672_v9 }
 0x484   : > { %v3593_v0 = vmax.f32 %v3592_v58, %v3460_v51  ;;  %v3390_v2 = vadd.f32 %v5713_v32, %v3389_v63  ;;  %v3464_v46 = vmax.f32 %v3398_v7, 0.0  ;;  %v3588_v1 = vmax.f32 %v3586_v30, %v3587_v50  ;;  %v4169_v51 = vld [vmem:[%s5844_s15] ss:$0 sm:$0xff] }
 0x485   : > { %v3674_v25 = vsel %vm3631_vm7, %v3581_v41, %v3673_v11 }
 0x486   : > { %v3594_v38 = vrot.slane %v3593_v0, 4  ;;  %v3462_v36 = vmax.f32 %v3390_v2, 0.0  ;;  %v3589_v29 = vrot.slane %v3588_v1, 1 }
 0x488   : > { %v3595_v3 = vmax.f32 %v3593_v0, %v3594_v38  ;;  %v3600_v13 = vmax.f32 %v3461_v34, %v3462_v36  ;;  %v3590_v44 = vmax.f32 %v3588_v1, %v3589_v29 }
 0x48a   : > { %v3596_v24 = vrot.slane %v3595_v3, 2  ;;  %v3601_v42 = vmax.f32 %v3600_v13, %v3463_v5  ;;  %v3675_v37 = vsel %vm3633_vm8, %v3590_v44, %v3674_v25 }
 0x48c   : > { %v3602_v22 = vmax.f32 %v3601_v42, %v3464_v46  ;;  %v3597_v32 = vmax.f32 %v3595_v3, %v3596_v24 }
 0x48e   : > { %v3603_v21 = vrot.slane %v3602_v22, 4  ;;  %v3598_v28 = vrot.slane %v3597_v32, 1 }
 0x490   : > { %v3604_v18 = vmax.f32 %v3602_v22, %v3603_v21  ;;  %v3599_v6 = vmax.f32 %v3597_v32, %v3598_v28 }
 0x492   : > { %v3605_v31 = vrot.slane %v3604_v18, 2  ;;  %v3676_v49 = vsel %vm3635_vm9, %v3599_v6, %v3675_v37 }
 0x494   : > { %v3606_v54 = vmax.f32 %v3604_v18, %v3605_v31 }
 0x496   : > { %v3607_v47 = vrot.slane %v3606_v54, 1 }
 0x498   : > { %v3608_v45 = vmax.f32 %v3606_v54, %v3607_v47 }
 0x49a   : > { %v3677_v14 = vsel %vm3637_vm10, %v3608_v45, %v3676_v49 }
 0x49b   : > { %v3681_v55 = vpack.c.bf16 %v3677_v14, %v5762_v56 }
 0x49d   : > { %3849 = vmatprep.mubr.bf16.mxu1 %v3681_v55 }
 0x49e   : > { %3850 = vmatmul.mubr.bf16.vlgmr.msra.gmra.mxu1 %v3680_v52 }
 0x55e   : > { %v4380_v35 = vpop.f32.mrf.mxu1 }
 0x560   : > { %v4381_v58 = vpop.f32.mrf.mxu1 }
 0x561   : > { %v4382_v39 = vadd.f32 %v4381_v58, %v4380_v35 }
 0x562   : > { %v4383_v56 = vpop.f32.mrf.mxu1 }
 0x563   : > { %v3852_v62 = vadd.f32 %v4382_v39, %v4169_v51 }
 0x564   : > { %v4384_v48 = vpop.f32.mrf.mxu1 }
 0x565   : > { %3858 = vst [vmem:[%s545_s17] sm:$0xff] %v3852_v62  ;;  %v4385_v59 = vadd.f32 %v4384_v48, %v4383_v56 }
 0x567   : > { %v3855_v27 = vadd.f32 %v4385_v59, %v4169_v51 }
 0x569   : > { %3859 = vst [vmem:[%s545_s17 + $0x8] sm:$0xff] %v3855_v27 }
 0x56a PF: > { %s26_s21 = sadd.s32 1, %s4863_s21  }
 0x56b   : > { %p23_p6 = scmp.ge.s32.totalorder %s26_s21, 4  }
 0x56d   :  { %25 = sbr.rel (!%p23_p6) target bundleno = 2 (0x2), region = 117 }

</bundles_post_ra>
